<compile_context>
chip_gen: v5e
topology: v5e:2x2
jax: 0.10.0
libtpu: 0.0.40
codegen_flags: <defaults>
</compile_context>

<pallas_src>
import functools
import numpy as np
import jax
import jax.numpy as jnp
from jax.experimental import pallas as pl
from jax.experimental.pallas import tpu as pltpu

PAD = 0
LANES = 128


# ------------------------------ fused kernel --------------------------------

def _fused_forward_kernel(emb_ref, enc_ref, tgt_ref, pad_ref,
                          wa_ref, wb_ref, wc_ref, bias_ref, out_ref,
                          *, plan, n_head, d_k, d_v, d_model, d_inner,
                          T, B_BLK, eps):
    """One grid step == B_BLK batch rows: full decoder + fused prediction head."""
    N = B_BLK * T
    hd_k, hd_v = n_head * d_k, n_head * d_v

    def mm(x, w):                        # bf16 MXU operands, f32 accumulation
        return jnp.dot(x.astype(jnp.bfloat16), w,
                       preferred_element_type=jnp.float32)

    def brow(i, w):                      # (1, w) f32 bias/LN row from the slab
        return bias_ref[i:i + 1, :w]

    def layernorm(x, gi, bi):
        mu = jnp.mean(x, axis=-1, keepdims=True)
        xc = x - mu
        var = jnp.mean(xc * xc, axis=-1, keepdims=True)
        return xc * jax.lax.rsqrt(var + eps) * brow(gi, d_model) + brow(bi, d_model)

    def softmax(s):
        s = s - jnp.max(s, axis=-1, keepdims=True)
        e = jnp.exp(s)
        return e * pl.reciprocal(jnp.sum(e, axis=-1, keepdims=True), approx=True)

    def mha(x2d, kv2d, mask3, p):
        # Fused projections: Q (one matmul) and K|V (one matmul).
        q = mm(x2d, wa_ref[p["q_w"]]) + brow(p["q_b"], hd_k)       # 1/sqrt(dk) folded
        kv = mm(kv2d, wb_ref[p["kv_w"]]) + brow(p["kv_b"], hd_k + hd_v)
        q3 = q.reshape(B_BLK, T, hd_k)
        k3 = kv[:, :hd_k].reshape(B_BLK, T, hd_k)
        v3 = kv[:, hd_k:hd_k + hd_v].reshape(B_BLK, T, hd_v)
        ctx = []
        for h in range(n_head):                                    # static head loop
            qh = q3[..., h * d_k:(h + 1) * d_k].astype(jnp.bfloat16)
            kh = k3[..., h * d_k:(h + 1) * d_k].astype(jnp.bfloat16)
            vh = v3[..., h * d_v:(h + 1) * d_v].astype(jnp.bfloat16)
            s = jnp.einsum("bqd,bkd->bqk", qh, kh,
                           preferred_element_type=jnp.float32)     # (B_BLK, T, T)
            if mask3 is not None:                                  # masked_fill(==0,-1e9)
                s = jnp.where(mask3, s, -1e9)
            a = softmax(s)                                         # dropout -> identity
            ctx.append(jnp.einsum("bqk,bkd->bqd", a.astype(jnp.bfloat16), vh,
                                  preferred_element_type=jnp.float32))
        # Concat heads -> single output projection (no per-head accumulation).
        ctx2d = jnp.concatenate(ctx, axis=-1).reshape(N, hd_v)
        o = x2d + brow(p["fc_b"], d_model) + mm(ctx2d, wc_ref[p["fc_w"]])
        return layernorm(o, p["ln_g"], p["ln_b"])                  # dropout -> identity

    def ffn(x2d, p):
        h = jnp.maximum(mm(x2d, wa_ref[p["w1"]]) + brow(p["b1"], d_inner), 0.0)
        o = mm(h, wc_ref[p["w2"]]) + brow(p["b2"], d_model) + x2d  # dropout -> identity
        return layernorm(o, p["ln_g"], p["ln_b"])

    # ---- embedding linear + positional + pre-LN -----------------------------
    emb = emb_ref[...].reshape(N, 2 * d_model)            # bf16 concat(shot, area)
    x = mm(emb, wc_ref[plan["lin_w"]]) + brow(plan["lin_b"], d_model)
    # scale_emb is False -> no d_model**0.5 scaling.
    # TODO(synk): PositionalEncoding / DecoderLayer are not defined in the provided
    # source; a standard sinusoid table (decode mode = offset by encode_length) and
    # the canonical post-LN AIAYN DecoderLayer are used.
    pos = bias_ref[plan["pos"]:plan["pos"] + T, :d_model]  # (T, d_model)
    x = (x.reshape(B_BLK, T, d_model) + pos[None]).reshape(N, d_model)
    x = layernorm(x, plan["dec_ln_g"], plan["dec_ln_b"])

    # ---- causal + pad mask, built in-kernel ----------------------------------
    qi = jax.lax.broadcasted_iota(jnp.int32, (T, T), 0)
    ki = jax.lax.broadcasted_iota(jnp.int32, (T, T), 1)
    causal = ki <= qi
    mask3 = jnp.logical_and(pad_ref[...][:, None, :] > 0.0, causal[None])

    enc2d = enc_ref[...].reshape(N, d_model)               # bf16 encoder output

    # ---- decoder layers -------------------------------------------------------
    for lp in plan["layers"]:
        x = mha(x, x, mask3, lp["slf"])        # masked self-attention
        x = mha(x, enc2d, None, lp["enc"])     # encoder-attention (no mask)
        x = ffn(x, lp["ffn"])

    # ---- fused, lane-padded prediction head (area|shot, bias=False) ----------
    x = x + tgt_ref[...].reshape(N, d_model)
    out = mm(x, wb_ref[plan["head_w"]])                    # (N, out_lanes) lane-dense
    out_ref[...] = out.reshape(B_BLK, T, out.shape[-1])


# ----------------------------- weight packing --------------------------------

def pack_weights(p, cfg, T):
    """Fold 1/sqrt(d_k) into W_q/b_q, fuse K|V and the two output heads, and pack
    everything into 3 bf16 matmul slabs + 1 f32 bias/LN/pos slab (static indices
    recorded in `plan`)."""
    n_head, d_k, d_v = cfg["n_head"], cfg["d_k"], cfg["d_v"]
    d_model = cfg["encode_dim"]
    d_inner = 2 * d_model
    hd_k, hd_v = n_head * d_k, n_head * d_v
    inv_temp = 1.0 / float(d_k) ** 0.5

    # Packing assumptions (hold for this module: n_heads=2, d_k=d_v=d_model,
    # d_inner=2*d_model, shot_dim+area_dim=2*d_model).
    assert hd_k == d_inner and hd_v == cfg["shot_dim"] + cfg["area_dim"]

    b_width = max(LANES, hd_k + hd_v)
    slab_a, slab_b, slab_c, rows = [], [], [], []
    n_rows = 0

    def add(slab, w, width):             # bf16 matmul weight -> slab plane index
        w = jnp.asarray(w, jnp.float32)
        if w.shape[1] < width:
            w = jnp.pad(w, ((0, 0), (0, width - w.shape[1])))
        slab.append(w.astype(jnp.bfloat16))
        return len(slab) - 1

    def add_rows(m):                     # f32 bias/LN/pos rows -> start row index
        nonlocal n_rows
        m = jnp.atleast_2d(jnp.asarray(m, jnp.float32))
        m = jnp.pad(m, ((0, 0), (0, b_width - m.shape[1])))
        rows.append(m)
        idx = n_rows
        n_rows += m.shape[0]
        return idx

    plan = {}
    plan["pos"] = add_rows(
        p["pos_table"][cfg["encode_length"]:cfg["encode_length"] + T])
    plan["lin_b"] = add_rows(p["lin_b"])
    plan["dec_ln_g"] = add_rows(p["dec_ln_g"])
    plan["dec_ln_b"] = add_rows(p["dec_ln_b"])
    plan["lin_w"] = add(slab_c, p["lin_w"], d_model)
    head_w = jnp.concatenate([p["area_dec_w"], p["shot_dec_w"]], axis=1)  # bias=False
    plan["head_w"] = add(slab_b, head_w, b_width)

    def attn_plan(m):
        return dict(
            q_w=add(slab_a, m["w_qs"] * inv_temp, hd_k),
            kv_w=add(slab_b, jnp.concatenate([m["w_ks"], m["w_vs"]], axis=1), b_width),
            fc_w=add(slab_c, m["fc_w"], d_model),
            q_b=add_rows(m["b_qs"] * inv_temp),
            kv_b=add_rows(jnp.concatenate([m["b_ks"], m["b_vs"]])),
            fc_b=add_rows(m["fc_b"]),
            ln_g=add_rows(m["ln_g"]), ln_b=add_rows(m["ln_b"]))

    plan["layers"] = [dict(
        slf=attn_plan(l["slf_attn"]),
        enc=attn_plan(l["enc_attn"]),
        ffn=dict(w1=add(slab_a, l["pos_ffn"]["w1"], hd_k),
                 w2=add(slab_c, l["pos_ffn"]["w2"], d_model),
                 b1=add_rows(l["pos_ffn"]["b1"]),
                 b2=add_rows(l["pos_ffn"]["b2"]),
                 ln_g=add_rows(l["pos_ffn"]["ln_g"]),
                 ln_b=add_rows(l["pos_ffn"]["ln_b"])))
        for l in p["layers"]]

    bias = jnp.concatenate(rows, axis=0)
    if bias.shape[0] % 8:
        bias = jnp.pad(bias, ((0, 8 - bias.shape[0] % 8), (0, 0)))
    return (jnp.stack(slab_a), jnp.stack(slab_b), jnp.stack(slab_c),
            bias.astype(jnp.float32), plan)


# ------------------------------ call wrapper ---------------------------------

def transformer_predictor_forward(params, cfg, input_shot, input_x, input_y,
                                  input_player, encoder_output, target_player,
                                  b_blk=8):
    B, T = input_shot.shape
    d_model = cfg["encode_dim"]
    area_num, shot_num = cfg["area_num"], cfg["shot_num"]

    # ---- plain-JAX glue: embedding gathers, area ELU embedding, pad flags ----
    emb_player = params["player_emb_dec"][input_player].astype(jnp.float32)
    area = jnp.stack([input_x, input_y], axis=-1).astype(jnp.float32)
    ya = area @ params["area_w"] + params["area_b"]
    emb_area = jnp.where(ya > 0.0, ya, jnp.exp(jnp.minimum(ya, 0.0)) - 1.0) + emb_player
    emb_shot = params["shot_emb"][input_shot].astype(jnp.float32) + emb_player
    emb_cat = jnp.concatenate([emb_shot, emb_area], axis=-1).astype(jnp.bfloat16)
    enc_bf = encoder_output.astype(jnp.bfloat16)
    tgt = params["player_emb_pred"][target_player].astype(jnp.float32)
    pad_keys = (input_shot != PAD).astype(jnp.float32)

    # ---- batch-block the grid (pad B up to a multiple of b_blk) --------------
    b_blk = max(1, min(b_blk, B))
    Bp = pl.cdiv(B, b_blk) * b_blk

    def padb(a):
        return a if Bp == B else jnp.pad(a, ((0, Bp - B),) + ((0, 0),) * (a.ndim - 1))

    emb_cat, enc_bf, tgt, pad_keys = (padb(a) for a in
                                      (emb_cat, enc_bf, tgt, pad_keys))

    wa, wb, wc, bias, plan = pack_weights(params, cfg, T)
    out_lanes = wb.shape[2]                                   # >= 128, lane-dense

    kernel = functools.partial(
        _fused_forward_kernel, plan=plan, n_head=cfg["n_head"], d_k=cfg["d_k"],
        d_v=cfg["d_v"], d_model=d_model, d_inner=2 * d_model,
        T=T, B_BLK=b_blk, eps=1e-6)

    def full(a):                         # full-array, VMEM-resident shared weight
        nd = a.ndim
        return pl.BlockSpec(a.shape, lambda b: (0,) * nd)

    out = pl.pallas_call(
        kernel,
        out_shape=jax.ShapeDtypeStruct((Bp, T, out_lanes), jnp.float32),
        grid=(Bp // b_blk,),
        in_specs=[pl.BlockSpec((b_blk, T, 2 * d_model), lambda b: (b, 0, 0)),
                  pl.BlockSpec((b_blk, T, d_model), lambda b: (b, 0, 0)),
                  pl.BlockSpec((b_blk, T, d_model), lambda b: (b, 0, 0)),
                  pl.BlockSpec((b_blk, T), lambda b: (b, 0)),
                  full(wa), full(wb), full(wc), full(bias)],
        out_specs=pl.BlockSpec((b_blk, T, out_lanes), lambda b: (b, 0, 0)),
        compiler_params=pltpu.CompilerParams(
            dimension_semantics=("parallel",)),               # both TCs on v7x
    )(emb_cat, enc_bf, tgt, pad_keys, wa, wb, wc, bias)

    out = out[:B]
    return out[..., :area_num], out[..., area_num:area_num + shot_num]


# ------------------------- plain-JAX f32 reference ---------------------------

def reference_forward(p, cfg, input_shot, input_x, input_y, input_player,
                      encoder_output, target_player):
    n_head, d_k, d_v = cfg["n_head"], cfg["d_k"], cfg["d_v"]

    def layernorm(x, g, b, eps=1e-6):
        mu = x.mean(-1, keepdims=True)
        var = ((x - mu) ** 2).mean(-1, keepdims=True)
        return (x - mu) / jnp.sqrt(var + eps) * g + b

    def mha(m, q_in, k_in, v_in, mask):
        Bq, Tq, _ = q_in.shape
        Tk = k_in.shape[1]
        q = (q_in @ m["w_qs"] + m["b_qs"]).reshape(Bq, Tq, n_head, d_k).transpose(0, 2, 1, 3)
        k = (k_in @ m["w_ks"] + m["b_ks"]).reshape(Bq, Tk, n_head, d_k).transpose(0, 2, 1, 3)
        v = (v_in @ m["w_vs"] + m["b_vs"]).reshape(Bq, Tk, n_head, d_v).transpose(0, 2, 1, 3)
        s = jnp.einsum("bhqd,bhkd->bhqk", q / (d_k ** 0.5), k)
        if mask is not None:
            s = jnp.where(mask[:, None] > 0, s, -1e9)
        a = jax.nn.softmax(s, axis=-1)
        o = jnp.einsum("bhqk,bhkd->bhqd", a, v).transpose(0, 2, 1, 3).reshape(Bq, Tq, -1)
        return layernorm(o @ m["fc_w"] + m["fc_b"] + q_in, m["ln_g"], m["ln_b"])

    def ffn(m, x):
        h = jax.nn.relu(x @ m["w1"] + m["b1"])
        return layernorm(h @ m["w2"] + m["b2"] + x, m["ln_g"], m["ln_b"])

    B, T = input_shot.shape
    trg_mask = jnp.logical_and((input_shot != PAD)[:, None, :],
                               jnp.tril(jnp.ones((T, T), dtype=bool))[None]
                               ).astype(jnp.float32)
    area = jnp.stack([input_x, input_y], -1).astype(jnp.float32)
    emb_player = p["player_emb_dec"][input_player]
    ya = area @ p["area_w"] + p["area_b"]
    emb_area = jnp.where(ya > 0, ya, jnp.exp(jnp.minimum(ya, 0.0)) - 1.0) + emb_player
    emb_shot = p["shot_emb"][input_shot] + emb_player
    x = jnp.concatenate([emb_shot, emb_area], -1) @ p["lin_w"] + p["lin_b"]
    x = x + p["pos_table"][cfg["encode_length"]:cfg["encode_length"] + T][None]
    x = layernorm(x, p["dec_ln_g"], p["dec_ln_b"])
    for l in p["layers"]:
        x = mha(l["slf_attn"], x, x, x, trg_mask)
        x = mha(l["enc_attn"], x, encoder_output, encoder_output, None)
        x = ffn(l["pos_ffn"], x)
    x = x + p["player_emb_pred"][target_player]
    return x @ p["area_dec_w"], x @ p["shot_dec_w"]


# ----------------------------- parameter setup -------------------------------

def sinusoid_table(n_position, d_hid):
    pos = np.arange(n_position, dtype=np.float64)[:, None]
    i = np.arange(d_hid, dtype=np.float64)[None, :]
    angle = pos / np.power(10000.0, 2.0 * (i // 2) / d_hid)
    table = np.zeros((n_position, d_hid), dtype=np.float64)
    table[:, 0::2] = np.sin(angle[:, 0::2])
    table[:, 1::2] = np.cos(angle[:, 1::2])
    return jnp.asarray(table, jnp.float32)


def init_params(cfg, key):
    keys = iter(jax.random.split(key, 128))

    def dense(k_in, k_out):
        return 0.1 * jax.random.normal(next(keys), (k_in, k_out), jnp.float32)

    def emb(n, d):
        t = 0.1 * jax.random.normal(next(keys), (n, d), jnp.float32)
        return t.at[PAD].set(0.0)          # padding_idx = 0

    d_model = cfg["encode_dim"]
    n_head, d_k, d_v = cfg["n_head"], cfg["d_k"], cfg["d_v"]
    d_inner = 2 * d_model

    def mha():
        return dict(w_qs=dense(d_model, n_head * d_k), b_qs=jnp.zeros(n_head * d_k),
                    w_ks=dense(d_model, n_head * d_k), b_ks=jnp.zeros(n_head * d_k),
                    w_vs=dense(d_model, n_head * d_v), b_vs=jnp.zeros(n_head * d_v),
                    fc_w=dense(n_head * d_v, d_model), fc_b=jnp.zeros(d_model),
                    ln_g=jnp.ones(d_model), ln_b=jnp.zeros(d_model))

    def ffn():
        return dict(w1=dense(d_model, d_inner), b1=jnp.zeros(d_inner),
                    w2=dense(d_inner, d_model), b2=jnp.zeros(d_model),
                    ln_g=jnp.ones(d_model), ln_b=jnp.zeros(d_model))

    layers = [dict(slf_attn=mha(), enc_attn=mha(), pos_ffn=ffn())
              for _ in range(cfg["n_layers"])]

    return dict(
        area_w=dense(2, cfg["area_dim"]), area_b=jnp.zeros(cfg["area_dim"]),
        shot_emb=emb(cfg["shot_num"], cfg["shot_dim"]),
        player_emb_dec=emb(cfg["player_num"], cfg["player_dim"]),
        player_emb_pred=emb(cfg["player_num"], cfg["player_dim"]),
        lin_w=dense(cfg["shot_dim"] + cfg["area_dim"], cfg["player_dim"]),
        lin_b=jnp.zeros(cfg["player_dim"]),
        pos_table=sinusoid_table(cfg["max_ball_round"], cfg["shot_dim"]),
        dec_ln_g=jnp.ones(d_model), dec_ln_b=jnp.zeros(d_model),
        layers=layers,
        area_dec_w=dense(d_model, cfg["area_num"]),   # bias=False
        shot_dec_w=dense(d_model, cfg["shot_num"]),   # bias=False
    )


# ----------------------------------- main ------------------------------------

if __name__ == "__main__":
    cfg = dict(n_layers=2, shot_num=12, player_num=6, area_num=10,
               shot_dim=32, area_dim=32, player_dim=32, encode_dim=32,
               encode_length=4, max_ball_round=32, n_head=2)
    cfg["d_k"] = cfg["encode_dim"]
    cfg["d_v"] = cfg["encode_dim"]

    key = jax.random.PRNGKey(0)
    kp, k1, k2, k3, k4, k5, k6 = jax.random.split(key, 7)
    params = init_params(cfg, kp)

    B, T = 16, 8            # batch-blocked kernel: grid = (B // 8,) = (2,)
    input_shot = jax.random.randint(k1, (B, T), 1, cfg["shot_num"])
    input_shot = input_shot.at[0, -1].set(PAD)     # exercise pad mask
    input_player = jax.random.randint(k2, (B, T), 1, cfg["player_num"])
    target_player = jax.random.randint(k3, (B, T), 1, cfg["player_num"])
    input_x = jax.random.uniform(k4, (B, T), jnp.float32)
    input_y = jax.random.uniform(k5, (B, T), jnp.float32)
    encoder_output = 0.1 * jax.random.normal(k6, (B, T, cfg["encode_dim"]),
                                             jnp.float32)

    fwd = jax.jit(functools.partial(transformer_predictor_forward, params, cfg))
    area_logits, shot_logits = fwd(input_shot, input_x, input_y, input_player,
                                   encoder_output, target_player)
    jax.block_until_ready((area_logits, shot_logits))

    assert area_logits.shape == (B, T, cfg["area_num"])
    assert shot_logits.shape == (B, T, cfg["shot_num"])
    assert bool(jnp.all(jnp.isfinite(area_logits)))
    assert bool(jnp.all(jnp.isfinite(shot_logits)))

    # Cross-check the fused bf16-MXU kernel against a plain-JAX f32 reference
    # (loose tolerance: bf16 operands + approximate-reciprocal softmax).
    ref_area, ref_shot = reference_forward(
        params, cfg, input_shot, input_x, input_y, input_player,
        encoder_output, target_player)
    assert float(jnp.max(jnp.abs(area_logits - ref_area))) < 0.2
    assert float(jnp.max(jnp.abs(shot_logits - ref_shot))) < 0.2

    print("KERNEL_OK")
</pallas_src>

<mosaic_0001>
module attributes {stable_mosaic.version = 11 : i64} {
  func.func @_fused_forward_kernel(%arg0: i32, %arg1: memref<8x8x64xbf16, #tpu.memory_space<vmem>>, %arg2: memref<8x8x32xbf16, #tpu.memory_space<vmem>>, %arg3: memref<8x8x32xf32, #tpu.memory_space<vmem>>, %arg4: memref<8x8xf32, #tpu.memory_space<vmem>>, %arg5: memref<6x32x64xbf16, #tpu.memory_space<vmem>>, %arg6: memref<5x32x128xbf16, #tpu.memory_space<vmem>>, %arg7: memref<7x64x32xbf16, #tpu.memory_space<vmem>>, %arg8: memref<40x128xf32, #tpu.memory_space<vmem>>, %arg9: memref<8x8x128xf32, #tpu.memory_space<vmem>>) attributes {dimension_semantics = [#tpu.dimension_semantics<parallel>], iteration_bounds = array<i64: 2>, scalar_prefetch = 0 : i64, scratch_operands = 0 : i64, tpu.core_type = #tpu.core_type<tc>, window_params = [{transform_indices = @transform_0, window_bounds = array<i64: 8, 8, 64>}, {transform_indices = @transform_1, window_bounds = array<i64: 8, 8, 32>}, {transform_indices = @transform_2, window_bounds = array<i64: 8, 8, 32>}, {transform_indices = @transform_3, window_bounds = array<i64: 8, 8>}, {pipeline_mode = #tpu.pipeline_mode<synchronous>, transform_indices = @transform_4, window_bounds = array<i64: 6, 32, 64>}, {pipeline_mode = #tpu.pipeline_mode<synchronous>, transform_indices = @transform_5, window_bounds = array<i64: 5, 32, 128>}, {pipeline_mode = #tpu.pipeline_mode<synchronous>, transform_indices = @transform_6, window_bounds = array<i64: 7, 64, 32>}, {pipeline_mode = #tpu.pipeline_mode<synchronous>, transform_indices = @transform_7, window_bounds = array<i64: 40, 128>}, {transform_indices = @transform_8, window_bounds = array<i64: 8, 8, 128>}]} {
    %c0 = arith.constant 0 : index
    %c0_0 = arith.constant 0 : index
    %c0_1 = arith.constant 0 : index
    %0 = vector.load %arg1[%c0, %c0_0, %c0_1] : memref<8x8x64xbf16, #tpu.memory_space<vmem>>, vector<8x8x64xbf16>
    %1 = vector.shape_cast %0 : vector<8x8x64xbf16> to vector<64x64xbf16>
    %c0_2 = arith.constant 0 : index
    %c0_3 = arith.constant 0 : index
    %c0_4 = arith.constant 0 : index
    %2 = vector.load %arg7[%c0_2, %c0_3, %c0_4] : memref<7x64x32xbf16, #tpu.memory_space<vmem>>, vector<1x64x32xbf16>
    %3 = vector.shape_cast %2 : vector<1x64x32xbf16> to vector<64x32xbf16>
    %cst = arith.constant dense<0.000000e+00> : vector<64x32xf32>
    %4 = tpu.matmul %1, %3, %cst {dimension_numbers = #tpu.dot_dimension_numbers<[1], [0], [0], [1], [0, 0, 1, 1], [], []>} : vector<64x64xbf16>, vector<64x32xbf16>, vector<64x32xf32> -> vector<64x32xf32>
    %c8 = arith.constant 8 : index
    %c0_5 = arith.constant 0 : index
    %5 = vector.load %arg8[%c8, %c0_5] : memref<40x128xf32, #tpu.memory_space<vmem>>, vector<1x32xf32>
    %6 = vector.broadcast %5 : vector<1x32xf32> to vector<64x32xf32>
    %7 = arith.addf %4, %6 : vector<64x32xf32>
    %c0_6 = arith.constant 0 : index
    %c0_7 = arith.constant 0 : index
    %8 = vector.load %arg8[%c0_6, %c0_7] : memref<40x128xf32, #tpu.memory_space<vmem>>, vector<8x32xf32>
    %9 = vector.shape_cast %7 : vector<64x32xf32> to vector<8x8x32xf32>
    %10 = vector.shape_cast %8 : vector<8x32xf32> to vector<1x8x32xf32>
    %11 = vector.broadcast %10 : vector<1x8x32xf32> to vector<8x8x32xf32>
    %12 = arith.addf %9, %11 : vector<8x8x32xf32>
    %13 = vector.shape_cast %12 : vector<8x8x32xf32> to vector<64x32xf32>
    %cst_8 = arith.constant dense<0.000000e+00> : vector<64xf32>
    %14 = vector.multi_reduction <add>, %13, %cst_8 [1] : vector<64x32xf32> to vector<64xf32>
    %15 = vector.shape_cast %14 : vector<64xf32> to vector<64x1xf32>
    %cst_9 = arith.constant 3.200000e+01 : f32
    %16 = vector.broadcast %cst_9 : f32 to vector<64x1xf32>
    %17 = arith.divf %15, %16 : vector<64x1xf32>
    %18 = vector.broadcast %17 : vector<64x1xf32> to vector<64x32xf32>
    %19 = arith.subf %13, %18 : vector<64x32xf32>
    %20 = arith.mulf %19, %19 : vector<64x32xf32>
    %cst_10 = arith.constant dense<0.000000e+00> : vector<64xf32>
    %21 = vector.multi_reduction <add>, %20, %cst_10 [1] : vector<64x32xf32> to vector<64xf32>
    %22 = vector.shape_cast %21 : vector<64xf32> to vector<64x1xf32>
    %cst_11 = arith.constant 3.200000e+01 : f32
    %23 = vector.broadcast %cst_11 : f32 to vector<64x1xf32>
    %24 = arith.divf %22, %23 : vector<64x1xf32>
    %cst_12 = arith.constant 9.99999997E-7 : f32
    %25 = vector.broadcast %cst_12 : f32 to vector<64x1xf32>
    %26 = arith.addf %24, %25 : vector<64x1xf32>
    %27 = math.rsqrt %26 : vector<64x1xf32>
    %28 = vector.broadcast %27 : vector<64x1xf32> to vector<64x32xf32>
    %29 = arith.mulf %19, %28 : vector<64x32xf32>
    %c9 = arith.constant 9 : index
    %c0_13 = arith.constant 0 : index
    %30 = vector.load %arg8[%c9, %c0_13] : memref<40x128xf32, #tpu.memory_space<vmem>>, vector<1x32xf32>
    %31 = vector.broadcast %30 : vector<1x32xf32> to vector<64x32xf32>
    %32 = arith.mulf %29, %31 : vector<64x32xf32>
    %c10 = arith.constant 10 : index
    %c0_14 = arith.constant 0 : index
    %33 = vector.load %arg8[%c10, %c0_14] : memref<40x128xf32, #tpu.memory_space<vmem>>, vector<1x32xf32>
    %34 = vector.broadcast %33 : vector<1x32xf32> to vector<64x32xf32>
    %35 = arith.addf %32, %34 : vector<64x32xf32>
    %36 = tpu.iota {dimensions = array<i32: 0>} : vector<8x8xi32>
    %37 = tpu.iota {dimensions = array<i32: 1>} : vector<8x8xi32>
    %38 = arith.cmpi sle, %37, %36 : vector<8x8xi32>
    %c0_15 = arith.constant 0 : index
    %c0_16 = arith.constant 0 : index
    %39 = vector.load %arg4[%c0_15, %c0_16] : memref<8x8xf32, #tpu.memory_space<vmem>>, vector<8x8xf32>
    %40 = vector.shape_cast %39 : vector<8x8xf32> to vector<8x1x8xf32>
    %cst_17 = arith.constant 0.000000e+00 : f32
    %41 = vector.broadcast %cst_17 : f32 to vector<8x1x8xf32>
    %42 = arith.cmpf ogt, %40, %41 : vector<8x1x8xf32>
    %43 = vector.shape_cast %38 : vector<8x8xi1> to vector<1x8x8xi1>
    %44 = vector.broadcast %42 : vector<8x1x8xi1> to vector<8x8x8xi1>
    %45 = vector.broadcast %43 : vector<1x8x8xi1> to vector<8x8x8xi1>
    %46 = arith.andi %44, %45 : vector<8x8x8xi1>
    %c0_18 = arith.constant 0 : index
    %c0_19 = arith.constant 0 : index
    %c0_20 = arith.constant 0 : index
    %47 = vector.load %arg2[%c0_18, %c0_19, %c0_20] : memref<8x8x32xbf16, #tpu.memory_space<vmem>>, vector<8x8x32xbf16>
    %48 = vector.shape_cast %47 : vector<8x8x32xbf16> to vector<64x32xbf16>
    %c0_21 = arith.constant 0 : index
    %c0_22 = arith.constant 0 : index
    %c0_23 = arith.constant 0 : index
    %49 = vector.load %arg5[%c0_21, %c0_22, %c0_23] : memref<6x32x64xbf16, #tpu.memory_space<vmem>>, vector<1x32x64xbf16>
    %50 = vector.shape_cast %49 : vector<1x32x64xbf16> to vector<32x64xbf16>
    %51 = arith.truncf %35 : vector<64x32xf32> to vector<64x32xbf16>
    %cst_24 = arith.constant dense<0.000000e+00> : vector<64x64xf32>
    %52 = tpu.matmul %51, %50, %cst_24 {dimension_numbers = #tpu.dot_dimension_numbers<[1], [0], [0], [1], [0, 0, 1, 1], [], []>} : vector<64x32xbf16>, vector<32x64xbf16>, vector<64x64xf32> -> vector<64x64xf32>
    %c11 = arith.constant 11 : index
    %c0_25 = arith.constant 0 : index
    %53 = vector.load %arg8[%c11, %c0_25] : memref<40x128xf32, #tpu.memory_space<vmem>>, vector<1x64xf32>
    %54 = vector.broadcast %53 : vector<1x64xf32> to vector<64x64xf32>
    %55 = arith.addf %52, %54 : vector<64x64xf32>
    %c1 = arith.constant 1 : index
    %c0_26 = arith.constant 0 : index
    %c0_27 = arith.constant 0 : index
    %56 = vector.load %arg6[%c1, %c0_26, %c0_27] : memref<5x32x128xbf16, #tpu.memory_space<vmem>>, vector<1x32x128xbf16>
    %57 = vector.shape_cast %56 : vector<1x32x128xbf16> to vector<32x128xbf16>
    %58 = arith.truncf %35 : vector<64x32xf32> to vector<64x32xbf16>
    %cst_28 = arith.constant dense<0.000000e+00> : vector<64x128xf32>
    %59 = tpu.matmul %58, %57, %cst_28 {dimension_numbers = #tpu.dot_dimension_numbers<[1], [0], [0], [1], [0, 0, 1, 1], [], []>} : vector<64x32xbf16>, vector<32x128xbf16>, vector<64x128xf32> -> vector<64x128xf32>
    %c12 = arith.constant 12 : index
    %c0_29 = arith.constant 0 : index
    %60 = vector.load %arg8[%c12, %c0_29] : memref<40x128xf32, #tpu.memory_space<vmem>>, vector<1x128xf32>
    %61 = vector.broadcast %60 : vector<1x128xf32> to vector<64x128xf32>
    %62 = arith.addf %59, %61 : vector<64x128xf32>
    %63 = vector.shape_cast %55 : vector<64x64xf32> to vector<8x8x64xf32>
    %64 = vector.extract_strided_slice %62 {offsets = [0, 0], sizes = [64, 64], strides = [1, 1]} : vector<64x128xf32> to vector<64x64xf32>
    %65 = vector.shape_cast %64 : vector<64x64xf32> to vector<8x8x64xf32>
    %66 = vector.extract_strided_slice %62 {offsets = [0, 64], sizes = [64, 64], strides = [1, 1]} : vector<64x128xf32> to vector<64x64xf32>
    %67 = vector.shape_cast %66 : vector<64x64xf32> to vector<8x8x64xf32>
    %68 = vector.extract_strided_slice %63 {offsets = [0, 0, 0], sizes = [8, 8, 32], strides = [1, 1, 1]} : vector<8x8x64xf32> to vector<8x8x32xf32>
    %69 = arith.truncf %68 : vector<8x8x32xf32> to vector<8x8x32xbf16>
    %70 = vector.extract_strided_slice %65 {offsets = [0, 0, 0], sizes = [8, 8, 32], strides = [1, 1, 1]} : vector<8x8x64xf32> to vector<8x8x32xf32>
    %71 = arith.truncf %70 : vector<8x8x32xf32> to vector<8x8x32xbf16>
    %72 = vector.extract_strided_slice %67 {offsets = [0, 0, 0], sizes = [8, 8, 32], strides = [1, 1, 1]} : vector<8x8x64xf32> to vector<8x8x32xf32>
    %73 = arith.truncf %72 : vector<8x8x32xf32> to vector<8x8x32xbf16>
    "tpu.trace_start"() <{level = 10 : i32, message = "bqd,bkd->bqk"}> : () -> ()
    %cst_30 = arith.constant dense<0.000000e+00> : vector<8x8x8xf32>
    %74 = tpu.matmul %69, %71, %cst_30 {dimension_numbers = #tpu.dot_dimension_numbers<[2], [2], [1], [1], [0, 0, 0, 1, 1, 1], [0], [0]>} : vector<8x8x32xbf16>, vector<8x8x32xbf16>, vector<8x8x8xf32> -> vector<8x8x8xf32>
    %cst_31 = arith.constant -1.000000e+09 : f32
    "tpu.trace_stop"() : () -> ()
    %75 = vector.broadcast %cst_31 : f32 to vector<8x8x8xf32>
    %76 = arith.select %46, %74, %75 : vector<8x8x8xi1>, vector<8x8x8xf32>
    %cst_32 = arith.constant dense<0xFF800000> : vector<8x8xf32>
    %77 = vector.multi_reduction <maximumf>, %76, %cst_32 [2] : vector<8x8x8xf32> to vector<8x8xf32>
    %78 = vector.shape_cast %77 : vector<8x8xf32> to vector<8x8x1xf32>
    %79 = vector.broadcast %78 : vector<8x8x1xf32> to vector<8x8x8xf32>
    %80 = arith.subf %76, %79 : vector<8x8x8xf32>
    %81 = math.exp %80 : vector<8x8x8xf32>
    %cst_33 = arith.constant dense<0.000000e+00> : vector<8x8xf32>
    %82 = vector.multi_reduction <add>, %81, %cst_33 [2] : vector<8x8x8xf32> to vector<8x8xf32>
    %83 = vector.shape_cast %82 : vector<8x8xf32> to vector<8x8x1xf32>
    %84 = tpu.reciprocal %83 {approx = true} : vector<8x8x1xf32> -> vector<8x8x1xf32>
    %85 = vector.broadcast %84 : vector<8x8x1xf32> to vector<8x8x8xf32>
    %86 = arith.mulf %81, %85 : vector<8x8x8xf32>
    %87 = arith.truncf %86 : vector<8x8x8xf32> to vector<8x8x8xbf16>
    "tpu.trace_start"() <{level = 10 : i32, message = "bqk,bkd->bqd"}> : () -> ()
    %cst_34 = arith.constant dense<0.000000e+00> : vector<8x8x32xf32>
    %88 = tpu.matmul %87, %73, %cst_34 {dimension_numbers = #tpu.dot_dimension_numbers<[2], [1], [1], [2], [0, 0, 0, 1, 1, 2], [0], [0]>} : vector<8x8x8xbf16>, vector<8x8x32xbf16>, vector<8x8x32xf32> -> vector<8x8x32xf32>
    "tpu.trace_stop"() : () -> ()
    %89 = vector.extract_strided_slice %63 {offsets = [0, 0, 32], sizes = [8, 8, 32], strides = [1, 1, 1]} : vector<8x8x64xf32> to vector<8x8x32xf32>
    %90 = arith.truncf %89 : vector<8x8x32xf32> to vector<8x8x32xbf16>
    %91 = vector.extract_strided_slice %65 {offsets = [0, 0, 32], sizes = [8, 8, 32], strides = [1, 1, 1]} : vector<8x8x64xf32> to vector<8x8x32xf32>
    %92 = arith.truncf %91 : vector<8x8x32xf32> to vector<8x8x32xbf16>
    %93 = vector.extract_strided_slice %67 {offsets = [0, 0, 32], sizes = [8, 8, 32], strides = [1, 1, 1]} : vector<8x8x64xf32> to vector<8x8x32xf32>
    %94 = arith.truncf %93 : vector<8x8x32xf32> to vector<8x8x32xbf16>
    "tpu.trace_start"() <{level = 10 : i32, message = "bqd,bkd->bqk"}> : () -> ()
    %cst_35 = arith.constant dense<0.000000e+00> : vector<8x8x8xf32>
    %95 = tpu.matmul %90, %92, %cst_35 {dimension_numbers = #tpu.dot_dimension_numbers<[2], [2], [1], [1], [0, 0, 0, 1, 1, 1], [0], [0]>} : vector<8x8x32xbf16>, vector<8x8x32xbf16>, vector<8x8x8xf32> -> vector<8x8x8xf32>
    %cst_36 = arith.constant -1.000000e+09 : f32
    "tpu.trace_stop"() : () -> ()
    %96 = vector.broadcast %cst_36 : f32 to vector<8x8x8xf32>
    %97 = arith.select %46, %95, %96 : vector<8x8x8xi1>, vector<8x8x8xf32>
    %cst_37 = arith.constant dense<0xFF800000> : vector<8x8xf32>
    %98 = vector.multi_reduction <maximumf>, %97, %cst_37 [2] : vector<8x8x8xf32> to vector<8x8xf32>
    %99 = vector.shape_cast %98 : vector<8x8xf32> to vector<8x8x1xf32>
    %100 = vector.broadcast %99 : vector<8x8x1xf32> to vector<8x8x8xf32>
    %101 = arith.subf %97, %100 : vector<8x8x8xf32>
    %102 = math.exp %101 : vector<8x8x8xf32>
    %cst_38 = arith.constant dense<0.000000e+00> : vector<8x8xf32>
    %103 = vector.multi_reduction <add>, %102, %cst_38 [2] : vector<8x8x8xf32> to vector<8x8xf32>
    %104 = vector.shape_cast %103 : vector<8x8xf32> to vector<8x8x1xf32>
    %105 = tpu.reciprocal %104 {approx = true} : vector<8x8x1xf32> -> vector<8x8x1xf32>
    %106 = vector.broadcast %105 : vector<8x8x1xf32> to vector<8x8x8xf32>
    %107 = arith.mulf %102, %106 : vector<8x8x8xf32>
    %108 = arith.truncf %107 : vector<8x8x8xf32> to vector<8x8x8xbf16>
    "tpu.trace_start"() <{level = 10 : i32, message = "bqk,bkd->bqd"}> : () -> ()
    %cst_39 = arith.constant dense<0.000000e+00> : vector<8x8x32xf32>
    %109 = tpu.matmul %108, %94, %cst_39 {dimension_numbers = #tpu.dot_dimension_numbers<[2], [1], [1], [2], [0, 0, 0, 1, 1, 2], [0], [0]>} : vector<8x8x8xbf16>, vector<8x8x32xbf16>, vector<8x8x32xf32> -> vector<8x8x32xf32>
    "tpu.trace_stop"() : () -> ()
    %110 = tpu.concatenate %88, %109 in 2 : vector<8x8x32xf32>, vector<8x8x32xf32> -> vector<8x8x64xf32>
    %111 = vector.shape_cast %110 : vector<8x8x64xf32> to vector<64x64xf32>
    %c13 = arith.constant 13 : index
    %c0_40 = arith.constant 0 : index
    %112 = vector.load %arg8[%c13, %c0_40] : memref<40x128xf32, #tpu.memory_space<vmem>>, vector<1x32xf32>
    %113 = vector.broadcast %112 : vector<1x32xf32> to vector<64x32xf32>
    %114 = arith.addf %35, %113 : vector<64x32xf32>
    %c1_41 = arith.constant 1 : index
    %c0_42 = arith.constant 0 : index
    %c0_43 = arith.constant 0 : index
    %115 = vector.load %arg7[%c1_41, %c0_42, %c0_43] : memref<7x64x32xbf16, #tpu.memory_space<vmem>>, vector<1x64x32xbf16>
    %116 = vector.shape_cast %115 : vector<1x64x32xbf16> to vector<64x32xbf16>
    %117 = arith.truncf %111 : vector<64x64xf32> to vector<64x64xbf16>
    %cst_44 = arith.constant dense<0.000000e+00> : vector<64x32xf32>
    %118 = tpu.matmul %117, %116, %cst_44 {dimension_numbers = #tpu.dot_dimension_numbers<[1], [0], [0], [1], [0, 0, 1, 1], [], []>} : vector<64x64xbf16>, vector<64x32xbf16>, vector<64x32xf32> -> vector<64x32xf32>
    %119 = arith.addf %114, %118 : vector<64x32xf32>
    %cst_45 = arith.constant dense<0.000000e+00> : vector<64xf32>
    %120 = vector.multi_reduction <add>, %119, %cst_45 [1] : vector<64x32xf32> to vector<64xf32>
    %121 = vector.shape_cast %120 : vector<64xf32> to vector<64x1xf32>
    %cst_46 = arith.constant 3.200000e+01 : f32
    %122 = vector.broadcast %cst_46 : f32 to vector<64x1xf32>
    %123 = arith.divf %121, %122 : vector<64x1xf32>
    %124 = vector.broadcast %123 : vector<64x1xf32> to vector<64x32xf32>
    %125 = arith.subf %119, %124 : vector<64x32xf32>
    %126 = arith.mulf %125, %125 : vector<64x32xf32>
    %cst_47 = arith.constant dense<0.000000e+00> : vector<64xf32>
    %127 = vector.multi_reduction <add>, %126, %cst_47 [1] : vector<64x32xf32> to vector<64xf32>
    %128 = vector.shape_cast %127 : vector<64xf32> to vector<64x1xf32>
    %cst_48 = arith.constant 3.200000e+01 : f32
    %129 = vector.broadcast %cst_48 : f32 to vector<64x1xf32>
    %130 = arith.divf %128, %129 : vector<64x1xf32>
    %cst_49 = arith.constant 9.99999997E-7 : f32
    %131 = vector.broadcast %cst_49 : f32 to vector<64x1xf32>
    %132 = arith.addf %130, %131 : vector<64x1xf32>
    %133 = math.rsqrt %132 : vector<64x1xf32>
    %134 = vector.broadcast %133 : vector<64x1xf32> to vector<64x32xf32>
    %135 = arith.mulf %125, %134 : vector<64x32xf32>
    %c14 = arith.constant 14 : index
    %c0_50 = arith.constant 0 : index
    %136 = vector.load %arg8[%c14, %c0_50] : memref<40x128xf32, #tpu.memory_space<vmem>>, vector<1x32xf32>
    %137 = vector.broadcast %136 : vector<1x32xf32> to vector<64x32xf32>
    %138 = arith.mulf %135, %137 : vector<64x32xf32>
    %c15 = arith.constant 15 : index
    %c0_51 = arith.constant 0 : index
    %139 = vector.load %arg8[%c15, %c0_51] : memref<40x128xf32, #tpu.memory_space<vmem>>, vector<1x32xf32>
    %140 = vector.broadcast %139 : vector<1x32xf32> to vector<64x32xf32>
    %141 = arith.addf %138, %140 : vector<64x32xf32>
    %c1_52 = arith.constant 1 : index
    %c0_53 = arith.constant 0 : index
    %c0_54 = arith.constant 0 : index
    %142 = vector.load %arg5[%c1_52, %c0_53, %c0_54] : memref<6x32x64xbf16, #tpu.memory_space<vmem>>, vector<1x32x64xbf16>
    %143 = vector.shape_cast %142 : vector<1x32x64xbf16> to vector<32x64xbf16>
    %144 = arith.truncf %141 : vector<64x32xf32> to vector<64x32xbf16>
    %cst_55 = arith.constant dense<0.000000e+00> : vector<64x64xf32>
    %145 = tpu.matmul %144, %143, %cst_55 {dimension_numbers = #tpu.dot_dimension_numbers<[1], [0], [0], [1], [0, 0, 1, 1], [], []>} : vector<64x32xbf16>, vector<32x64xbf16>, vector<64x64xf32> -> vector<64x64xf32>
    %c16 = arith.constant 16 : index
    %c0_56 = arith.constant 0 : index
    %146 = vector.load %arg8[%c16, %c0_56] : memref<40x128xf32, #tpu.memory_space<vmem>>, vector<1x64xf32>
    %147 = vector.broadcast %146 : vector<1x64xf32> to vector<64x64xf32>
    %148 = arith.addf %145, %147 : vector<64x64xf32>
    %c2 = arith.constant 2 : index
    %c0_57 = arith.constant 0 : index
    %c0_58 = arith.constant 0 : index
    %149 = vector.load %arg6[%c2, %c0_57, %c0_58] : memref<5x32x128xbf16, #tpu.memory_space<vmem>>, vector<1x32x128xbf16>
    %150 = vector.shape_cast %149 : vector<1x32x128xbf16> to vector<32x128xbf16>
    %cst_59 = arith.constant dense<0.000000e+00> : vector<64x128xf32>
    %151 = tpu.matmul %48, %150, %cst_59 {dimension_numbers = #tpu.dot_dimension_numbers<[1], [0], [0], [1], [0, 0, 1, 1], [], []>} : vector<64x32xbf16>, vector<32x128xbf16>, vector<64x128xf32> -> vector<64x128xf32>
    %c17 = arith.constant 17 : index
    %c0_60 = arith.constant 0 : index
    %152 = vector.load %arg8[%c17, %c0_60] : memref<40x128xf32, #tpu.memory_space<vmem>>, vector<1x128xf32>
    %153 = vector.broadcast %152 : vector<1x128xf32> to vector<64x128xf32>
    %154 = arith.addf %151, %153 : vector<64x128xf32>
    %155 = vector.shape_cast %148 : vector<64x64xf32> to vector<8x8x64xf32>
    %156 = vector.extract_strided_slice %154 {offsets = [0, 0], sizes = [64, 64], strides = [1, 1]} : vector<64x128xf32> to vector<64x64xf32>
    %157 = vector.shape_cast %156 : vector<64x64xf32> to vector<8x8x64xf32>
    %158 = vector.extract_strided_slice %154 {offsets = [0, 64], sizes = [64, 64], strides = [1, 1]} : vector<64x128xf32> to vector<64x64xf32>
    %159 = vector.shape_cast %158 : vector<64x64xf32> to vector<8x8x64xf32>
    %160 = vector.extract_strided_slice %155 {offsets = [0, 0, 0], sizes = [8, 8, 32], strides = [1, 1, 1]} : vector<8x8x64xf32> to vector<8x8x32xf32>
    %161 = arith.truncf %160 : vector<8x8x32xf32> to vector<8x8x32xbf16>
    %162 = vector.extract_strided_slice %157 {offsets = [0, 0, 0], sizes = [8, 8, 32], strides = [1, 1, 1]} : vector<8x8x64xf32> to vector<8x8x32xf32>
    %163 = arith.truncf %162 : vector<8x8x32xf32> to vector<8x8x32xbf16>
    %164 = vector.extract_strided_slice %159 {offsets = [0, 0, 0], sizes = [8, 8, 32], strides = [1, 1, 1]} : vector<8x8x64xf32> to vector<8x8x32xf32>
    %165 = arith.truncf %164 : vector<8x8x32xf32> to vector<8x8x32xbf16>
    "tpu.trace_start"() <{level = 10 : i32, message = "bqd,bkd->bqk"}> : () -> ()
    %cst_61 = arith.constant dense<0.000000e+00> : vector<8x8x8xf32>
    %166 = tpu.matmul %161, %163, %cst_61 {dimension_numbers = #tpu.dot_dimension_numbers<[2], [2], [1], [1], [0, 0, 0, 1, 1, 1], [0], [0]>} : vector<8x8x32xbf16>, vector<8x8x32xbf16>, vector<8x8x8xf32> -> vector<8x8x8xf32>
    "tpu.trace_stop"() : () -> ()
    %cst_62 = arith.constant dense<0xFF800000> : vector<8x8xf32>
    %167 = vector.multi_reduction <maximumf>, %166, %cst_62 [2] : vector<8x8x8xf32> to vector<8x8xf32>
    %168 = vector.shape_cast %167 : vector<8x8xf32> to vector<8x8x1xf32>
    %169 = vector.broadcast %168 : vector<8x8x1xf32> to vector<8x8x8xf32>
    %170 = arith.subf %166, %169 : vector<8x8x8xf32>
    %171 = math.exp %170 : vector<8x8x8xf32>
    %cst_63 = arith.constant dense<0.000000e+00> : vector<8x8xf32>
    %172 = vector.multi_reduction <add>, %171, %cst_63 [2] : vector<8x8x8xf32> to vector<8x8xf32>
    %173 = vector.shape_cast %172 : vector<8x8xf32> to vector<8x8x1xf32>
    %174 = tpu.reciprocal %173 {approx = true} : vector<8x8x1xf32> -> vector<8x8x1xf32>
    %175 = vector.broadcast %174 : vector<8x8x1xf32> to vector<8x8x8xf32>
    %176 = arith.mulf %171, %175 : vector<8x8x8xf32>
    %177 = arith.truncf %176 : vector<8x8x8xf32> to vector<8x8x8xbf16>
    "tpu.trace_start"() <{level = 10 : i32, message = "bqk,bkd->bqd"}> : () -> ()
    %cst_64 = arith.constant dense<0.000000e+00> : vector<8x8x32xf32>
    %178 = tpu.matmul %177, %165, %cst_64 {dimension_numbers = #tpu.dot_dimension_numbers<[2], [1], [1], [2], [0, 0, 0, 1, 1, 2], [0], [0]>} : vector<8x8x8xbf16>, vector<8x8x32xbf16>, vector<8x8x32xf32> -> vector<8x8x32xf32>
    "tpu.trace_stop"() : () -> ()
    %179 = vector.extract_strided_slice %155 {offsets = [0, 0, 32], sizes = [8, 8, 32], strides = [1, 1, 1]} : vector<8x8x64xf32> to vector<8x8x32xf32>
    %180 = arith.truncf %179 : vector<8x8x32xf32> to vector<8x8x32xbf16>
    %181 = vector.extract_strided_slice %157 {offsets = [0, 0, 32], sizes = [8, 8, 32], strides = [1, 1, 1]} : vector<8x8x64xf32> to vector<8x8x32xf32>
    %182 = arith.truncf %181 : vector<8x8x32xf32> to vector<8x8x32xbf16>
    %183 = vector.extract_strided_slice %159 {offsets = [0, 0, 32], sizes = [8, 8, 32], strides = [1, 1, 1]} : vector<8x8x64xf32> to vector<8x8x32xf32>
    %184 = arith.truncf %183 : vector<8x8x32xf32> to vector<8x8x32xbf16>
    "tpu.trace_start"() <{level = 10 : i32, message = "bqd,bkd->bqk"}> : () -> ()
    %cst_65 = arith.constant dense<0.000000e+00> : vector<8x8x8xf32>
    %185 = tpu.matmul %180, %182, %cst_65 {dimension_numbers = #tpu.dot_dimension_numbers<[2], [2], [1], [1], [0, 0, 0, 1, 1, 1], [0], [0]>} : vector<8x8x32xbf16>, vector<8x8x32xbf16>, vector<8x8x8xf32> -> vector<8x8x8xf32>
    "tpu.trace_stop"() : () -> ()
    %cst_66 = arith.constant dense<0xFF800000> : vector<8x8xf32>
    %186 = vector.multi_reduction <maximumf>, %185, %cst_66 [2] : vector<8x8x8xf32> to vector<8x8xf32>
    %187 = vector.shape_cast %186 : vector<8x8xf32> to vector<8x8x1xf32>
    %188 = vector.broadcast %187 : vector<8x8x1xf32> to vector<8x8x8xf32>
    %189 = arith.subf %185, %188 : vector<8x8x8xf32>
    %190 = math.exp %189 : vector<8x8x8xf32>
    %cst_67 = arith.constant dense<0.000000e+00> : vector<8x8xf32>
    %191 = vector.multi_reduction <add>, %190, %cst_67 [2] : vector<8x8x8xf32> to vector<8x8xf32>
    %192 = vector.shape_cast %191 : vector<8x8xf32> to vector<8x8x1xf32>
    %193 = tpu.reciprocal %192 {approx = true} : vector<8x8x1xf32> -> vector<8x8x1xf32>
    %194 = vector.broadcast %193 : vector<8x8x1xf32> to vector<8x8x8xf32>
    %195 = arith.mulf %190, %194 : vector<8x8x8xf32>
    %196 = arith.truncf %195 : vector<8x8x8xf32> to vector<8x8x8xbf16>
    "tpu.trace_start"() <{level = 10 : i32, message = "bqk,bkd->bqd"}> : () -> ()
    %cst_68 = arith.constant dense<0.000000e+00> : vector<8x8x32xf32>
    %197 = tpu.matmul %196, %184, %cst_68 {dimension_numbers = #tpu.dot_dimension_numbers<[2], [1], [1], [2], [0, 0, 0, 1, 1, 2], [0], [0]>} : vector<8x8x8xbf16>, vector<8x8x32xbf16>, vector<8x8x32xf32> -> vector<8x8x32xf32>
    "tpu.trace_stop"() : () -> ()
    %198 = tpu.concatenate %178, %197 in 2 : vector<8x8x32xf32>, vector<8x8x32xf32> -> vector<8x8x64xf32>
    %199 = vector.shape_cast %198 : vector<8x8x64xf32> to vector<64x64xf32>
    %c18 = arith.constant 18 : index
    %c0_69 = arith.constant 0 : index
    %200 = vector.load %arg8[%c18, %c0_69] : memref<40x128xf32, #tpu.memory_space<vmem>>, vector<1x32xf32>
    %201 = vector.broadcast %200 : vector<1x32xf32> to vector<64x32xf32>
    %202 = arith.addf %141, %201 : vector<64x32xf32>
    %c2_70 = arith.constant 2 : index
    %c0_71 = arith.constant 0 : index
    %c0_72 = arith.constant 0 : index
    %203 = vector.load %arg7[%c2_70, %c0_71, %c0_72] : memref<7x64x32xbf16, #tpu.memory_space<vmem>>, vector<1x64x32xbf16>
    %204 = vector.shape_cast %203 : vector<1x64x32xbf16> to vector<64x32xbf16>
    %205 = arith.truncf %199 : vector<64x64xf32> to vector<64x64xbf16>
    %cst_73 = arith.constant dense<0.000000e+00> : vector<64x32xf32>
    %206 = tpu.matmul %205, %204, %cst_73 {dimension_numbers = #tpu.dot_dimension_numbers<[1], [0], [0], [1], [0, 0, 1, 1], [], []>} : vector<64x64xbf16>, vector<64x32xbf16>, vector<64x32xf32> -> vector<64x32xf32>
    %207 = arith.addf %202, %206 : vector<64x32xf32>
    %cst_74 = arith.constant dense<0.000000e+00> : vector<64xf32>
    %208 = vector.multi_reduction <add>, %207, %cst_74 [1] : vector<64x32xf32> to vector<64xf32>
    %209 = vector.shape_cast %208 : vector<64xf32> to vector<64x1xf32>
    %cst_75 = arith.constant 3.200000e+01 : f32
    %210 = vector.broadcast %cst_75 : f32 to vector<64x1xf32>
    %211 = arith.divf %209, %210 : vector<64x1xf32>
    %212 = vector.broadcast %211 : vector<64x1xf32> to vector<64x32xf32>
    %213 = arith.subf %207, %212 : vector<64x32xf32>
    %214 = arith.mulf %213, %213 : vector<64x32xf32>
    %cst_76 = arith.constant dense<0.000000e+00> : vector<64xf32>
    %215 = vector.multi_reduction <add>, %214, %cst_76 [1] : vector<64x32xf32> to vector<64xf32>
    %216 = vector.shape_cast %215 : vector<64xf32> to vector<64x1xf32>
    %cst_77 = arith.constant 3.200000e+01 : f32
    %217 = vector.broadcast %cst_77 : f32 to vector<64x1xf32>
    %218 = arith.divf %216, %217 : vector<64x1xf32>
    %cst_78 = arith.constant 9.99999997E-7 : f32
    %219 = vector.broadcast %cst_78 : f32 to vector<64x1xf32>
    %220 = arith.addf %218, %219 : vector<64x1xf32>
    %221 = math.rsqrt %220 : vector<64x1xf32>
    %222 = vector.broadcast %221 : vector<64x1xf32> to vector<64x32xf32>
    %223 = arith.mulf %213, %222 : vector<64x32xf32>
    %c19 = arith.constant 19 : index
    %c0_79 = arith.constant 0 : index
    %224 = vector.load %arg8[%c19, %c0_79] : memref<40x128xf32, #tpu.memory_space<vmem>>, vector<1x32xf32>
    %225 = vector.broadcast %224 : vector<1x32xf32> to vector<64x32xf32>
    %226 = arith.mulf %223, %225 : vector<64x32xf32>
    %c20 = arith.constant 20 : index
    %c0_80 = arith.constant 0 : index
    %227 = vector.load %arg8[%c20, %c0_80] : memref<40x128xf32, #tpu.memory_space<vmem>>, vector<1x32xf32>
    %228 = vector.broadcast %227 : vector<1x32xf32> to vector<64x32xf32>
    %229 = arith.addf %226, %228 : vector<64x32xf32>
    %c2_81 = arith.constant 2 : index
    %c0_82 = arith.constant 0 : index
    %c0_83 = arith.constant 0 : index
    %230 = vector.load %arg5[%c2_81, %c0_82, %c0_83] : memref<6x32x64xbf16, #tpu.memory_space<vmem>>, vector<1x32x64xbf16>
    %231 = vector.shape_cast %230 : vector<1x32x64xbf16> to vector<32x64xbf16>
    %232 = arith.truncf %229 : vector<64x32xf32> to vector<64x32xbf16>
    %cst_84 = arith.constant dense<0.000000e+00> : vector<64x64xf32>
    %233 = tpu.matmul %232, %231, %cst_84 {dimension_numbers = #tpu.dot_dimension_numbers<[1], [0], [0], [1], [0, 0, 1, 1], [], []>} : vector<64x32xbf16>, vector<32x64xbf16>, vector<64x64xf32> -> vector<64x64xf32>
    %c21 = arith.constant 21 : index
    %c0_85 = arith.constant 0 : index
    %234 = vector.load %arg8[%c21, %c0_85] : memref<40x128xf32, #tpu.memory_space<vmem>>, vector<1x64xf32>
    %235 = vector.broadcast %234 : vector<1x64xf32> to vector<64x64xf32>
    %236 = arith.addf %233, %235 : vector<64x64xf32>
    %cst_86 = arith.constant 0.000000e+00 : f32
    %237 = vector.broadcast %cst_86 : f32 to vector<64x64xf32>
    %238 = arith.maximumf %236, %237 : vector<64x64xf32>
    %c3 = arith.constant 3 : index
    %c0_87 = arith.constant 0 : index
    %c0_88 = arith.constant 0 : index
    %239 = vector.load %arg7[%c3, %c0_87, %c0_88] : memref<7x64x32xbf16, #tpu.memory_space<vmem>>, vector<1x64x32xbf16>
    %240 = vector.shape_cast %239 : vector<1x64x32xbf16> to vector<64x32xbf16>
    %241 = arith.truncf %238 : vector<64x64xf32> to vector<64x64xbf16>
    %cst_89 = arith.constant dense<0.000000e+00> : vector<64x32xf32>
    %242 = tpu.matmul %241, %240, %cst_89 {dimension_numbers = #tpu.dot_dimension_numbers<[1], [0], [0], [1], [0, 0, 1, 1], [], []>} : vector<64x64xbf16>, vector<64x32xbf16>, vector<64x32xf32> -> vector<64x32xf32>
    %c22 = arith.constant 22 : index
    %c0_90 = arith.constant 0 : index
    %243 = vector.load %arg8[%c22, %c0_90] : memref<40x128xf32, #tpu.memory_space<vmem>>, vector<1x32xf32>
    %244 = vector.broadcast %243 : vector<1x32xf32> to vector<64x32xf32>
    %245 = arith.addf %242, %244 : vector<64x32xf32>
    %246 = arith.addf %245, %229 : vector<64x32xf32>
    %cst_91 = arith.constant dense<0.000000e+00> : vector<64xf32>
    %247 = vector.multi_reduction <add>, %246, %cst_91 [1] : vector<64x32xf32> to vector<64xf32>
    %248 = vector.shape_cast %247 : vector<64xf32> to vector<64x1xf32>
    %cst_92 = arith.constant 3.200000e+01 : f32
    %249 = vector.broadcast %cst_92 : f32 to vector<64x1xf32>
    %250 = arith.divf %248, %249 : vector<64x1xf32>
    %251 = vector.broadcast %250 : vector<64x1xf32> to vector<64x32xf32>
    %252 = arith.subf %246, %251 : vector<64x32xf32>
    %253 = arith.mulf %252, %252 : vector<64x32xf32>
    %cst_93 = arith.constant dense<0.000000e+00> : vector<64xf32>
    %254 = vector.multi_reduction <add>, %253, %cst_93 [1] : vector<64x32xf32> to vector<64xf32>
    %255 = vector.shape_cast %254 : vector<64xf32> to vector<64x1xf32>
    %cst_94 = arith.constant 3.200000e+01 : f32
    %256 = vector.broadcast %cst_94 : f32 to vector<64x1xf32>
    %257 = arith.divf %255, %256 : vector<64x1xf32>
    %cst_95 = arith.constant 9.99999997E-7 : f32
    %258 = vector.broadcast %cst_95 : f32 to vector<64x1xf32>
    %259 = arith.addf %257, %258 : vector<64x1xf32>
    %260 = math.rsqrt %259 : vector<64x1xf32>
    %261 = vector.broadcast %260 : vector<64x1xf32> to vector<64x32xf32>
    %262 = arith.mulf %252, %261 : vector<64x32xf32>
    %c23 = arith.constant 23 : index
    %c0_96 = arith.constant 0 : index
    %263 = vector.load %arg8[%c23, %c0_96] : memref<40x128xf32, #tpu.memory_space<vmem>>, vector<1x32xf32>
    %264 = vector.broadcast %263 : vector<1x32xf32> to vector<64x32xf32>
    %265 = arith.mulf %262, %264 : vector<64x32xf32>
    %c24 = arith.constant 24 : index
    %c0_97 = arith.constant 0 : index
    %266 = vector.load %arg8[%c24, %c0_97] : memref<40x128xf32, #tpu.memory_space<vmem>>, vector<1x32xf32>
    %267 = vector.broadcast %266 : vector<1x32xf32> to vector<64x32xf32>
    %268 = arith.addf %265, %267 : vector<64x32xf32>
    %c3_98 = arith.constant 3 : index
    %c0_99 = arith.constant 0 : index
    %c0_100 = arith.constant 0 : index
    %269 = vector.load %arg5[%c3_98, %c0_99, %c0_100] : memref<6x32x64xbf16, #tpu.memory_space<vmem>>, vector<1x32x64xbf16>
    %270 = vector.shape_cast %269 : vector<1x32x64xbf16> to vector<32x64xbf16>
    %271 = arith.truncf %268 : vector<64x32xf32> to vector<64x32xbf16>
    %cst_101 = arith.constant dense<0.000000e+00> : vector<64x64xf32>
    %272 = tpu.matmul %271, %270, %cst_101 {dimension_numbers = #tpu.dot_dimension_numbers<[1], [0], [0], [1], [0, 0, 1, 1], [], []>} : vector<64x32xbf16>, vector<32x64xbf16>, vector<64x64xf32> -> vector<64x64xf32>
    %c25 = arith.constant 25 : index
    %c0_102 = arith.constant 0 : index
    %273 = vector.load %arg8[%c25, %c0_102] : memref<40x128xf32, #tpu.memory_space<vmem>>, vector<1x64xf32>
    %274 = vector.broadcast %273 : vector<1x64xf32> to vector<64x64xf32>
    %275 = arith.addf %272, %274 : vector<64x64xf32>
    %c3_103 = arith.constant 3 : index
    %c0_104 = arith.constant 0 : index
    %c0_105 = arith.constant 0 : index
    %276 = vector.load %arg6[%c3_103, %c0_104, %c0_105] : memref<5x32x128xbf16, #tpu.memory_space<vmem>>, vector<1x32x128xbf16>
    %277 = vector.shape_cast %276 : vector<1x32x128xbf16> to vector<32x128xbf16>
    %278 = arith.truncf %268 : vector<64x32xf32> to vector<64x32xbf16>
    %cst_106 = arith.constant dense<0.000000e+00> : vector<64x128xf32>
    %279 = tpu.matmul %278, %277, %cst_106 {dimension_numbers = #tpu.dot_dimension_numbers<[1], [0], [0], [1], [0, 0, 1, 1], [], []>} : vector<64x32xbf16>, vector<32x128xbf16>, vector<64x128xf32> -> vector<64x128xf32>
    %c26 = arith.constant 26 : index
    %c0_107 = arith.constant 0 : index
    %280 = vector.load %arg8[%c26, %c0_107] : memref<40x128xf32, #tpu.memory_space<vmem>>, vector<1x128xf32>
    %281 = vector.broadcast %280 : vector<1x128xf32> to vector<64x128xf32>
    %282 = arith.addf %279, %281 : vector<64x128xf32>
    %283 = vector.shape_cast %275 : vector<64x64xf32> to vector<8x8x64xf32>
    %284 = vector.extract_strided_slice %282 {offsets = [0, 0], sizes = [64, 64], strides = [1, 1]} : vector<64x128xf32> to vector<64x64xf32>
    %285 = vector.shape_cast %284 : vector<64x64xf32> to vector<8x8x64xf32>
    %286 = vector.extract_strided_slice %282 {offsets = [0, 64], sizes = [64, 64], strides = [1, 1]} : vector<64x128xf32> to vector<64x64xf32>
    %287 = vector.shape_cast %286 : vector<64x64xf32> to vector<8x8x64xf32>
    %288 = vector.extract_strided_slice %283 {offsets = [0, 0, 0], sizes = [8, 8, 32], strides = [1, 1, 1]} : vector<8x8x64xf32> to vector<8x8x32xf32>
    %289 = arith.truncf %288 : vector<8x8x32xf32> to vector<8x8x32xbf16>
    %290 = vector.extract_strided_slice %285 {offsets = [0, 0, 0], sizes = [8, 8, 32], strides = [1, 1, 1]} : vector<8x8x64xf32> to vector<8x8x32xf32>
    %291 = arith.truncf %290 : vector<8x8x32xf32> to vector<8x8x32xbf16>
    %292 = vector.extract_strided_slice %287 {offsets = [0, 0, 0], sizes = [8, 8, 32], strides = [1, 1, 1]} : vector<8x8x64xf32> to vector<8x8x32xf32>
    %293 = arith.truncf %292 : vector<8x8x32xf32> to vector<8x8x32xbf16>
    "tpu.trace_start"() <{level = 10 : i32, message = "bqd,bkd->bqk"}> : () -> ()
    %cst_108 = arith.constant dense<0.000000e+00> : vector<8x8x8xf32>
    %294 = tpu.matmul %289, %291, %cst_108 {dimension_numbers = #tpu.dot_dimension_numbers<[2], [2], [1], [1], [0, 0, 0, 1, 1, 1], [0], [0]>} : vector<8x8x32xbf16>, vector<8x8x32xbf16>, vector<8x8x8xf32> -> vector<8x8x8xf32>
    %cst_109 = arith.constant -1.000000e+09 : f32
    "tpu.trace_stop"() : () -> ()
    %295 = vector.broadcast %cst_109 : f32 to vector<8x8x8xf32>
    %296 = arith.select %46, %294, %295 : vector<8x8x8xi1>, vector<8x8x8xf32>
    %cst_110 = arith.constant dense<0xFF800000> : vector<8x8xf32>
    %297 = vector.multi_reduction <maximumf>, %296, %cst_110 [2] : vector<8x8x8xf32> to vector<8x8xf32>
    %298 = vector.shape_cast %297 : vector<8x8xf32> to vector<8x8x1xf32>
    %299 = vector.broadcast %298 : vector<8x8x1xf32> to vector<8x8x8xf32>
    %300 = arith.subf %296, %299 : vector<8x8x8xf32>
    %301 = math.exp %300 : vector<8x8x8xf32>
    %cst_111 = arith.constant dense<0.000000e+00> : vector<8x8xf32>
    %302 = vector.multi_reduction <add>, %301, %cst_111 [2] : vector<8x8x8xf32> to vector<8x8xf32>
    %303 = vector.shape_cast %302 : vector<8x8xf32> to vector<8x8x1xf32>
    %304 = tpu.reciprocal %303 {approx = true} : vector<8x8x1xf32> -> vector<8x8x1xf32>
    %305 = vector.broadcast %304 : vector<8x8x1xf32> to vector<8x8x8xf32>
    %306 = arith.mulf %301, %305 : vector<8x8x8xf32>
    %307 = arith.truncf %306 : vector<8x8x8xf32> to vector<8x8x8xbf16>
    "tpu.trace_start"() <{level = 10 : i32, message = "bqk,bkd->bqd"}> : () -> ()
    %cst_112 = arith.constant dense<0.000000e+00> : vector<8x8x32xf32>
    %308 = tpu.matmul %307, %293, %cst_112 {dimension_numbers = #tpu.dot_dimension_numbers<[2], [1], [1], [2], [0, 0, 0, 1, 1, 2], [0], [0]>} : vector<8x8x8xbf16>, vector<8x8x32xbf16>, vector<8x8x32xf32> -> vector<8x8x32xf32>
    "tpu.trace_stop"() : () -> ()
    %309 = vector.extract_strided_slice %283 {offsets = [0, 0, 32], sizes = [8, 8, 32], strides = [1, 1, 1]} : vector<8x8x64xf32> to vector<8x8x32xf32>
    %310 = arith.truncf %309 : vector<8x8x32xf32> to vector<8x8x32xbf16>
    %311 = vector.extract_strided_slice %285 {offsets = [0, 0, 32], sizes = [8, 8, 32], strides = [1, 1, 1]} : vector<8x8x64xf32> to vector<8x8x32xf32>
    %312 = arith.truncf %311 : vector<8x8x32xf32> to vector<8x8x32xbf16>
    %313 = vector.extract_strided_slice %287 {offsets = [0, 0, 32], sizes = [8, 8, 32], strides = [1, 1, 1]} : vector<8x8x64xf32> to vector<8x8x32xf32>
    %314 = arith.truncf %313 : vector<8x8x32xf32> to vector<8x8x32xbf16>
    "tpu.trace_start"() <{level = 10 : i32, message = "bqd,bkd->bqk"}> : () -> ()
    %cst_113 = arith.constant dense<0.000000e+00> : vector<8x8x8xf32>
    %315 = tpu.matmul %310, %312, %cst_113 {dimension_numbers = #tpu.dot_dimension_numbers<[2], [2], [1], [1], [0, 0, 0, 1, 1, 1], [0], [0]>} : vector<8x8x32xbf16>, vector<8x8x32xbf16>, vector<8x8x8xf32> -> vector<8x8x8xf32>
    %cst_114 = arith.constant -1.000000e+09 : f32
    "tpu.trace_stop"() : () -> ()
    %316 = vector.broadcast %cst_114 : f32 to vector<8x8x8xf32>
    %317 = arith.select %46, %315, %316 : vector<8x8x8xi1>, vector<8x8x8xf32>
    %cst_115 = arith.constant dense<0xFF800000> : vector<8x8xf32>
    %318 = vector.multi_reduction <maximumf>, %317, %cst_115 [2] : vector<8x8x8xf32> to vector<8x8xf32>
    %319 = vector.shape_cast %318 : vector<8x8xf32> to vector<8x8x1xf32>
    %320 = vector.broadcast %319 : vector<8x8x1xf32> to vector<8x8x8xf32>
    %321 = arith.subf %317, %320 : vector<8x8x8xf32>
    %322 = math.exp %321 : vector<8x8x8xf32>
    %cst_116 = arith.constant dense<0.000000e+00> : vector<8x8xf32>
    %323 = vector.multi_reduction <add>, %322, %cst_116 [2] : vector<8x8x8xf32> to vector<8x8xf32>
    %324 = vector.shape_cast %323 : vector<8x8xf32> to vector<8x8x1xf32>
    %325 = tpu.reciprocal %324 {approx = true} : vector<8x8x1xf32> -> vector<8x8x1xf32>
    %326 = vector.broadcast %325 : vector<8x8x1xf32> to vector<8x8x8xf32>
    %327 = arith.mulf %322, %326 : vector<8x8x8xf32>
    %328 = arith.truncf %327 : vector<8x8x8xf32> to vector<8x8x8xbf16>
    "tpu.trace_start"() <{level = 10 : i32, message = "bqk,bkd->bqd"}> : () -> ()
    %cst_117 = arith.constant dense<0.000000e+00> : vector<8x8x32xf32>
    %329 = tpu.matmul %328, %314, %cst_117 {dimension_numbers = #tpu.dot_dimension_numbers<[2], [1], [1], [2], [0, 0, 0, 1, 1, 2], [0], [0]>} : vector<8x8x8xbf16>, vector<8x8x32xbf16>, vector<8x8x32xf32> -> vector<8x8x32xf32>
    "tpu.trace_stop"() : () -> ()
    %330 = tpu.concatenate %308, %329 in 2 : vector<8x8x32xf32>, vector<8x8x32xf32> -> vector<8x8x64xf32>
    %331 = vector.shape_cast %330 : vector<8x8x64xf32> to vector<64x64xf32>
    %c27 = arith.constant 27 : index
    %c0_118 = arith.constant 0 : index
    %332 = vector.load %arg8[%c27, %c0_118] : memref<40x128xf32, #tpu.memory_space<vmem>>, vector<1x32xf32>
    %333 = vector.broadcast %332 : vector<1x32xf32> to vector<64x32xf32>
    %334 = arith.addf %268, %333 : vector<64x32xf32>
    %c4 = arith.constant 4 : index
    %c0_119 = arith.constant 0 : index
    %c0_120 = arith.constant 0 : index
    %335 = vector.load %arg7[%c4, %c0_119, %c0_120] : memref<7x64x32xbf16, #tpu.memory_space<vmem>>, vector<1x64x32xbf16>
    %336 = vector.shape_cast %335 : vector<1x64x32xbf16> to vector<64x32xbf16>
    %337 = arith.truncf %331 : vector<64x64xf32> to vector<64x64xbf16>
    %cst_121 = arith.constant dense<0.000000e+00> : vector<64x32xf32>
    %338 = tpu.matmul %337, %336, %cst_121 {dimension_numbers = #tpu.dot_dimension_numbers<[1], [0], [0], [1], [0, 0, 1, 1], [], []>} : vector<64x64xbf16>, vector<64x32xbf16>, vector<64x32xf32> -> vector<64x32xf32>
    %339 = arith.addf %334, %338 : vector<64x32xf32>
    %cst_122 = arith.constant dense<0.000000e+00> : vector<64xf32>
    %340 = vector.multi_reduction <add>, %339, %cst_122 [1] : vector<64x32xf32> to vector<64xf32>
    %341 = vector.shape_cast %340 : vector<64xf32> to vector<64x1xf32>
    %cst_123 = arith.constant 3.200000e+01 : f32
    %342 = vector.broadcast %cst_123 : f32 to vector<64x1xf32>
    %343 = arith.divf %341, %342 : vector<64x1xf32>
    %344 = vector.broadcast %343 : vector<64x1xf32> to vector<64x32xf32>
    %345 = arith.subf %339, %344 : vector<64x32xf32>
    %346 = arith.mulf %345, %345 : vector<64x32xf32>
    %cst_124 = arith.constant dense<0.000000e+00> : vector<64xf32>
    %347 = vector.multi_reduction <add>, %346, %cst_124 [1] : vector<64x32xf32> to vector<64xf32>
    %348 = vector.shape_cast %347 : vector<64xf32> to vector<64x1xf32>
    %cst_125 = arith.constant 3.200000e+01 : f32
    %349 = vector.broadcast %cst_125 : f32 to vector<64x1xf32>
    %350 = arith.divf %348, %349 : vector<64x1xf32>
    %cst_126 = arith.constant 9.99999997E-7 : f32
    %351 = vector.broadcast %cst_126 : f32 to vector<64x1xf32>
    %352 = arith.addf %350, %351 : vector<64x1xf32>
    %353 = math.rsqrt %352 : vector<64x1xf32>
    %354 = vector.broadcast %353 : vector<64x1xf32> to vector<64x32xf32>
    %355 = arith.mulf %345, %354 : vector<64x32xf32>
    %c28 = arith.constant 28 : index
    %c0_127 = arith.constant 0 : index
    %356 = vector.load %arg8[%c28, %c0_127] : memref<40x128xf32, #tpu.memory_space<vmem>>, vector<1x32xf32>
    %357 = vector.broadcast %356 : vector<1x32xf32> to vector<64x32xf32>
    %358 = arith.mulf %355, %357 : vector<64x32xf32>
    %c29 = arith.constant 29 : index
    %c0_128 = arith.constant 0 : index
    %359 = vector.load %arg8[%c29, %c0_128] : memref<40x128xf32, #tpu.memory_space<vmem>>, vector<1x32xf32>
    %360 = vector.broadcast %359 : vector<1x32xf32> to vector<64x32xf32>
    %361 = arith.addf %358, %360 : vector<64x32xf32>
    %c4_129 = arith.constant 4 : index
    %c0_130 = arith.constant 0 : index
    %c0_131 = arith.constant 0 : index
    %362 = vector.load %arg5[%c4_129, %c0_130, %c0_131] : memref<6x32x64xbf16, #tpu.memory_space<vmem>>, vector<1x32x64xbf16>
    %363 = vector.shape_cast %362 : vector<1x32x64xbf16> to vector<32x64xbf16>
    %364 = arith.truncf %361 : vector<64x32xf32> to vector<64x32xbf16>
    %cst_132 = arith.constant dense<0.000000e+00> : vector<64x64xf32>
    %365 = tpu.matmul %364, %363, %cst_132 {dimension_numbers = #tpu.dot_dimension_numbers<[1], [0], [0], [1], [0, 0, 1, 1], [], []>} : vector<64x32xbf16>, vector<32x64xbf16>, vector<64x64xf32> -> vector<64x64xf32>
    %c30 = arith.constant 30 : index
    %c0_133 = arith.constant 0 : index
    %366 = vector.load %arg8[%c30, %c0_133] : memref<40x128xf32, #tpu.memory_space<vmem>>, vector<1x64xf32>
    %367 = vector.broadcast %366 : vector<1x64xf32> to vector<64x64xf32>
    %368 = arith.addf %365, %367 : vector<64x64xf32>
    %c4_134 = arith.constant 4 : index
    %c0_135 = arith.constant 0 : index
    %c0_136 = arith.constant 0 : index
    %369 = vector.load %arg6[%c4_134, %c0_135, %c0_136] : memref<5x32x128xbf16, #tpu.memory_space<vmem>>, vector<1x32x128xbf16>
    %370 = vector.shape_cast %369 : vector<1x32x128xbf16> to vector<32x128xbf16>
    %cst_137 = arith.constant dense<0.000000e+00> : vector<64x128xf32>
    %371 = tpu.matmul %48, %370, %cst_137 {dimension_numbers = #tpu.dot_dimension_numbers<[1], [0], [0], [1], [0, 0, 1, 1], [], []>} : vector<64x32xbf16>, vector<32x128xbf16>, vector<64x128xf32> -> vector<64x128xf32>
    %c31 = arith.constant 31 : index
    %c0_138 = arith.constant 0 : index
    %372 = vector.load %arg8[%c31, %c0_138] : memref<40x128xf32, #tpu.memory_space<vmem>>, vector<1x128xf32>
    %373 = vector.broadcast %372 : vector<1x128xf32> to vector<64x128xf32>
    %374 = arith.addf %371, %373 : vector<64x128xf32>
    %375 = vector.shape_cast %368 : vector<64x64xf32> to vector<8x8x64xf32>
    %376 = vector.extract_strided_slice %374 {offsets = [0, 0], sizes = [64, 64], strides = [1, 1]} : vector<64x128xf32> to vector<64x64xf32>
    %377 = vector.shape_cast %376 : vector<64x64xf32> to vector<8x8x64xf32>
    %378 = vector.extract_strided_slice %374 {offsets = [0, 64], sizes = [64, 64], strides = [1, 1]} : vector<64x128xf32> to vector<64x64xf32>
    %379 = vector.shape_cast %378 : vector<64x64xf32> to vector<8x8x64xf32>
    %380 = vector.extract_strided_slice %375 {offsets = [0, 0, 0], sizes = [8, 8, 32], strides = [1, 1, 1]} : vector<8x8x64xf32> to vector<8x8x32xf32>
    %381 = arith.truncf %380 : vector<8x8x32xf32> to vector<8x8x32xbf16>
    %382 = vector.extract_strided_slice %377 {offsets = [0, 0, 0], sizes = [8, 8, 32], strides = [1, 1, 1]} : vector<8x8x64xf32> to vector<8x8x32xf32>
    %383 = arith.truncf %382 : vector<8x8x32xf32> to vector<8x8x32xbf16>
    %384 = vector.extract_strided_slice %379 {offsets = [0, 0, 0], sizes = [8, 8, 32], strides = [1, 1, 1]} : vector<8x8x64xf32> to vector<8x8x32xf32>
    %385 = arith.truncf %384 : vector<8x8x32xf32> to vector<8x8x32xbf16>
    "tpu.trace_start"() <{level = 10 : i32, message = "bqd,bkd->bqk"}> : () -> ()
    %cst_139 = arith.constant dense<0.000000e+00> : vector<8x8x8xf32>
    %386 = tpu.matmul %381, %383, %cst_139 {dimension_numbers = #tpu.dot_dimension_numbers<[2], [2], [1], [1], [0, 0, 0, 1, 1, 1], [0], [0]>} : vector<8x8x32xbf16>, vector<8x8x32xbf16>, vector<8x8x8xf32> -> vector<8x8x8xf32>
    "tpu.trace_stop"() : () -> ()
    %cst_140 = arith.constant dense<0xFF800000> : vector<8x8xf32>
    %387 = vector.multi_reduction <maximumf>, %386, %cst_140 [2] : vector<8x8x8xf32> to vector<8x8xf32>
    %388 = vector.shape_cast %387 : vector<8x8xf32> to vector<8x8x1xf32>
    %389 = vector.broadcast %388 : vector<8x8x1xf32> to vector<8x8x8xf32>
    %390 = arith.subf %386, %389 : vector<8x8x8xf32>
    %391 = math.exp %390 : vector<8x8x8xf32>
    %cst_141 = arith.constant dense<0.000000e+00> : vector<8x8xf32>
    %392 = vector.multi_reduction <add>, %391, %cst_141 [2] : vector<8x8x8xf32> to vector<8x8xf32>
    %393 = vector.shape_cast %392 : vector<8x8xf32> to vector<8x8x1xf32>
    %394 = tpu.reciprocal %393 {approx = true} : vector<8x8x1xf32> -> vector<8x8x1xf32>
    %395 = vector.broadcast %394 : vector<8x8x1xf32> to vector<8x8x8xf32>
    %396 = arith.mulf %391, %395 : vector<8x8x8xf32>
    %397 = arith.truncf %396 : vector<8x8x8xf32> to vector<8x8x8xbf16>
    "tpu.trace_start"() <{level = 10 : i32, message = "bqk,bkd->bqd"}> : () -> ()
    %cst_142 = arith.constant dense<0.000000e+00> : vector<8x8x32xf32>
    %398 = tpu.matmul %397, %385, %cst_142 {dimension_numbers = #tpu.dot_dimension_numbers<[2], [1], [1], [2], [0, 0, 0, 1, 1, 2], [0], [0]>} : vector<8x8x8xbf16>, vector<8x8x32xbf16>, vector<8x8x32xf32> -> vector<8x8x32xf32>
    "tpu.trace_stop"() : () -> ()
    %399 = vector.extract_strided_slice %375 {offsets = [0, 0, 32], sizes = [8, 8, 32], strides = [1, 1, 1]} : vector<8x8x64xf32> to vector<8x8x32xf32>
    %400 = arith.truncf %399 : vector<8x8x32xf32> to vector<8x8x32xbf16>
    %401 = vector.extract_strided_slice %377 {offsets = [0, 0, 32], sizes = [8, 8, 32], strides = [1, 1, 1]} : vector<8x8x64xf32> to vector<8x8x32xf32>
    %402 = arith.truncf %401 : vector<8x8x32xf32> to vector<8x8x32xbf16>
    %403 = vector.extract_strided_slice %379 {offsets = [0, 0, 32], sizes = [8, 8, 32], strides = [1, 1, 1]} : vector<8x8x64xf32> to vector<8x8x32xf32>
    %404 = arith.truncf %403 : vector<8x8x32xf32> to vector<8x8x32xbf16>
    "tpu.trace_start"() <{level = 10 : i32, message = "bqd,bkd->bqk"}> : () -> ()
    %cst_143 = arith.constant dense<0.000000e+00> : vector<8x8x8xf32>
    %405 = tpu.matmul %400, %402, %cst_143 {dimension_numbers = #tpu.dot_dimension_numbers<[2], [2], [1], [1], [0, 0, 0, 1, 1, 1], [0], [0]>} : vector<8x8x32xbf16>, vector<8x8x32xbf16>, vector<8x8x8xf32> -> vector<8x8x8xf32>
    "tpu.trace_stop"() : () -> ()
    %cst_144 = arith.constant dense<0xFF800000> : vector<8x8xf32>
    %406 = vector.multi_reduction <maximumf>, %405, %cst_144 [2] : vector<8x8x8xf32> to vector<8x8xf32>
    %407 = vector.shape_cast %406 : vector<8x8xf32> to vector<8x8x1xf32>
    %408 = vector.broadcast %407 : vector<8x8x1xf32> to vector<8x8x8xf32>
    %409 = arith.subf %405, %408 : vector<8x8x8xf32>
    %410 = math.exp %409 : vector<8x8x8xf32>
    %cst_145 = arith.constant dense<0.000000e+00> : vector<8x8xf32>
    %411 = vector.multi_reduction <add>, %410, %cst_145 [2] : vector<8x8x8xf32> to vector<8x8xf32>
    %412 = vector.shape_cast %411 : vector<8x8xf32> to vector<8x8x1xf32>
    %413 = tpu.reciprocal %412 {approx = true} : vector<8x8x1xf32> -> vector<8x8x1xf32>
    %414 = vector.broadcast %413 : vector<8x8x1xf32> to vector<8x8x8xf32>
    %415 = arith.mulf %410, %414 : vector<8x8x8xf32>
    %416 = arith.truncf %415 : vector<8x8x8xf32> to vector<8x8x8xbf16>
    "tpu.trace_start"() <{level = 10 : i32, message = "bqk,bkd->bqd"}> : () -> ()
    %cst_146 = arith.constant dense<0.000000e+00> : vector<8x8x32xf32>
    %417 = tpu.matmul %416, %404, %cst_146 {dimension_numbers = #tpu.dot_dimension_numbers<[2], [1], [1], [2], [0, 0, 0, 1, 1, 2], [0], [0]>} : vector<8x8x8xbf16>, vector<8x8x32xbf16>, vector<8x8x32xf32> -> vector<8x8x32xf32>
    "tpu.trace_stop"() : () -> ()
    %418 = tpu.concatenate %398, %417 in 2 : vector<8x8x32xf32>, vector<8x8x32xf32> -> vector<8x8x64xf32>
    %419 = vector.shape_cast %418 : vector<8x8x64xf32> to vector<64x64xf32>
    %c32 = arith.constant 32 : index
    %c0_147 = arith.constant 0 : index
    %420 = vector.load %arg8[%c32, %c0_147] : memref<40x128xf32, #tpu.memory_space<vmem>>, vector<1x32xf32>
    %421 = vector.broadcast %420 : vector<1x32xf32> to vector<64x32xf32>
    %422 = arith.addf %361, %421 : vector<64x32xf32>
    %c5 = arith.constant 5 : index
    %c0_148 = arith.constant 0 : index
    %c0_149 = arith.constant 0 : index
    %423 = vector.load %arg7[%c5, %c0_148, %c0_149] : memref<7x64x32xbf16, #tpu.memory_space<vmem>>, vector<1x64x32xbf16>
    %424 = vector.shape_cast %423 : vector<1x64x32xbf16> to vector<64x32xbf16>
    %425 = arith.truncf %419 : vector<64x64xf32> to vector<64x64xbf16>
    %cst_150 = arith.constant dense<0.000000e+00> : vector<64x32xf32>
    %426 = tpu.matmul %425, %424, %cst_150 {dimension_numbers = #tpu.dot_dimension_numbers<[1], [0], [0], [1], [0, 0, 1, 1], [], []>} : vector<64x64xbf16>, vector<64x32xbf16>, vector<64x32xf32> -> vector<64x32xf32>
    %427 = arith.addf %422, %426 : vector<64x32xf32>
    %cst_151 = arith.constant dense<0.000000e+00> : vector<64xf32>
    %428 = vector.multi_reduction <add>, %427, %cst_151 [1] : vector<64x32xf32> to vector<64xf32>
    %429 = vector.shape_cast %428 : vector<64xf32> to vector<64x1xf32>
    %cst_152 = arith.constant 3.200000e+01 : f32
    %430 = vector.broadcast %cst_152 : f32 to vector<64x1xf32>
    %431 = arith.divf %429, %430 : vector<64x1xf32>
    %432 = vector.broadcast %431 : vector<64x1xf32> to vector<64x32xf32>
    %433 = arith.subf %427, %432 : vector<64x32xf32>
    %434 = arith.mulf %433, %433 : vector<64x32xf32>
    %cst_153 = arith.constant dense<0.000000e+00> : vector<64xf32>
    %435 = vector.multi_reduction <add>, %434, %cst_153 [1] : vector<64x32xf32> to vector<64xf32>
    %436 = vector.shape_cast %435 : vector<64xf32> to vector<64x1xf32>
    %cst_154 = arith.constant 3.200000e+01 : f32
    %437 = vector.broadcast %cst_154 : f32 to vector<64x1xf32>
    %438 = arith.divf %436, %437 : vector<64x1xf32>
    %cst_155 = arith.constant 9.99999997E-7 : f32
    %439 = vector.broadcast %cst_155 : f32 to vector<64x1xf32>
    %440 = arith.addf %438, %439 : vector<64x1xf32>
    %441 = math.rsqrt %440 : vector<64x1xf32>
    %442 = vector.broadcast %441 : vector<64x1xf32> to vector<64x32xf32>
    %443 = arith.mulf %433, %442 : vector<64x32xf32>
    %c33 = arith.constant 33 : index
    %c0_156 = arith.constant 0 : index
    %444 = vector.load %arg8[%c33, %c0_156] : memref<40x128xf32, #tpu.memory_space<vmem>>, vector<1x32xf32>
    %445 = vector.broadcast %444 : vector<1x32xf32> to vector<64x32xf32>
    %446 = arith.mulf %443, %445 : vector<64x32xf32>
    %c34 = arith.constant 34 : index
    %c0_157 = arith.constant 0 : index
    %447 = vector.load %arg8[%c34, %c0_157] : memref<40x128xf32, #tpu.memory_space<vmem>>, vector<1x32xf32>
    %448 = vector.broadcast %447 : vector<1x32xf32> to vector<64x32xf32>
    %449 = arith.addf %446, %448 : vector<64x32xf32>
    %c5_158 = arith.constant 5 : index
    %c0_159 = arith.constant 0 : index
    %c0_160 = arith.constant 0 : index
    %450 = vector.load %arg5[%c5_158, %c0_159, %c0_160] : memref<6x32x64xbf16, #tpu.memory_space<vmem>>, vector<1x32x64xbf16>
    %451 = vector.shape_cast %450 : vector<1x32x64xbf16> to vector<32x64xbf16>
    %452 = arith.truncf %449 : vector<64x32xf32> to vector<64x32xbf16>
    %cst_161 = arith.constant dense<0.000000e+00> : vector<64x64xf32>
    %453 = tpu.matmul %452, %451, %cst_161 {dimension_numbers = #tpu.dot_dimension_numbers<[1], [0], [0], [1], [0, 0, 1, 1], [], []>} : vector<64x32xbf16>, vector<32x64xbf16>, vector<64x64xf32> -> vector<64x64xf32>
    %c35 = arith.constant 35 : index
    %c0_162 = arith.constant 0 : index
    %454 = vector.load %arg8[%c35, %c0_162] : memref<40x128xf32, #tpu.memory_space<vmem>>, vector<1x64xf32>
    %455 = vector.broadcast %454 : vector<1x64xf32> to vector<64x64xf32>
    %456 = arith.addf %453, %455 : vector<64x64xf32>
    %cst_163 = arith.constant 0.000000e+00 : f32
    %457 = vector.broadcast %cst_163 : f32 to vector<64x64xf32>
    %458 = arith.maximumf %456, %457 : vector<64x64xf32>
    %c6 = arith.constant 6 : index
    %c0_164 = arith.constant 0 : index
    %c0_165 = arith.constant 0 : index
    %459 = vector.load %arg7[%c6, %c0_164, %c0_165] : memref<7x64x32xbf16, #tpu.memory_space<vmem>>, vector<1x64x32xbf16>
    %460 = vector.shape_cast %459 : vector<1x64x32xbf16> to vector<64x32xbf16>
    %461 = arith.truncf %458 : vector<64x64xf32> to vector<64x64xbf16>
    %cst_166 = arith.constant dense<0.000000e+00> : vector<64x32xf32>
    %462 = tpu.matmul %461, %460, %cst_166 {dimension_numbers = #tpu.dot_dimension_numbers<[1], [0], [0], [1], [0, 0, 1, 1], [], []>} : vector<64x64xbf16>, vector<64x32xbf16>, vector<64x32xf32> -> vector<64x32xf32>
    %c36 = arith.constant 36 : index
    %c0_167 = arith.constant 0 : index
    %463 = vector.load %arg8[%c36, %c0_167] : memref<40x128xf32, #tpu.memory_space<vmem>>, vector<1x32xf32>
    %464 = vector.broadcast %463 : vector<1x32xf32> to vector<64x32xf32>
    %465 = arith.addf %462, %464 : vector<64x32xf32>
    %466 = arith.addf %465, %449 : vector<64x32xf32>
    %cst_168 = arith.constant dense<0.000000e+00> : vector<64xf32>
    %467 = vector.multi_reduction <add>, %466, %cst_168 [1] : vector<64x32xf32> to vector<64xf32>
    %468 = vector.shape_cast %467 : vector<64xf32> to vector<64x1xf32>
    %cst_169 = arith.constant 3.200000e+01 : f32
    %469 = vector.broadcast %cst_169 : f32 to vector<64x1xf32>
    %470 = arith.divf %468, %469 : vector<64x1xf32>
    %471 = vector.broadcast %470 : vector<64x1xf32> to vector<64x32xf32>
    %472 = arith.subf %466, %471 : vector<64x32xf32>
    %473 = arith.mulf %472, %472 : vector<64x32xf32>
    %cst_170 = arith.constant dense<0.000000e+00> : vector<64xf32>
    %474 = vector.multi_reduction <add>, %473, %cst_170 [1] : vector<64x32xf32> to vector<64xf32>
    %475 = vector.shape_cast %474 : vector<64xf32> to vector<64x1xf32>
    %cst_171 = arith.constant 3.200000e+01 : f32
    %476 = vector.broadcast %cst_171 : f32 to vector<64x1xf32>
    %477 = arith.divf %475, %476 : vector<64x1xf32>
    %cst_172 = arith.constant 9.99999997E-7 : f32
    %478 = vector.broadcast %cst_172 : f32 to vector<64x1xf32>
    %479 = arith.addf %477, %478 : vector<64x1xf32>
    %480 = math.rsqrt %479 : vector<64x1xf32>
    %481 = vector.broadcast %480 : vector<64x1xf32> to vector<64x32xf32>
    %482 = arith.mulf %472, %481 : vector<64x32xf32>
    %c37 = arith.constant 37 : index
    %c0_173 = arith.constant 0 : index
    %483 = vector.load %arg8[%c37, %c0_173] : memref<40x128xf32, #tpu.memory_space<vmem>>, vector<1x32xf32>
    %484 = vector.broadcast %483 : vector<1x32xf32> to vector<64x32xf32>
    %485 = arith.mulf %482, %484 : vector<64x32xf32>
    %c38 = arith.constant 38 : index
    %c0_174 = arith.constant 0 : index
    %486 = vector.load %arg8[%c38, %c0_174] : memref<40x128xf32, #tpu.memory_space<vmem>>, vector<1x32xf32>
    %487 = vector.broadcast %486 : vector<1x32xf32> to vector<64x32xf32>
    %488 = arith.addf %485, %487 : vector<64x32xf32>
    %c0_175 = arith.constant 0 : index
    %c0_176 = arith.constant 0 : index
    %c0_177 = arith.constant 0 : index
    %489 = vector.load %arg3[%c0_175, %c0_176, %c0_177] : memref<8x8x32xf32, #tpu.memory_space<vmem>>, vector<8x8x32xf32>
    %490 = vector.shape_cast %489 : vector<8x8x32xf32> to vector<64x32xf32>
    %491 = arith.addf %488, %490 : vector<64x32xf32>
    %c0_178 = arith.constant 0 : index
    %c0_179 = arith.constant 0 : index
    %c0_180 = arith.constant 0 : index
    %492 = vector.load %arg6[%c0_178, %c0_179, %c0_180] : memref<5x32x128xbf16, #tpu.memory_space<vmem>>, vector<1x32x128xbf16>
    %493 = vector.shape_cast %492 : vector<1x32x128xbf16> to vector<32x128xbf16>
    %494 = arith.truncf %491 : vector<64x32xf32> to vector<64x32xbf16>
    %cst_181 = arith.constant dense<0.000000e+00> : vector<64x128xf32>
    %495 = tpu.matmul %494, %493, %cst_181 {dimension_numbers = #tpu.dot_dimension_numbers<[1], [0], [0], [1], [0, 0, 1, 1], [], []>} : vector<64x32xbf16>, vector<32x128xbf16>, vector<64x128xf32> -> vector<64x128xf32>
    %496 = vector.shape_cast %495 : vector<64x128xf32> to vector<8x8x128xf32>
    %c0_182 = arith.constant 0 : index
    %c0_183 = arith.constant 0 : index
    %c0_184 = arith.constant 0 : index
    %497 = vector.load %arg9[%c0_182, %c0_183, %c0_184] : memref<8x8x128xf32, #tpu.memory_space<vmem>>, vector<8x8x128xf32>
    tpu.vector_store %arg9[%c0_182, %c0_183, %c0_184], %496 {strides = array<i32>} : memref<8x8x128xf32, #tpu.memory_space<vmem>>, vector<8x8x128xf32>,
    return
  }
  func.func @transform_0(%arg0: i32) -> (i32, i32, i32) {
    %c0_i32 = arith.constant 0 : i32
    %c0_i32_0 = arith.constant 0 : i32
    %c0_i32_1 = arith.constant 0 : i32
    return %arg0, %c0_i32, %c0_i32_0 : i32, i32, i32
  }
  func.func @transform_1(%arg0: i32) -> (i32, i32, i32) {
    %c0_i32 = arith.constant 0 : i32
    %c0_i32_0 = arith.constant 0 : i32
    %c0_i32_1 = arith.constant 0 : i32
    return %arg0, %c0_i32, %c0_i32_0 : i32, i32, i32
  }
  func.func @transform_2(%arg0: i32) -> (i32, i32, i32) {
    %c0_i32 = arith.constant 0 : i32
    %c0_i32_0 = arith.constant 0 : i32
    %c0_i32_1 = arith.constant 0 : i32
    return %arg0, %c0_i32, %c0_i32_0 : i32, i32, i32
  }
  func.func @transform_3(%arg0: i32) -> (i32, i32) {
    %c0_i32 = arith.constant 0 : i32
    %c0_i32_0 = arith.constant 0 : i32
    return %arg0, %c0_i32 : i32, i32
  }
  func.func @transform_4(%arg0: i32) -> (i32, i32, i32) {
    %c0_i32 = arith.constant 0 : i32
    %c0_i32_0 = arith.constant 0 : i32
    %c0_i32_1 = arith.constant 0 : i32
    %c0_i32_2 = arith.constant 0 : i32
    return %c0_i32, %c0_i32_0, %c0_i32_1 : i32, i32, i32
  }
  func.func @transform_5(%arg0: i32) -> (i32, i32, i32) {
    %c0_i32 = arith.constant 0 : i32
    %c0_i32_0 = arith.constant 0 : i32
    %c0_i32_1 = arith.constant 0 : i32
    %c0_i32_2 = arith.constant 0 : i32
    return %c0_i32, %c0_i32_0, %c0_i32_1 : i32, i32, i32
  }
  func.func @transform_6(%arg0: i32) -> (i32, i32, i32) {
    %c0_i32 = arith.constant 0 : i32
    %c0_i32_0 = arith.constant 0 : i32
    %c0_i32_1 = arith.constant 0 : i32
    %c0_i32_2 = arith.constant 0 : i32
    return %c0_i32, %c0_i32_0, %c0_i32_1 : i32, i32, i32
  }
  func.func @transform_7(%arg0: i32) -> (i32, i32) {
    %c0_i32 = arith.constant 0 : i32
    %c0_i32_0 = arith.constant 0 : i32
    %c0_i32_1 = arith.constant 0 : i32
    return %c0_i32, %c0_i32_0 : i32, i32
  }
  func.func @transform_8(%arg0: i32) -> (i32, i32, i32) {
    %c0_i32 = arith.constant 0 : i32
    %c0_i32_0 = arith.constant 0 : i32
    %c0_i32_1 = arith.constant 0 : i32
    return %arg0, %c0_i32, %c0_i32_0 : i32, i32, i32
  }
}

</mosaic_0001>

<bundles_post_ra>
// kernel: transformer_predictor_forward.1
= control target key start
LH: loop header
LB: loop body
LE: loop exit
PB: predicated region body
PF: predicated region fallthrough
CT: control target
= control target key end

     0   :  { %s8347_s27 = smov 0   ;;  %s11110_s0 = inlined_call_operand.vmem [shape: bf16[16,8,64], index: 0, kind: input, shape index: {}]   ;;  %s11111_s1 = inlined_call_operand.vmem [shape: bf16[16,8,32], index: 1, kind: input, shape index: {}]   ;;  %s11112_s2 = inlined_call_operand.vmem [shape: f32[16,8,32], index: 2, kind: input, shape index: {}]   ;;  %s11113_s3 = inlined_call_operand.vmem [shape: f32[16,8], index: 3, kind: input, shape index: {}]   ;;  %s11114_s4 = inlined_call_operand.vmem [shape: bf16[6,32,64], index: 4, kind: input, shape index: {}]   ;;  %s11115_s5 = inlined_call_operand.vmem [shape: bf16[5,32,128], index: 5, kind: input, shape index: {}]   ;;  %s11116_s6 = inlined_call_operand.vmem [shape: bf16[7,64,32], index: 6, kind: input, shape index: {}]   ;;  %s11117_s7 = inlined_call_operand.vmem [shape: f32[40,128], index: 7, kind: input, shape index: {}]   ;;  %s11118_s8 = inlined_call_operand.vmem [shape: f32[16,8,128], index: 8, kind: output, shape index: {}]  }
   0x1 LB: > { %s8353_s28 = sadd.s32 4294967295, %s8295_s27   ;;  %p7205_p0 = scmp.ge.s32.totalorder %s8295_s27, 1  ;;  %s8295_s27 = sphi %s8347_s27, %s18_s27  }
   0x2   : > { %p294_p1 = scmp.lt.s32.totalorder %s8295_s27, 3 }
   0x4   : > { %p295_p2 = pnand %p7205_p0, %p294_p1 }
   0x5   : > { %s7206_s9 = sshll.u32 (!%p295_p2), %s8353_s28, 3  ;;  %s8298_s22 = smov (!%p295_p2), 64  }
   0x6   : > { %298 = sbr.rel (%p295_p2) target bundleno = 8599 (0x2197), region = 52  ;;  %p343_p3 = scmp.lt.s32.totalorder (!%p295_p2), %s7206_s9, 15 }
   0x7   : > { %p360_p4 = scmp.lt.s32.totalorder (!%p295_p2), %s8353_s28, 1  ;;  %s8301_s29 = smov (!%p295_p2), 32  }
   0xb   : > { %v7740_v0 = vld [vmem:[%s11116_s6 + $0x18] sm:$0xff]  ;;  %v7739_v1 = vld [vmem:[%s11116_s6 + $0x10] sm:$0xff]  ;;  %s11290_s9 = smov (!%p343_p3, %s7206_s9), 15  ;;  %v7738_v2 = vld [vmem:[%s11116_s6 + $0x8] sm:$0xff]  ;;  %vm11119_vm0 = vcmask 523264   ;;  %vm484_vm1 = vcmask 261120  }
   0xc   : > { %450 = vmatpush.bf16.msra.mxu0 %v7740_v0  ;;  %s7207_s14 = sshll.u32 %s11290_s9, 2  ;;  %v7737_v3 = vld [vmem:[%s11116_s6] sm:$0xff]  ;;  %v7884_v8 = vld [vmem:[%s11117_s7 + $0x8] ss:$0 sm:$0xff]  ;;  %v8297_v38 = vmov 32.0   ;;  %s11292_s28 = smov (!%p360_p4, %s8353_s28), 1 }
   0xd   : > { %s346_s19 = scalar_lea.vmem %s11110_s0, %s7207_s14  ;;  %v475_v10 = vld [vmem:[%s11117_s7] sm:$0xff]  ;;  %7915 = vrcp.f32 %v8297_v38  ;;  %s7212_s23 = sshll.u32 %s11292_s28, 3 }
   0xe   : > { %v7733_v4 = vld [vmem:[%s346_s19] sm:$0xff]  ;;  %v7734_v5 = vld [vmem:[%s346_s19 + $0x8] sm:$0xff]  ;;  %v7735_v6 = vld [vmem:[%s346_s19 + $0x10] sm:$0xff]  ;;  %s363_s26 = scalar_lea.vmem %s11113_s3, %s7212_s23  ;;  %s8300_s28 = smov 96  }
   0xf   : > { %v7736_v7 = vld [vmem:[%s346_s19 + $0x18] sm:$0xff]  ;;  %s9068_s25 = scalar_lea.vmem %s11111_s1, %s7207_s14 }
  0x10   : > { %451 = vmatpush.bf16.msra.mxu0 %v7739_v1 }
  0x13   : > { %v7916_v39 = vpop.eup %7915 }
  0x14   : > { %452 = vmatpush.bf16.msra.mxu0 %v7738_v2  ;;  %v510_v40 = vmul.f32 32.0, %v7916_v39  ;;  %vm514_vm2 = vweird.f32 %v7916_v39 }
  0x16   : > { %v511_v41 = vsub.f32 1.0, %v510_v40 }
  0x18   : > { %453 = vmatpush.bf16.msra.mxu0 %v7737_v3  ;;  %v512_v42 = vmul.f32 %v7916_v39, %v511_v41 }
  0x1a   : > { %v513_v43 = vadd.f32 %v7916_v39, %v512_v42 }
  0x1b   : > { %7247 = vmatmul.msk.bf16.vlgmr.msra.gmra.mxu0 %vm11119_vm0, %v7733_v4 }
  0x1c   : > { %v8395_v44 = vsel %vm514_vm2, %v7916_v39, %v513_v43 }
  0x2b   : > { %7248 = vmatmul.msk.bf16.gmra.mxu0 %vm11119_vm0, %v7734_v5 }
  0x3b   : > { %7249 = vmatmul.msk.bf16.gmra.mxu0 %vm11119_vm0, %v7735_v6 }
  0x4b   : > { %7250 = vmatmul.msk.bf16.gmra.mxu0 %vm11119_vm0, %v7736_v7 }
  0x98   : > { %v455_v9 = vpop.f32.mrf.mxu0 }
  0x99   : > { %v456_v11 = vadd.f32 %v7884_v8, %v455_v9 }
  0x9b   : > { %v476_v12 = vadd.f32 %v475_v10, %v456_v11 }
  0x9d   : > { %v485_v13 = vsel %vm484_vm1, %v476_v12, 0.0 }
  0x9e   : > { %486 = vadd.xlane.f32.xlu0 %v485_v13 }
  0xa0   : > { %v457_v14 = vpop.f32.mrf.mxu0 }
  0xa1   : > { %v458_v15 = vadd.f32 %v7884_v8, %v457_v14 }
  0xa3   : > { %v477_v16 = vadd.f32 %v475_v10, %v458_v15 }
  0xa5   : > { %v488_v17 = vsel %vm484_vm1, %v477_v16, 0.0 }
  0xa6   : > { %489 = vadd.xlane.f32.xlu0 %v488_v17 }
  0xa8   : > { %v460_v18 = vpop.f32.mrf.mxu0 }
  0xa9   : > { %v461_v19 = vadd.f32 %v7884_v8, %v460_v18 }
  0xab   : > { %v478_v20 = vadd.f32 %v475_v10, %v461_v19 }
  0xad   : > { %v491_v21 = vsel %vm484_vm1, %v478_v20, 0.0 }
  0xae   : > { %492 = vadd.xlane.f32.xlu1 %v491_v21  ;;  %v7748_v21 = vld [vmem:[%s11115_s5 + $0x18] sm:$0xff] }
  0xaf   : > { %847 = vmatpush.bf16.msra.mxu2 %v7748_v21 }
  0xb0   : > { %v462_v22 = vpop.f32.mrf.mxu0 }
  0xb1   : > { %v463_v23 = vadd.f32 %v7884_v8, %v462_v22 }
  0xb3   : > { %v479_v24 = vadd.f32 %v475_v10, %v463_v23 }
  0xb5   : > { %v494_v25 = vsel %vm484_vm1, %v479_v24, 0.0 }
  0xb6   : > { %495 = vadd.xlane.f32.xlu1 %v494_v25  ;;  %v7747_v25 = vld [vmem:[%s11115_s5 + $0x10] sm:$0xff] }
  0xb7   : > { %848 = vmatpush.bf16.msra.mxu2 %v7747_v25 }
  0xb8   : > { %v465_v26 = vpop.f32.mrf.mxu0 }
  0xb9   : > { %v466_v27 = vadd.f32 %v7884_v8, %v465_v26 }
  0xbb   : > { %v480_v28 = vadd.f32 %v475_v10, %v466_v27 }
  0xbd   : > { %v497_v29 = vsel %vm484_vm1, %v480_v28, 0.0 }
  0xbe   : > { %498 = vadd.xlane.f32.xlu2 %v497_v29 }
  0xc0   : > { %v467_v30 = vpop.f32.mrf.mxu0 }
  0xc1   : > { %v468_v31 = vadd.f32 %v7884_v8, %v467_v30 }
  0xc3   : > { %v481_v32 = vadd.f32 %v475_v10, %v468_v31 }
  0xc5   : > { %v500_v33 = vsel %vm484_vm1, %v481_v32, 0.0 }
  0xc6   : > { %501 = vadd.xlane.f32.xlu2 %v500_v33 }
  0xc8   : > { %v470_v34 = vpop.f32.mrf.mxu0 }
  0xc9   : > { %v471_v35 = vadd.f32 %v7884_v8, %v470_v34 }
  0xcb   : > { %v482_v36 = vadd.f32 %v475_v10, %v471_v35 }
  0xcd   : > { %v503_v37 = vsel %vm484_vm1, %v482_v36, 0.0 }
  0xce   : > { %504 = vadd.xlane.f32.xlu2 %v503_v37 }
  0xd0   : > { %v472_v48 = vpop.f32.mrf.mxu0 }
  0xd1   : > { %v473_v50 = vadd.f32 %v7884_v8, %v472_v48 }
  0xd3   : > { %v483_v55 = vadd.f32 %v475_v10, %v473_v50 }
  0xd5   : > { %v506_v57 = vsel %vm484_vm1, %v483_v55, 0.0 }
 0x111   : > { %v487_v45 = vpop.xlane.xlu0 %486 }
 0x112   : > { %v516_v46 = vmul.f32 %v8395_v44, %v487_v45 }
 0x114   : > { %v8398_v47 = vsub.f32 %v476_v12, %v516_v46 }
 0x116   : > { %v532_v49 = vmul.f32 %v8398_v47, %v8398_v47 }
 0x118   : > { %v540_v51 = vsel %vm484_vm1, %v532_v49, 0.0 }
 0x119   : > { %541 = vadd.xlane.f32.xlu0 %v540_v51  ;;  %v490_v52 = vpop.xlane.xlu0 %489 }
 0x11a   : > { %v517_v53 = vmul.f32 %v8395_v44, %v490_v52 }
 0x11c   : > { %v8404_v54 = vsub.f32 %v477_v16, %v517_v53 }
 0x11e   : > { %v533_v56 = vmul.f32 %v8404_v54, %v8404_v54 }
 0x120   : > { %v543_v58 = vsel %vm484_vm1, %v533_v56, 0.0 }
 0x121   : > { %v493_v59 = vpop.xlane.xlu1 %492  ;;  %507 = vadd.xlane.f32.xlu0 %v506_v57  ;;  %544 = vadd.xlane.f32.xlu1 %v543_v58  ;;  %v8466_v58 = vld [vmem:[%s11117_s7 + $0x9] ss:$0 sm:$0xff] }
 0x122   : > { %v518_v60 = vmul.f32 %v8395_v44, %v493_v59 }
 0x124   : > { %v8411_v61 = vsub.f32 %v478_v20, %v518_v60  ;;  %v7746_v20 = vld [vmem:[%s11114_s4 + $0x8] sm:$0xff] }
 0x125   : > { %799 = vmatpush.bf16.msra.mxu1 %v7746_v20 }
 0x126   : > { %v534_v62 = vmul.f32 %v8411_v61, %v8411_v61 }
 0x128   : > { %v546_v63 = vsel %vm484_vm1, %v534_v62, 0.0 }
 0x129   : > { %v496_v0 = vpop.xlane.xlu1 %495  ;;  %547 = vadd.xlane.f32.xlu1 %v546_v63 }
 0x12a   : > { %v519_v1 = vmul.f32 %v8395_v44, %v496_v0 }
 0x12c   : > { %v8417_v2 = vsub.f32 %v479_v24, %v519_v1  ;;  %v7745_v24 = vld [vmem:[%s11114_s4] sm:$0xff] }
 0x12d   : > { %800 = vmatpush.bf16.msra.mxu1 %v7745_v24 }
 0x12e   : > { %v535_v3 = vmul.f32 %v8417_v2, %v8417_v2 }
 0x130   : > { %v549_v4 = vsel %vm484_vm1, %v535_v3, 0.0 }
 0x131   : > { %v499_v5 = vpop.xlane.xlu2 %498  ;;  %550 = vadd.xlane.f32.xlu2 %v549_v4 }
 0x132   : > { %v520_v6 = vmul.f32 %v8395_v44, %v499_v5 }
 0x134   : > { %v8423_v7 = vsub.f32 %v480_v28, %v520_v6 }
 0x136   : > { %v536_v8 = vmul.f32 %v8423_v7, %v8423_v7 }
 0x138   : > { %v552_v9 = vsel %vm484_vm1, %v536_v8, 0.0 }
 0x139   : > { %v502_v10 = vpop.xlane.xlu2 %501  ;;  %553 = vadd.xlane.f32.xlu0 %v552_v9 }
 0x13a   : > { %v521_v11 = vmul.f32 %v8395_v44, %v502_v10 }
 0x13c   : > { %v8429_v12 = vsub.f32 %v481_v32, %v521_v11 }
 0x13e   : > { %v537_v13 = vmul.f32 %v8429_v12, %v8429_v12 }
 0x140   : > { %v555_v14 = vsel %vm484_vm1, %v537_v13, 0.0 }
 0x141   : > { %v505_v15 = vpop.xlane.xlu2 %504  ;;  %556 = vadd.xlane.f32.xlu1 %v555_v14 }
 0x142   : > { %v522_v16 = vmul.f32 %v8395_v44, %v505_v15 }
 0x144   : > { %v8435_v17 = vsub.f32 %v482_v36, %v522_v16 }
 0x146   : > { %v538_v18 = vmul.f32 %v8435_v17, %v8435_v17 }
 0x148   : > { %v558_v19 = vsel %vm484_vm1, %v538_v18, 0.0 }
 0x149   : > { %559 = vadd.xlane.f32.xlu2 %v558_v19 }
 0x18c   : > { %v542_v22 = vpop.xlane.xlu0 %541 }
 0x18d   : > { %v564_v23 = vmul.f32 %v542_v22, %v8395_v44 }
 0x18f   : > { %v572_v26 = vadd.f32 1e-06, %v564_v23 }
 0x191   : > { %7917 = vrsqrt.f32 %v572_v26  ;;  %vm586_vm4 = vweird.f32 %v572_v26 }
 0x194   : > { %v545_v27 = vpop.xlane.xlu1 %544  ;;  %v508_v28 = vpop.xlane.xlu0 %507 }
 0x195   : > { %v565_v29 = vmul.f32 %v545_v27, %v8395_v44  ;;  %v523_v30 = vmul.f32 %v8395_v44, %v508_v28 }
 0x197   : > { %v7918_v31 = vpop.eup %7917  ;;  %v573_v32 = vadd.f32 1e-06, %v565_v29  ;;  %v8455_v33 = vsub.f32 %v483_v55, %v523_v30 }
 0x198   : > { %v581_v34 = vmul.f32 %v7918_v31, %v572_v26  ;;  %vm587_vm3 = vweird.f32 %v7918_v31 }
 0x199   : > { %7919 = vrsqrt.f32 %v573_v32  ;;  %v539_v35 = vmul.f32 %v8455_v33, %v8455_v33  ;;  %vm588_vm5 = vmor %vm586_vm4, %vm587_vm3  ;;  %vm596_vm7 = vweird.f32 %v573_v32 }
 0x19a   : > { %v582_v36 = vmul.f32 %v7918_v31, %v581_v34 }
 0x19b   : > { %v561_v37 = vsel %vm484_vm1, %v539_v35, 0.0 }
 0x19c   : > { %v583_v38 = vmul.f32 0.5, %v582_v36  ;;  %v548_v39 = vpop.xlane.xlu1 %547  ;;  %562 = vadd.xlane.f32.xlu0 %v561_v37 }
 0x19d   : > { %v566_v40 = vmul.f32 %v548_v39, %v8395_v44 }
 0x19e   : > { %v584_v41 = vsub.f32 1.5, %v583_v38 }
 0x19f   : > { %v7920_v42 = vpop.eup %7919  ;;  %v574_v43 = vadd.f32 1e-06, %v566_v40 }
 0x1a0   : > { %v585_v45 = vmul.f32 %v7918_v31, %v584_v41  ;;  %v591_v46 = vmul.f32 %v7920_v42, %v573_v32  ;;  %vm597_vm6 = vweird.f32 %v7920_v42 }
 0x1a1   : > { %7921 = vrsqrt.f32 %v574_v43  ;;  %vm598_vm8 = vmor %vm596_vm7, %vm597_vm6  ;;  %vm606_vm10 = vweird.f32 %v574_v43 }
 0x1a2   : > { %v592_v48 = vmul.f32 %v7920_v42, %v591_v46  ;;  %v589_v49 = vsel %vm588_vm5, %v7918_v31, %v585_v45 }
 0x1a3   : > { %v660_v57 = vmul.f32 %v589_v49, %v8398_v47  ;;  %v8473_v47 = vld [vmem:[%s11117_s7 + $0xa] ss:$0 sm:$0xff] }
 0x1a4   : > { %v593_v50 = vmul.f32 0.5, %v592_v48  ;;  %v551_v51 = vpop.xlane.xlu2 %550 }
 0x1a5   : > { %v567_v52 = vmul.f32 %v551_v51, %v8395_v44  ;;  %v670_v1 = vmul.f32 %v8466_v58, %v660_v57 }
 0x1a6   : > { %v594_v53 = vsub.f32 1.5, %v593_v50 }
 0x1a7   : > { %v7922_v55 = vpop.eup %7921  ;;  %v575_v56 = vadd.f32 1e-06, %v567_v52  ;;  %v8478_v11 = vadd.f32 %v8473_v47, %v670_v1 }
 0x1a8   : > { %v595_v59 = vmul.f32 %v7920_v42, %v594_v53  ;;  %v601_v60 = vmul.f32 %v7922_v55, %v574_v43  ;;  %vm607_vm9 = vweird.f32 %v7922_v55 }
 0x1a9   : > { %7923 = vrsqrt.f32 %v575_v56  ;;  %vm608_vm11 = vmor %vm606_vm10, %vm607_vm9  ;;  %vm616_vm13 = vweird.f32 %v575_v56 }
 0x1aa   : > { %v599_v62 = vsel %vm598_vm8, %v7920_v42, %v595_v59  ;;  %v602_v63 = vmul.f32 %v7922_v55, %v601_v60 }
 0x1ab   : > { %v661_v0 = vmul.f32 %v599_v62, %v8404_v54 }
 0x1ac   : > { %v603_v3 = vmul.f32 0.5, %v602_v63  ;;  %v554_v4 = vpop.xlane.xlu0 %553 }
 0x1ad   : > { %v568_v5 = vmul.f32 %v554_v4, %v8395_v44  ;;  %v671_v6 = vmul.f32 %v8466_v58, %v661_v0 }
 0x1ae   : > { %v604_v8 = vsub.f32 1.5, %v603_v3 }
 0x1af   : > { %v7924_v9 = vpop.eup %7923  ;;  %v576_v10 = vadd.f32 1e-06, %v568_v5  ;;  %v8481_v54 = vadd.f32 %v8473_v47, %v671_v6 }
 0x1b0   : > { %v605_v13 = vmul.f32 %v7922_v55, %v604_v8  ;;  %v611_v14 = vmul.f32 %v7924_v9, %v575_v56  ;;  %vm617_vm12 = vweird.f32 %v7924_v9 }
 0x1b1   : > { %7925 = vrsqrt.f32 %v576_v10  ;;  %v763_v15 = vpack.c.bf16 %v8481_v54, %v8478_v11  ;;  %vm618_vm14 = vmor %vm616_vm13, %vm617_vm12  ;;  %vm626_vm2 = vweird.f32 %v576_v10  ;;  %vm1151_vm13 = vcmask 1043456  }
 0x1b2   : > { %v612_v16 = vmul.f32 %v7924_v9, %v611_v14  ;;  %v609_v18 = vsel %vm608_vm11, %v7922_v55, %v605_v13 }
 0x1b3   : > { %7259 = vmatmul.msk.bf16.vlgmr.msra.gmra.mxu1 %vm484_vm1, %v763_v15  ;;  %7275 = vmatmul.msk.bf16.vlgmr.msra.gmra.mxu2 %vm484_vm1, %v763_v15  ;;  %v662_v25 = vmul.f32 %v609_v18, %v8411_v61 }
 0x1b4   : > { %v613_v19 = vmul.f32 0.5, %v612_v16  ;;  %v557_v20 = vpop.xlane.xlu1 %556 }
 0x1b5   : > { %v569_v21 = vmul.f32 %v557_v20, %v8395_v44  ;;  %v672_v31 = vmul.f32 %v8466_v58, %v662_v25 }
 0x1b6   : > { %v614_v22 = vsub.f32 1.5, %v613_v19 }
 0x1b7   : > { %v7926_v23 = vpop.eup %7925  ;;  %v577_v24 = vadd.f32 1e-06, %v569_v21  ;;  %v8493_v37 = vadd.f32 %v8473_v47, %v672_v31 }
 0x1b8   : > { %v615_v26 = vmul.f32 %v7924_v9, %v614_v22  ;;  %v621_v27 = vmul.f32 %v7926_v23, %v576_v10  ;;  %vm627_vm15 = vweird.f32 %v7926_v23 }
 0x1b9   : > { %7927 = vrsqrt.f32 %v577_v24  ;;  %vm628_vm3 = vmor %vm626_vm2, %vm627_vm15  ;;  %vm636_vm5 = vweird.f32 %v577_v24 }
 0x1ba   : > { %v619_v28 = vsel %vm618_vm14, %v7924_v9, %v615_v26  ;;  %v622_v29 = vmul.f32 %v7926_v23, %v621_v27 }
 0x1bb   : > { %v663_v30 = vmul.f32 %v619_v28, %v8417_v2 }
 0x1bc   : > { %v623_v32 = vmul.f32 0.5, %v622_v29 }
 0x1bd   : > { %v673_v34 = vmul.f32 %v8466_v58, %v663_v30 }
 0x1be   : > { %v624_v35 = vsub.f32 1.5, %v623_v32 }
 0x1bf   : > { %v7928_v36 = vpop.eup %7927  ;;  %v8496_v61 = vadd.f32 %v8473_v47, %v673_v34 }
 0x1c0   : > { %v625_v38 = vmul.f32 %v7926_v23, %v624_v35  ;;  %v631_v39 = vmul.f32 %v7928_v36, %v577_v24  ;;  %vm637_vm4 = vweird.f32 %v7928_v36 }
 0x1c1   : > { %v764_v40 = vpack.c.bf16 %v8496_v61, %v8493_v37  ;;  %vm638_vm6 = vmor %vm636_vm5, %vm637_vm4  ;;  %vm11120_vm4 = vcmask 64512  }
 0x1c2   : > { %v632_v2 = vmul.f32 %v7928_v36, %v631_v39  ;;  %v629_v41 = vsel %vm628_vm3, %v7926_v23, %v625_v38 }
 0x1c3   : > { %7260 = vmatmul.msk.bf16.gmra.mxu1 %vm484_vm1, %v764_v40  ;;  %7276 = vmatmul.msk.bf16.gmra.mxu2 %vm484_vm1, %v764_v40  ;;  %v664_v45 = vmul.f32 %v629_v41, %v8423_v7  ;;  %v560_v7 = vpop.xlane.xlu2 %559 }
 0x1c4   : > { %v633_v42 = vmul.f32 0.5, %v632_v2 }
 0x1c5   : > { %v674_v50 = vmul.f32 %v8466_v58, %v664_v45 }
 0x1c6   : > { %v634_v43 = vsub.f32 1.5, %v633_v42 }
 0x1c7   : > { %v8507_v52 = vadd.f32 %v8473_v47, %v674_v50 }
 0x1c8   : > { %v635_v46 = vmul.f32 %v7928_v36, %v634_v43 }
 0x1ca   : > { %v639_v48 = vsel %vm638_vm6, %v7928_v36, %v635_v46 }
 0x1cb   : > { %v665_v49 = vmul.f32 %v639_v48, %v8429_v12  ;;  %v570_v12 = vmul.f32 %v560_v7, %v8395_v44 }
 0x1cd   : > { %v675_v51 = vmul.f32 %v8466_v58, %v665_v49  ;;  %v578_v56 = vadd.f32 1e-06, %v570_v12 }
 0x1cf   : > { %v8510_v53 = vadd.f32 %v8473_v47, %v675_v51  ;;  %7929 = vrsqrt.f32 %v578_v56  ;;  %vm646_vm8 = vweird.f32 %v578_v56 }
 0x1d1   : > { %v765_v55 = vpack.c.bf16 %v8510_v53, %v8507_v52 }
 0x1d3   : > { %7261 = vmatmul.msk.bf16.gmra.mxu1 %vm484_vm1, %v765_v55  ;;  %7277 = vmatmul.msk.bf16.gmra.mxu2 %vm484_vm1, %v765_v55 }
 0x1d5   : > { %v7930_v57 = vpop.eup %7929 }
 0x1d6   : > { %v641_v59 = vmul.f32 %v7930_v57, %v578_v56  ;;  %vm647_vm7 = vweird.f32 %v7930_v57 }
 0x1d7   : > { %vm648_vm9 = vmor %vm646_vm8, %vm647_vm7 }
 0x1d8   : > { %v642_v60 = vmul.f32 %v7930_v57, %v641_v59 }
 0x1da   : > { %v643_v1 = vmul.f32 0.5, %v642_v60 }
 0x1dc   : > { %v644_v3 = vsub.f32 1.5, %v643_v1 }
 0x1de   : > { %v645_v5 = vmul.f32 %v7930_v57, %v644_v3 }
 0x1e0   : > { %v649_v9 = vsel %vm648_vm9, %v7930_v57, %v645_v5 }
 0x1e1   : > { %v666_v14 = vmul.f32 %v649_v9, %v8435_v17 }
 0x1e3   : > { %v676_v19 = vmul.f32 %v8466_v58, %v666_v14 }
 0x1e5   : > { %v8523_v21 = vadd.f32 %v8473_v47, %v676_v19 }
 0x20f   : > { %v563_v62 = vpop.xlane.xlu0 %562 }
 0x210   : > { %v571_v63 = vmul.f32 %v563_v62, %v8395_v44 }
 0x212   : > { %v579_v0 = vadd.f32 1e-06, %v571_v63 }
 0x214   : > { %7931 = vrsqrt.f32 %v579_v0  ;;  %vm656_vm11 = vweird.f32 %v579_v0 }
 0x21a   : > { %v7932_v4 = vpop.eup %7931 }
 0x21b   : > { %v651_v6 = vmul.f32 %v7932_v4, %v579_v0  ;;  %vm657_vm10 = vweird.f32 %v7932_v4 }
 0x21c   : > { %vm658_vm12 = vmor %vm656_vm11, %vm657_vm10 }
 0x21d   : > { %v652_v8 = vmul.f32 %v7932_v4, %v651_v6 }
 0x21f   : > { %v653_v10 = vmul.f32 0.5, %v652_v8 }
 0x221   : > { %v654_v13 = vsub.f32 1.5, %v653_v10 }
 0x223   : > { %v655_v15 = vmul.f32 %v7932_v4, %v654_v13 }
 0x225   : > { %v659_v16 = vsel %vm658_vm12, %v7932_v4, %v655_v15 }
 0x226   : > { %v667_v18 = vmul.f32 %v659_v16, %v8455_v33  ;;  %v8535_v33 = vld [vmem:[%s11117_s7 + $0xc] ss:$0 sm:$0xff] }
 0x228   : > { %v677_v20 = vmul.f32 %v8466_v58, %v667_v18 }
 0x22a   : > { %v8526_v22 = vadd.f32 %v8473_v47, %v677_v20  ;;  %v8541_v47 = vld [vmem:[%s11117_s7 + $0xb] ss:$0 sm:$0xff] }
 0x22c   : > { %v766_v23 = vpack.c.bf16 %v8526_v22, %v8523_v21 }
 0x22e   : > { %7262 = vmatmul.msk.bf16.gmra.mxu1 %vm484_vm1, %v766_v23  ;;  %7278 = vmatmul.msk.bf16.gmra.mxu2 %vm484_vm1, %v766_v23 }
 0x230   : > { %v802_v17 = vpop.f32.mrf.mxu1 }
 0x231   : > { %v803_v29 = vadd.f32 %v8541_v47, %v802_v17 }
 0x233   : > { %v8550_v34 = vpack.c.bf16 %v803_v29, %v803_v29 }
 0x236   : > { %v850_v58 = vpop.f32.mrf.mxu2 }
 0x237   : > { %v851_v24 = vadd.f32 %v8535_v33, %v850_v58 }
 0x238   : > { %v804_v26 = vpop.f32.mrf.mxu1 }
 0x239   : > { %v878_v25 = vpack.c.bf16 %v851_v24, %v851_v24  ;;  %v805_v46 = vadd.f32 %v8541_v47, %v804_v26  ;;  %v8615_v26 = vld [vmem:[%s363_s26] sm:$0xff] }
 0x23a   : > { %vm709_vm14 = vcmp.gt.f32.partialorder %v8615_v26, 0.0 }
 0x23b   : > { %v1144_v27 = vunpack.c.l.b16 %v878_v25  ;;  %v890_v28 = vsel %vm484_vm1, %v878_v25, 0  ;;  %v8567_v55 = vpack.c.bf16 %v805_v46, %v805_v46 }
 0x23c   : > { %899 = vmatpush.bf16.xpose.msra.mxu3 %v890_v28 }
 0x23d   : > { %v8545_v30 = vpack.c.b16 %v1144_v27, %v1144_v27 }
 0x23e   : > { %v852_v31 = vpop.f32.mrf.mxu2 }
 0x23f   : > { %v853_v32 = vadd.f32 %v8535_v33, %v852_v31  ;;  %1146 = vrot.lane.b32.xlu0 %v8545_v30, %s8298_s22 }
 0x240   : > { %v807_v39 = vpop.f32.mrf.mxu1 }
 0x241   : > { %v879_v35 = vpack.c.bf16 %v853_v32, %v853_v32  ;;  %v808_v63 = vadd.f32 %v8541_v47, %v807_v39  ;;  %v8299_v39 = vmov 0  }
 0x243   : > { %v1169_v36 = vunpack.c.l.b16 %v879_v35  ;;  %7279 = vmatmul.msk.bf16.vlgmr.msra.gmra.mxu3 %vm484_vm1, %v8550_v34  ;;  %v909_v38 = vsel %vm484_vm1, %v879_v35, 0  ;;  %v8583_v4 = vpack.c.bf16 %v808_v63, %v808_v63  ;;  %v688_v35 = vlaneseq }
 0x244   : > { %918 = vmatpush.bf16.xpose.msrb.mxu3 %v909_v38 }
 0x245   : > { %v8555_v40 = vpack.c.b16 %v1169_v36, %v1169_v36  ;;  %v691_v46 = vand.u32 127, %v688_v35 }
 0x246   : > { %v855_v2 = vpop.f32.mrf.mxu2 }
 0x247   : > { %v856_v41 = vadd.f32 %v8535_v33, %v855_v2  ;;  %1171 = vrot.lane.b32.xlu1 %v8555_v40, %s8298_s22  ;;  %v717_v2 = vsel %vm709_vm14, 1, %v8299_v39 }
 0x248   : > { %v809_v49 = vpop.f32.mrf.mxu1 }
 0x249   : > { %v880_v42 = vpack.c.bf16 %v856_v41, %v856_v41  ;;  %v810_v16 = vadd.f32 %v8541_v47, %v809_v49  ;;  %v725_v49 = vperm.slane %v717_v2, 0 }
 0x24b   : > { %v928_v43 = vsel %vm484_vm1, %v880_v42, 0  ;;  %v1193_v45 = vunpack.c.l.b16 %v880_v42  ;;  %v8602_v18 = vpack.c.bf16 %v810_v16, %v810_v16  ;;  %vm733_vm2 = vcmp.eq.s32.totalorder %v725_v49, 1 }
 0x24c   : > { %937 = vmatpush.bf16.xpose.msra.mxu3 %v928_v43 }
 0x24d   : > { %v8562_v48 = vpack.c.b16 %v1193_v45, %v1193_v45  ;;  %v689_v45 = vshrl.u32 %v688_v35, 7 }
 0x24e   : > { %v857_v50 = vpop.f32.mrf.mxu2 }
 0x24f   : > { %v858_v51 = vadd.f32 %v8535_v33, %v857_v50  ;;  %1195 = vrot.lane.b32.xlu2 %v8562_v48, %s8298_s22  ;;  %vm8634_vm15 = vcmp.le.s32.totalorder %v691_v46, %v689_v45 }
 0x250   : > { %v812_v59 = vpop.f32.mrf.mxu1  ;;  %vm8643_vm3 = vmand %vm733_vm2, %vm8634_vm15 }
 0x251   : > { %v8569_v7 = vpack.c.bf16 %v858_v51, %v858_v51  ;;  %v813_v0 = vadd.f32 %v8541_v47, %v812_v59 }
 0x253   : > { %7280 = vmatmul.msk.bf16.vlgmr.msrb.gmra.mxu3 %vm484_vm1, %v8567_v55  ;;  %v947_v12 = vsel %vm484_vm1, %v8569_v7, 0  ;;  %v8585_v5 = vpack.c.bf16 %v813_v0, %v813_v0 }
 0x254   : > { %956 = vmatpush.bf16.xpose.msrb.mxu3 %v947_v12  ;;  %v695_v12 = vrot.slane %v8615_v26, 1 }
 0x256   : > { %v860_v56 = vpop.f32.mrf.mxu2  ;;  %vm710_vm5 = vcmp.gt.f32.partialorder %v695_v12, 0.0 }
 0x257   : > { %v861_v57 = vadd.f32 %v8535_v33, %v860_v56  ;;  %v718_v63 = vsel %vm710_vm5, 1, %v8299_v39 }
 0x258   : > { %v814_v8 = vpop.f32.mrf.mxu1  ;;  %v726_v0 = vperm.slane %v718_v63, 0 }
 0x259   : > { %v8576_v60 = vpack.c.bf16 %v861_v57, %v861_v57  ;;  %v815_v13 = vadd.f32 %v8541_v47, %v814_v8 }
 0x25a   : > { %vm734_vm6 = vcmp.eq.s32.totalorder %v726_v0, 1 }
 0x25b   : > { %v966_v62 = vsel %vm484_vm1, %v8576_v60, 0  ;;  %v8597_v15 = vpack.c.bf16 %v815_v13, %v815_v13  ;;  %vm8660_vm8 = vmand %vm734_vm6, %vm8634_vm15 }
 0x25c   : > { %975 = vmatpush.bf16.xpose.msrb.mxu1 %v966_v62 }
 0x25e   : > { %v862_v1 = vpop.f32.mrf.mxu2 }
 0x25f   : > { %v863_v3 = vadd.f32 %v8535_v33, %v862_v1  ;;  %v698_v1 = vrot.slane %v8615_v26, 4 }
 0x261   : > { %v883_v6 = vpack.c.bf16 %v863_v3, %v863_v3  ;;  %vm713_vm7 = vcmp.gt.f32.partialorder %v698_v1, 0.0 }
 0x263   : > { %v1265_v9 = vunpack.c.l.b16 %v883_v6  ;;  %7281 = vmatmul.msk.bf16.vlgmr.msra.gmra.mxu3 %vm484_vm1, %v8583_v4  ;;  %7283 = vmatmul.msk.bf16.vlgmr.msrb.gmra.mxu1 %vm484_vm1, %v8585_v5  ;;  %v985_v10 = vsel %vm484_vm1, %v883_v6, 0  ;;  %v696_v6 = vrot.slane %v8615_v26, 2 }
 0x264   : > { %994 = vmatpush.bf16.xpose.msrb.mxu2 %v985_v10 }
 0x265   : > { %v8593_v14 = vpack.c.b16 %v1265_v9, %v1265_v9  ;;  %v721_v9 = vsel %vm713_vm7, 1, %v8299_v39  ;;  %vm711_vm9 = vcmp.gt.f32.partialorder %v696_v6, 0.0 }
 0x266   : > { %v729_v16 = vperm.slane %v721_v9, 0 }
 0x267   : > { %1267 = vrot.lane.b32.xlu1 %v8593_v14, %s8298_s22 }
 0x268   : > { %vm737_vm10 = vcmp.eq.s32.totalorder %v729_v16, 1 }
 0x269   : > { %vm8676_vm11 = vmand %vm737_vm10, %vm8634_vm15 }
 0x26b   : > { %7284 = vmatmul.msk.bf16.vlgmr.msrb.gmra.mxu2 %vm484_vm1, %v8597_v15 }
 0x273   : > { %7282 = vmatmul.msk.bf16.vlgmr.msrb.gmra.mxu3 %vm484_vm1, %v8602_v18 }
 0x2a9   : > { %v1196_v24 = vpop.permute.xlu2 %1195 }
 0x2aa   : > { %v1201_v28 = vsel %vm1151_vm13, %v1196_v24, 0 }
 0x2ab   : > { %v817_v58 = vpop.f32.mrf.mxu1 }
 0x2ac   : > { %v818_v29 = vadd.f32 %v8541_v47, %v817_v58  ;;  %v699_v58 = vrot.slane %v8615_v26, 5 }
 0x2ae   : > { %v8625_v41 = vpack.c.bf16 %v818_v29, %v818_v29  ;;  %vm714_vm12 = vcmp.gt.f32.partialorder %v699_v58, 0.0 }
 0x2af   : > { %v722_v35 = vsel %vm714_vm12, 1, %v8299_v39 }
 0x2b0   : > { %v730_v2 = vperm.slane %v722_v35, 0 }
 0x2b1   : > { %v865_v19 = vpop.f32.mrf.mxu2  ;;  %v1147_v20 = vpop.permute.xlu0 %1146 }
 0x2b2   : > { %v866_v23 = vadd.f32 %v8535_v33, %v865_v19  ;;  %v1153_v17 = vsel %vm1151_vm13, %v1147_v20, 0  ;;  %vm738_vm6 = vcmp.eq.s32.totalorder %v730_v2, 1 }
 0x2b3   : > { %1162 = vmatpush.bf16.msra.mxu1 %v1153_v17  ;;  %v819_v43 = vpop.f32.mrf.mxu1  ;;  %v719_v17 = vsel %vm711_vm9, 1, %v8299_v39  ;;  %vm8703_vm7 = vmand %vm738_vm6, %vm8634_vm15 }
 0x2b4   : > { %v8613_v25 = vpack.c.bf16 %v866_v23, %v866_v23  ;;  %v727_v24 = vperm.slane %v719_v17, 0 }
 0x2b6   : > { %v1004_v27 = vsel %vm484_vm1, %v8613_v25, 0  ;;  %vm735_vm14 = vcmp.eq.s32.totalorder %v727_v24, 1 }
 0x2b7   : > { %1013 = vmatpush.bf16.xpose.msra.mxu3 %v1004_v27  ;;  %vm8690_vm2 = vmand %vm735_vm14, %vm8634_vm15 }
 0x2b9   : > { %v1172_v31 = vpop.permute.xlu1 %1171  ;;  %v867_v32 = vpop.f32.mrf.mxu2 }
 0x2ba   : > { %v1177_v36 = vsel %vm1151_vm13, %v1172_v31, 0  ;;  %v868_v38 = vadd.f32 %v8535_v33, %v867_v32  ;;  %v820_v33 = vadd.f32 %v8541_v47, %v819_v43 }
 0x2bb   : > { %1186 = vmatpush.bf16.msra.mxu2 %v1177_v36  ;;  %v697_v36 = vrot.slane %v8615_v26, 3 }
 0x2bc   : > { %v8627_v42 = vpack.c.bf16 %v868_v38, %v868_v38  ;;  %v8639_v56 = vpack.c.bf16 %v820_v33, %v820_v33 }
 0x2bd   : > { %vm712_vm5 = vcmp.gt.f32.partialorder %v697_v36, 0.0 }
 0x2be   : > { %7285 = vmatmul.msk.bf16.vlgmr.msra.gmra.mxu3 %vm484_vm1, %v8625_v41  ;;  %v1023_v50 = vsel %vm484_vm1, %v8627_v42, 0 }
 0x2bf   : > { %1210 = vmatpush.bf16.msrb.mxu3 %v1201_v28  ;;  %1032 = vmatpush.bf16.xpose.msrb.mxu0 %v1023_v50  ;;  %v720_v50 = vsel %vm712_vm5, 1, %v8299_v39 }
 0x2c0   : > { %v728_v12 = vperm.slane %v720_v50, 0 }
 0x2c2   : > { %vm736_vm9 = vcmp.eq.s32.totalorder %v728_v12, 1 }
 0x2c3   : > { %vm8712_vm10 = vmand %vm736_vm9, %vm8634_vm15 }
 0x2c6   : > { %v901_v59 = vpop.f32.mrf.mxu3  ;;  %7286 = vmatmul.msk.bf16.vlgmr.msrb.gmra.mxu0 %vm484_vm1, %v8639_v56 }
 0x2c7   : > { %v8651_v47 = vsel %vm8643_vm3, %v901_v59, -1e+09 }
 0x2c8   : > { %v1047_v62 = vsel %vm11120_vm4, %v8651_v47, -inf }
 0x2c9   : > { %1048 = vmax.xlane.f32.xlu2 %v1047_v62 }
 0x2ce   : > { %v903_v3 = vpop.f32.mrf.mxu3 }
 0x2d6   : > { %v920_v10 = vpop.f32.mrf.mxu3 }
 0x2d7   : > { %v8667_v13 = vsel %vm8660_vm8, %v920_v10, -1e+09 }
 0x2d8   : > { %v1050_v19 = vsel %vm11120_vm4, %v8667_v13, -inf }
 0x2d9   : > { %1051 = vmax.xlane.f32.xlu1 %v1050_v19  ;;  %v1268_v20 = vpop.permute.xlu1 %1267  ;;  %v700_v19 = vrot.slane %v8615_v26, 6 }
 0x2da   : > { %v1273_v23 = vsel %vm1151_vm13, %v1268_v20, 0  ;;  %v701_v20 = vrot.slane %v8615_v26, 7 }
 0x2db   : > { %1282 = vmatpush.bf16.msrb.mxu2 %v1273_v23  ;;  %vm715_vm12 = vcmp.gt.f32.partialorder %v700_v19, 0.0 }
 0x2dc   : > { %vm716_vm14 = vcmp.gt.f32.partialorder %v701_v20, 0.0  ;;  %v723_v23 = vsel %vm715_vm12, 1, %v8299_v39 }
 0x2dd   : > { %v724_v17 = vsel %vm716_vm14, 1, %v8299_v39  ;;  %v731_v58 = vperm.slane %v723_v23, 0 }
 0x2de   : > { %v922_v27 = vpop.f32.mrf.mxu3  ;;  %v732_v24 = vperm.slane %v724_v17, 0 }
 0x2df   : > { %vm739_vm5 = vcmp.eq.s32.totalorder %v731_v58, 1 }
 0x2e0   : > { %v977_v29 = vpop.f32.mrf.mxu1  ;;  %vm740_vm6 = vcmp.eq.s32.totalorder %v732_v24, 1  ;;  %vm8726_vm9 = vmand %vm739_vm5, %vm8634_vm15 }
 0x2e1   : > { %v8682_v31 = vsel %vm8676_vm11, %v977_v29, -1e+09  ;;  %vm8732_vm12 = vmand %vm740_vm6, %vm8634_vm15 }
 0x2e2   : > { %v1059_v32 = vsel %vm11120_vm4, %v8682_v31, -inf }
 0x2e3   : > { %1060 = vmax.xlane.f32.xlu0 %v1059_v32 }
 0x2e6   : > { %v939_v43 = vpop.f32.mrf.mxu3 }
 0x2e7   : > { %v8696_v45 = vsel %vm8690_vm2, %v939_v43, -1e+09 }
 0x2e8   : > { %v979_v46 = vpop.f32.mrf.mxu1  ;;  %v1053_v49 = vsel %vm11120_vm4, %v8696_v45, -inf }
 0x2eb   : > { %1054 = vmax.xlane.f32.xlu0 %v1053_v49 }
 0x2ee   : > { %v941_v59 = vpop.f32.mrf.mxu3  ;;  %v996_v62 = vpop.f32.mrf.mxu2 }
 0x2ef   : > { %v1043_v63 = vsel %vm8703_vm7, %v996_v62, -1e+09 }
 0x2f0   : > { %v1062_v0 = vsel %vm11120_vm4, %v1043_v63, -inf }
 0x2f1   : > { %1063 = vmax.xlane.f32.xlu1 %v1062_v0 }
 0x2f6   : > { %v958_v3 = vpop.f32.mrf.mxu3  ;;  %v998_v6 = vpop.f32.mrf.mxu2 }
 0x2f7   : > { %v1041_v9 = vsel %vm8712_vm10, %v958_v3, -1e+09 }
 0x2f8   : > { %v1056_v10 = vsel %vm11120_vm4, %v1041_v9, -inf }
 0x2f9   : > { %1057 = vmax.xlane.f32.xlu2 %v1056_v10 }
 0x2fe   : > { %v960_v16 = vpop.f32.mrf.mxu3 }
 0x33c   : > { %v1049_v27 = vpop.xlane.xlu2 %1048 }
 0x33d   : > { %v1071_v29 = vsub.f32 %v8651_v47, %v1049_v27 }
 0x33f   : > { %v1079_v26 = vmul.f32 1.442695, %v1071_v29 }
 0x341   : > { %v1015_v35 = vpop.f32.mrf.mxu3  ;;  %7933 = vpow2.f32 %v1079_v26 }
 0x342   : > { %v8738_v39 = vsel %vm8726_vm9, %v1015_v35, -1e+09 }
 0x343   : > { %v1034_v47 = vpop.f32.mrf.mxu0  ;;  %v1065_v2 = vsel %vm11120_vm4, %v8738_v39, -inf }
 0x344   : > { %v8744_v43 = vsel %vm8732_vm12, %v1034_v47, -1e+09  ;;  %1066 = vmax.xlane.f32.xlu1 %v1065_v2 }
 0x345   : > { %v1068_v51 = vsel %vm11120_vm4, %v8744_v43, -inf }
 0x346   : > { %1069 = vmax.xlane.f32.xlu2 %v1068_v51 }
 0x347   : > { %v8748_v49 = vpop.eup %7933 }
 0x348   : > { %v1095_v62 = vsel %vm11120_vm4, %v8748_v49, 0.0 }
 0x349   : > { %v1017_v46 = vpop.f32.mrf.mxu3 }
 0x34b   : > { %v1036_v50 = vpop.f32.mrf.mxu0 }
 0x34c   : > { %v1052_v12 = vpop.xlane.xlu1 %1051  ;;  %v1241_v50 = vunpack.c.l.b16 %v8576_v60  ;;  %v1217_v60 = vunpack.c.l.b16 %v8569_v7  ;;  %v1337_v7 = vunpack.c.l.b16 %v8550_v34 }
 0x34d   : > { %v1072_v59 = vsub.f32 %v8667_v13, %v1052_v12 }
 0x34e   : > { %1096 = vadd.xlane.f32.xlu2 %v1095_v62  ;;  %v8776_v12 = vpack.c.b16 %v1241_v50, %v1241_v50  ;;  %v1363_v62 = vunpack.c.l.b16 %v8567_v55  ;;  %v1389_v55 = vunpack.c.l.b16 %v8583_v4 }
 0x34f   : > { %v1081_v0 = vmul.f32 1.442695, %v1072_v59 }
 0x351   : > { %7935 = vpow2.f32 %v1081_v0  ;;  %v1364_v0 = vpack.c.b16 %v1363_v62, %v1363_v62 }
 0x356   : > { %v1061_v3 = vpop.xlane.xlu0 %1060 }
 0x357   : > { %v8753_v6 = vpop.eup %7935  ;;  %v1075_v10 = vsub.f32 %v8682_v31, %v1061_v3  ;;  %v8791_v3 = vpack.c.b16 %v1217_v60, %v1217_v60 }
 0x358   : > { %v1098_v16 = vsel %vm11120_vm4, %v8753_v6, 0.0 }
 0x359   : > { %v1087_v19 = vmul.f32 1.442695, %v1075_v10  ;;  %1099 = vadd.xlane.f32.xlu0 %v1098_v16  ;;  %v1390_v16 = vpack.c.b16 %v1389_v55, %v1389_v55 }
 0x35b   : > { %7937 = vpow2.f32 %v1087_v19  ;;  %v1338_v19 = vpack.c.b16 %v1337_v7, %v1337_v7 }
 0x35e   : > { %v1055_v20 = vpop.xlane.xlu0 %1054 }
 0x35f   : > { %v1073_v13 = vsub.f32 %v8696_v45, %v1055_v20 }
 0x361   : > { %v8759_v23 = vpop.eup %7937  ;;  %v1083_v17 = vmul.f32 1.442695, %v1073_v13 }
 0x362   : > { %v1107_v58 = vsel %vm11120_vm4, %v8759_v23, 0.0 }
 0x363   : > { %7939 = vpow2.f32 %v1083_v17  ;;  %1108 = vadd.xlane.f32.xlu0 %v1107_v58 }
 0x364   : > { %v1064_v24 = vpop.xlane.xlu1 %1063 }
 0x365   : > { %v1076_v27 = vsub.f32 %v1043_v63, %v1064_v24 }
 0x367   : > { %v1089_v31 = vmul.f32 1.442695, %v1076_v27 }
 0x369   : > { %v8763_v29 = vpop.eup %7939  ;;  %7941 = vpow2.f32 %v1089_v31 }
 0x36a   : > { %v1101_v26 = vsel %vm11120_vm4, %v8763_v29, 0.0 }
 0x36b   : > { %1102 = vadd.xlane.f32.xlu0 %v1101_v26 }
 0x36c   : > { %v1058_v35 = vpop.xlane.xlu2 %1057 }
 0x36d   : > { %v1074_v45 = vsub.f32 %v1041_v9, %v1058_v35  ;;  %v1289_v9 = vunpack.c.l.b16 %v8613_v25  ;;  %v1313_v25 = vunpack.c.l.b16 %v8627_v42  ;;  %v1467_v42 = vunpack.c.l.b16 %v8597_v15 }
 0x36f   : > { %v8767_v47 = vpop.eup %7941  ;;  %v1085_v2 = vmul.f32 1.442695, %v1074_v45  ;;  %v8781_v59 = vpack.c.b16 %v1289_v9, %v1289_v9  ;;  %v8799_v10 = vpack.c.b16 %v1313_v25, %v1313_v25  ;;  %v1468_v4 = vpack.c.b16 %v1467_v42, %v1467_v42 }
 0x370   : > { %v1110_v51 = vsel %vm11120_vm4, %v8767_v47, 0.0 }
 0x371   : > { %7943 = vpow2.f32 %v1085_v2  ;;  %1111 = vadd.xlane.f32.xlu2 %v1110_v51 }
 0x377   : > { %v8771_v46 = vpop.eup %7943 }
 0x378   : > { %v1104_v63 = vsel %vm11120_vm4, %v8771_v46, 0.0 }
 0x379   : > { %1105 = vadd.xlane.f32.xlu1 %v1104_v63 }
 0x37f   : > { %1243 = vrot.lane.b32.xlu0 %v8776_v12, %s8298_s22 }
 0x387   : > { %1291 = vrot.lane.b32.xlu0 %v8781_v59, %s8298_s22 }
 0x389   : > { %1367 = vrot.lane.b32.xlu2 %v8555_v40, %s8300_s28 }
 0x38f   : > { %1341 = vrot.lane.b32.xlu0 %v8545_v30, %s8300_s28 }
 0x391   : > { %1365 = vrot.lane.b32.xlu2 %v1364_v0, %s8300_s28 }
 0x392   : > { %1219 = vrot.lane.b32.xlu1 %v8791_v3, %s8298_s22 }
 0x397   : > { %1393 = vrot.lane.b32.xlu0 %v8562_v48, %s8300_s28 }
 0x399   : > { %1315 = vrot.lane.b32.xlu2 %v8799_v10, %s8298_s22 }
 0x39f   : > { %1391 = vrot.lane.b32.xlu0 %v1390_v16, %s8300_s28  ;;  %v1441_v16 = vunpack.c.l.b16 %v8585_v5  ;;  %v1493_v5 = vunpack.c.l.b16 %v8625_v41 }
 0x3a1   : > { %1339 = vrot.lane.b32.xlu2 %v1338_v19, %s8300_s28 }
 0x3a7   : > { %1471 = vrot.lane.b32.xlu0 %v8593_v14, %s8300_s28 }
 0x3a9   : > { %1419 = vrot.lane.b32.xlu2 %v8791_v3, %s8300_s28 }
 0x3af   : > { %1469 = vrot.lane.b32.xlu0 %v1468_v4, %s8300_s28 }
 0x3b7   : > { %1497 = vrot.lane.b32.xlu0 %v8781_v59, %s8300_s28  ;;  %v1067_v17 = vpop.xlane.xlu1 %1066 }
 0x3b8   : > { %v1077_v15 = vsub.f32 %v8738_v39, %v1067_v17 }
 0x3b9   : > { %v1070_v34 = vpop.xlane.xlu2 %1069 }
 0x3ba   : > { %v1078_v20 = vsub.f32 %v8744_v43, %v1070_v34  ;;  %v1091_v27 = vmul.f32 1.442695, %v1077_v15 }
 0x3bc   : > { %v1093_v13 = vmul.f32 1.442695, %v1078_v20  ;;  %v1442_v20 = vpack.c.b16 %v1441_v16, %v1441_v16 }
 0x3be   : > { %7945 = vpow2.f32 %v1093_v13 }
 0x3bf   : > { %1523 = vrot.lane.b32.xlu0 %v8799_v10, %s8300_s28 }
 0x3c1   : > { %v1097_v58 = vpop.xlane.xlu2 %1096 }
 0x3c2   : > { %7947 = vrcp.f32 %v1097_v58 }
 0x3c3   : > { %7949 = vpow2.f32 %v1091_v27  ;;  %v1494_v27 = vpack.c.b16 %v1493_v5, %v1493_v5 }
 0x3c4   : > { %v8819_v24 = vpop.eup %7945 }
 0x3c5   : > { %v1116_v31 = vsel %vm11120_vm4, %v8819_v24, 0.0 }
 0x3c6   : > { %1117 = vadd.xlane.f32.xlu1 %v1116_v31 }
 0x3c8   : > { %v7948_v26 = vpop.eup %7947 }
 0x3c9   : > { %v1127_v43 = vmul.f32 %v7948_v26, %v8748_v49  ;;  %v8825_v2 = vpop.eup %7949  ;;  %v1415_v49 = vunpack.c.l.b16 %v8602_v18  ;;  %v1519_v26 = vunpack.c.l.b16 %v8639_v56 }
 0x3ca   : > { %v1113_v39 = vsel %vm11120_vm4, %v8825_v2, 0.0 }
 0x3cb   : > { %v1135_v35 = vpack.c.bf16 %v1127_v43, %v1127_v43  ;;  %v1416_v7 = vpack.c.b16 %v1415_v49, %v1415_v49  ;;  %v1520_v41 = vpack.c.b16 %v1519_v26, %v1519_v26 }
 0x3cc   : > { %v1100_v45 = vpop.xlane.xlu0 %1099 }
 0x3cd   : > { %7951 = vrcp.f32 %v1100_v45  ;;  %7287 = vmatmul.msk.bf16.vlgmr.msra.gmra.mxu1 %vm11120_vm4, %v1135_v35 }
 0x3d2   : > { %1114 = vadd.xlane.f32.xlu2 %v1113_v39 }
 0x3d3   : > { %v7952_v51 = vpop.eup %7951 }
 0x3d4   : > { %v1128_v63 = vmul.f32 %v7952_v51, %v8753_v6 }
 0x3d6   : > { %v1136_v50 = vpack.c.bf16 %v1128_v63, %v1128_v63  ;;  %v1109_v9 = vpop.xlane.xlu0 %1108 }
 0x3d8   : > { %7288 = vmatmul.msk.bf16.vlgmr.msra.gmra.mxu2 %vm11120_vm4, %v1136_v50 }
 0x3de   : > { %v1103_v62 = vpop.xlane.xlu0 %1102 }
 0x3df   : > { %7953 = vrcp.f32 %v1103_v62  ;;  %1445 = vrot.lane.b32.xlu1 %v8776_v12, %s8300_s28 }
 0x3e4   : > { %v1112_v60 = vpop.xlane.xlu2 %1111 }
 0x3e5   : > { %v7954_v0 = vpop.eup %7953  ;;  %7955 = vrcp.f32 %v1112_v60 }
 0x3e6   : > { %v1129_v25 = vmul.f32 %v7954_v0, %v8763_v29  ;;  %7957 = vrcp.f32 %v1109_v9 }
 0x3e8   : > { %v1137_v55 = vpack.c.bf16 %v1129_v25, %v1129_v25 }
 0x3ea   : > { %1417 = vrot.lane.b32.xlu2 %v1416_v7, %s8300_s28  ;;  %7289 = vmatmul.msk.bf16.vlgmr.msrb.gmra.mxu3 %vm11120_vm4, %v1137_v55 }
 0x3eb   : > { %v7956_v6 = vpop.eup %7955 }
 0x3ec   : > { %v1132_v19 = vmul.f32 %v7956_v6, %v8767_v47  ;;  %v1368_v42 = vpop.permute.xlu2 %1367  ;;  %v7958_v4 = vpop.eup %7957 }
 0x3ed   : > { %v1373_v18 = vsel %vm484_vm1, %v1368_v42, 0  ;;  %v1131_v29 = vmul.f32 %v7958_v4, %v8759_v23  ;;  %v1106_v58 = vpop.xlane.xlu1 %1105 }
 0x3ee   : > { %v1140_v34 = vpack.c.bf16 %v1132_v19, %v1132_v19  ;;  %1382 = vmatpush.bf16.xpose.msra.mxu2 %v1373_v18  ;;  %7959 = vrcp.f32 %v1106_v58 }
 0x3ef   : > { %v1139_v47 = vpack.c.bf16 %v1131_v29, %v1131_v29 }
 0x3f0   : > { %7292 = vmatmul.msk.bf16.vlgmr.msrb.gmra.mxu2 %vm11120_vm4, %v1140_v34 }
 0x3f1   : > { %v1244_v13 = vpop.permute.xlu0 %1243 }
 0x3f2   : > { %v1249_v17 = vsel %vm1151_vm13, %v1244_v13, 0  ;;  %1443 = vrot.lane.b32.xlu2 %v1442_v20, %s8300_s28 }
 0x3f3   : > { %1258 = vmatpush.bf16.msrb.mxu1 %v1249_v17 }
 0x3f4   : > { %v1366_v15 = vpop.permute.xlu2 %1365  ;;  %v7960_v35 = vpop.eup %7959 }
 0x3f5   : > { %v1130_v51 = vmul.f32 %v7960_v35, %v8771_v46 }
 0x3f6   : > { %7291 = vmatmul.msk.bf16.vlgmr.msrb.gmra.mxu1 %vm11120_vm4, %v1139_v47 }
 0x3f7   : > { %v1138_v56 = vpack.c.bf16 %v1130_v51, %v1130_v51 }
 0x3f9   : > { %v1292_v31 = vpop.permute.xlu0 %1291 }
 0x3fa   : > { %v1297_v23 = vsel %vm1151_vm13, %v1292_v31, 0  ;;  %1495 = vrot.lane.b32.xlu2 %v1494_v27, %s8300_s28 }
 0x3fb   : > { %1306 = vmatpush.bf16.msra.mxu3 %v1297_v23 }
 0x3fc   : > { %v1316_v43 = vpop.permute.xlu2 %1315 }
 0x3fd   : > { %v1321_v62 = vsel %vm1151_vm13, %v1316_v43, 0 }
 0x400   : > { %7296 = vmatmul.msk.bf16.vlgmr.msra.gmra.mxu2 %vm484_vm1, %v1366_v15 }
 0x401   : > { %v1342_v45 = vpop.permute.xlu0 %1341 }
 0x402   : > { %v1347_v39 = vsel %vm484_vm1, %v1342_v45, 0  ;;  %1521 = vrot.lane.b32.xlu2 %v1520_v41, %s8300_s28 }
 0x403   : > { %1356 = vmatpush.bf16.xpose.msra.mxu1 %v1347_v39 }
 0x404   : > { %v1340_v63 = vpop.permute.xlu2 %1339  ;;  %v1220_v50 = vpop.permute.xlu1 %1219 }
 0x405   : > { %v1225_v9 = vsel %vm1151_vm13, %v1220_v50, 0 }
 0x406   : > { %1234 = vmatpush.bf16.msra.mxu0 %v1225_v9 }
 0x409   : > { %7290 = vmatmul.msk.bf16.vlgmr.msra.gmra.mxu0 %vm11120_vm4, %v1138_v56  ;;  %v1394_v49 = vpop.permute.xlu0 %1393 }
 0x40a   : > { %1330 = vmatpush.bf16.msrb.mxu0 %v1321_v62  ;;  %v1399_v60 = vsel %vm484_vm1, %v1394_v49, 0  ;;  %7295 = vmatmul.msk.bf16.vlgmr.msra.gmra.mxu1 %vm484_vm1, %v1340_v63 }
 0x40b   : > { %1408 = vmatpush.bf16.xpose.msrb.mxu3 %v1399_v60 }
 0x40c   : > { %v1420_v0 = vpop.permute.xlu2 %1419 }
 0x40d   : > { %v1425_v46 = vsel %vm484_vm1, %v1420_v0, 0 }
 0x40e   : > { %1434 = vmatpush.bf16.xpose.msra.mxu0 %v1425_v46 }
 0x411   : > { %v1392_v25 = vpop.permute.xlu0 %1391 }
 0x419   : > { %v1472_v55 = vpop.permute.xlu0 %1471 }
 0x41a   : > { %v1477_v7 = vsel %vm484_vm1, %v1472_v55, 0 }
 0x41b   : > { %1486 = vmatpush.bf16.xpose.msrb.mxu2 %v1477_v7 }
 0x421   : > { %v1470_v6 = vpop.permute.xlu0 %1469 }
 0x422   : > { %7300 = vmatmul.msk.bf16.vlgmr.msrb.gmra.mxu2 %vm484_vm1, %v1470_v6 }
 0x429   : > { %v1498_v16 = vpop.permute.xlu0 %1497 }
 0x42a   : > { %v1503_v58 = vsel %vm484_vm1, %v1498_v16, 0 }
 0x431   : > { %v1524_v18 = vpop.permute.xlu0 %1523 }
 0x432   : > { %v1529_v20 = vsel %vm484_vm1, %v1524_v18, 0 }
 0x439   : > { %v1118_v19 = vpop.xlane.xlu1 %1117 }
 0x43a   : > { %7961 = vrcp.f32 %v1118_v19 }
 0x440   : > { %v7962_v42 = vpop.eup %7961 }
 0x441   : > { %v1134_v4 = vmul.f32 %v7962_v42, %v8819_v24 }
 0x443   : > { %v1142_v34 = vpack.c.bf16 %v1134_v4, %v1134_v4 }
 0x445   : > { %v1115_v29 = vpop.xlane.xlu2 %1114  ;;  %7294 = vmatmul.msk.bf16.vlgmr.msrb.gmra.mxu0 %vm11120_vm4, %v1142_v34 }
 0x446   : > { %7963 = vrcp.f32 %v1115_v29  ;;  %1538 = vmatpush.bf16.xpose.msrb.mxu0 %v1529_v20 }
 0x44a   : > { %v8864_v13 = vpop.f32.mrf.mxu1 }
 0x44c   : > { %v7964_v17 = vpop.eup %7963 }
 0x44d   : > { %v1133_v5 = vmul.f32 %v7964_v17, %v8825_v2  ;;  %v1418_v47 = vpop.permute.xlu2 %1417 }
 0x44f   : > { %v1141_v15 = vpack.c.bf16 %v1133_v5, %v1133_v5 }
 0x451   : > { %v1446_v27 = vpop.permute.xlu1 %1445  ;;  %7293 = vmatmul.msk.bf16.vlgmr.msra.gmra.mxu3 %vm11120_vm4, %v1141_v15 }
 0x452   : > { %v1451_v24 = vsel %vm484_vm1, %v1446_v27, 0  ;;  %1512 = vmatpush.bf16.xpose.msra.mxu3 %v1503_v58  ;;  %v1166_v31 = vpop.f32.mrf.mxu1 }
 0x453   : > { %1460 = vmatpush.bf16.xpose.msrb.mxu1 %v1451_v24 }
 0x455   : > { %v1444_v23 = vpop.permute.xlu2 %1443  ;;  %7298 = vmatmul.msk.bf16.vlgmr.msra.gmra.mxu0 %vm484_vm1, %v1418_v47 }
 0x45a   : > { %7299 = vmatmul.msk.bf16.vlgmr.msrb.gmra.mxu1 %vm484_vm1, %v1444_v23 }
 0x45b   : > { %v8872_v26 = vpop.f32.mrf.mxu2 }
 0x45d   : > { %v1496_v2 = vpop.permute.xlu2 %1495 }
 0x461   : > { %7297 = vmatmul.msk.bf16.vlgmr.msrb.gmra.mxu3 %vm484_vm1, %v1392_v25 }
 0x463   : > { %v1190_v43 = vpop.f32.mrf.mxu2 }
 0x465   : > { %v1522_v35 = vpop.permute.xlu2 %1521 }
 0x466   : > { %7302 = vmatmul.msk.bf16.vlgmr.msrb.gmra.mxu0 %vm484_vm1, %v1522_v35 }
 0x46d   : > { %v8876_v41 = vpop.f32.mrf.mxu3 }
 0x471   : > { %7301 = vmatmul.msk.bf16.vlgmr.msra.gmra.mxu3 %vm484_vm1, %v1496_v2 }
 0x473   : > { %v8879_v45 = vpop.f32.mrf.mxu1  ;;  %v8881_v39 = vpop.f32.mrf.mxu2 }
 0x475   : > { %v1214_v51 = vpop.f32.mrf.mxu3 }
 0x47b   : > { %v1262_v63 = vpop.f32.mrf.mxu1  ;;  %v1286_v50 = vpop.f32.mrf.mxu2 }
 0x483   : > { %v1384_v9 = vpop.f32.mrf.mxu2 }
 0x484   : > { %v1545_v62 = vsel %vm8660_vm8, %v1384_v9, -1e+09 }
 0x485   : > { %v1555_v56 = vsel %vm11120_vm4, %v1545_v62, -inf }
 0x486   : > { %v8886_v49 = vpop.f32.mrf.mxu0  ;;  %1556 = vmax.xlane.f32.xlu0 %v1555_v56 }
 0x487   : > { %v1358_v60 = vpop.f32.mrf.mxu1 }
 0x488   : > { %v1544_v0 = vsel %vm8643_vm3, %v1358_v60, -1e+09 }
 0x489   : > { %v1552_v46 = vsel %vm11120_vm4, %v1544_v0, -inf }
 0x48a   : > { %1553 = vmax.xlane.f32.xlu1 %v1552_v46 }
 0x48b   : > { %v1386_v25 = vpop.f32.mrf.mxu2 }
 0x48e   : > { %v1238_v55 = vpop.f32.mrf.mxu0 }
 0x48f   : > { %v1360_v7 = vpop.f32.mrf.mxu1 }
 0x4a5   : > { %v1488_v6 = vpop.f32.mrf.mxu2 }
 0x4a6   : > { %v8893_v16 = vsel %vm8703_vm7, %v1488_v6, -1e+09 }
 0x4a7   : > { %v1567_v19 = vsel %vm11120_vm4, %v8893_v16, -inf }
 0x4a8   : > { %1568 = vmax.xlane.f32.xlu1 %v1567_v19 }
 0x4ad   : > { %v1490_v42 = vpop.f32.mrf.mxu2 }
 0x4c1   : > { %1690 = vrot.lane.b32.xlu1 %v8562_v48, %s8301_s29 }
 0x4c2   : > { %v8899_v4 = vpop.f32.mrf.mxu0 }
 0x4ca   : > { %v1334_v18 = vpop.f32.mrf.mxu0 }
 0x4d2   : > { %v1436_v34 = vpop.f32.mrf.mxu0 }
 0x4d3   : > { %v1547_v20 = vsel %vm8712_vm10, %v1436_v34, -1e+09 }
 0x4d4   : > { %v8903_v29 = vpop.f32.mrf.mxu3  ;;  %v1561_v17 = vsel %vm11120_vm4, %v1547_v20, -inf }
 0x4d5   : > { %1562 = vmax.xlane.f32.xlu0 %v1561_v17 }
 0x4d7   : > { %v1462_v5 = vpop.f32.mrf.mxu1 }
 0x4d8   : > { %v1548_v47 = vsel %vm8676_vm11, %v1462_v5, -1e+09 }
 0x4d9   : > { %v1564_v15 = vsel %vm11120_vm4, %v1548_v47, -inf }
 0x4da   : > { %v1438_v58 = vpop.f32.mrf.mxu0  ;;  %1565 = vmax.xlane.f32.xlu2 %v1564_v15 }
 0x4dc   : > { %v1310_v48 = vpop.f32.mrf.mxu3 }
 0x4df   : > { %v1464_v27 = vpop.f32.mrf.mxu1 }
 0x4e3   : > { %v1540_v24 = vpop.f32.mrf.mxu0 }
 0x4e4   : > { %v1410_v31 = vpop.f32.mrf.mxu3  ;;  %v8911_v23 = vsel %vm8732_vm12, %v1540_v24, -1e+09 }
 0x4e5   : > { %v1573_v2 = vsel %vm11120_vm4, %v8911_v23, -inf  ;;  %v1546_v55 = vsel %vm8690_vm2, %v1410_v31, -1e+09 }
 0x4e9   : > { %1669 = vrot.lane.b32.xlu0 %v8555_v40, %s8301_s29 }
 0x4eb   : > { %1574 = vmax.xlane.f32.xlu1 %v1573_v2  ;;  %v1542_v43 = vpop.f32.mrf.mxu0 }
 0x4ec   : > { %v1412_v35 = vpop.f32.mrf.mxu3 }
 0x4f2   : > { %1648 = vrot.lane.b32.xlu2 %v8545_v30, %s8301_s29  ;;  %v1558_v30 = vsel %vm11120_vm4, %v1546_v55, -inf }
 0x4f4   : > { %v1514_v51 = vpop.f32.mrf.mxu3 }
 0x4f5   : > { %v1550_v63 = vsel %vm8726_vm9, %v1514_v51, -1e+09 }
 0x4f6   : > { %v1570_v50 = vsel %vm11120_vm4, %v1550_v63, -inf }
 0x4f7   : > { %1571 = vmax.xlane.f32.xlu1 %v1570_v50 }
 0x4f9   : > { %v1557_v56 = vpop.xlane.xlu0 %1556 }
 0x4fa   : > { %v1577_v60 = vsub.f32 %v1545_v62, %v1557_v56 }
 0x4fc   : > { %v1516_v9 = vpop.f32.mrf.mxu3  ;;  %v1586_v40 = vmul.f32 1.442695, %v1577_v60 }
 0x4fd   : > { %v1554_v7 = vpop.xlane.xlu1 %1553 }
 0x4fe   : > { %7965 = vpow2.f32 %v1586_v40  ;;  %v1576_v18 = vsub.f32 %v1544_v0, %v1554_v7 }
 0x500   : > { %v1584_v5 = vmul.f32 1.442695, %v1576_v18 }
 0x504   : > { %v7966_v46 = vpop.eup %7965 }
 0x505   : > { %v1603_v25 = vsel %vm11120_vm4, %v7966_v46, 0.0 }
 0x513   : > { %1604 = vadd.xlane.f32.xlu0 %v1603_v25 }
 0x51b   : > { %1559 = vmax.xlane.f32.xlu2 %v1558_v30  ;;  %v1569_v6 = vpop.xlane.xlu1 %1568 }
 0x51c   : > { %v1581_v27 = vsub.f32 %v8893_v16, %v1569_v6 }
 0x51e   : > { %v1594_v2 = vmul.f32 1.442695, %v1581_v27 }
 0x533   : > { %1711 = vrot.lane.b32.xlu2 %v8791_v3, %s8301_s29  ;;  %v1691_v19 = vpop.permute.xlu1 %1690 }
 0x534   : > { %v1696_v62 = vsel %vm1151_vm13, %v1691_v19, 0 }
 0x535   : > { %1705 = vmatpush.bf16.msrb.mxu3 %v1696_v62 }
 0x548   : > { %v1563_v42 = vpop.xlane.xlu0 %1562 }
 0x549   : > { %v1579_v34 = vsub.f32 %v1547_v20, %v1563_v42 }
 0x54b   : > { %v1590_v17 = vmul.f32 1.442695, %v1579_v34 }
 0x54d   : > { %7967 = vpow2.f32 %v1590_v17  ;;  %v1566_v15 = vpop.xlane.xlu2 %1565 }
 0x54e   : > { %v1580_v58 = vsub.f32 %v1548_v47, %v1566_v15  ;;  %7969 = vpow2.f32 %v1584_v5 }
 0x550   : > { %v1592_v48 = vmul.f32 1.442695, %v1580_v58 }
 0x552   : > { %7971 = vpow2.f32 %v1592_v48 }
 0x553   : > { %v7968_v24 = vpop.eup %7967  ;;  %7973 = vpow2.f32 %v1594_v2 }
 0x554   : > { %v1609_v3 = vsel %vm11120_vm4, %v7968_v24, 0.0  ;;  %v7970_v0 = vpop.eup %7969 }
 0x555   : > { %v1649_v31 = vpop.permute.xlu2 %1648  ;;  %1610 = vadd.xlane.f32.xlu0 %v1609_v3  ;;  %v1600_v16 = vsel %vm11120_vm4, %v7970_v0, 0.0 }
 0x556   : > { %v1654_v43 = vsel %vm1151_vm13, %v1649_v31, 0 }
 0x557   : > { %1663 = vmatpush.bf16.msra.mxu1 %v1654_v43 }
 0x558   : > { %v8932_v20 = vpop.eup %7971 }
 0x559   : > { %v1612_v47 = vsel %vm11120_vm4, %v8932_v20, 0.0  ;;  %v7974_v50 = vpop.eup %7973 }
 0x55a   : > { %1613 = vadd.xlane.f32.xlu1 %v1612_v47  ;;  %v1615_v9 = vsel %vm11120_vm4, %v7974_v50, 0.0 }
 0x55b   : > { %v1670_v35 = vpop.permute.xlu0 %1669 }
 0x55c   : > { %v1675_v51 = vsel %vm1151_vm13, %v1670_v35, 0  ;;  %1601 = vadd.xlane.f32.xlu2 %v1600_v16 }
 0x55d   : > { %1684 = vmatpush.bf16.msra.mxu2 %v1675_v51 }
 0x55e   : > { %v1575_v56 = vpop.xlane.xlu1 %1574 }
 0x55f   : > { %v1583_v18 = vsub.f32 %v8911_v23, %v1575_v56 }
 0x564   : > { %1616 = vadd.xlane.f32.xlu2 %v1615_v9 }
 0x569   : > { %1753 = vrot.lane.b32.xlu0 %v8593_v14, %s8301_s29 }
 0x56a   : > { %v1572_v60 = vpop.xlane.xlu1 %1571 }
 0x56b   : > { %v1582_v40 = vsub.f32 %v1550_v63, %v1572_v60 }
 0x56d   : > { %v1596_v25 = vmul.f32 1.442695, %v1582_v40 }
 0x57c   : > { %1732 = vrot.lane.b32.xlu2 %v8776_v12, %s8301_s29 }
 0x584   : > { %1795 = vrot.lane.b32.xlu2 %v8799_v10, %s8301_s29  ;;  %v1598_v10 = vmul.f32 1.442695, %v1583_v18 }
 0x586   : > { %v1605_v30 = vpop.xlane.xlu0 %1604 }
 0x587   : > { %7975 = vrcp.f32 %v1605_v30 }
 0x588   : > { %7977 = vpow2.f32 %v1596_v25 }
 0x58d   : > { %v7976_v7 = vpop.eup %7975 }
 0x58e   : > { %v1633_v6 = vmul.f32 %v7976_v7, %v7966_v46  ;;  %v1560_v19 = vpop.xlane.xlu2 %1559  ;;  %v8945_v62 = vpop.eup %7977 }
 0x58f   : > { %v1578_v42 = vsub.f32 %v1546_v55, %v1560_v19  ;;  %v1618_v12 = vsel %vm11120_vm4, %v8945_v62, 0.0 }
 0x590   : > { %v1641_v14 = vpack.c.bf16 %v1633_v6, %v1633_v6 }
 0x591   : > { %v1588_v34 = vmul.f32 1.442695, %v1578_v42 }
 0x592   : > { %7304 = vmatmul.msk.bf16.vlgmr.msra.gmra.mxu2 %vm11120_vm4, %v1641_v14 }
 0x593   : > { %7979 = vpow2.f32 %v1588_v34  ;;  %1619 = vadd.xlane.f32.xlu0 %v1618_v12 }
 0x594   : > { %7981 = vpow2.f32 %v1598_v10 }
 0x596   : > { %v1712_v63 = vpop.permute.xlu2 %1711 }
 0x597   : > { %v1717_v17 = vsel %vm1151_vm13, %v1712_v63, 0 }
 0x598   : > { %1726 = vmatpush.bf16.msra.mxu0 %v1717_v17 }
 0x599   : > { %v7980_v46 = vpop.eup %7979 }
 0x59a   : > { %v1606_v55 = vsel %vm11120_vm4, %v7980_v46, 0.0  ;;  %v7982_v5 = vpop.eup %7981 }
 0x59b   : > { %1607 = vadd.xlane.f32.xlu1 %v1606_v55  ;;  %v1621_v23 = vsel %vm11120_vm4, %v7982_v5, 0.0 }
 0x5a3   : > { %1622 = vadd.xlane.f32.xlu1 %v1621_v23 }
 0x5bc   : > { %1774 = vrot.lane.b32.xlu1 %v8781_v59, %s8301_s29 }
 0x5c8   : > { %v1611_v15 = vpop.xlane.xlu0 %1610 }
 0x5c9   : > { %7983 = vrcp.f32 %v1611_v15 }
 0x5cd   : > { %v1614_v47 = vpop.xlane.xlu1 %1613 }
 0x5cf   : > { %v7984_v58 = vpop.eup %7983  ;;  %v1602_v48 = vpop.xlane.xlu2 %1601 }
 0x5d0   : > { %v1635_v27 = vmul.f32 %v7984_v58, %v7968_v24  ;;  %7985 = vrcp.f32 %v1602_v48 }
 0x5d2   : > { %v1643_v3 = vpack.c.bf16 %v1635_v27, %v1635_v27 }
 0x5d4   : > { %7306 = vmatmul.msk.bf16.vlgmr.msra.gmra.mxu0 %vm11120_vm4, %v1643_v3 }
 0x5d6   : > { %v7986_v31 = vpop.eup %7985 }
 0x5d7   : > { %v1632_v2 = vmul.f32 %v7986_v31, %v7970_v0  ;;  %v1617_v43 = vpop.xlane.xlu2 %1616 }
 0x5d8   : > { %7987 = vrcp.f32 %v1617_v43 }
 0x5d9   : > { %v1640_v35 = vpack.c.bf16 %v1632_v2, %v1632_v2  ;;  %7989 = vrcp.f32 %v1614_v47 }
 0x5db   : > { %7303 = vmatmul.msk.bf16.vlgmr.msra.gmra.mxu1 %vm11120_vm4, %v1640_v35  ;;  %v1754_v16 = vpop.permute.xlu0 %1753  ;;  %v7752_v35 = vld [vmem:[%s11116_s6 + $0x38] sm:$0xff] }
 0x5dc   : > { %v1759_v59 = vsel %vm1151_vm13, %v1754_v16, 0  ;;  %v7751_v16 = vld [vmem:[%s11116_s6 + $0x30] sm:$0xff] }
 0x5dd   : > { %1768 = vmatpush.bf16.msrb.mxu2 %v1759_v59  ;;  %v7750_v59 = vld [vmem:[%s11116_s6 + $0x28] sm:$0xff] }
 0x5de   : > { %v7988_v51 = vpop.eup %7987 }
 0x5df   : > { %v1637_v9 = vmul.f32 %v7988_v51, %v7974_v50  ;;  %v1733_v24 = vpop.permute.xlu2 %1732  ;;  %v7990_v40 = vpop.eup %7989  ;;  %v7749_v51 = vld [vmem:[%s11116_s6 + $0x20] sm:$0xff] }
 0x5e0   : > { %v1738_v56 = vsel %vm1151_vm13, %v1733_v24, 0  ;;  %v1636_v0 = vmul.f32 %v7990_v40, %v8932_v20 }
 0x5e1   : > { %v1645_v60 = vpack.c.bf16 %v1637_v9, %v1637_v9  ;;  %1747 = vmatpush.bf16.msrb.mxu1 %v1738_v56 }
 0x5e2   : > { %v1644_v7 = vpack.c.bf16 %v1636_v0, %v1636_v0 }
 0x5e3   : > { %7308 = vmatmul.msk.bf16.vlgmr.msrb.gmra.mxu2 %vm11120_vm4, %v1645_v60 }
 0x5e5   : > { %1919 = vmatpush.bf16.msra.mxu1 %v7752_v35 }
 0x5e7   : > { %v1796_v25 = vpop.permute.xlu2 %1795 }
 0x5e8   : > { %v1801_v30 = vsel %vm1151_vm13, %v1796_v25, 0 }
 0x5e9   : > { %1810 = vmatpush.bf16.msrb.mxu0 %v1801_v30  ;;  %1920 = vmatpush.bf16.msra.mxu1 %v7751_v16 }
 0x5eb   : > { %7307 = vmatmul.msk.bf16.vlgmr.msrb.gmra.mxu1 %vm11120_vm4, %v1644_v7 }
 0x5ed   : > { %1921 = vmatpush.bf16.msra.mxu1 %v7750_v59 }
 0x5f1   : > { %1922 = vmatpush.bf16.msra.mxu1 %v7749_v51 }
 0x606   : > { %v1620_v63 = vpop.xlane.xlu0 %1619 }
 0x60e   : > { %v1608_v6 = vpop.xlane.xlu1 %1607 }
 0x60f   : > { %7991 = vrcp.f32 %v1608_v6 }
 0x615   : > { %v7992_v50 = vpop.eup %7991  ;;  %v1686_v19 = vpop.f32.mrf.mxu2 }
 0x616   : > { %v1634_v42 = vmul.f32 %v7992_v50, %v7980_v46  ;;  %v1623_v14 = vpop.xlane.xlu1 %1622 }
 0x617   : > { %7993 = vrcp.f32 %v1623_v14 }
 0x618   : > { %v1642_v18 = vpack.c.bf16 %v1634_v42, %v1634_v42  ;;  %7995 = vrcp.f32 %v1620_v63 }
 0x61a   : > { %7305 = vmatmul.msk.bf16.vlgmr.msrb.gmra.mxu3 %vm11120_vm4, %v1642_v18 }
 0x61d   : > { %v7994_v34 = vpop.eup %7993  ;;  %v1688_v12 = vpop.f32.mrf.mxu2 }
 0x61e   : > { %v1639_v20 = vmul.f32 %v7994_v34, %v7982_v5  ;;  %v7996_v17 = vpop.eup %7995 }
 0x61f   : > { %v1638_v55 = vmul.f32 %v7996_v17, %v8945_v62 }
 0x620   : > { %v1647_v10 = vpack.c.bf16 %v1639_v20, %v1639_v20 }
 0x621   : > { %v1646_v46 = vpack.c.bf16 %v1638_v55, %v1638_v55 }
 0x622   : > { %7310 = vmatmul.msk.bf16.vlgmr.msrb.gmra.mxu0 %vm11120_vm4, %v1647_v10 }
 0x62e   : > { %v1775_v23 = vpop.permute.xlu1 %1774 }
 0x62f   : > { %v1780_v15 = vsel %vm1151_vm13, %v1775_v23, 0 }
 0x630   : > { %1789 = vmatpush.bf16.msra.mxu3 %v1780_v15 }
 0x633   : > { %7309 = vmatmul.msk.bf16.vlgmr.msra.gmra.mxu3 %vm11120_vm4, %v1646_v46 }
 0x651   : > { %v1728_v58 = vpop.f32.mrf.mxu0 }
 0x658   : > { %v1665_v48 = vpop.f32.mrf.mxu1 }
 0x659   : > { %v7804_v27 = vpack.i.bf16 %v1686_v19, %v1665_v48  ;;  %v1730_v3 = vpop.f32.mrf.mxu0 }
 0x65b   : > { %7805 = vrot.lane.b32.xlu2 %v7804_v27, %s8301_s29 }
 0x660   : > { %v1667_v5 = vpop.f32.mrf.mxu1 }
 0x666   : > { %v1770_v31 = vpop.f32.mrf.mxu2 }
 0x668   : > { %v1749_v2 = vpop.f32.mrf.mxu1 }
 0x669   : > { %v7814_v43 = vpack.i.bf16 %v1770_v31, %v1749_v2 }
 0x66b   : > { %7815 = vrot.lane.b32.xlu1 %v7814_v43, %s8301_s29 }
 0x66e   : > { %v1772_v62 = vpop.f32.mrf.mxu2 }
 0x670   : > { %v1751_v47 = vpop.f32.mrf.mxu1 }
 0x69d   : > { %v1707_v9 = vpop.f32.mrf.mxu3 }
 0x69e   : > { %v7809_v24 = vpack.i.bf16 %v1728_v58, %v1707_v9 }
 0x69f   : > { %v1812_v56 = vpop.f32.mrf.mxu0 }
 0x6a0   : > { %7810 = vrot.lane.b32.xlu2 %v7809_v24, %s8301_s29 }
 0x6a5   : > { %v1709_v60 = vpop.f32.mrf.mxu3 }
 0x6a7   : > { %v1814_v40 = vpop.f32.mrf.mxu0 }
 0x6b5   : > { %v7806_v0 = vpop.permute.xlu2 %7805 }
 0x6b6   : > { %v7808_v25 = vunpack.i.h.bf16 %v7806_v0  ;;  %v7807_v30 = vunpack.i.l.bf16 %v7806_v0  ;;  %v1791_v7 = vpop.f32.mrf.mxu3 }
 0x6b7   : > { %v7819_v6 = vpack.i.bf16 %v1812_v56, %v1791_v7 }
 0x6b8   : > { %v1849_v50 = vsel %vm484_vm1, %v8872_v26, %v7808_v25  ;;  %v1848_v19 = vsel %vm484_vm1, %v8864_v13, %v7807_v30 }
 0x6b9   : > { %v1875_v42 = vpack.c.bf16 %v1849_v50, %v1848_v19  ;;  %7820 = vrot.lane.b32.xlu0 %v7819_v6, %s8301_s29 }
 0x6bb   : > { %7335 = vmatmul.msk.bf16.vlgmr.msra.gmra.mxu1 %vm11119_vm0, %v1875_v42 }
 0x6be   : > { %v1793_v14 = vpop.f32.mrf.mxu3 }
 0x6dd   : > { %v7816_v26 = vpop.permute.xlu1 %7815 }
 0x6de   : > { %v7818_v13 = vunpack.i.h.bf16 %v7816_v26  ;;  %v7817_v17 = vunpack.i.l.bf16 %v7816_v26 }
 0x6e0   : > { %v1853_v55 = vsel %vm484_vm1, %v8881_v39, %v7818_v13  ;;  %v1852_v23 = vsel %vm484_vm1, %v8879_v45, %v7817_v17  ;;  %v7889_v39 = vld [vmem:[%s11117_s7 + $0xd] ss:$0 sm:$0xff] }
 0x6e1   : > { %v1877_v15 = vpack.c.bf16 %v1853_v55, %v1852_v23  ;;  %v1858_v45 = vadd.f32 %v7889_v39, %v8478_v11  ;;  %v1859_v2 = vadd.f32 %v7889_v39, %v8481_v54  ;;  %v1860_v62 = vadd.f32 %v7889_v39, %v8493_v37 }
 0x6e2   : > { %v1861_v11 = vadd.f32 %v7889_v39, %v8496_v61  ;;  %v1862_v54 = vadd.f32 %v7889_v39, %v8507_v52  ;;  %v1863_v37 = vadd.f32 %v7889_v39, %v8510_v53  ;;  %v1864_v61 = vadd.f32 %v7889_v39, %v8523_v21 }
 0x6e3   : > { %v1865_v21 = vadd.f32 %v7889_v39, %v8526_v22 }
 0x6fa   : > { %v7811_v18 = vpop.permute.xlu2 %7810 }
 0x6fb   : > { %v7813_v34 = vunpack.i.h.bf16 %v7811_v18  ;;  %v7812_v12 = vunpack.i.l.bf16 %v7811_v18 }
 0x6fd   : > { %v1851_v20 = vsel %vm484_vm1, %v8886_v49, %v7813_v34  ;;  %v1850_v10 = vsel %vm484_vm1, %v8876_v41, %v7812_v12 }
 0x6fe   : > { %v1876_v63 = vpack.c.bf16 %v1851_v20, %v1850_v10 }
 0x700   : > { %7336 = vmatmul.msk.bf16.gmra.mxu1 %vm11119_vm0, %v1876_v63 }
 0x710   : > { %7337 = vmatmul.msk.bf16.gmra.mxu1 %vm11119_vm0, %v1877_v15 }
 0x72b   : > { %v7821_v46 = vpop.permute.xlu0 %7820 }
 0x72c   : > { %v7823_v49 = vunpack.i.h.bf16 %v7821_v46  ;;  %v7822_v58 = vunpack.i.l.bf16 %v7821_v46 }
 0x72e   : > { %v1855_v41 = vsel %vm484_vm1, %v8899_v4, %v7823_v49  ;;  %v1854_v48 = vsel %vm484_vm1, %v8903_v29, %v7822_v58 }
 0x72f   : > { %v1878_v27 = vpack.c.bf16 %v1855_v41, %v1854_v48 }
 0x731   : > { %7338 = vmatmul.msk.bf16.gmra.mxu1 %vm11119_vm0, %v1878_v27 }
 0x738   : > { %v1924_v3 = vpop.f32.mrf.mxu1 }
 0x739   : > { %v1944_v5 = vadd.f32 %v1924_v3, %v1858_v45 }
 0x73b   : > { %v1952_v31 = vsel %vm484_vm1, %v1944_v5, 0.0 }
 0x73c   : > { %1953 = vadd.xlane.f32.xlu2 %v1952_v31 }
 0x740   : > { %v1926_v4 = vpop.f32.mrf.mxu1 }
 0x741   : > { %v1945_v43 = vadd.f32 %v1926_v4, %v1859_v2 }
 0x743   : > { %v1955_v29 = vsel %vm484_vm1, %v1945_v43, 0.0 }
 0x744   : > { %1956 = vadd.xlane.f32.xlu1 %v1955_v29  ;;  %v7756_v29 = vld [vmem:[%s11115_s5 + $0x28] sm:$0xff] }
 0x745   : > { %2269 = vmatpush.bf16.msrb.mxu3 %v7756_v29 }
 0x77d   : > { %v1929_v47 = vpop.f32.mrf.mxu1 }
 0x77e   : > { %v1946_v35 = vadd.f32 %v1929_v47, %v1860_v62  ;;  %v7755_v47 = vld [vmem:[%s11115_s5 + $0x20] sm:$0xff] }
 0x77f   : > { %2270 = vmatpush.bf16.msrb.mxu3 %v7755_v47 }
 0x780   : > { %v1958_v16 = vsel %vm484_vm1, %v1946_v35, 0.0 }
 0x781   : > { %1959 = vadd.xlane.f32.xlu0 %v1958_v16 }
 0x785   : > { %v1931_v59 = vpop.f32.mrf.mxu1 }
 0x786   : > { %v1947_v51 = vadd.f32 %v1931_v59, %v1861_v11  ;;  %v7741_v11 = vld [vmem:[%s9068_s25] sm:$0xff]  ;;  %v7754_v59 = vld [vmem:[%s11114_s4 + $0x18] sm:$0xff] }
 0x787   : > { %7383 = vmatmul.msk.bf16.vlgmr.msrb.gmra.mxu3 %vm484_vm1, %v7741_v11  ;;  %2189 = vmatpush.bf16.msra.mxu2 %v7754_v59 }
 0x788   : > { %v1961_v9 = vsel %vm484_vm1, %v1947_v51, 0.0 }
 0x789   : > { %1962 = vadd.xlane.f32.xlu2 %v1961_v9 }
 0x78d   : > { %v1934_v24 = vpop.f32.mrf.mxu1 }
 0x78e   : > { %v1948_v56 = vadd.f32 %v1934_v24, %v1862_v54  ;;  %v7753_v24 = vld [vmem:[%s11114_s4 + $0x10] sm:$0xff] }
 0x78f   : > { %2190 = vmatpush.bf16.msra.mxu2 %v7753_v24 }
 0x790   : > { %v1964_v60 = vsel %vm484_vm1, %v1948_v56, 0.0 }
 0x791   : > { %1965 = vadd.xlane.f32.xlu1 %v1964_v60 }
 0x795   : > { %v1936_v40 = vpop.f32.mrf.mxu1 }
 0x796   : > { %v1949_v0 = vadd.f32 %v1936_v40, %v1863_v37 }
 0x798   : > { %v1967_v25 = vsel %vm484_vm1, %v1949_v0, 0.0 }
 0x799   : > { %1968 = vadd.xlane.f32.xlu2 %v1967_v25 }
 0x7ae   : > { %v1939_v30 = vpop.f32.mrf.mxu1 }
 0x7af   : > { %v1950_v7 = vadd.f32 %v1939_v30, %v1864_v61  ;;  %v1954_v6 = vpop.xlane.xlu2 %1953 }
 0x7b0   : > { %v1976_v50 = vmul.f32 %v1954_v6, %v8395_v44 }
 0x7b1   : > { %v1970_v52 = vsel %vm484_vm1, %v1950_v7, 0.0 }
 0x7b2   : > { %v9023_v19 = vsub.f32 %v1944_v5, %v1976_v50  ;;  %1971 = vadd.xlane.f32.xlu0 %v1970_v52 }
 0x7b4   : > { %v1992_v53 = vmul.f32 %v9023_v19, %v9023_v19 }
 0x7b6   : > { %v2000_v42 = vsel %vm484_vm1, %v1992_v53, 0.0  ;;  %v1941_v14 = vpop.f32.mrf.mxu1 }
 0x7b7   : > { %v1957_v18 = vpop.xlane.xlu1 %1956  ;;  %2001 = vadd.xlane.f32.xlu1 %v2000_v42  ;;  %v1951_v12 = vadd.f32 %v1941_v14, %v1865_v21 }
 0x7b8   : > { %v1977_v34 = vmul.f32 %v1957_v18, %v8395_v44 }
 0x7b9   : > { %v1973_v26 = vsel %vm484_vm1, %v1951_v12, 0.0 }
 0x7ba   : > { %v9030_v20 = vsub.f32 %v1945_v43, %v1977_v34 }
 0x7bc   : > { %v1993_v10 = vmul.f32 %v9030_v20, %v9030_v20 }
 0x7be   : > { %v2003_v63 = vsel %vm484_vm1, %v1993_v10, 0.0 }
 0x7bf   : > { %2004 = vadd.xlane.f32.xlu2 %v2003_v63  ;;  %1974 = vadd.xlane.f32.xlu1 %v1973_v26 }
 0x7f4   : > { %v1960_v13 = vpop.xlane.xlu0 %1959 }
 0x7f5   : > { %v1978_v17 = vmul.f32 %v1960_v13, %v8395_v44  ;;  %v9098_v13 = vld [vmem:[%s11117_s7 + $0xe] ss:$0 sm:$0xff] }
 0x7f7   : > { %v9037_v55 = vsub.f32 %v1946_v35, %v1978_v17 }
 0x7f9   : > { %v1994_v22 = vmul.f32 %v9037_v55, %v9037_v55 }
 0x7fb   : > { %v2006_v23 = vsel %vm484_vm1, %v1994_v22, 0.0 }
 0x7fc   : > { %v1963_v15 = vpop.xlane.xlu2 %1962  ;;  %2007 = vadd.xlane.f32.xlu2 %v2006_v23 }
 0x7fd   : > { %v1979_v46 = vmul.f32 %v1963_v15, %v8395_v44 }
 0x7ff   : > { %v9043_v49 = vsub.f32 %v1947_v51, %v1979_v46 }
 0x801   : > { %v1995_v58 = vmul.f32 %v9043_v49, %v9043_v49 }
 0x803   : > { %v2009_v41 = vsel %vm484_vm1, %v1995_v58, 0.0  ;;  %v9106_v58 = vld [vmem:[%s11117_s7 + $0xf] ss:$0 sm:$0xff] }
 0x804   : > { %v1966_v48 = vpop.xlane.xlu1 %1965  ;;  %2010 = vadd.xlane.f32.xlu0 %v2009_v41 }
 0x805   : > { %v1980_v27 = vmul.f32 %v1966_v48, %v8395_v44 }
 0x807   : > { %v9049_v39 = vsub.f32 %v1948_v56, %v1980_v27 }
 0x809   : > { %v1996_v45 = vmul.f32 %v9049_v39, %v9049_v39 }
 0x80b   : > { %v2012_v3 = vsel %vm484_vm1, %v1996_v45, 0.0  ;;  %v7742_v45 = vld [vmem:[%s9068_s25 + $0x8] sm:$0xff] }
 0x80c   : > { %v1969_v5 = vpop.xlane.xlu2 %1968  ;;  %2013 = vadd.xlane.f32.xlu1 %v2012_v3  ;;  %7384 = vmatmul.msk.bf16.gmra.mxu3 %vm484_vm1, %v7742_v45 }
 0x80d   : > { %v1981_v31 = vmul.f32 %v1969_v5, %v8395_v44 }
 0x80f   : > { %v9055_v2 = vsub.f32 %v1949_v0, %v1981_v31  ;;  %v7743_v31 = vld [vmem:[%s9068_s25 + $0x10] sm:$0xff] }
 0x811   : > { %v1997_v4 = vmul.f32 %v9055_v2, %v9055_v2 }
 0x813   : > { %v2015_v43 = vsel %vm484_vm1, %v1997_v4, 0.0 }
 0x814   : > { %2016 = vadd.xlane.f32.xlu2 %v2015_v43 }
 0x81c   : > { %7385 = vmatmul.msk.bf16.gmra.mxu3 %vm484_vm1, %v7743_v31 }
 0x825   : > { %v1972_v62 = vpop.xlane.xlu0 %1971 }
 0x826   : > { %v1982_v35 = vmul.f32 %v1972_v62, %v8395_v44 }
 0x828   : > { %v9074_v16 = vsub.f32 %v1950_v7, %v1982_v35 }
 0x82a   : > { %v2002_v51 = vpop.xlane.xlu1 %2001  ;;  %v1998_v9 = vmul.f32 %v9074_v16, %v9074_v16 }
 0x82b   : > { %v2024_v54 = vmul.f32 %v2002_v51, %v8395_v44 }
 0x82c   : > { %v2018_v56 = vsel %vm484_vm1, %v1998_v9, 0.0 }
 0x82d   : > { %v2032_v60 = vadd.f32 1e-06, %v2024_v54  ;;  %2019 = vadd.xlane.f32.xlu0 %v2018_v56 }
 0x82f   : > { %7997 = vrsqrt.f32 %v2032_v60  ;;  %vm2046_vm14 = vweird.f32 %v2032_v60 }
 0x832   : > { %v2005_v37 = vpop.xlane.xlu2 %2004  ;;  %v1975_v40 = vpop.xlane.xlu1 %1974 }
 0x833   : > { %v2025_v0 = vmul.f32 %v2005_v37, %v8395_v44  ;;  %v1983_v25 = vmul.f32 %v1975_v40, %v8395_v44 }
 0x835   : > { %v7998_v61 = vpop.eup %7997  ;;  %v2033_v30 = vadd.f32 1e-06, %v2025_v0  ;;  %v9090_v7 = vsub.f32 %v1951_v12, %v1983_v25 }
 0x836   : > { %v2041_v6 = vmul.f32 %v7998_v61, %v2032_v60  ;;  %vm2047_vm15 = vweird.f32 %v7998_v61 }
 0x837   : > { %7999 = vrsqrt.f32 %v2033_v30  ;;  %v1999_v50 = vmul.f32 %v9090_v7, %v9090_v7  ;;  %vm2048_vm5 = vmor %vm2046_vm14, %vm2047_vm15  ;;  %vm2056_vm0 = vweird.f32 %v2033_v30 }
 0x838   : > { %v2042_v52 = vmul.f32 %v7998_v61, %v2041_v6 }
 0x839   : > { %v2021_v53 = vsel %vm484_vm1, %v1999_v50, 0.0 }
 0x83a   : > { %v2043_v42 = vmul.f32 0.5, %v2042_v52  ;;  %2022 = vadd.xlane.f32.xlu1 %v2021_v53 }
 0x83c   : > { %v2044_v14 = vsub.f32 1.5, %v2043_v42 }
 0x83d   : > { %v8000_v18 = vpop.eup %7999 }
 0x83e   : > { %v2045_v21 = vmul.f32 %v7998_v61, %v2044_v14  ;;  %v2051_v34 = vmul.f32 %v8000_v18, %v2033_v30  ;;  %vm2057_vm6 = vweird.f32 %v8000_v18 }
 0x83f   : > { %vm2058_vm4 = vmor %vm2056_vm0, %vm2057_vm6 }
 0x840   : > { %v2052_v10 = vmul.f32 %v8000_v18, %v2051_v34  ;;  %v2049_v12 = vsel %vm2048_vm5, %v7998_v61, %v2045_v21 }
 0x841   : > { %v2120_v17 = vmul.f32 %v2049_v12, %v9023_v19 }
 0x842   : > { %v2053_v63 = vmul.f32 0.5, %v2052_v10 }
 0x843   : > { %v2130_v15 = vmul.f32 %v9098_v13, %v2120_v17 }
 0x844   : > { %v2054_v26 = vsub.f32 1.5, %v2053_v63 }
 0x845   : > { %v9110_v48 = vadd.f32 %v9106_v58, %v2130_v15 }
 0x846   : > { %v2055_v22 = vmul.f32 %v8000_v18, %v2054_v26 }
 0x848   : > { %v2059_v23 = vsel %vm2058_vm4, %v8000_v18, %v2055_v22 }
 0x849   : > { %v2121_v46 = vmul.f32 %v2059_v23, %v9030_v20 }
 0x84b   : > { %v2131_v41 = vmul.f32 %v9098_v13, %v2121_v46 }
 0x84d   : > { %v9113_v19 = vadd.f32 %v9106_v58, %v2131_v41 }
 0x84f   : > { %v2153_v27 = vpack.c.bf16 %v9113_v19, %v9110_v48 }
 0x851   : > { %7351 = vmatmul.msk.bf16.vlgmr.msra.gmra.mxu2 %vm484_vm1, %v2153_v27 }
 0x86f   : > { %v2008_v20 = vpop.xlane.xlu2 %2007 }
 0x870   : > { %v2026_v3 = vmul.f32 %v2008_v20, %v8395_v44 }
 0x872   : > { %v2034_v5 = vadd.f32 1e-06, %v2026_v3 }
 0x874   : > { %8001 = vrsqrt.f32 %v2034_v5  ;;  %vm2066_vm4 = vweird.f32 %v2034_v5 }
 0x877   : > { %v2011_v4 = vpop.xlane.xlu0 %2010 }
 0x878   : > { %v2027_v43 = vmul.f32 %v2011_v4, %v8395_v44 }
 0x87a   : > { %v8002_v29 = vpop.eup %8001  ;;  %v2035_v62 = vadd.f32 1e-06, %v2027_v43 }
 0x87b   : > { %v2061_v47 = vmul.f32 %v8002_v29, %v2034_v5  ;;  %vm2067_vm0 = vweird.f32 %v8002_v29 }
 0x87c   : > { %8003 = vrsqrt.f32 %v2035_v62  ;;  %vm2068_vm15 = vmor %vm2066_vm4, %vm2067_vm0  ;;  %vm2076_vm5 = vweird.f32 %v2035_v62 }
 0x87d   : > { %v2062_v35 = vmul.f32 %v8002_v29, %v2061_v47 }
 0x87f   : > { %v2063_v11 = vmul.f32 0.5, %v2062_v35  ;;  %v2014_v59 = vpop.xlane.xlu1 %2013  ;;  %v7744_v35 = vld [vmem:[%s9068_s25 + $0x18] sm:$0xff] }
 0x880   : > { %v2028_v51 = vmul.f32 %v2014_v59, %v8395_v44  ;;  %7386 = vmatmul.msk.bf16.gmra.mxu3 %vm484_vm1, %v7744_v35 }
 0x881   : > { %v2064_v9 = vsub.f32 1.5, %v2063_v11 }
 0x882   : > { %v8004_v54 = vpop.eup %8003  ;;  %v2036_v24 = vadd.f32 1e-06, %v2028_v51  ;;  %v9158_v51 = vld [vmem:[%s11117_s7 + $0x11] ss:$0 sm:$0xff] }
 0x883   : > { %v2065_v56 = vmul.f32 %v8002_v29, %v2064_v9  ;;  %v2071_v60 = vmul.f32 %v8004_v54, %v2035_v62  ;;  %vm2077_vm14 = vweird.f32 %v8004_v54 }
 0x884   : > { %8005 = vrsqrt.f32 %v2036_v24  ;;  %vm2078_vm6 = vmor %vm2076_vm5, %vm2077_vm14  ;;  %vm2086_vm4 = vweird.f32 %v2036_v24 }
 0x885   : > { %v2072_v37 = vmul.f32 %v8004_v54, %v2071_v60  ;;  %v2069_v40 = vsel %vm2068_vm15, %v8002_v29, %v2065_v56 }
 0x886   : > { %v2122_v50 = vmul.f32 %v2069_v40, %v9037_v55 }
 0x887   : > { %v2073_v0 = vmul.f32 0.5, %v2072_v37  ;;  %v2017_v25 = vpop.xlane.xlu2 %2016 }
 0x888   : > { %v2029_v61 = vmul.f32 %v2017_v25, %v8395_v44  ;;  %v2132_v34 = vmul.f32 %v9098_v13, %v2122_v50 }
 0x889   : > { %v2074_v30 = vsub.f32 1.5, %v2073_v0 }
 0x88a   : > { %v8006_v6 = vpop.eup %8005  ;;  %v2037_v52 = vadd.f32 1e-06, %v2029_v61  ;;  %v9131_v17 = vadd.f32 %v9106_v58, %v2132_v34 }
 0x88b   : > { %v2075_v53 = vmul.f32 %v8004_v54, %v2074_v30  ;;  %v2081_v42 = vmul.f32 %v8006_v6, %v2036_v24  ;;  %vm2087_vm0 = vweird.f32 %v8006_v6 }
 0x88c   : > { %8007 = vrsqrt.f32 %v2037_v52  ;;  %vm2088_vm15 = vmor %vm2086_vm4, %vm2087_vm0  ;;  %vm2096_vm5 = vweird.f32 %v2037_v52 }
 0x88d   : > { %v2079_v14 = vsel %vm2078_vm6, %v8004_v54, %v2075_v53  ;;  %v2082_v18 = vmul.f32 %v8006_v6, %v2081_v42  ;;  %v2272_v54 = vpop.f32.mrf.mxu3 }
 0x88e   : > { %v2123_v21 = vmul.f32 %v2079_v14, %v9043_v49  ;;  %v2273_v60 = vadd.f32 %v9158_v51, %v2272_v54 }
 0x88f   : > { %v2083_v10 = vmul.f32 0.5, %v2082_v18 }
 0x890   : > { %v2133_v12 = vmul.f32 %v9098_v13, %v2123_v21  ;;  %v2300_v40 = vpack.c.bf16 %v2273_v60, %v2273_v60 }
 0x891   : > { %v2084_v63 = vsub.f32 1.5, %v2083_v10 }
 0x892   : > { %v8008_v26 = vpop.eup %8007  ;;  %v9134_v55 = vadd.f32 %v9106_v58, %v2133_v12  ;;  %v2312_v25 = vsel %vm484_vm1, %v2300_v40, 0  ;;  %v2557_v61 = vunpack.c.l.b16 %v2300_v40 }
 0x893   : > { %v2085_v22 = vmul.f32 %v8006_v6, %v2084_v63  ;;  %v2091_v23 = vmul.f32 %v8008_v26, %v2037_v52  ;;  %vm2097_vm14 = vweird.f32 %v8008_v26  ;;  %2321 = vmatpush.bf16.xpose.msra.mxu0 %v2312_v25 }
 0x894   : > { %v2154_v15 = vpack.c.bf16 %v9134_v55, %v9131_v17  ;;  %vm2098_vm6 = vmor %vm2096_vm5, %vm2097_vm14 }
 0x895   : > { %v2092_v49 = vmul.f32 %v8008_v26, %v2091_v23  ;;  %v2089_v46 = vsel %vm2088_vm15, %v8006_v6, %v2085_v22  ;;  %v9163_v6 = vpack.c.b16 %v2557_v61, %v2557_v61  ;;  %v2274_v21 = vpop.f32.mrf.mxu3 }
 0x896   : > { %7352 = vmatmul.msk.bf16.gmra.mxu2 %vm484_vm1, %v2154_v15  ;;  %v2124_v45 = vmul.f32 %v2089_v46, %v9049_v39  ;;  %v2275_v34 = vadd.f32 %v9158_v51, %v2274_v21 }
 0x897   : > { %v2093_v41 = vmul.f32 0.5, %v2092_v49  ;;  %2559 = vrot.lane.b32.xlu1 %v9163_v6, %s8298_s22 }
 0x898   : > { %v2134_v31 = vmul.f32 %v9098_v13, %v2124_v45  ;;  %v2301_v63 = vpack.c.bf16 %v2275_v34, %v2275_v34 }
 0x899   : > { %v2094_v27 = vsub.f32 1.5, %v2093_v41 }
 0x89a   : > { %v9145_v62 = vadd.f32 %v9106_v58, %v2134_v31  ;;  %v2331_v22 = vsel %vm484_vm1, %v2301_v63, 0  ;;  %v2581_v45 = vunpack.c.l.b16 %v2301_v63 }
 0x89b   : > { %v2095_v20 = vmul.f32 %v8008_v26, %v2094_v27  ;;  %2340 = vmatpush.bf16.xpose.msrb.mxu0 %v2331_v22 }
 0x89d   : > { %v2099_v3 = vsel %vm2098_vm6, %v8008_v26, %v2095_v20  ;;  %v9187_v20 = vpack.c.b16 %v2581_v45, %v2581_v45 }
 0x89e   : > { %v2125_v5 = vmul.f32 %v2099_v3, %v9055_v2 }
 0x89f   : > { %2583 = vrot.lane.b32.xlu2 %v9187_v20, %s8298_s22 }
 0x8a0   : > { %v2020_v4 = vpop.xlane.xlu0 %2019  ;;  %v2135_v43 = vmul.f32 %v9098_v13, %v2125_v5 }
 0x8a1   : > { %v2030_v29 = vmul.f32 %v2020_v4, %v8395_v44 }
 0x8a2   : > { %v9148_v47 = vadd.f32 %v9106_v58, %v2135_v43  ;;  %v2277_v43 = vpop.f32.mrf.mxu3 }
 0x8a3   : > { %v2038_v39 = vadd.f32 1e-06, %v2030_v29  ;;  %v2278_v29 = vadd.f32 %v9158_v51, %v2277_v43 }
 0x8a4   : > { %v2155_v11 = vpack.c.bf16 %v9148_v47, %v9145_v62 }
 0x8a5   : > { %8009 = vrsqrt.f32 %v2038_v39  ;;  %vm2106_vm4 = vweird.f32 %v2038_v39 }
 0x8a6   : > { %7353 = vmatmul.msk.bf16.gmra.mxu2 %vm484_vm1, %v2155_v11 }
 0x8ab   : > { %v8010_v2 = vpop.eup %8009 }
 0x8ac   : > { %v2101_v59 = vmul.f32 %v8010_v2, %v2038_v39  ;;  %vm2107_vm0 = vweird.f32 %v8010_v2  ;;  %v2302_v39 = vpack.c.bf16 %v2278_v29, %v2278_v29 }
 0x8ad   : > { %v2023_v9 = vpop.xlane.xlu1 %2022  ;;  %vm2108_vm15 = vmor %vm2106_vm4, %vm2107_vm0  ;;  %vm11139_vm0 = vcmask 64512  }
 0x8ae   : > { %v2102_v24 = vmul.f32 %v8010_v2, %v2101_v59  ;;  %v2031_v56 = vmul.f32 %v2023_v9, %v8395_v44  ;;  %v2350_v35 = vsel %vm484_vm1, %v2302_v39, 0  ;;  %v2605_v11 = vunpack.c.l.b16 %v2302_v39  ;;  %v2279_v59 = vpop.f32.mrf.mxu3  ;;  %vm11140_vm4 = vmmov %vm11139_vm0 }
 0x8af   : > { %v2280_v9 = vadd.f32 %v9158_v51, %v2279_v59 }
 0x8b0   : > { %v2039_v37 = vadd.f32 1e-06, %v2031_v56  ;;  %v2103_v0 = vmul.f32 0.5, %v2102_v24 }
 0x8b1   : > { %v9208_v54 = vpack.c.bf16 %v2280_v9, %v2280_v9 }
 0x8b2   : > { %8011 = vrsqrt.f32 %v2039_v37  ;;  %v2104_v30 = vsub.f32 1.5, %v2103_v0  ;;  %vm2116_vm5 = vweird.f32 %v2039_v37 }
 0x8b3   : > { %v2369_v24 = vsel %vm484_vm1, %v9208_v54, 0 }
 0x8b4   : > { %v2105_v52 = vmul.f32 %v8010_v2, %v2104_v30 }
 0x8b6   : > { %v2109_v14 = vsel %vm2108_vm15, %v8010_v2, %v2105_v52  ;;  %v9203_v2 = vpack.c.b16 %v2605_v11, %v2605_v11  ;;  %v2282_v56 = vpop.f32.mrf.mxu3  ;;  %vm11141_vm15 = vmmov %vm11139_vm0 }
 0x8b7   : > { %v2126_v12 = vmul.f32 %v2109_v14, %v9074_v16  ;;  %v2283_v60 = vadd.f32 %v9158_v51, %v2282_v56 }
 0x8b8   : > { %v8012_v50 = vpop.eup %8011  ;;  %2607 = vrot.lane.b32.xlu0 %v9203_v2, %s8298_s22 }
 0x8b9   : > { %v2111_v53 = vmul.f32 %v8012_v50, %v2039_v37  ;;  %vm2117_vm14 = vweird.f32 %v8012_v50  ;;  %v2136_v49 = vmul.f32 %v9098_v13, %v2126_v12  ;;  %v9213_v37 = vpack.c.bf16 %v2283_v60, %v2283_v60 }
 0x8ba   : > { %vm2118_vm6 = vmor %vm2116_vm5, %vm2117_vm14 }
 0x8bb   : > { %v2112_v42 = vmul.f32 %v8012_v50, %v2111_v53  ;;  %v9174_v41 = vadd.f32 %v9106_v58, %v2136_v49  ;;  %v2388_v25 = vsel %vm484_vm1, %v9213_v37, 0  ;;  %vm11142_vm14 = vmmov %vm11139_vm0 }
 0x8bc   : > { %2397 = vmatpush.bf16.xpose.msrb.mxu1 %v2388_v25  ;;  %vm11143_vm5 = vmmov %vm11139_vm0 }
 0x8bd   : > { %v2113_v18 = vmul.f32 0.5, %v2112_v42 }
 0x8be   : > { %v2284_v40 = vpop.f32.mrf.mxu3 }
 0x8bf   : > { %v2114_v10 = vsub.f32 1.5, %v2113_v18  ;;  %v2285_v0 = vadd.f32 %v9158_v51, %v2284_v40 }
 0x8c1   : > { %v2115_v26 = vmul.f32 %v8012_v50, %v2114_v10  ;;  %v2305_v61 = vpack.c.bf16 %v2285_v0, %v2285_v0 }
 0x8c3   : > { %v2119_v23 = vsel %vm2118_vm6, %v8012_v50, %v2115_v26  ;;  %v2677_v30 = vunpack.c.l.b16 %v2305_v61  ;;  %v2407_v50 = vsel %vm484_vm1, %v2305_v61, 0  ;;  %vm11144_vm6 = vmmov %vm11139_vm0 }
 0x8c4   : > { %v2127_v15 = vmul.f32 %v2119_v23, %v9090_v7  ;;  %v9185_v7 = vld [vmem:[%s11117_s7 + $0x10] ss:$0 sm:$0xff]  ;;  %2416 = vmatpush.bf16.xpose.msrb.mxu2 %v2407_v50 }
 0x8c5   : > { %v9219_v52 = vpack.c.b16 %v2677_v30, %v2677_v30 }
 0x8c6   : > { %v2137_v46 = vmul.f32 %v9098_v13, %v2127_v15 }
 0x8c7   : > { %2679 = vrot.lane.b32.xlu2 %v9219_v52, %s8298_s22 }
 0x8c8   : > { %v9177_v27 = vadd.f32 %v9106_v58, %v2137_v46 }
 0x8ca   : > { %v2156_v16 = vpack.c.bf16 %v9177_v27, %v9174_v41 }
 0x8cc   : > { %7354 = vmatmul.msk.bf16.gmra.mxu2 %vm484_vm1, %v2156_v16 }
 0x8d4   : > { %v2192_v13 = vpop.f32.mrf.mxu2 }
 0x8d5   : > { %v2193_v58 = vadd.f32 %v9185_v7, %v2192_v13 }
 0x8d7   : > { %v9192_v3 = vpack.c.bf16 %v2193_v58, %v2193_v58 }
 0x8d9   : > { %7387 = vmatmul.msk.bf16.vlgmr.msra.gmra.mxu0 %vm484_vm1, %v9192_v3 }
 0x8da   : > { %2359 = vmatpush.bf16.xpose.msra.mxu0 %v2350_v35 }
 0x8dc   : > { %v2194_v5 = vpop.f32.mrf.mxu2 }
 0x8dd   : > { %v2195_v31 = vadd.f32 %v9185_v7, %v2194_v5 }
 0x8df   : > { %v9197_v4 = vpack.c.bf16 %v2195_v31, %v2195_v31 }
 0x8e9   : > { %7388 = vmatmul.msk.bf16.vlgmr.msrb.gmra.mxu0 %vm484_vm1, %v9197_v4 }
 0x8ea   : > { %2378 = vmatpush.bf16.xpose.msrb.mxu0 %v2369_v24 }
 0x8f9   : > { %v2584_v31 = vpop.permute.xlu2 %2583 }
 0x8fa   : > { %v2589_v43 = vsel %vm1151_vm13, %v2584_v31, 0 }
 0x8fb   : > { %2598 = vmatpush.bf16.msra.mxu2 %v2589_v43 }
 0x903   : > { %v2287_v34 = vpop.f32.mrf.mxu3 }
 0x904   : > { %v2288_v12 = vadd.f32 %v9158_v51, %v2287_v34 }
 0x906   : > { %v9231_v26 = vpack.c.bf16 %v2288_v12, %v2288_v12 }
 0x908   : > { %v2426_v15 = vsel %vm484_vm1, %v9231_v26, 0 }
 0x909   : > { %2435 = vmatpush.bf16.xpose.msra.mxu3 %v2426_v15  ;;  %v2560_v29 = vpop.permute.xlu1 %2559 }
 0x90b   : > { %v2289_v49 = vpop.f32.mrf.mxu3 }
 0x90c   : > { %v2290_v16 = vadd.f32 %v9158_v51, %v2289_v49  ;;  %v2565_v51 = vsel %vm1151_vm13, %v2560_v29, 0 }
 0x90d   : > { %2574 = vmatpush.bf16.msra.mxu1 %v2565_v51 }
 0x90e   : > { %v9245_v13 = vpack.c.bf16 %v2290_v16, %v2290_v16 }
 0x910   : > { %v2445_v5 = vsel %vm484_vm1, %v9245_v13, 0 }
 0x919   : > { %v2197_v53 = vpop.f32.mrf.mxu2 }
 0x91a   : > { %v2198_v42 = vadd.f32 %v9185_v7, %v2197_v53 }
 0x91c   : > { %v9224_v14 = vpack.c.bf16 %v2198_v42, %v2198_v42 }
 0x91e   : > { %7389 = vmatmul.msk.bf16.vlgmr.msra.gmra.mxu0 %vm484_vm1, %v9224_v14 }
 0x91f   : > { %2454 = vmatpush.bf16.xpose.msra.mxu0 %v2445_v5 }
 0x921   : > { %v2199_v18 = vpop.f32.mrf.mxu2  ;;  %v2680_v0 = vpop.permute.xlu2 %2679 }
 0x922   : > { %v2200_v21 = vadd.f32 %v9185_v7, %v2199_v18  ;;  %v2685_v30 = vsel %vm1151_vm13, %v2680_v0, 0 }
 0x924   : > { %v9233_v22 = vpack.c.bf16 %v2200_v21, %v2200_v21 }
 0x929   : > { %v2202_v10 = vpop.f32.mrf.mxu2 }
 0x92a   : > { %v2203_v63 = vadd.f32 %v9185_v7, %v2202_v10  ;;  %v2608_v25 = vpop.permute.xlu0 %2607 }
 0x92b   : > { %v2613_v50 = vsel %vm1151_vm13, %v2608_v25, 0 }
 0x92c   : > { %v9235_v23 = vpack.c.bf16 %v2203_v63, %v2203_v63  ;;  %2622 = vmatpush.bf16.msrb.mxu3 %v2613_v50  ;;  %v2629_v50 = vunpack.c.l.b16 %v9208_v54 }
 0x92e   : > { %7390 = vmatmul.msk.bf16.vlgmr.msrb.gmra.mxu0 %vm484_vm1, %v9233_v22  ;;  %7391 = vmatmul.msk.bf16.vlgmr.msrb.gmra.mxu1 %vm484_vm1, %v9235_v23 }
 0x931   : > { %v2204_v46 = vpop.f32.mrf.mxu2 }
 0x932   : > { %v2205_v45 = vadd.f32 %v9185_v7, %v2204_v46 }
 0x934   : > { %v9247_v58 = vpack.c.bf16 %v2205_v45, %v2205_v45  ;;  %v2653_v45 = vunpack.c.l.b16 %v9213_v37 }
 0x936   : > { %7392 = vmatmul.msk.bf16.vlgmr.msrb.gmra.mxu2 %vm484_vm1, %v9247_v58  ;;  %v9274_v31 = vpack.c.b16 %v2653_v45, %v2653_v45 }
 0x937   : > { %2694 = vmatpush.bf16.msrb.mxu2 %v2685_v30 }
 0x94f   : > { %v2207_v39 = vpop.f32.mrf.mxu2 }
 0x950   : > { %v2208_v35 = vadd.f32 %v9185_v7, %v2207_v39 }
 0x952   : > { %v9256_v11 = vpack.c.bf16 %v2208_v35, %v2208_v35 }
 0x954   : > { %7393 = vmatmul.msk.bf16.vlgmr.msra.gmra.mxu3 %vm484_vm1, %v9256_v11 }
 0x956   : > { %v2323_v59 = vpop.f32.mrf.mxu0 }
 0x957   : > { %v2209_v9 = vpop.f32.mrf.mxu2  ;;  %v2460_v24 = vsel %vm11139_vm0, %v2323_v59, -inf }
 0x958   : > { %v2210_v56 = vadd.f32 %v9185_v7, %v2209_v9  ;;  %2461 = vmax.xlane.f32.xlu0 %v2460_v24 }
 0x95a   : > { %v9262_v60 = vpack.c.bf16 %v2210_v56, %v2210_v56 }
 0x95c   : > { %7394 = vmatmul.msk.bf16.vlgmr.msra.gmra.mxu0 %vm484_vm1, %v9262_v60 }
 0x95e   : > { %v2325_v40 = vpop.f32.mrf.mxu0 }
 0x966   : > { %v2342_v61 = vpop.f32.mrf.mxu0 }
 0x967   : > { %v2463_v53 = vsel %vm11140_vm4, %v2342_v61, -inf  ;;  %vm11145_vm4 = vmmov %vm11139_vm0 }
 0x968   : > { %2464 = vmax.xlane.f32.xlu2 %v2463_v53 }
 0x96e   : > { %v2344_v7 = vpop.f32.mrf.mxu0 }
 0x99b   : > { %v2361_v42 = vpop.f32.mrf.mxu0 }
 0x99c   : > { %v2466_v18 = vsel %vm11141_vm15, %v2361_v42, -inf  ;;  %vm11146_vm15 = vmmov %vm11139_vm0 }
 0x99d   : > { %2467 = vmax.xlane.f32.xlu1 %v2466_v18  ;;  %v9295_v18 = vpack.c.b16 %v2629_v50, %v2629_v50 }
 0x9a3   : > { %v2363_v21 = vpop.f32.mrf.mxu0 }
 0x9ab   : > { %v2380_v34 = vpop.f32.mrf.mxu0  ;;  %v2399_v10 = vpop.f32.mrf.mxu1 }
 0x9ac   : > { %v2472_v12 = vsel %vm11142_vm14, %v2399_v10, -inf  ;;  %v2469_v63 = vsel %vm11143_vm5, %v2380_v34, -inf  ;;  %vm11147_vm14 = vmmov %vm11139_vm0 }
 0x9ad   : > { %2473 = vmax.xlane.f32.xlu1 %v2472_v12  ;;  %2470 = vmax.xlane.f32.xlu0 %v2469_v63  ;;  %vm11148_vm5 = vmmov %vm11139_vm0 }
 0x9b3   : > { %v2382_v15 = vpop.f32.mrf.mxu0  ;;  %v2401_v49 = vpop.f32.mrf.mxu1 }
 0x9b9   : > { %v2418_v46 = vpop.f32.mrf.mxu2 }
 0x9ba   : > { %v2475_v16 = vsel %vm11144_vm6, %v2418_v46, -inf  ;;  %vm11149_vm6 = vmmov %vm11139_vm0 }
 0x9bb   : > { %2476 = vmax.xlane.f32.xlu2 %v2475_v16 }
 0x9c1   : > { %v2420_v5 = vpop.f32.mrf.mxu2 }
 0x9c6   : > { %2655 = vrot.lane.b32.xlu1 %v9274_v31, %s8298_s22 }
 0x9cb   : > { %v2462_v43 = vpop.xlane.xlu0 %2461 }
 0x9cc   : > { %v2484_v29 = vsub.f32 %v2323_v59, %v2462_v43 }
 0x9ce   : > { %v2492_v39 = vmul.f32 1.442695, %v2484_v29 }
 0x9d0   : > { %8013 = vpow2.f32 %v2492_v39 }
 0x9d6   : > { %v9286_v40 = vpop.eup %8013 }
 0x9d7   : > { %v9278_v51 = vpop.f32.mrf.mxu3  ;;  %v2508_v30 = vsel %vm11146_vm15, %v9286_v40, 0.0  ;;  %vm11151_vm15 = vmmov %vm11139_vm0 }
 0x9d8   : > { %v2478_v35 = vsel %vm11139_vm0, %v9278_v51, -inf }
 0x9d9   : > { %2479 = vmax.xlane.f32.xlu2 %v2478_v35  ;;  %v9282_v9 = vpop.f32.mrf.mxu0 }
 0x9da   : > { %v2481_v37 = vsel %vm11145_vm4, %v9282_v9, -inf  ;;  %vm11150_vm4 = vmmov %vm11139_vm0 }
 0x9db   : > { %v2465_v24 = vpop.xlane.xlu2 %2464  ;;  %2482 = vmax.xlane.f32.xlu0 %v2481_v37 }
 0x9dc   : > { %v2485_v56 = vsub.f32 %v2342_v61, %v2465_v24 }
 0x9de   : > { %v2494_v25 = vmul.f32 1.442695, %v2485_v56 }
 0x9df   : > { %v2439_v0 = vpop.f32.mrf.mxu3 }
 0x9e0   : > { %8015 = vpow2.f32 %v2494_v25  ;;  %v2775_v25 = vunpack.c.l.b16 %v9197_v4 }
 0x9e1   : > { %v2458_v59 = vpop.f32.mrf.mxu0 }
 0x9e3   : > { %2509 = vadd.xlane.f32.xlu0 %v2508_v30  ;;  %v2701_v30 = vunpack.c.l.b16 %v9231_v26  ;;  %v2749_v26 = vunpack.c.l.b16 %v9192_v3 }
 0x9e5   : > { %v9318_v50 = vpack.c.b16 %v2701_v30, %v2701_v30 }
 0x9e6   : > { %v9291_v53 = vpop.eup %8015 }
 0x9e7   : > { %v2511_v7 = vsel %vm11147_vm14, %v9291_v53, 0.0  ;;  %vm11152_vm14 = vmmov %vm11139_vm0 }
 0x9f0   : > { %2512 = vadd.xlane.f32.xlu1 %v2511_v7  ;;  %v2776_v7 = vpack.c.b16 %v2775_v25, %v2775_v25 }
 0x9f1   : > { %2631 = vrot.lane.b32.xlu2 %v9295_v18, %s8298_s22 }
 0xa10   : > { %v2468_v61 = vpop.xlane.xlu1 %2467 }
 0xa11   : > { %v2486_v21 = vsub.f32 %v2361_v42, %v2468_v61 }
 0xa13   : > { %v2496_v12 = vmul.f32 1.442695, %v2486_v21 }
 0xa15   : > { %8017 = vpow2.f32 %v2496_v12 }
 0xa1b   : > { %v9299_v63 = vpop.eup %8017 }
 0xa1c   : > { %v2514_v54 = vsel %vm11148_vm5, %v9299_v63, 0.0  ;;  %vm11153_vm5 = vmmov %vm11139_vm0 }
 0xa1d   : > { %2515 = vadd.xlane.f32.xlu1 %v2514_v54  ;;  %v2750_v54 = vpack.c.b16 %v2749_v26, %v2749_v26 }
 0xa20   : > { %v2474_v15 = vpop.xlane.xlu1 %2473  ;;  %v2471_v49 = vpop.xlane.xlu0 %2470 }
 0xa21   : > { %v2488_v16 = vsub.f32 %v2399_v10, %v2474_v15  ;;  %v2487_v45 = vsub.f32 %v2380_v34, %v2471_v49  ;;  %v2801_v49 = vunpack.c.l.b16 %v9224_v14 }
 0xa23   : > { %v2500_v5 = vmul.f32 1.442695, %v2488_v16  ;;  %v2498_v43 = vmul.f32 1.442695, %v2487_v45  ;;  %v2802_v16 = vpack.c.b16 %v2801_v49, %v2801_v49 }
 0xa25   : > { %8019 = vpow2.f32 %v2500_v5 }
 0xa26   : > { %8021 = vpow2.f32 %v2498_v43  ;;  %v2827_v43 = vunpack.c.l.b16 %v9233_v22 }
 0xa2b   : > { %v9303_v29 = vpop.eup %8019 }
 0xa2c   : > { %v9305_v39 = vpop.eup %8021  ;;  %v2520_v42 = vsel %vm11149_vm6, %v9303_v29, 0.0  ;;  %vm11154_vm6 = vmmov %vm11139_vm0 }
 0xa2d   : > { %2521 = vadd.xlane.f32.xlu1 %v2520_v42  ;;  %v2517_v35 = vsel %vm11139_vm0, %v9305_v39, 0.0 }
 0xa2e   : > { %2518 = vadd.xlane.f32.xlu2 %v2517_v35  ;;  %v2477_v37 = vpop.xlane.xlu2 %2476  ;;  %v2828_v35 = vpack.c.b16 %v2827_v43, %v2827_v43 }
 0xa2f   : > { %v2489_v24 = vsub.f32 %v2418_v46, %v2477_v37  ;;  %v2725_v46 = vunpack.c.l.b16 %v9245_v13 }
 0xa31   : > { %v2502_v10 = vmul.f32 1.442695, %v2489_v24  ;;  %v9324_v21 = vpack.c.b16 %v2725_v46, %v2725_v46 }
 0xa33   : > { %8023 = vpow2.f32 %v2502_v10 }
 0xa38   : > { %v2656_v34 = vpop.permute.xlu1 %2655 }
 0xa39   : > { %v9311_v56 = vpop.eup %8023  ;;  %v2661_v0 = vsel %vm1151_vm13, %v2656_v34, 0 }
 0xa3a   : > { %2670 = vmatpush.bf16.msrb.mxu1 %v2661_v0  ;;  %v2523_v59 = vsel %vm11150_vm4, %v9311_v56, 0.0  ;;  %vm11155_vm4 = vmmov %vm11139_vm0 }
 0xa3b   : > { %2524 = vadd.xlane.f32.xlu0 %v2523_v59 }
 0xa46   : > { %2703 = vrot.lane.b32.xlu2 %v9318_v50, %s8298_s22  ;;  %2777 = vrot.lane.b32.xlu1 %v2776_v7, %s8300_s28  ;;  %v2931_v7 = vunpack.c.l.b16 %v9262_v60 }
 0xa4c   : > { %v2480_v61 = vpop.xlane.xlu2 %2479 }
 0xa4d   : > { %v2490_v14 = vsub.f32 %v9278_v51, %v2480_v61  ;;  %v2853_v51 = vunpack.c.l.b16 %v9235_v23  ;;  %v2932_v23 = vpack.c.b16 %v2931_v7, %v2931_v7 }
 0xa4e   : > { %2753 = vrot.lane.b32.xlu2 %v9163_v6, %s8300_s28  ;;  %2727 = vrot.lane.b32.xlu1 %v9324_v21, %s8298_s22  ;;  %v2483_v4 = vpop.xlane.xlu0 %2482 }
 0xa4f   : > { %2779 = vrot.lane.b32.xlu0 %v9187_v20, %s8300_s28  ;;  %v2504_v24 = vmul.f32 1.442695, %v2490_v14  ;;  %v2491_v0 = vsub.f32 %v9282_v9, %v2483_v4  ;;  %v2854_v25 = vpack.c.b16 %v2853_v51, %v2853_v51 }
 0xa51   : > { %v2506_v59 = vmul.f32 1.442695, %v2491_v0 }
 0xa54   : > { %v2632_v12 = vpop.permute.xlu2 %2631 }
 0xa55   : > { %v2637_v15 = vsel %vm1151_vm13, %v2632_v12, 0 }
 0xa56   : > { %2805 = vrot.lane.b32.xlu2 %v9203_v2, %s8300_s28  ;;  %2646 = vmatpush.bf16.msrb.mxu0 %v2637_v15  ;;  %v2510_v13 = vpop.xlane.xlu0 %2509 }
 0xa57   : > { %2751 = vrot.lane.b32.xlu1 %v2750_v54, %s8300_s28  ;;  %8025 = vrcp.f32 %v2510_v13 }
 0xa5d   : > { %v8026_v45 = vpop.eup %8025 }
 0xa5e   : > { %v2540_v5 = vmul.f32 %v8026_v45, %v9286_v40  ;;  %2803 = vrot.lane.b32.xlu2 %v2802_v16, %s8300_s28  ;;  %v2879_v40 = vunpack.c.l.b16 %v9247_v58  ;;  %v2905_v58 = vunpack.c.l.b16 %v9256_v11 }
 0xa5f   : > { %2831 = vrot.lane.b32.xlu1 %v9295_v18, %s8300_s28 }
 0xa60   : > { %v2548_v3 = vpack.c.bf16 %v2540_v5, %v2540_v5  ;;  %v2880_v34 = vpack.c.b16 %v2879_v40, %v2879_v40 }
 0xa62   : > { %7395 = vmatmul.msk.bf16.vlgmr.msra.gmra.mxu1 %vm11151_vm15, %v2548_v3  ;;  %vm11156_vm15 = vmmov %vm11139_vm0 }
 0xa63   : > { %v2513_v42 = vpop.xlane.xlu1 %2512 }
 0xa64   : > { %8027 = vrcp.f32 %v2513_v42 }
 0xa65   : > { %8029 = vpow2.f32 %v2504_v24 }
 0xa66   : > { %2883 = vrot.lane.b32.xlu2 %v9219_v52, %s8300_s28  ;;  %8031 = vpow2.f32 %v2506_v59 }
 0xa67   : > { %2829 = vrot.lane.b32.xlu1 %v2828_v35, %s8300_s28 }
 0xa6a   : > { %v8028_v37 = vpop.eup %8027 }
 0xa6b   : > { %v2541_v10 = vmul.f32 %v8028_v37, %v9291_v53  ;;  %v9357_v30 = vpop.eup %8029  ;;  %v2906_v53 = vpack.c.b16 %v2905_v58, %v2905_v58 }
 0xa6c   : > { %v2526_v9 = vsel %vm11153_vm5, %v9357_v30, 0.0  ;;  %v9364_v46 = vpop.eup %8031  ;;  %vm11158_vm5 = vmmov %vm11139_vm0 }
 0xa6d   : > { %v2549_v22 = vpack.c.bf16 %v2541_v10, %v2541_v10  ;;  %v2529_v11 = vsel %vm11154_vm6, %v9364_v46, 0.0  ;;  %vm11159_vm6 = vmmov %vm11139_vm0 }
 0xa6e   : > { %2881 = vrot.lane.b32.xlu2 %v2880_v34, %s8300_s28 }
 0xa6f   : > { %2909 = vrot.lane.b32.xlu1 %v9318_v50, %s8300_s28  ;;  %7396 = vmatmul.msk.bf16.vlgmr.msra.gmra.mxu2 %vm11152_vm14, %v2549_v22  ;;  %vm11157_vm14 = vmmov %vm11139_vm0 }
 0xa76   : > { %2855 = vrot.lane.b32.xlu2 %v2854_v25, %s8300_s28 }
 0xa77   : > { %2907 = vrot.lane.b32.xlu1 %v2906_v53, %s8300_s28 }
 0xa79   : > { %2527 = vadd.xlane.f32.xlu0 %v2526_v9 }
 0xa7e   : > { %2935 = vrot.lane.b32.xlu2 %v9324_v21, %s8300_s28 }
 0xa7f   : > { %2933 = vrot.lane.b32.xlu1 %v2932_v23, %s8300_s28 }
 0xa81   : > { %2530 = vadd.xlane.f32.xlu0 %v2529_v11 }
 0xa90   : > { %v2516_v61 = vpop.xlane.xlu1 %2515 }
 0xa91   : > { %8033 = vrcp.f32 %v2516_v61 }
 0xa95   : > { %2857 = vrot.lane.b32.xlu0 %v9274_v31, %s8300_s28 }
 0xa97   : > { %v8034_v4 = vpop.eup %8033 }
 0xa98   : > { %v2542_v60 = vmul.f32 %v8034_v4, %v9299_v63 }
 0xa9a   : > { %v2550_v26 = vpack.c.bf16 %v2542_v60, %v2542_v60 }
 0xa9c   : > { %7397 = vmatmul.msk.bf16.vlgmr.msrb.gmra.mxu3 %vm11139_vm0, %v2550_v26 }
 0xa9d   : > { %3073 = vrot.lane.b32.xlu0 %v9187_v20, %s8301_s29 }
 0xaa0   : > { %v2522_v12 = vpop.xlane.xlu1 %2521 }
 0xaa1   : > { %8035 = vrcp.f32 %v2522_v12  ;;  %v2519_v54 = vpop.xlane.xlu2 %2518 }
 0xaa2   : > { %8037 = vrcp.f32 %v2519_v54 }
 0xaa7   : > { %v8036_v15 = vpop.eup %8035 }
 0xaa8   : > { %v8038_v13 = vpop.eup %8037  ;;  %v2544_v49 = vmul.f32 %v8036_v15, %v9303_v29 }
 0xaa9   : > { %v2543_v16 = vmul.f32 %v8038_v13, %v9305_v39  ;;  %v2704_v45 = vpop.permute.xlu2 %2703 }
 0xaaa   : > { %v2552_v5 = vpack.c.bf16 %v2544_v49, %v2544_v49  ;;  %v2709_v63 = vsel %vm1151_vm13, %v2704_v45, 0 }
 0xaab   : > { %v2551_v3 = vpack.c.bf16 %v2543_v16, %v2543_v16  ;;  %2718 = vmatpush.bf16.msra.mxu3 %v2709_v63 }
 0xaac   : > { %7399 = vmatmul.msk.bf16.vlgmr.msrb.gmra.mxu1 %vm11155_vm4, %v2552_v5  ;;  %vm11160_vm4 = vmmov %vm11139_vm0 }
 0xaad   : > { %7398 = vmatmul.msk.bf16.vlgmr.msrb.gmra.mxu0 %vm11156_vm15, %v2551_v3  ;;  %vm11161_vm15 = vmmov %vm11139_vm0 }
 0xaae   : > { %v2525_v20 = vpop.xlane.xlu0 %2524 }
 0xaaf   : > { %8039 = vrcp.f32 %v2525_v20 }
 0xab1   : > { %v2754_v43 = vpop.permute.xlu2 %2753 }
 0xab2   : > { %v2759_v42 = vsel %vm484_vm1, %v2754_v43, 0 }
 0xab3   : > { %2768 = vmatpush.bf16.xpose.msra.mxu1 %v2759_v42 }
 0xab5   : > { %v8040_v35 = vpop.eup %8039 }
 0xab6   : > { %v2545_v29 = vmul.f32 %v8040_v35, %v9311_v56 }
 0xab8   : > { %v2553_v39 = vpack.c.bf16 %v2545_v29, %v2545_v29  ;;  %v2778_v14 = vpop.permute.xlu1 %2777 }
 0xab9   : > { %v2806_v40 = vpop.permute.xlu2 %2805 }
 0xaba   : > { %v2811_v37 = vsel %vm484_vm1, %v2806_v40, 0  ;;  %7400 = vmatmul.msk.bf16.vlgmr.msrb.gmra.mxu2 %vm11157_vm14, %v2553_v39  ;;  %vm11162_vm14 = vmmov %vm11139_vm0 }
 0xabb   : > { %2820 = vmatpush.bf16.xpose.msrb.mxu3 %v2811_v37 }
 0xac0   : > { %v2728_v24 = vpop.permute.xlu1 %2727 }
 0xac1   : > { %v2733_v10 = vsel %vm1151_vm13, %v2728_v24, 0  ;;  %v2804_v34 = vpop.permute.xlu2 %2803  ;;  %v2780_v22 = vpop.permute.xlu0 %2779 }
 0xac2   : > { %v2785_v0 = vsel %vm484_vm1, %v2780_v22, 0  ;;  %2742 = vmatpush.bf16.msra.mxu0 %v2733_v10 }
 0xac3   : > { %2794 = vmatpush.bf16.xpose.msra.mxu2 %v2785_v0 }
 0xac9   : > { %v2752_v51 = vpop.permute.xlu1 %2751  ;;  %v2884_v58 = vpop.permute.xlu2 %2883 }
 0xaca   : > { %v2889_v56 = vsel %vm484_vm1, %v2884_v58, 0  ;;  %7403 = vmatmul.msk.bf16.vlgmr.msra.gmra.mxu1 %vm484_vm1, %v2752_v51  ;;  %7404 = vmatmul.msk.bf16.vlgmr.msra.gmra.mxu2 %vm484_vm1, %v2778_v14 }
 0xacb   : > { %2898 = vmatpush.bf16.xpose.msrb.mxu2 %v2889_v56 }
 0xad1   : > { %v2832_v59 = vpop.permute.xlu1 %2831  ;;  %v2882_v53 = vpop.permute.xlu2 %2881 }
 0xad2   : > { %v2837_v25 = vsel %vm484_vm1, %v2832_v59, 0 }
 0xad3   : > { %2846 = vmatpush.bf16.xpose.msrb.mxu0 %v2837_v25 }
 0xad9   : > { %v2830_v23 = vpop.permute.xlu1 %2829  ;;  %v2856_v60 = vpop.permute.xlu2 %2855 }
 0xada   : > { %7408 = vmatmul.msk.bf16.vlgmr.msrb.gmra.mxu2 %vm484_vm1, %v2882_v53 }
 0xadf   : > { %v9393_v9 = vpop.f32.mrf.mxu1 }
 0xae1   : > { %v2910_v54 = vpop.permute.xlu1 %2909  ;;  %v2936_v5 = vpop.permute.xlu2 %2935 }
 0xae2   : > { %v2915_v13 = vsel %vm484_vm1, %v2910_v54, 0  ;;  %v2941_v3 = vsel %vm484_vm1, %v2936_v5, 0 }
 0xae7   : > { %v2578_v7 = vpop.f32.mrf.mxu1 }
 0xaec   : > { %v2528_v11 = vpop.xlane.xlu0 %2527 }
 0xaed   : > { %8041 = vrcp.f32 %v2528_v11 }
 0xaf2   : > { %v9395_v61 = vpop.f32.mrf.mxu2 }
 0xaf3   : > { %v8042_v4 = vpop.eup %8041 }
 0xaf4   : > { %v2546_v26 = vmul.f32 %v8042_v4, %v9357_v30  ;;  %v2531_v12 = vpop.xlane.xlu0 %2530 }
 0xaf5   : > { %8043 = vrcp.f32 %v2531_v12 }
 0xaf6   : > { %v2554_v15 = vpack.c.bf16 %v2546_v26, %v2546_v26 }
 0xaf8   : > { %7401 = vmatmul.msk.bf16.vlgmr.msra.gmra.mxu3 %vm11158_vm5, %v2554_v15  ;;  %vm11163_vm5 = vmmov %vm11139_vm0 }
 0xaf9   : > { %2924 = vmatpush.bf16.xpose.msra.mxu3 %v2915_v13 }
 0xafa   : > { %v2602_v49 = vpop.f32.mrf.mxu2 }
 0xafb   : > { %v8044_v16 = vpop.eup %8043 }
 0xafc   : > { %v2547_v45 = vmul.f32 %v8044_v16, %v9364_v46  ;;  %v2908_v46 = vpop.permute.xlu1 %2907 }
 0xafe   : > { %v2555_v63 = vpack.c.bf16 %v2547_v45, %v2547_v45 }
 0xb00   : > { %7402 = vmatmul.msk.bf16.vlgmr.msra.gmra.mxu0 %vm11159_vm6, %v2555_v63  ;;  %vm11164_vm6 = vmmov %vm11139_vm0 }
 0xb01   : > { %2950 = vmatpush.bf16.xpose.msra.mxu0 %v2941_v3 }
 0xb04   : > { %v2934_v35 = vpop.permute.xlu1 %2933 }
 0xb07   : > { %v2858_v30 = vpop.permute.xlu0 %2857 }
 0xb08   : > { %v2863_v20 = vsel %vm484_vm1, %v2858_v30, 0  ;;  %7405 = vmatmul.msk.bf16.vlgmr.msrb.gmra.mxu3 %vm484_vm1, %v2804_v34 }
 0xb09   : > { %2872 = vmatpush.bf16.xpose.msrb.mxu1 %v2863_v20 }
 0xb0f   : > { %v3074_v43 = vpop.permute.xlu0 %3073 }
 0xb10   : > { %v3079_v42 = vsel %vm1151_vm13, %v3074_v43, 0  ;;  %7406 = vmatmul.msk.bf16.vlgmr.msrb.gmra.mxu0 %vm484_vm1, %v2830_v23  ;;  %7407 = vmatmul.msk.bf16.vlgmr.msrb.gmra.mxu1 %vm484_vm1, %v2856_v60 }
 0xb11   : > { %3088 = vmatpush.bf16.msra.mxu2 %v3079_v42 }
 0xb18   : > { %7409 = vmatmul.msk.bf16.vlgmr.msra.gmra.mxu3 %vm484_vm1, %v2908_v46 }
 0xb1f   : > { %v9409_v29 = vpop.f32.mrf.mxu3 }
 0xb20   : > { %7410 = vmatmul.msk.bf16.vlgmr.msra.gmra.mxu0 %vm484_vm1, %v2934_v35 }
 0xb27   : > { %v2626_v39 = vpop.f32.mrf.mxu3 }
 0xb29   : > { %v9412_v14 = vpop.f32.mrf.mxu1 }
 0xb2a   : > { %v9414_v40 = vpop.f32.mrf.mxu0 }
 0xb31   : > { %v2674_v37 = vpop.f32.mrf.mxu1 }
 0xb32   : > { %v2650_v24 = vpop.f32.mrf.mxu0 }
 0xb3d   : > { %v9416_v10 = vpop.f32.mrf.mxu2 }
 0xb45   : > { %v2698_v34 = vpop.f32.mrf.mxu2 }
 0xb47   : > { %v2770_v22 = vpop.f32.mrf.mxu1 }
 0xb48   : > { %v2956_v0 = vsel %vm11139_vm0, %v2770_v22, -inf }
 0xb49   : > { %2957 = vmax.xlane.f32.xlu0 %v2956_v0 }
 0xb4d   : > { %v2796_v51 = vpop.f32.mrf.mxu2 }
 0xb4e   : > { %v2959_v58 = vsel %vm11160_vm4, %v2796_v51, -inf  ;;  %vm11165_vm4 = vmmov %vm11139_vm0 }
 0xb4f   : > { %v2772_v56 = vpop.f32.mrf.mxu1  ;;  %2960 = vmax.xlane.f32.xlu2 %v2959_v58 }
 0xb55   : > { %v2798_v59 = vpop.f32.mrf.mxu2 }
 0xb5d   : > { %v2900_v25 = vpop.f32.mrf.mxu2 }
 0xb5e   : > { %v2971_v53 = vsel %vm11161_vm15, %v2900_v25, -inf  ;;  %vm11166_vm15 = vmmov %vm11139_vm0 }
 0xb5f   : > { %2972 = vmax.xlane.f32.xlu0 %v2971_v53 }
 0xb65   : > { %v2902_v7 = vpop.f32.mrf.mxu2 }
 0xb7b   : > { %v9421_v23 = vpop.f32.mrf.mxu3 }
 0xb7d   : > { %v9423_v11 = vpop.f32.mrf.mxu0 }
 0xb83   : > { %v2722_v4 = vpop.f32.mrf.mxu3 }
 0xb85   : > { %v2746_v60 = vpop.f32.mrf.mxu0 }
 0xb8b   : > { %v2822_v26 = vpop.f32.mrf.mxu3 }
 0xb8c   : > { %v2962_v5 = vsel %vm11164_vm6, %v2822_v26, -inf  ;;  %vm11169_vm6 = vmmov %vm11139_vm0 }
 0xb8d   : > { %v2848_v12 = vpop.f32.mrf.mxu0  ;;  %v2874_v54 = vpop.f32.mrf.mxu1 }
 0xb8e   : > { %v2968_v15 = vsel %vm11162_vm14, %v2874_v54, -inf  ;;  %v2965_v13 = vsel %vm11163_vm5, %v2848_v12, -inf  ;;  %vm11167_vm14 = vmmov %vm11139_vm0 }
 0xb8f   : > { %2969 = vmax.xlane.f32.xlu1 %v2968_v15  ;;  %2966 = vmax.xlane.f32.xlu2 %v2965_v13  ;;  %vm11168_vm5 = vmmov %vm11139_vm0 }
 0xb93   : > { %v2824_v49 = vpop.f32.mrf.mxu3 }
 0xb95   : > { %v2850_v16 = vpop.f32.mrf.mxu0  ;;  %v2876_v45 = vpop.f32.mrf.mxu1 }
 0xb97   : > { %2963 = vmax.xlane.f32.xlu1 %v2962_v5 }
 0xb9b   : > { %v9428_v63 = vpop.f32.mrf.mxu3 }
 0xb9c   : > { %v2974_v3 = vsel %vm11139_vm0, %v9428_v63, -inf }
 0xb9d   : > { %2975 = vmax.xlane.f32.xlu2 %v2974_v3  ;;  %v2952_v30 = vpop.f32.mrf.mxu0 }
 0xb9e   : > { %v2977_v20 = vsel %vm11165_vm4, %v2952_v30, -inf  ;;  %vm11170_vm4 = vmmov %vm11139_vm0 }
 0xb9f   : > { %2978 = vmax.xlane.f32.xlu1 %v2977_v20 }
 0xba3   : > { %v2928_v43 = vpop.f32.mrf.mxu3 }
 0xba5   : > { %v2954_v42 = vpop.f32.mrf.mxu0 }
 0xbb8   : > { %3052 = vrot.lane.b32.xlu1 %v9163_v6, %s8301_s29 }
 0xbbc   : > { %v2958_v46 = vpop.xlane.xlu0 %2957 }
 0xbbd   : > { %v2980_v35 = vsub.f32 %v2770_v22, %v2958_v46 }
 0xbbf   : > { %v2988_v39 = vmul.f32 1.442695, %v2980_v35 }
 0xbc1   : > { %8045 = vpow2.f32 %v2988_v39 }
 0xbc2   : > { %v2961_v37 = vpop.xlane.xlu2 %2960 }
 0xbc3   : > { %v2981_v24 = vsub.f32 %v2796_v51, %v2961_v37 }
 0xbc5   : > { %v2990_v34 = vmul.f32 1.442695, %v2981_v24 }
 0xbc7   : > { %v8046_v0 = vpop.eup %8045  ;;  %8047 = vpow2.f32 %v2990_v34 }
 0xbc8   : > { %v3004_v58 = vsel %vm11166_vm15, %v8046_v0, 0.0  ;;  %vm11171_vm15 = vmmov %vm11139_vm0 }
 0xbc9   : > { %3005 = vadd.xlane.f32.xlu2 %v3004_v58 }
 0xbcd   : > { %v8048_v56 = vpop.eup %8047 }
 0xbce   : > { %v3007_v59 = vsel %vm11167_vm14, %v8048_v56, 0.0  ;;  %vm11172_vm14 = vmmov %vm11139_vm0 }
 0xbcf   : > { %3008 = vadd.xlane.f32.xlu0 %v3007_v59 }
 0xbd2   : > { %v2973_v6 = vpop.xlane.xlu0 %2972 }
 0xbd3   : > { %v2985_v22 = vsub.f32 %v2900_v25, %v2973_v6 }
 0xbd5   : > { %v2998_v51 = vmul.f32 1.442695, %v2985_v22 }
 0xbd7   : > { %8049 = vpow2.f32 %v2998_v51 }
 0xbdd   : > { %v8050_v49 = vpop.eup %8049 }
 0xbe1   : > { %3115 = vrot.lane.b32.xlu2 %v9295_v18, %s8301_s29 }
 0xbe3   : > { %3094 = vrot.lane.b32.xlu0 %v9203_v2, %s8301_s29  ;;  %v3019_v2 = vsel %vm11168_vm5, %v8050_v49, 0.0  ;;  %vm11173_vm5 = vmmov %vm11139_vm0 }
 0xbe9   : > { %3157 = vrot.lane.b32.xlu2 %v9219_v52, %s8301_s29 }
 0xc02   : > { %v2970_v53 = vpop.xlane.xlu1 %2969  ;;  %v2967_v7 = vpop.xlane.xlu2 %2966 }
 0xc03   : > { %v2984_v4 = vsub.f32 %v2874_v54, %v2970_v53  ;;  %v2983_v60 = vsub.f32 %v2848_v12, %v2967_v7 }
 0xc05   : > { %v2996_v15 = vmul.f32 1.442695, %v2984_v4  ;;  %v2994_v13 = vmul.f32 1.442695, %v2983_v60 }
 0xc07   : > { %8051 = vpow2.f32 %v2996_v15 }
 0xc08   : > { %8053 = vpow2.f32 %v2994_v13 }
 0xc0a   : > { %v2964_v18 = vpop.xlane.xlu1 %2963 }
 0xc0b   : > { %v2982_v16 = vsub.f32 %v2822_v26, %v2964_v18 }
 0xc0d   : > { %v9444_v45 = vpop.eup %8051  ;;  %v2992_v52 = vmul.f32 1.442695, %v2982_v16  ;;  %3020 = vadd.xlane.f32.xlu0 %v3019_v2 }
 0xc0e   : > { %v8054_v25 = vpop.eup %8053  ;;  %v3016_v5 = vsel %vm11169_vm6, %v9444_v45, 0.0  ;;  %vm11174_vm6 = vmmov %vm11139_vm0 }
 0xc0f   : > { %3017 = vadd.xlane.f32.xlu1 %v3016_v5  ;;  %8055 = vpow2.f32 %v2992_v52  ;;  %v3013_v12 = vsel %vm11139_vm0, %v8054_v25, 0.0 }
 0xc12   : > { %3014 = vadd.xlane.f32.xlu2 %v3013_v12  ;;  %v2979_v54 = vpop.xlane.xlu1 %2978 }
 0xc13   : > { %v2987_v3 = vsub.f32 %v2952_v30, %v2979_v54  ;;  %v2976_v30 = vpop.xlane.xlu2 %2975 }
 0xc15   : > { %v3002_v20 = vmul.f32 1.442695, %v2987_v3  ;;  %v8056_v43 = vpop.eup %8055 }
 0xc16   : > { %v3010_v26 = vsel %vm11170_vm4, %v8056_v43, 0.0  ;;  %vm11175_vm4 = vmmov %vm11139_vm0 }
 0xc17   : > { %8057 = vpow2.f32 %v3002_v20 }
 0xc1a   : > { %3011 = vadd.xlane.f32.xlu2 %v3010_v26 }
 0xc1d   : > { %v9450_v42 = vpop.eup %8057 }
 0xc1e   : > { %v3025_v46 = vsel %vm11171_vm15, %v9450_v42, 0.0  ;;  %vm11176_vm15 = vmmov %vm11139_vm0 }
 0xc1f   : > { %3026 = vadd.xlane.f32.xlu0 %v3025_v46 }
 0xc28   : > { %3178 = vrot.lane.b32.xlu1 %v9318_v50, %s8301_s29 }
 0xc2a   : > { %v3053_v35 = vpop.permute.xlu1 %3052 }
 0xc2b   : > { %v3058_v39 = vsel %vm1151_vm13, %v3053_v35, 0 }
 0xc2c   : > { %3067 = vmatpush.bf16.msra.mxu1 %v3058_v39 }
 0xc32   : > { %3136 = vrot.lane.b32.xlu2 %v9274_v31, %s8301_s29  ;;  %v2986_v31 = vsub.f32 %v9428_v63, %v2976_v30 }
 0xc33   : > { %3199 = vrot.lane.b32.xlu0 %v9324_v21, %s8301_s29 }
 0xc34   : > { %v3000_v7 = vmul.f32 1.442695, %v2986_v31 }
 0xc3c   : > { %v3006_v37 = vpop.xlane.xlu2 %3005 }
 0xc3d   : > { %8059 = vrcp.f32 %v3006_v37 }
 0xc42   : > { %v3009_v24 = vpop.xlane.xlu0 %3008 }
 0xc43   : > { %v8060_v34 = vpop.eup %8059  ;;  %8061 = vrcp.f32 %v3009_v24 }
 0xc44   : > { %v3036_v58 = vmul.f32 %v8060_v34, %v8046_v0  ;;  %v3116_v59 = vpop.permute.xlu2 %3115  ;;  %8063 = vpow2.f32 %v3000_v7 }
 0xc45   : > { %v3121_v50 = vsel %vm1151_vm13, %v3116_v59, 0 }
 0xc46   : > { %v3044_v6 = vpack.c.bf16 %v3036_v58, %v3036_v58  ;;  %3130 = vmatpush.bf16.msrb.mxu0 %v3121_v50 }
 0xc48   : > { %7411 = vmatmul.msk.bf16.vlgmr.msra.gmra.mxu1 %vm11172_vm14, %v3044_v6  ;;  %vm11177_vm14 = vmmov %vm11139_vm0 }
 0xc49   : > { %v8062_v22 = vpop.eup %8061 }
 0xc4a   : > { %v3037_v51 = vmul.f32 %v8062_v22, %v8048_v56  ;;  %v8064_v15 = vpop.eup %8063 }
 0xc4b   : > { %v3022_v13 = vsel %vm11174_vm6, %v8064_v15, 0.0  ;;  %vm11179_vm6 = vmmov %vm11139_vm0 }
 0xc4c   : > { %v3045_v53 = vpack.c.bf16 %v3037_v51, %v3037_v51  ;;  %v3158_v21 = vpop.permute.xlu2 %3157 }
 0xc4d   : > { %v3163_v4 = vsel %vm1151_vm13, %v3158_v21, 0 }
 0xc4e   : > { %3172 = vmatpush.bf16.msrb.mxu2 %v3163_v4 }
 0xc4f   : > { %7412 = vmatmul.msk.bf16.vlgmr.msra.gmra.mxu2 %vm11173_vm5, %v3045_v53  ;;  %vm11178_vm5 = vmmov %vm11139_vm0 }
 0xc55   : > { %v3095_v0 = vpop.permute.xlu0 %3094 }
 0xc56   : > { %v3100_v60 = vsel %vm1151_vm13, %v3095_v0, 0 }
 0xc57   : > { %3109 = vmatpush.bf16.msrb.mxu3 %v3100_v60 }
 0xc5b   : > { %3023 = vadd.xlane.f32.xlu2 %v3022_v13  ;;  %v7760_v13 = vld [vmem:[%s11116_s6 + $0x58] sm:$0xff] }
 0xc80   : > { %v3021_v18 = vpop.xlane.xlu0 %3020 }
 0xc81   : > { %8065 = vrcp.f32 %v3021_v18  ;;  %v7759_v18 = vld [vmem:[%s11116_s6 + $0x50] sm:$0xff] }
 0xc82   : > { %v3018_v2 = vpop.xlane.xlu1 %3017 }
 0xc85   : > { %v3015_v63 = vpop.xlane.xlu2 %3014 }
 0xc86   : > { %8067 = vrcp.f32 %v3015_v63 }
 0xc87   : > { %v8066_v56 = vpop.eup %8065  ;;  %8069 = vrcp.f32 %v3018_v2 }
 0xc88   : > { %v3041_v16 = vmul.f32 %v8066_v56, %v8050_v49 }
 0xc8a   : > { %v3049_v52 = vpack.c.bf16 %v3041_v16, %v3041_v16 }
 0xc8c   : > { %v8068_v5 = vpop.eup %8067  ;;  %7416 = vmatmul.msk.bf16.vlgmr.msrb.gmra.mxu2 %vm11139_vm0, %v3049_v52  ;;  %vm11180_vm0 = vcmask 523264  }
 0xc8d   : > { %v3039_v12 = vmul.f32 %v8068_v5, %v8054_v25  ;;  %v3012_v54 = vpop.xlane.xlu2 %3011  ;;  %v8070_v20 = vpop.eup %8069 }
 0xc8e   : > { %8071 = vrcp.f32 %v3012_v54  ;;  %v3040_v46 = vmul.f32 %v8070_v20, %v9444_v45  ;;  %v7757_v20 = vld [vmem:[%s11116_s6 + $0x40] sm:$0xff] }
 0xc8f   : > { %v3047_v3 = vpack.c.bf16 %v3039_v12, %v3039_v12 }
 0xc90   : > { %v3048_v37 = vpack.c.bf16 %v3040_v46, %v3040_v46 }
 0xc91   : > { %7414 = vmatmul.msk.bf16.vlgmr.msrb.gmra.mxu0 %vm11175_vm4, %v3047_v3  ;;  %vm11181_vm4 = vmmov %vm11180_vm0 }
 0xc92   : > { %v3027_v24 = vpop.xlane.xlu0 %3026 }
 0xc93   : > { %8073 = vrcp.f32 %v3027_v24 }
 0xc94   : > { %v8072_v26 = vpop.eup %8071 }
 0xc95   : > { %v3038_v35 = vmul.f32 %v8072_v26, %v8056_v43  ;;  %v3137_v39 = vpop.permute.xlu2 %3136 }
 0xc96   : > { %v3142_v49 = vsel %vm1151_vm13, %v3137_v39, 0 }
 0xc97   : > { %v3046_v30 = vpack.c.bf16 %v3038_v35, %v3038_v35  ;;  %3151 = vmatpush.bf16.msrb.mxu1 %v3142_v49 }
 0xc99   : > { %7413 = vmatmul.msk.bf16.vlgmr.msrb.gmra.mxu3 %vm11176_vm15, %v3046_v30  ;;  %v8074_v58 = vpop.eup %8073  ;;  %vm11182_vm15 = vmmov %vm11180_vm0 }
 0xc9a   : > { %7415 = vmatmul.msk.bf16.vlgmr.msrb.gmra.mxu1 %vm11177_vm14, %v3048_v37  ;;  %v3179_v25 = vpop.permute.xlu1 %3178  ;;  %v3043_v45 = vmul.f32 %v8074_v58, %v9450_v42  ;;  %vm11183_vm14 = vmmov %vm11180_vm0 }
 0xc9b   : > { %v3184_v34 = vsel %vm1151_vm13, %v3179_v25, 0  ;;  %3323 = vmatpush.bf16.msra.mxu1 %v7760_v13 }
 0xc9c   : > { %3193 = vmatpush.bf16.msra.mxu3 %v3184_v34  ;;  %v3051_v50 = vpack.c.bf16 %v3043_v45, %v3043_v45 }
 0xc9f   : > { %3324 = vmatpush.bf16.msra.mxu1 %v7759_v18 }
 0xca5   : > { %v3200_v43 = vpop.permute.xlu0 %3199 }
 0xca6   : > { %v3205_v59 = vsel %vm1151_vm13, %v3200_v43, 0 }
 0xca7   : > { %3214 = vmatpush.bf16.msra.mxu0 %v3205_v59 }
 0xcaa   : > { %7418 = vmatmul.msk.bf16.vlgmr.msra.gmra.mxu0 %vm11178_vm5, %v3051_v50 }
 0xcc5   : > { %v3069_v6 = vpop.f32.mrf.mxu1 }
 0xccd   : > { %v3071_v22 = vpop.f32.mrf.mxu1 }
 0xcce   : > { %v3024_v31 = vpop.xlane.xlu2 %3023 }
 0xccf   : > { %8075 = vrcp.f32 %v3024_v31 }
 0xcd2   : > { %v3090_v51 = vpop.f32.mrf.mxu2 }
 0xcd3   : > { %v7824_v53 = vpack.i.bf16 %v3090_v51, %v3069_v6 }
 0xcd5   : > { %v8076_v21 = vpop.eup %8075  ;;  %7825 = vrot.lane.b32.xlu1 %v7824_v53, %s8301_s29 }
 0xcd6   : > { %v3042_v7 = vmul.f32 %v8076_v21, %v8064_v15  ;;  %v7758_v15 = vld [vmem:[%s11116_s6 + $0x48] sm:$0xff] }
 0xcd7   : > { %3325 = vmatpush.bf16.msra.mxu1 %v7758_v15 }
 0xcd8   : > { %v3050_v4 = vpack.c.bf16 %v3042_v7, %v3042_v7 }
 0xcda   : > { %v3092_v0 = vpop.f32.mrf.mxu2  ;;  %7417 = vmatmul.msk.bf16.vlgmr.msra.gmra.mxu3 %vm11179_vm6, %v3050_v4 }
 0xcdb   : > { %3326 = vmatpush.bf16.msra.mxu1 %v7757_v20 }
 0xd0e   : > { %v3132_v42 = vpop.f32.mrf.mxu0 }
 0xd0f   : > { %v3174_v60 = vpop.f32.mrf.mxu2 }
 0xd16   : > { %v3134_v63 = vpop.f32.mrf.mxu0 }
 0xd17   : > { %v3153_v56 = vpop.f32.mrf.mxu1  ;;  %v3176_v16 = vpop.f32.mrf.mxu2 }
 0xd18   : > { %v7834_v2 = vpack.i.bf16 %v3174_v60, %v3153_v56 }
 0xd1a   : > { %7835 = vrot.lane.b32.xlu2 %v7834_v2, %s8301_s29 }
 0xd1c   : > { %v3111_v52 = vpop.f32.mrf.mxu3 }
 0xd1d   : > { %v7829_v5 = vpack.i.bf16 %v3132_v42, %v3111_v52 }
 0xd1f   : > { %v3155_v12 = vpop.f32.mrf.mxu1  ;;  %7830 = vrot.lane.b32.xlu0 %v7829_v5, %s8301_s29 }
 0xd24   : > { %v3113_v54 = vpop.f32.mrf.mxu3 }
 0xd27   : > { %v3216_v3 = vpop.f32.mrf.mxu0 }
 0xd2f   : > { %v3218_v26 = vpop.f32.mrf.mxu0 }
 0xd47   : > { %v7826_v46 = vpop.permute.xlu1 %7825 }
 0xd48   : > { %v7828_v35 = vunpack.i.h.bf16 %v7826_v46  ;;  %v7827_v39 = vunpack.i.l.bf16 %v7826_v46 }
 0xd4a   : > { %v3253_v49 = vsel %vm484_vm1, %v9395_v61, %v7828_v35  ;;  %v3252_v30 = vsel %vm484_vm1, %v9393_v9, %v7827_v39 }
 0xd4b   : > { %v3279_v37 = vpack.c.bf16 %v3253_v49, %v3252_v30 }
 0xd4d   : > { %7443 = vmatmul.msk.bf16.vlgmr.msra.gmra.mxu1 %vm11180_vm0, %v3279_v37 }
 0xd5d   : > { %v3195_v24 = vpop.f32.mrf.mxu3 }
 0xd5e   : > { %v7839_v25 = vpack.i.bf16 %v3216_v3, %v3195_v24 }
 0xd60   : > { %7840 = vrot.lane.b32.xlu1 %v7839_v25, %s8301_s29 }
 0xd65   : > { %v3197_v34 = vpop.f32.mrf.mxu3 }
 0xd74   : > { %v7836_v9 = vpop.permute.xlu2 %7835 }
 0xd75   : > { %v7838_v6 = vunpack.i.h.bf16 %v7836_v9  ;;  %v7837_v22 = vunpack.i.l.bf16 %v7836_v9 }
 0xd77   : > { %v3257_v31 = vsel %vm484_vm1, %v9416_v10, %v7838_v6  ;;  %v3256_v51 = vsel %vm484_vm1, %v9412_v14, %v7837_v22 }
 0xd78   : > { %v3281_v53 = vpack.c.bf16 %v3257_v31, %v3256_v51 }
 0xd91   : > { %v7831_v58 = vpop.permute.xlu0 %7830 }
 0xd92   : > { %v7833_v45 = vunpack.i.h.bf16 %v7831_v58  ;;  %v7832_v43 = vunpack.i.l.bf16 %v7831_v58 }
 0xd94   : > { %v3255_v59 = vsel %vm484_vm1, %v9414_v40, %v7833_v45  ;;  %v3254_v61 = vsel %vm484_vm1, %v9409_v29, %v7832_v43  ;;  %v7894_v40 = vld [vmem:[%s11117_s7 + $0x12] ss:$0 sm:$0xff] }
 0xd95   : > { %v3280_v50 = vpack.c.bf16 %v3255_v59, %v3254_v61  ;;  %v3262_v29 = vadd.f32 %v7894_v40, %v9110_v48  ;;  %v3263_v0 = vadd.f32 %v7894_v40, %v9113_v19  ;;  %v3264_v56 = vadd.f32 %v7894_v40, %v9131_v17 }
 0xd96   : > { %v3265_v52 = vadd.f32 %v7894_v40, %v9134_v55  ;;  %v3267_v17 = vadd.f32 %v7894_v40, %v9148_v47  ;;  %v3268_v58 = vadd.f32 %v7894_v40, %v9174_v41  ;;  %v3269_v61 = vadd.f32 %v7894_v40, %v9177_v27 }
 0xd97   : > { %7444 = vmatmul.msk.bf16.gmra.mxu1 %vm11181_vm4, %v3280_v50 }
 0xda7   : > { %7445 = vmatmul.msk.bf16.gmra.mxu1 %vm11182_vm15, %v3281_v53 }
 0xdca   : > { %v3328_v21 = vpop.f32.mrf.mxu1 }
 0xdcb   : > { %v3348_v7 = vadd.f32 %v3328_v21, %v3262_v29 }
 0xdcd   : > { %v3356_v4 = vsel %vm484_vm1, %v3348_v7, 0.0 }
 0xdce   : > { %3357 = vadd.xlane.f32.xlu0 %v3356_v4 }
 0xdd2   : > { %v3330_v10 = vpop.f32.mrf.mxu1  ;;  %v7841_v42 = vpop.permute.xlu1 %7840 }
 0xdd3   : > { %v3349_v60 = vadd.f32 %v3330_v10, %v3263_v0  ;;  %v7843_v14 = vunpack.i.h.bf16 %v7841_v42  ;;  %v7842_v13 = vunpack.i.l.bf16 %v7841_v42 }
 0xdd5   : > { %v3259_v18 = vsel %vm484_vm1, %v9423_v11, %v7843_v14  ;;  %v3258_v15 = vsel %vm484_vm1, %v9421_v23, %v7842_v13  ;;  %v3359_v48 = vsel %vm484_vm1, %v3349_v60, 0.0  ;;  %v3266_v23 = vadd.f32 %v7894_v40, %v9145_v62 }
 0xdd6   : > { %3360 = vadd.xlane.f32.xlu1 %v3359_v48  ;;  %v3282_v63 = vpack.c.bf16 %v3259_v18, %v3258_v15 }
 0xdd8   : > { %7446 = vmatmul.msk.bf16.gmra.mxu1 %vm11183_vm14, %v3282_v63  ;;  %v7762_v63 = vld [vmem:[%s11114_s4 + $0x28] sm:$0xff] }
 0xdd9   : > { %3593 = vmatpush.bf16.msra.mxu2 %v7762_v63 }
 0xe14   : > { %v3333_v19 = vpop.f32.mrf.mxu1 }
 0xe15   : > { %v3350_v16 = vadd.f32 %v3333_v19, %v3264_v56 }
 0xe17   : > { %v3362_v2 = vsel %vm484_vm1, %v3350_v16, 0.0 }
 0xe18   : > { %3363 = vadd.xlane.f32.xlu2 %v3362_v2 }
 0xe1c   : > { %v3335_v5 = vpop.f32.mrf.mxu1 }
 0xe1d   : > { %v3351_v11 = vadd.f32 %v3335_v5, %v3265_v52 }
 0xe1f   : > { %v3365_v12 = vsel %vm484_vm1, %v3351_v11, 0.0 }
 0xe20   : > { %3366 = vadd.xlane.f32.xlu0 %v3365_v12 }
 0xe24   : > { %v3338_v54 = vpop.f32.mrf.mxu1 }
 0xe25   : > { %v3352_v3 = vadd.f32 %v3338_v54, %v3266_v23 }
 0xe27   : > { %v3368_v20 = vsel %vm484_vm1, %v3352_v3, 0.0 }
 0xe28   : > { %3369 = vadd.xlane.f32.xlu1 %v3368_v20 }
 0xe2c   : > { %v3340_v26 = vpop.f32.mrf.mxu1 }
 0xe2d   : > { %v3353_v46 = vadd.f32 %v3340_v26, %v3267_v17 }
 0xe2f   : > { %v3371_v35 = vsel %vm484_vm1, %v3353_v46, 0.0 }
 0xe30   : > { %3372 = vadd.xlane.f32.xlu0 %v3371_v35 }
 0xe41   : > { %v3358_v55 = vpop.xlane.xlu0 %3357 }
 0xe42   : > { %v3380_v39 = vmul.f32 %v3358_v55, %v8395_v44 }
 0xe44   : > { %v9531_v49 = vsub.f32 %v3348_v7, %v3380_v39 }
 0xe46   : > { %v3396_v62 = vmul.f32 %v9531_v49, %v9531_v49 }
 0xe48   : > { %v3404_v30 = vsel %vm484_vm1, %v3396_v62, 0.0 }
 0xe49   : > { %3405 = vadd.xlane.f32.xlu1 %v3404_v30  ;;  %v3361_v37 = vpop.xlane.xlu1 %3360 }
 0xe4a   : > { %v3381_v24 = vmul.f32 %v3361_v37, %v8395_v44 }
 0xe4c   : > { %v9537_v47 = vsub.f32 %v3349_v60, %v3381_v24 }
 0xe4e   : > { %v3397_v25 = vmul.f32 %v9537_v47, %v9537_v47 }
 0xe50   : > { %v3407_v34 = vsel %vm484_vm1, %v3397_v25, 0.0 }
 0xe51   : > { %3408 = vadd.xlane.f32.xlu0 %v3407_v34 }
 0xe55   : > { %v3343_v45 = vpop.f32.mrf.mxu1 }
 0xe56   : > { %v3354_v43 = vadd.f32 %v3343_v45, %v3268_v58 }
 0xe58   : > { %v3374_v59 = vsel %vm484_vm1, %v3354_v43, 0.0 }
 0xe59   : > { %3375 = vadd.xlane.f32.xlu2 %v3374_v59 }
 0xe5d   : > { %v3345_v50 = vpop.f32.mrf.mxu1 }
 0xe5e   : > { %v9545_v9 = vadd.f32 %v3345_v50, %v3269_v61 }
 0xe60   : > { %v3377_v6 = vsel %vm484_vm1, %v9545_v9, 0.0 }
 0xe61   : > { %3378 = vadd.xlane.f32.xlu1 %v3377_v6 }
 0xe8b   : > { %v3364_v22 = vpop.xlane.xlu2 %3363 }
 0xe8c   : > { %v3382_v31 = vmul.f32 %v3364_v22, %v8395_v44 }
 0xe8e   : > { %v9550_v51 = vsub.f32 %v3350_v16, %v3382_v31  ;;  %v7761_v16 = vld [vmem:[%s11114_s4 + $0x20] sm:$0xff]  ;;  %v9602_v31 = vld [vmem:[%s11117_s7 + $0x14] ss:$0 sm:$0xff] }
 0xe8f   : > { %3594 = vmatpush.bf16.msra.mxu2 %v7761_v16 }
 0xe90   : > { %v3398_v41 = vmul.f32 %v9550_v51, %v9550_v51 }
 0xe92   : > { %v3410_v53 = vsel %vm484_vm1, %v3398_v41, 0.0 }
 0xe93   : > { %v3367_v29 = vpop.xlane.xlu0 %3366  ;;  %3411 = vadd.xlane.f32.xlu0 %v3410_v53 }
 0xe94   : > { %v3383_v27 = vmul.f32 %v3367_v29, %v8395_v44 }
 0xe96   : > { %v9556_v40 = vsub.f32 %v3351_v11, %v3383_v27 }
 0xe98   : > { %v3399_v21 = vmul.f32 %v9556_v40, %v9556_v40 }
 0xe9a   : > { %v3413_v7 = vsel %vm484_vm1, %v3399_v21, 0.0 }
 0xe9b   : > { %v3370_v4 = vpop.xlane.xlu1 %3369  ;;  %3414 = vadd.xlane.f32.xlu2 %v3413_v7 }
 0xe9c   : > { %v3384_v0 = vmul.f32 %v3370_v4, %v8395_v44 }
 0xe9e   : > { %v9562_v10 = vsub.f32 %v3352_v3, %v3384_v0 }
 0xea0   : > { %v3400_v42 = vmul.f32 %v9562_v10, %v9562_v10 }
 0xea2   : > { %v3416_v60 = vsel %vm484_vm1, %v3400_v42, 0.0 }
 0xea3   : > { %v3373_v14 = vpop.xlane.xlu0 %3372  ;;  %3417 = vadd.xlane.f32.xlu1 %v3416_v60 }
 0xea4   : > { %v3385_v13 = vmul.f32 %v3373_v14, %v8395_v44 }
 0xea6   : > { %v9568_v18 = vsub.f32 %v3353_v46, %v3385_v13 }
 0xea8   : > { %v3401_v15 = vmul.f32 %v9568_v18, %v9568_v18 }
 0xeaa   : > { %v3419_v48 = vsel %vm484_vm1, %v3401_v15, 0.0 }
 0xeab   : > { %3420 = vadd.xlane.f32.xlu0 %v3419_v48 }
 0xebc   : > { %v3406_v56 = vpop.xlane.xlu1 %3405 }
 0xebd   : > { %v3428_v19 = vmul.f32 %v3406_v56, %v8395_v44 }
 0xebf   : > { %v3436_v2 = vadd.f32 1e-06, %v3428_v19 }
 0xec1   : > { %8077 = vrsqrt.f32 %v3436_v2  ;;  %vm3450_vm6 = vweird.f32 %v3436_v2 }
 0xec4   : > { %v3409_v52 = vpop.xlane.xlu0 %3408 }
 0xec5   : > { %v3429_v5 = vmul.f32 %v3409_v52, %v8395_v44 }
 0xec7   : > { %v8078_v11 = vpop.eup %8077  ;;  %v3437_v12 = vadd.f32 1e-06, %v3429_v5 }
 0xec8   : > { %v3445_v23 = vmul.f32 %v8078_v11, %v3436_v2  ;;  %vm3451_vm5 = vweird.f32 %v8078_v11 }
 0xec9   : > { %8079 = vrsqrt.f32 %v3437_v12  ;;  %vm3452_vm0 = vmor %vm3450_vm6, %vm3451_vm5  ;;  %vm3460_vm15 = vweird.f32 %v3437_v12 }
 0xeca   : > { %v3446_v54 = vmul.f32 %v8078_v11, %v3445_v23 }
 0xecc   : > { %v3447_v3 = vmul.f32 0.5, %v3446_v54  ;;  %v3376_v20 = vpop.xlane.xlu2 %3375 }
 0xecd   : > { %v3386_v17 = vmul.f32 %v3376_v20, %v8395_v44 }
 0xece   : > { %v3448_v26 = vsub.f32 1.5, %v3447_v3 }
 0xecf   : > { %v8080_v46 = vpop.eup %8079  ;;  %v9582_v35 = vsub.f32 %v3354_v43, %v3386_v17  ;;  %v9591_v43 = vld [vmem:[%s11117_s7 + $0x13] ss:$0 sm:$0xff] }
 0xed0   : > { %v3449_v55 = vmul.f32 %v8078_v11, %v3448_v26  ;;  %v3455_v39 = vmul.f32 %v8080_v46, %v3437_v12  ;;  %vm3461_vm4 = vweird.f32 %v8080_v46 }
 0xed1   : > { %v3402_v62 = vmul.f32 %v9582_v35, %v9582_v35  ;;  %vm3462_vm14 = vmor %vm3460_vm15, %vm3461_vm4 }
 0xed2   : > { %v3456_v30 = vmul.f32 %v8080_v46, %v3455_v39  ;;  %v3453_v24 = vsel %vm3452_vm0, %v8078_v11, %v3449_v55 }
 0xed3   : > { %v3422_v37 = vsel %vm484_vm1, %v3402_v62, 0.0  ;;  %v3524_v59 = vmul.f32 %v3453_v24, %v9531_v49 }
 0xed4   : > { %v3457_v25 = vmul.f32 0.5, %v3456_v30  ;;  %3423 = vadd.xlane.f32.xlu2 %v3422_v37  ;;  %v3379_v34 = vpop.xlane.xlu1 %3378 }
 0xed5   : > { %v3387_v58 = vmul.f32 %v3379_v34, %v8395_v44  ;;  %v3534_v41 = vmul.f32 %v9591_v43, %v3524_v59 }
 0xed6   : > { %v3458_v45 = vsub.f32 1.5, %v3457_v25 }
 0xed7   : > { %v9595_v61 = vsub.f32 %v9545_v9, %v3387_v58  ;;  %v9609_v29 = vadd.f32 %v9602_v31, %v3534_v41 }
 0xed8   : > { %v3459_v50 = vmul.f32 %v8080_v46, %v3458_v45 }
 0xed9   : > { %v3403_v6 = vmul.f32 %v9595_v61, %v9595_v61 }
 0xeda   : > { %v3463_v22 = vsel %vm3462_vm14, %v8080_v46, %v3459_v50 }
 0xedb   : > { %v3525_v53 = vmul.f32 %v3463_v22, %v9537_v47  ;;  %v3425_v49 = vsel %vm484_vm1, %v3403_v6, 0.0 }
 0xedc   : > { %3426 = vadd.xlane.f32.xlu1 %v3425_v49 }
 0xedd   : > { %v3535_v9 = vmul.f32 %v9591_v43, %v3525_v53 }
 0xedf   : > { %v9612_v27 = vadd.f32 %v9602_v31, %v3535_v9 }
 0xee1   : > { %v3557_v21 = vpack.c.bf16 %v9612_v27, %v9609_v29 }
 0xee3   : > { %7459 = vmatmul.msk.bf16.vlgmr.msra.gmra.mxu2 %vm484_vm1, %v3557_v21 }
 0xf06   : > { %v3412_v7 = vpop.xlane.xlu0 %3411 }
 0xf07   : > { %v3430_v4 = vmul.f32 %v3412_v7, %v8395_v44 }
 0xf09   : > { %v3438_v47 = vadd.f32 1e-06, %v3430_v4 }
 0xf0b   : > { %8081 = vrsqrt.f32 %v3438_v47  ;;  %vm3470_vm6 = vweird.f32 %v3438_v47 }
 0xf0e   : > { %v3415_v0 = vpop.xlane.xlu2 %3414 }
 0xf0f   : > { %v3431_v42 = vmul.f32 %v3415_v0, %v8395_v44 }
 0xf11   : > { %v8082_v60 = vpop.eup %8081  ;;  %v3439_v14 = vadd.f32 1e-06, %v3431_v42 }
 0xf12   : > { %v3465_v13 = vmul.f32 %v8082_v60, %v3438_v47  ;;  %vm3471_vm5 = vweird.f32 %v8082_v60 }
 0xf13   : > { %8083 = vrsqrt.f32 %v3439_v14  ;;  %vm3472_vm0 = vmor %vm3470_vm6, %vm3471_vm5  ;;  %vm3480_vm15 = vweird.f32 %v3439_v14 }
 0xf14   : > { %v3466_v15 = vmul.f32 %v8082_v60, %v3465_v13 }
 0xf16   : > { %v3467_v48 = vmul.f32 0.5, %v3466_v15  ;;  %v3418_v63 = vpop.xlane.xlu1 %3417  ;;  %v7765_v15 = vld [vmem:[%s11116_s6 + $0x70] sm:$0xff] }
 0xf17   : > { %v3432_v56 = vmul.f32 %v3418_v63, %v8395_v44  ;;  %v7764_v63 = vld [vmem:[%s11116_s6 + $0x68] sm:$0xff] }
 0xf18   : > { %v3468_v19 = vsub.f32 1.5, %v3467_v48 }
 0xf19   : > { %v8084_v16 = vpop.eup %8083  ;;  %v3440_v2 = vadd.f32 1e-06, %v3432_v56 }
 0xf1a   : > { %v3469_v52 = vmul.f32 %v8082_v60, %v3468_v19  ;;  %v3475_v5 = vmul.f32 %v8084_v16, %v3439_v14  ;;  %vm3481_vm4 = vweird.f32 %v8084_v16 }
 0xf1b   : > { %8085 = vrsqrt.f32 %v3440_v2  ;;  %vm3482_vm14 = vmor %vm3480_vm15, %vm3481_vm4  ;;  %vm3490_vm6 = vweird.f32 %v3440_v2 }
 0xf1c   : > { %v3476_v11 = vmul.f32 %v8084_v16, %v3475_v5  ;;  %v3473_v12 = vsel %vm3472_vm0, %v8082_v60, %v3469_v52 }
 0xf1d   : > { %v3526_v26 = vmul.f32 %v3473_v12, %v9550_v51 }
 0xf1e   : > { %v3477_v23 = vmul.f32 0.5, %v3476_v11  ;;  %v3421_v54 = vpop.xlane.xlu0 %3420 }
 0xf1f   : > { %v3433_v3 = vmul.f32 %v3421_v54, %v8395_v44  ;;  %v3536_v24 = vmul.f32 %v9591_v43, %v3526_v26 }
 0xf20   : > { %v3478_v20 = vsub.f32 1.5, %v3477_v23 }
 0xf21   : > { %v8086_v17 = vpop.eup %8085  ;;  %v3441_v46 = vadd.f32 1e-06, %v3433_v3  ;;  %v9626_v59 = vadd.f32 %v9602_v31, %v3536_v24 }
 0xf22   : > { %v3479_v55 = vmul.f32 %v8084_v16, %v3478_v20  ;;  %v3485_v39 = vmul.f32 %v8086_v17, %v3440_v2  ;;  %vm3491_vm5 = vweird.f32 %v8086_v17 }
 0xf23   : > { %8087 = vrsqrt.f32 %v3441_v46  ;;  %vm3492_vm0 = vmor %vm3490_vm6, %vm3491_vm5  ;;  %vm3500_vm15 = vweird.f32 %v3441_v46 }
 0xf24   : > { %v3483_v62 = vsel %vm3482_vm14, %v8084_v16, %v3479_v55  ;;  %v3486_v30 = vmul.f32 %v8086_v17, %v3485_v39  ;;  %v7763_v16 = vld [vmem:[%s11116_s6 + $0x60] sm:$0xff] }
 0xf25   : > { %v3527_v37 = vmul.f32 %v3483_v62, %v9556_v40 }
 0xf26   : > { %v3487_v25 = vmul.f32 0.5, %v3486_v30 }
 0xf27   : > { %v3537_v34 = vmul.f32 %v9591_v43, %v3527_v37 }
 0xf28   : > { %v3488_v58 = vsub.f32 1.5, %v3487_v25 }
 0xf29   : > { %v8088_v45 = vpop.eup %8087  ;;  %v9629_v51 = vadd.f32 %v9602_v31, %v3537_v34 }
 0xf2a   : > { %v3489_v50 = vmul.f32 %v8086_v17, %v3488_v58  ;;  %v3495_v6 = vmul.f32 %v8088_v45, %v3441_v46  ;;  %vm3501_vm4 = vweird.f32 %v8088_v45  ;;  %v7897_v58 = vld [vmem:[%s11117_s7 + $0x15] ss:$0 sm:$0xff] }
 0xf2b   : > { %v3558_v22 = vpack.c.bf16 %v9629_v51, %v9626_v59  ;;  %vm3502_vm14 = vmor %vm3500_vm15, %vm3501_vm4 }
 0xf2c   : > { %v3496_v40 = vmul.f32 %v8088_v45, %v3495_v6  ;;  %v3493_v41 = vsel %vm3492_vm0, %v8086_v17, %v3489_v50 }
 0xf2d   : > { %7460 = vmatmul.msk.bf16.gmra.mxu2 %vm484_vm1, %v3558_v22  ;;  %v3528_v9 = vmul.f32 %v3493_v41, %v9562_v10  ;;  %v7766_v10 = vld [vmem:[%s11116_s6 + $0x78] sm:$0xff] }
 0xf2e   : > { %v3497_v53 = vmul.f32 0.5, %v3496_v40  ;;  %3679 = vmatpush.bf16.msrb.mxu3 %v7766_v10 }
 0xf2f   : > { %v3538_v47 = vmul.f32 %v9591_v43, %v3528_v9 }
 0xf30   : > { %v3498_v49 = vsub.f32 1.5, %v3497_v53 }
 0xf31   : > { %v9639_v42 = vadd.f32 %v9602_v31, %v3538_v47 }
 0xf32   : > { %v3499_v21 = vmul.f32 %v8088_v45, %v3498_v49  ;;  %3680 = vmatpush.bf16.msrb.mxu3 %v7765_v15 }
 0xf34   : > { %v3503_v7 = vsel %vm3502_vm14, %v8088_v45, %v3499_v21 }
 0xf35   : > { %v3529_v4 = vmul.f32 %v3503_v7, %v9568_v18 }
 0xf36   : > { %3681 = vmatpush.bf16.msrb.mxu3 %v7764_v63  ;;  %v7898_v63 = vld [vmem:[%s11117_s7 + $0x16] ss:$0 sm:$0xff] }
 0xf37   : > { %v3539_v0 = vmul.f32 %v9591_v43, %v3529_v4 }
 0xf39   : > { %v9642_v60 = vadd.f32 %v9602_v31, %v3539_v0 }
 0xf3a   : > { %3682 = vmatpush.bf16.msrb.mxu3 %v7763_v16 }
 0xf3b   : > { %v3559_v14 = vpack.c.bf16 %v9642_v60, %v9639_v42 }
 0xf3d   : > { %7461 = vmatmul.msk.bf16.gmra.mxu2 %vm484_vm1, %v3559_v14 }
 0xf47   : > { %v3424_v18 = vpop.xlane.xlu2 %3423 }
 0xf48   : > { %v3434_v13 = vmul.f32 %v3424_v18, %v8395_v44 }
 0xf4a   : > { %v3442_v48 = vadd.f32 1e-06, %v3434_v13 }
 0xf4c   : > { %8089 = vrsqrt.f32 %v3442_v48  ;;  %vm3510_vm6 = vweird.f32 %v3442_v48 }
 0xf4f   : > { %v3427_v56 = vpop.xlane.xlu1 %3426 }
 0xf50   : > { %v3435_v19 = vmul.f32 %v3427_v56, %v8395_v44 }
 0xf52   : > { %v8090_v2 = vpop.eup %8089  ;;  %v3443_v52 = vadd.f32 1e-06, %v3435_v19 }
 0xf53   : > { %v3505_v5 = vmul.f32 %v8090_v2, %v3442_v48  ;;  %vm3511_vm5 = vweird.f32 %v8090_v2 }
 0xf54   : > { %8091 = vrsqrt.f32 %v3443_v52  ;;  %vm3512_vm0 = vmor %vm3510_vm6, %vm3511_vm5  ;;  %vm3520_vm15 = vweird.f32 %v3443_v52  ;;  %vm11184_vm5 = vcmask 523264  }
 0xf55   : > { %v3506_v11 = vmul.f32 %v8090_v2, %v3505_v5  ;;  %vm11185_vm6 = vmmov %vm11184_vm5 }
 0xf57   : > { %v3507_v12 = vmul.f32 0.5, %v3506_v11 }
 0xf59   : > { %v3508_v23 = vsub.f32 1.5, %v3507_v12 }
 0xf5a   : > { %v8092_v54 = vpop.eup %8091 }
 0xf5b   : > { %v3509_v3 = vmul.f32 %v8090_v2, %v3508_v23  ;;  %v3515_v20 = vmul.f32 %v8092_v54, %v3443_v52  ;;  %vm3521_vm4 = vweird.f32 %v8092_v54 }
 0xf5c   : > { %vm3522_vm14 = vmor %vm3520_vm15, %vm3521_vm4 }
 0xf5d   : > { %v3516_v17 = vmul.f32 %v8092_v54, %v3515_v20  ;;  %v3513_v26 = vsel %vm3512_vm0, %v8090_v2, %v3509_v3  ;;  %vm11186_vm0 = vmmov %vm11184_vm5 }
 0xf5e   : > { %v3530_v39 = vmul.f32 %v3513_v26, %v9582_v35  ;;  %vm11187_vm4 = vmmov %vm11186_vm0 }
 0xf5f   : > { %v3517_v46 = vmul.f32 0.5, %v3516_v17 }
 0xf60   : > { %v3540_v25 = vmul.f32 %v9591_v43, %v3530_v39 }
 0xf61   : > { %v3518_v55 = vsub.f32 1.5, %v3517_v46 }
 0xf62   : > { %v9669_v45 = vadd.f32 %v9602_v31, %v3540_v25 }
 0xf63   : > { %v3519_v62 = vmul.f32 %v8092_v54, %v3518_v55 }
 0xf65   : > { %v3523_v30 = vsel %vm3522_vm14, %v8092_v54, %v3519_v62 }
 0xf66   : > { %v3531_v37 = vmul.f32 %v3523_v30, %v9595_v61  ;;  %v3596_v24 = vpop.f32.mrf.mxu2 }
 0xf67   : > { %v3597_v6 = vadd.f32 %v7897_v58, %v3596_v24 }
 0xf68   : > { %v3541_v34 = vmul.f32 %v9591_v43, %v3531_v37 }
 0xf69   : > { %v3616_v40 = vmax.f32 %v3597_v6, 0.0 }
 0xf6a   : > { %v9672_v35 = vadd.f32 %v9602_v31, %v3541_v34 }
 0xf6c   : > { %v3560_v50 = vpack.c.bf16 %v9672_v35, %v9669_v45 }
 0xf6e   : > { %v3598_v61 = vpop.f32.mrf.mxu2  ;;  %7462 = vmatmul.msk.bf16.gmra.mxu2 %vm484_vm1, %v3560_v50 }
 0xf6f   : > { %v3599_v22 = vadd.f32 %v7897_v58, %v3598_v61 }
 0xf71   : > { %v3617_v43 = vmax.f32 %v3599_v22, 0.0 }
 0xf73   : > { %v3633_v41 = vpack.c.bf16 %v3617_v43, %v3616_v40 }
 0xf75   : > { %7487 = vmatmul.msk.bf16.vlgmr.msrb.gmra.mxu3 %vm11184_vm5, %v3633_v41 }
 0xfb0   : > { %v3601_v53 = vpop.f32.mrf.mxu2 }
 0xfb1   : > { %v3602_v49 = vadd.f32 %v7897_v58, %v3601_v53 }
 0xfb3   : > { %v3618_v7 = vmax.f32 %v3602_v49, 0.0 }
 0xfb8   : > { %v3603_v9 = vpop.f32.mrf.mxu2 }
 0xfb9   : > { %v3604_v21 = vadd.f32 %v7897_v58, %v3603_v9 }
 0xfbb   : > { %v3619_v31 = vmax.f32 %v3604_v21, 0.0 }
 0xfbd   : > { %v3634_v4 = vpack.c.bf16 %v3619_v31, %v3618_v7 }
 0xfbf   : > { %7488 = vmatmul.msk.bf16.gmra.mxu3 %vm11185_vm6, %v3634_v4 }
 0xfc0   : > { %v3606_v47 = vpop.f32.mrf.mxu2 }
 0xfc1   : > { %v3607_v0 = vadd.f32 %v7897_v58, %v3606_v47 }
 0xfc3   : > { %v3620_v18 = vmax.f32 %v3607_v0, 0.0 }
 0xfc8   : > { %v3608_v14 = vpop.f32.mrf.mxu2 }
 0xfc9   : > { %v3609_v10 = vadd.f32 %v7897_v58, %v3608_v14 }
 0xfcb   : > { %v3621_v13 = vmax.f32 %v3609_v10, 0.0 }
 0xfcd   : > { %v3635_v15 = vpack.c.bf16 %v3621_v13, %v3620_v18 }
 0xfcf   : > { %7489 = vmatmul.msk.bf16.gmra.mxu3 %vm11186_vm0, %v3635_v15 }
 0xff1   : > { %v3611_v48 = vpop.f32.mrf.mxu2 }
 0xff2   : > { %v3612_v56 = vadd.f32 %v7897_v58, %v3611_v48 }
 0xff4   : > { %v3622_v11 = vmax.f32 %v3612_v56, 0.0 }
 0xff8   : > { %v3684_v19 = vpop.f32.mrf.mxu3 }
 0xff9   : > { %v3685_v16 = vadd.f32 %v7898_v63, %v3684_v19  ;;  %v3613_v2 = vpop.f32.mrf.mxu2 }
 0xffa   : > { %v3614_v52 = vadd.f32 %v7897_v58, %v3613_v2 }
 0xffb   : > { %v3704_v5 = vadd.f32 %v3685_v16, %v9609_v29 }
 0xffc   : > { %v3623_v12 = vmax.f32 %v3614_v52, 0.0 }
 0xffd   : > { %v3712_v23 = vsel %vm484_vm1, %v3704_v5, 0.0 }
 0xffe   : > { %v3636_v54 = vpack.c.bf16 %v3623_v12, %v3622_v11  ;;  %3713 = vadd.xlane.f32.xlu0 %v3712_v23 }
0x1000   : > { %v3686_v3 = vpop.f32.mrf.mxu3  ;;  %7490 = vmatmul.msk.bf16.gmra.mxu3 %vm11187_vm4, %v3636_v54 }
0x1001   : > { %v3687_v20 = vadd.f32 %v7898_v63, %v3686_v3 }
0x1003   : > { %v3705_v17 = vadd.f32 %v3687_v20, %v9612_v27 }
0x1005   : > { %v3715_v26 = vsel %vm484_vm1, %v3705_v17, 0.0 }
0x1006   : > { %3716 = vadd.xlane.f32.xlu2 %v3715_v26  ;;  %v7768_v26 = vld [vmem:[%s11114_s4 + $0x38] sm:$0xff] }
0x1007   : > { %3949 = vmatpush.bf16.msrb.mxu0 %v7768_v26 }
0x1042   : > { %v3689_v46 = vpop.f32.mrf.mxu3 }
0x1043   : > { %v3690_v55 = vadd.f32 %v7898_v63, %v3689_v46  ;;  %v7770_v46 = vld [vmem:[%s11115_s5 + $0x38] sm:$0xff] }
0x1044   : > { %3997 = vmatpush.bf16.msrb.mxu1 %v7770_v46 }
0x1045   : > { %v3706_v39 = vadd.f32 %v3690_v55, %v9626_v59 }
0x1047   : > { %v3718_v29 = vsel %vm484_vm1, %v3706_v39, 0.0 }
0x1048   : > { %3719 = vadd.xlane.f32.xlu1 %v3718_v29  ;;  %v7767_v29 = vld [vmem:[%s11114_s4 + $0x30] sm:$0xff] }
0x1049   : > { %3950 = vmatpush.bf16.msrb.mxu0 %v7767_v29 }
0x104a   : > { %v3691_v62 = vpop.f32.mrf.mxu3 }
0x104b   : > { %v3692_v30 = vadd.f32 %v7898_v63, %v3691_v62  ;;  %v7769_v62 = vld [vmem:[%s11115_s5 + $0x30] sm:$0xff] }
0x104c   : > { %3998 = vmatpush.bf16.msrb.mxu1 %v7769_v62 }
0x104d   : > { %v3707_v37 = vadd.f32 %v3692_v30, %v9629_v51 }
0x104f   : > { %v3721_v24 = vsel %vm484_vm1, %v3707_v37, 0.0 }
0x1050   : > { %3722 = vadd.xlane.f32.xlu0 %v3721_v24 }
0x1052   : > { %v3694_v25 = vpop.f32.mrf.mxu3 }
0x1053   : > { %v3695_v34 = vadd.f32 %v7898_v63, %v3694_v25 }
0x1055   : > { %v3708_v27 = vadd.f32 %v3695_v34, %v9639_v42 }
0x1057   : > { %v3724_v58 = vsel %vm484_vm1, %v3708_v27, 0.0 }
0x1058   : > { %3725 = vadd.xlane.f32.xlu2 %v3724_v58 }
0x105a   : > { %v3696_v50 = vpop.f32.mrf.mxu3 }
0x105b   : > { %v3697_v6 = vadd.f32 %v7898_v63, %v3696_v50 }
0x105d   : > { %v3709_v59 = vadd.f32 %v3697_v6, %v9642_v60 }
0x105f   : > { %v3727_v61 = vsel %vm484_vm1, %v3709_v59, 0.0 }
0x1060   : > { %3728 = vadd.xlane.f32.xlu1 %v3727_v61 }
0x1071   : > { %v3714_v22 = vpop.xlane.xlu0 %3713 }
0x1072   : > { %v3736_v51 = vmul.f32 %v3714_v22, %v8395_v44 }
0x1074   : > { %v9697_v40 = vsub.f32 %v3704_v5, %v3736_v51 }
0x1076   : > { %v3752_v43 = vmul.f32 %v9697_v40, %v9697_v40 }
0x1078   : > { %v3760_v42 = vsel %vm484_vm1, %v3752_v43, 0.0 }
0x1079   : > { %3761 = vadd.xlane.f32.xlu0 %v3760_v42  ;;  %v3717_v41 = vpop.xlane.xlu2 %3716 }
0x107a   : > { %v3737_v53 = vmul.f32 %v3717_v41, %v8395_v44 }
0x107c   : > { %v9703_v49 = vsub.f32 %v3705_v17, %v3737_v53 }
0x107e   : > { %v3753_v60 = vmul.f32 %v9703_v49, %v9703_v49 }
0x1080   : > { %v3763_v9 = vsel %vm484_vm1, %v3753_v60, 0.0 }
0x1081   : > { %3764 = vadd.xlane.f32.xlu2 %v3763_v9 }
0x1083   : > { %v3699_v21 = vpop.f32.mrf.mxu3 }
0x1084   : > { %v3700_v7 = vadd.f32 %v7898_v63, %v3699_v21 }
0x1086   : > { %v3710_v31 = vadd.f32 %v3700_v7, %v9669_v45 }
0x1088   : > { %v3730_v4 = vsel %vm484_vm1, %v3710_v31, 0.0 }
0x1089   : > { %3731 = vadd.xlane.f32.xlu1 %v3730_v4 }
0x108b   : > { %v3701_v47 = vpop.f32.mrf.mxu3 }
0x108c   : > { %v3702_v0 = vadd.f32 %v7898_v63, %v3701_v47 }
0x108e   : > { %v9711_v14 = vadd.f32 %v3702_v0, %v9672_v35 }
0x1090   : > { %v3733_v10 = vsel %vm484_vm1, %v9711_v14, 0.0 }
0x1091   : > { %3734 = vadd.xlane.f32.xlu0 %v3733_v10 }
0x10bb   : > { %v3720_v18 = vpop.xlane.xlu1 %3719 }
0x10bc   : > { %v3738_v13 = vmul.f32 %v3720_v18, %v8395_v44 }
0x10be   : > { %v9716_v15 = vsub.f32 %v3706_v39, %v3738_v13 }
0x10c0   : > { %v3754_v45 = vmul.f32 %v9716_v15, %v9716_v15 }
0x10c2   : > { %v3766_v48 = vsel %vm484_vm1, %v3754_v45, 0.0 }
0x10c3   : > { %v3723_v56 = vpop.xlane.xlu0 %3722  ;;  %3767 = vadd.xlane.f32.xlu2 %v3766_v48  ;;  %v9774_v48 = vld [vmem:[%s11117_s7 + $0x18] ss:$0 sm:$0xff] }
0x10c4   : > { %v3739_v63 = vmul.f32 %v3723_v56, %v8395_v44 }
0x10c6   : > { %v9722_v35 = vsub.f32 %v3707_v37, %v3739_v63 }
0x10c8   : > { %v3755_v19 = vmul.f32 %v9722_v35, %v9722_v35 }
0x10ca   : > { %v3769_v16 = vsel %vm484_vm1, %v3755_v19, 0.0 }
0x10cb   : > { %v3726_v2 = vpop.xlane.xlu2 %3725  ;;  %3770 = vadd.xlane.f32.xlu1 %v3769_v16 }
0x10cc   : > { %v3740_v52 = vmul.f32 %v3726_v2, %v8395_v44 }
0x10ce   : > { %v9728_v5 = vsub.f32 %v3708_v27, %v3740_v52 }
0x10d0   : > { %v3756_v11 = vmul.f32 %v9728_v5, %v9728_v5 }
0x10d2   : > { %v3772_v12 = vsel %vm484_vm1, %v3756_v11, 0.0 }
0x10d3   : > { %3773 = vadd.xlane.f32.xlu0 %v3772_v12  ;;  %v3729_v23 = vpop.xlane.xlu1 %3728 }
0x10d4   : > { %v3741_v54 = vmul.f32 %v3729_v23, %v8395_v44 }
0x10d6   : > { %v9734_v3 = vsub.f32 %v3709_v59, %v3741_v54 }
0x10d8   : > { %v3757_v20 = vmul.f32 %v9734_v3, %v9734_v3 }
0x10da   : > { %v3775_v17 = vsel %vm484_vm1, %v3757_v20, 0.0 }
0x10db   : > { %3776 = vadd.xlane.f32.xlu2 %v3775_v17 }
0x10ec   : > { %v3762_v55 = vpop.xlane.xlu0 %3761 }
0x10ed   : > { %v3784_v39 = vmul.f32 %v3762_v55, %v8395_v44 }
0x10ef   : > { %v3792_v30 = vadd.f32 1e-06, %v3784_v39 }
0x10f1   : > { %8093 = vrsqrt.f32 %v3792_v30  ;;  %vm3806_vm14 = vweird.f32 %v3792_v30 }
0x10f4   : > { %v3765_v37 = vpop.xlane.xlu2 %3764 }
0x10f5   : > { %v3785_v24 = vmul.f32 %v3765_v37, %v8395_v44 }
0x10f7   : > { %v8094_v25 = vpop.eup %8093  ;;  %v3793_v34 = vadd.f32 1e-06, %v3785_v24 }
0x10f8   : > { %v3801_v27 = vmul.f32 %v8094_v25, %v3792_v30  ;;  %vm3807_vm15 = vweird.f32 %v8094_v25 }
0x10f9   : > { %8095 = vrsqrt.f32 %v3793_v34  ;;  %vm3808_vm5 = vmor %vm3806_vm14, %vm3807_vm15  ;;  %vm3816_vm0 = vweird.f32 %v3793_v34 }
0x10fa   : > { %v3802_v58 = vmul.f32 %v8094_v25, %v3801_v27 }
0x10fc   : > { %v3803_v50 = vmul.f32 0.5, %v3802_v58  ;;  %v3732_v6 = vpop.xlane.xlu1 %3731 }
0x10fd   : > { %v3742_v59 = vmul.f32 %v3732_v6, %v8395_v44 }
0x10fe   : > { %v3804_v61 = vsub.f32 1.5, %v3803_v50 }
0x10ff   : > { %v8096_v22 = vpop.eup %8095  ;;  %v9754_v51 = vsub.f32 %v3710_v31, %v3742_v59  ;;  %v9763_v31 = vld [vmem:[%s11117_s7 + $0x17] ss:$0 sm:$0xff] }
0x1100   : > { %v3805_v43 = vmul.f32 %v8094_v25, %v3804_v61  ;;  %v3811_v42 = vmul.f32 %v8096_v22, %v3793_v34  ;;  %vm3817_vm6 = vweird.f32 %v8096_v22 }
0x1101   : > { %v3758_v41 = vmul.f32 %v9754_v51, %v9754_v51  ;;  %vm3818_vm4 = vmor %vm3816_vm0, %vm3817_vm6 }
0x1102   : > { %v3812_v53 = vmul.f32 %v8096_v22, %v3811_v42  ;;  %v3809_v9 = vsel %vm3808_vm5, %v8094_v25, %v3805_v43 }
0x1103   : > { %v3778_v60 = vsel %vm484_vm1, %v3758_v41, 0.0  ;;  %v3880_v0 = vmul.f32 %v3809_v9, %v9697_v40 }
0x1104   : > { %v3813_v21 = vmul.f32 0.5, %v3812_v53  ;;  %v3735_v7 = vpop.xlane.xlu0 %3734  ;;  %3779 = vadd.xlane.f32.xlu1 %v3778_v60 }
0x1105   : > { %v3743_v4 = vmul.f32 %v3735_v7, %v8395_v44  ;;  %v3890_v56 = vmul.f32 %v9763_v31, %v3880_v0 }
0x1106   : > { %v3814_v47 = vsub.f32 1.5, %v3813_v21 }
0x1107   : > { %v9767_v10 = vsub.f32 %v9711_v14, %v3743_v4  ;;  %v9781_v19 = vadd.f32 %v9774_v48, %v3890_v56 }
0x1108   : > { %v3815_v18 = vmul.f32 %v8096_v22, %v3814_v47 }
0x1109   : > { %v3759_v13 = vmul.f32 %v9767_v10, %v9767_v10 }
0x110a   : > { %v3819_v45 = vsel %vm3818_vm4, %v8096_v22, %v3815_v18 }
0x110b   : > { %v3881_v63 = vmul.f32 %v3819_v45, %v9703_v49  ;;  %v3781_v40 = vsel %vm484_vm1, %v3759_v13, 0.0 }
0x110c   : > { %3782 = vadd.xlane.f32.xlu0 %v3781_v40 }
0x110d   : > { %v3891_v14 = vmul.f32 %v9763_v31, %v3881_v63 }
0x110f   : > { %v9784_v16 = vadd.f32 %v9774_v48, %v3891_v14 }
0x1111   : > { %v3913_v2 = vpack.c.bf16 %v9784_v16, %v9781_v19 }
0x1113   : > { %7503 = vmatmul.msk.bf16.vlgmr.msrb.gmra.mxu0 %vm484_vm1, %v3913_v2  ;;  %7519 = vmatmul.msk.bf16.vlgmr.msrb.gmra.mxu1 %vm484_vm1, %v3913_v2 }
0x1136   : > { %v3768_v52 = vpop.xlane.xlu2 %3767 }
0x1137   : > { %v3786_v49 = vmul.f32 %v3768_v52, %v8395_v44 }
0x1139   : > { %v3794_v11 = vadd.f32 1e-06, %v3786_v49 }
0x113b   : > { %8097 = vrsqrt.f32 %v3794_v11  ;;  %vm3826_vm14 = vweird.f32 %v3794_v11 }
0x113e   : > { %v3771_v12 = vpop.xlane.xlu1 %3770 }
0x113f   : > { %v3787_v23 = vmul.f32 %v3771_v12, %v8395_v44 }
0x1141   : > { %v8098_v54 = vpop.eup %8097  ;;  %v3795_v20 = vadd.f32 1e-06, %v3787_v23 }
0x1142   : > { %v3821_v17 = vmul.f32 %v8098_v54, %v3794_v11  ;;  %vm3827_vm15 = vweird.f32 %v8098_v54 }
0x1143   : > { %8099 = vrsqrt.f32 %v3795_v20  ;;  %vm3828_vm5 = vmor %vm3826_vm14, %vm3827_vm15  ;;  %vm3836_vm0 = vweird.f32 %v3795_v20 }
0x1144   : > { %v3822_v26 = vmul.f32 %v8098_v54, %v3821_v17 }
0x1146   : > { %v3823_v46 = vmul.f32 0.5, %v3822_v26  ;;  %v3774_v55 = vpop.xlane.xlu0 %3773 }
0x1147   : > { %v3788_v39 = vmul.f32 %v3774_v55, %v8395_v44 }
0x1148   : > { %v3824_v29 = vsub.f32 1.5, %v3823_v46 }
0x1149   : > { %v8100_v62 = vpop.eup %8099  ;;  %v3796_v30 = vadd.f32 1e-06, %v3788_v39 }
0x114a   : > { %v3825_v37 = vmul.f32 %v8098_v54, %v3824_v29  ;;  %v3831_v24 = vmul.f32 %v8100_v62, %v3795_v20  ;;  %vm3837_vm6 = vweird.f32 %v8100_v62 }
0x114b   : > { %8101 = vrsqrt.f32 %v3796_v30  ;;  %vm3838_vm4 = vmor %vm3836_vm0, %vm3837_vm6  ;;  %vm3846_vm14 = vweird.f32 %v3796_v30 }
0x114c   : > { %v3832_v25 = vmul.f32 %v8100_v62, %v3831_v24  ;;  %v3829_v34 = vsel %vm3828_vm5, %v8098_v54, %v3825_v37 }
0x114d   : > { %v3882_v61 = vmul.f32 %v3829_v34, %v9716_v15 }
0x114e   : > { %v3833_v27 = vmul.f32 0.5, %v3832_v25  ;;  %v3777_v58 = vpop.xlane.xlu2 %3776 }
0x114f   : > { %v3789_v50 = vmul.f32 %v3777_v58, %v8395_v44  ;;  %v3892_v9 = vmul.f32 %v9763_v31, %v3882_v61  ;;  %v9827_v58 = vld [vmem:[%s11117_s7 + $0x1a] ss:$0 sm:$0xff] }
0x1150   : > { %v3834_v6 = vsub.f32 1.5, %v3833_v27 }
0x1151   : > { %v8102_v59 = vpop.eup %8101  ;;  %v3797_v22 = vadd.f32 1e-06, %v3789_v50  ;;  %v9799_v0 = vadd.f32 %v9774_v48, %v3892_v9 }
0x1152   : > { %v3835_v43 = vmul.f32 %v8100_v62, %v3834_v6  ;;  %v3841_v42 = vmul.f32 %v8102_v59, %v3796_v30  ;;  %vm3847_vm15 = vweird.f32 %v8102_v59 }
0x1153   : > { %8103 = vrsqrt.f32 %v3797_v22  ;;  %vm3848_vm5 = vmor %vm3846_vm14, %vm3847_vm15  ;;  %vm3856_vm0 = vweird.f32 %v3797_v22 }
0x1154   : > { %v3839_v41 = vsel %vm3838_vm4, %v8100_v62, %v3835_v43  ;;  %v3842_v53 = vmul.f32 %v8102_v59, %v3841_v42 }
0x1155   : > { %v3883_v60 = vmul.f32 %v3839_v41, %v9722_v35  ;;  %v9834_v41 = vld [vmem:[%s11117_s7 + $0x19] ss:$0 sm:$0xff] }
0x1156   : > { %v3843_v21 = vmul.f32 0.5, %v3842_v53 }
0x1157   : > { %v3893_v7 = vmul.f32 %v9763_v31, %v3883_v60 }
0x1158   : > { %v3844_v4 = vsub.f32 1.5, %v3843_v21 }
0x1159   : > { %v8104_v47 = vpop.eup %8103  ;;  %v9802_v15 = vadd.f32 %v9774_v48, %v3893_v7 }
0x115a   : > { %v3845_v18 = vmul.f32 %v8102_v59, %v3844_v4  ;;  %v3851_v13 = vmul.f32 %v8104_v47, %v3797_v22  ;;  %vm3857_vm6 = vweird.f32 %v8104_v47 }
0x115b   : > { %v3914_v45 = vpack.c.bf16 %v9802_v15, %v9799_v0  ;;  %vm3858_vm4 = vmor %vm3856_vm0, %vm3857_vm6 }
0x115c   : > { %v3852_v35 = vmul.f32 %v8104_v47, %v3851_v13  ;;  %v3849_v56 = vsel %vm3848_vm5, %v8102_v59, %v3845_v18 }
0x115d   : > { %7504 = vmatmul.msk.bf16.gmra.mxu0 %vm484_vm1, %v3914_v45  ;;  %7520 = vmatmul.msk.bf16.gmra.mxu1 %vm484_vm1, %v3914_v45  ;;  %v3884_v14 = vmul.f32 %v3849_v56, %v9728_v5 }
0x115e   : > { %v3853_v63 = vmul.f32 0.5, %v3852_v35 }
0x115f   : > { %v3894_v11 = vmul.f32 %v9763_v31, %v3884_v14 }
0x1160   : > { %v3854_v40 = vsub.f32 1.5, %v3853_v63 }
0x1161   : > { %v9813_v23 = vadd.f32 %v9774_v48, %v3894_v11 }
0x1162   : > { %v3855_v2 = vmul.f32 %v8104_v47, %v3854_v40 }
0x1164   : > { %v3859_v52 = vsel %vm3858_vm4, %v8104_v47, %v3855_v2 }
0x1165   : > { %v3885_v49 = vmul.f32 %v3859_v52, %v9734_v3 }
0x1167   : > { %v3895_v12 = vmul.f32 %v9763_v31, %v3885_v49 }
0x1169   : > { %v9816_v54 = vadd.f32 %v9774_v48, %v3895_v12 }
0x116b   : > { %v3915_v20 = vpack.c.bf16 %v9816_v54, %v9813_v23 }
0x116d   : > { %7505 = vmatmul.msk.bf16.gmra.mxu0 %vm484_vm1, %v3915_v20  ;;  %7521 = vmatmul.msk.bf16.gmra.mxu1 %vm484_vm1, %v3915_v20 }
0x1177   : > { %v3780_v5 = vpop.xlane.xlu1 %3779 }
0x1178   : > { %v3790_v3 = vmul.f32 %v3780_v5, %v8395_v44 }
0x117a   : > { %v3798_v17 = vadd.f32 1e-06, %v3790_v3 }
0x117c   : > { %8105 = vrsqrt.f32 %v3798_v17  ;;  %vm3866_vm14 = vweird.f32 %v3798_v17 }
0x117f   : > { %v3783_v26 = vpop.xlane.xlu0 %3782 }
0x1180   : > { %v3791_v46 = vmul.f32 %v3783_v26, %v8395_v44 }
0x1182   : > { %v8106_v55 = vpop.eup %8105  ;;  %v3799_v39 = vadd.f32 1e-06, %v3791_v46 }
0x1183   : > { %v3861_v29 = vmul.f32 %v8106_v55, %v3798_v17  ;;  %vm3867_vm15 = vweird.f32 %v8106_v55 }
0x1184   : > { %8107 = vrsqrt.f32 %v3799_v39  ;;  %vm3868_vm5 = vmor %vm3866_vm14, %vm3867_vm15  ;;  %vm3876_vm0 = vweird.f32 %v3799_v39  ;;  %vm11188_vm15 = vcmask 64512  }
0x1185   : > { %v3862_v62 = vmul.f32 %v8106_v55, %v3861_v29  ;;  %vm11189_vm14 = vmmov %vm11188_vm15 }
0x1187   : > { %v3863_v30 = vmul.f32 0.5, %v3862_v62 }
0x1189   : > { %v3864_v37 = vsub.f32 1.5, %v3863_v30 }
0x118a   : > { %v8108_v24 = vpop.eup %8107 }
0x118b   : > { %v3865_v25 = vmul.f32 %v8106_v55, %v3864_v37  ;;  %v3871_v34 = vmul.f32 %v8108_v24, %v3799_v39  ;;  %vm3877_vm6 = vweird.f32 %v8108_v24 }
0x118c   : > { %vm3878_vm4 = vmor %vm3876_vm0, %vm3877_vm6 }
0x118d   : > { %v3872_v27 = vmul.f32 %v8108_v24, %v3871_v34  ;;  %v3869_v50 = vsel %vm3868_vm5, %v8106_v55, %v3865_v25  ;;  %vm11190_vm5 = vmmov %vm11189_vm14 }
0x118e   : > { %v3886_v43 = vmul.f32 %v3869_v50, %v9754_v51  ;;  %vm11191_vm6 = vmmov %vm11190_vm5 }
0x118f   : > { %v3873_v6 = vmul.f32 0.5, %v3872_v27  ;;  %vm11192_vm0 = vmmov %vm11190_vm5 }
0x1190   : > { %v4000_v59 = vpop.f32.mrf.mxu1  ;;  %v3952_v53 = vpop.f32.mrf.mxu0  ;;  %v3896_v47 = vmul.f32 %v9763_v31, %v3886_v43 }
0x1191   : > { %v3874_v61 = vsub.f32 1.5, %v3873_v6  ;;  %v4001_v22 = vadd.f32 %v9827_v58, %v4000_v59  ;;  %v3953_v51 = vadd.f32 %v9834_v41, %v3952_v53 }
0x1192   : > { %v9847_v56 = vadd.f32 %v9774_v48, %v3896_v47 }
0x1193   : > { %v3875_v42 = vmul.f32 %v8108_v24, %v3874_v61  ;;  %v4028_v60 = vpack.c.bf16 %v4001_v22, %v4001_v22  ;;  %v9852_v63 = vpack.c.bf16 %v3953_v51, %v3953_v51 }
0x1195   : > { %v3879_v9 = vsel %vm3878_vm4, %v8108_v24, %v3875_v42  ;;  %v4040_v21 = vsel %vm484_vm1, %v4028_v60, 0  ;;  %v4293_v7 = vunpack.c.l.b16 %v4028_v60  ;;  %vm11193_vm4 = vmmov %vm11192_vm0 }
0x1196   : > { %v3887_v4 = vmul.f32 %v3879_v9, %v9767_v10  ;;  %4049 = vmatpush.bf16.xpose.msrb.mxu2 %v4040_v21 }
0x1197   : > { %v9840_v18 = vpack.c.b16 %v4293_v7, %v4293_v7 }
0x1198   : > { %v4002_v13 = vpop.f32.mrf.mxu1  ;;  %v3897_v45 = vmul.f32 %v9763_v31, %v3887_v4  ;;  %v3954_v2 = vpop.f32.mrf.mxu0 }
0x1199   : > { %v4003_v35 = vadd.f32 %v9827_v58, %v4002_v13  ;;  %4295 = vrot.lane.b32.xlu0 %v9840_v18, %s8298_s22 }
0x119a   : > { %v9850_v10 = vadd.f32 %v9774_v48, %v3897_v45  ;;  %v3955_v48 = vadd.f32 %v9834_v41, %v3954_v2 }
0x119b   : > { %v4029_v40 = vpack.c.bf16 %v4003_v35, %v4003_v35 }
0x119c   : > { %v3916_v14 = vpack.c.bf16 %v9850_v10, %v9847_v56  ;;  %v9866_v11 = vpack.c.bf16 %v3955_v48, %v3955_v48 }
0x119d   : > { %v4317_v52 = vunpack.c.l.b16 %v4029_v40  ;;  %7523 = vmatmul.msk.bf16.vlgmr.msrb.gmra.mxu2 %vm484_vm1, %v9852_v63  ;;  %v4059_v31 = vsel %vm484_vm1, %v4029_v40, 0 }
0x119e   : > { %7506 = vmatmul.msk.bf16.gmra.mxu0 %vm484_vm1, %v3916_v14  ;;  %7522 = vmatmul.msk.bf16.gmra.mxu1 %vm484_vm1, %v3916_v14 }
0x119f   : > { %v9861_v49 = vpack.c.b16 %v4317_v52, %v4317_v52  ;;  %4068 = vmatpush.bf16.xpose.msra.mxu3 %v4059_v31 }
0x11a1   : > { %4319 = vrot.lane.b32.xlu2 %v9861_v49, %s8298_s22 }
0x11a6   : > { %7524 = vmatmul.msk.bf16.vlgmr.msra.gmra.mxu3 %vm484_vm1, %v9866_v11 }
0x11da   : > { %v3957_v12 = vpop.f32.mrf.mxu0  ;;  %v4005_v20 = vpop.f32.mrf.mxu1 }
0x11db   : > { %v4006_v5 = vadd.f32 %v9827_v58, %v4005_v20  ;;  %v3958_v46 = vadd.f32 %v9834_v41, %v3957_v12 }
0x11dd   : > { %v4030_v3 = vpack.c.bf16 %v4006_v5, %v4006_v5  ;;  %v9878_v30 = vpack.c.bf16 %v3958_v46, %v3958_v46 }
0x11df   : > { %v4078_v17 = vsel %vm484_vm1, %v4030_v3, 0  ;;  %v4341_v26 = vunpack.c.l.b16 %v4030_v3 }
0x11e0   : > { %4087 = vmatpush.bf16.xpose.msra.mxu0 %v4078_v17 }
0x11e1   : > { %v9873_v55 = vpack.c.b16 %v4341_v26, %v4341_v26 }
0x11e2   : > { %v3959_v39 = vpop.f32.mrf.mxu0  ;;  %v4007_v29 = vpop.f32.mrf.mxu1 }
0x11e3   : > { %v4008_v62 = vadd.f32 %v9827_v58, %v4007_v29  ;;  %4343 = vrot.lane.b32.xlu1 %v9873_v55, %s8298_s22  ;;  %v3960_v25 = vadd.f32 %v9834_v41, %v3959_v39 }
0x11e5   : > { %v9880_v37 = vpack.c.bf16 %v4008_v62, %v4008_v62  ;;  %v9888_v6 = vpack.c.bf16 %v3960_v25, %v3960_v25 }
0x11e7   : > { %7525 = vmatmul.msk.bf16.vlgmr.msra.gmra.mxu0 %vm484_vm1, %v9878_v30  ;;  %v4097_v24 = vsel %vm484_vm1, %v9880_v37, 0 }
0x11e8   : > { %4106 = vmatpush.bf16.xpose.msra.mxu2 %v4097_v24 }
0x11ea   : > { %v4010_v34 = vpop.f32.mrf.mxu1  ;;  %v3962_v50 = vpop.f32.mrf.mxu0 }
0x11eb   : > { %v4011_v27 = vadd.f32 %v9827_v58, %v4010_v34  ;;  %v3963_v22 = vadd.f32 %v9834_v41, %v3962_v50 }
0x11ed   : > { %v9890_v59 = vpack.c.bf16 %v4011_v27, %v4011_v27  ;;  %v9898_v53 = vpack.c.bf16 %v3963_v22, %v3963_v22 }
0x11ef   : > { %v4116_v61 = vsel %vm484_vm1, %v9890_v59, 0  ;;  %7526 = vmatmul.msk.bf16.vlgmr.msra.gmra.mxu2 %vm484_vm1, %v9888_v6 }
0x11f0   : > { %4125 = vmatpush.bf16.xpose.msrb.mxu3 %v4116_v61 }
0x11f2   : > { %v4012_v43 = vpop.f32.mrf.mxu1  ;;  %v3964_v9 = vpop.f32.mrf.mxu0 }
0x11f3   : > { %v4013_v42 = vadd.f32 %v9827_v58, %v4012_v43  ;;  %v3965_v4 = vadd.f32 %v9834_v41, %v3964_v9 }
0x11f5   : > { %v4033_v60 = vpack.c.bf16 %v4013_v42, %v4013_v42  ;;  %v9908_v51 = vpack.c.bf16 %v3965_v4, %v3965_v4 }
0x11f7   : > { %v4413_v21 = vunpack.c.l.b16 %v4033_v60  ;;  %7527 = vmatmul.msk.bf16.vlgmr.msrb.gmra.mxu3 %vm484_vm1, %v9898_v53  ;;  %v4135_v7 = vsel %vm484_vm1, %v4033_v60, 0 }
0x11f8   : > { %4144 = vmatpush.bf16.xpose.msrb.mxu0 %v4135_v7 }
0x11f9   : > { %v9904_v47 = vpack.c.b16 %v4413_v21, %v4413_v21 }
0x11fb   : > { %4415 = vrot.lane.b32.xlu2 %v9904_v47, %s8298_s22  ;;  %v4320_v2 = vpop.permute.xlu2 %4319 }
0x11fc   : > { %v4325_v12 = vsel %vm1151_vm13, %v4320_v2, 0 }
0x11ff   : > { %7528 = vmatmul.msk.bf16.vlgmr.msrb.gmra.mxu0 %vm484_vm1, %v9908_v51 }
0x120b   : > { %v4296_v13 = vpop.permute.xlu0 %4295 }
0x120c   : > { %v4301_v45 = vsel %vm1151_vm13, %v4296_v13, 0 }
0x120d   : > { %4310 = vmatpush.bf16.msra.mxu0 %v4301_v45 }
0x121b   : > { %v4015_v35 = vpop.f32.mrf.mxu1  ;;  %v3967_v14 = vpop.f32.mrf.mxu0 }
0x121c   : > { %v4016_v40 = vadd.f32 %v9827_v58, %v4015_v35  ;;  %v3968_v5 = vadd.f32 %v9834_v41, %v3967_v14 }
0x121e   : > { %v4034_v52 = vpack.c.bf16 %v4016_v40, %v4016_v40  ;;  %v9924_v46 = vpack.c.bf16 %v3968_v5, %v3968_v5 }
0x1220   : > { %v4154_v31 = vsel %vm484_vm1, %v4034_v52, 0  ;;  %v4051_v48 = vpop.f32.mrf.mxu2 }
0x1221   : > { %v9918_v20 = vsel %vm8643_vm3, %v4051_v48, -1e+09  ;;  %4163 = vmatpush.bf16.xpose.msrb.mxu2 %v4154_v31 }
0x1222   : > { %v4196_v3 = vsel %vm11188_vm15, %v9918_v20, -inf  ;;  %vm11194_vm15 = vmmov %vm11192_vm0 }
0x1223   : > { %v4017_v17 = vpop.f32.mrf.mxu1  ;;  %4197 = vmax.xlane.f32.xlu1 %v4196_v3  ;;  %v3969_v29 = vpop.f32.mrf.mxu0 }
0x1224   : > { %v4018_v26 = vadd.f32 %v9827_v58, %v4017_v17  ;;  %v3970_v34 = vadd.f32 %v9834_v41, %v3969_v29  ;;  %v4389_v17 = vunpack.c.l.b16 %v9890_v59  ;;  %v4511_v59 = vunpack.c.l.b16 %v9866_v11 }
0x1226   : > { %v4035_v39 = vpack.c.bf16 %v4018_v26, %v4018_v26  ;;  %v9936_v50 = vpack.c.bf16 %v3970_v34, %v3970_v34  ;;  %v9969_v26 = vpack.c.b16 %v4389_v17, %v4389_v17  ;;  %v4485_v34 = vunpack.c.l.b16 %v9852_v63 }
0x1228   : > { %v4053_v62 = vpop.f32.mrf.mxu2  ;;  %7529 = vmatmul.msk.bf16.vlgmr.msrb.gmra.mxu2 %vm484_vm1, %v9924_v46  ;;  %v4173_v24 = vsel %vm484_vm1, %v4035_v39, 0  ;;  %v4461_v29 = vunpack.c.l.b16 %v4035_v39  ;;  %v4512_v39 = vpack.c.b16 %v4511_v59, %v4511_v59 }
0x1229   : > { %4334 = vmatpush.bf16.msra.mxu2 %v4325_v12  ;;  %v4070_v25 = vpop.f32.mrf.mxu3  ;;  %4182 = vmatpush.bf16.xpose.msra.mxu3 %v4173_v24  ;;  %v4437_v62 = vunpack.c.l.b16 %v4034_v52 }
0x122a   : > { %v9932_v27 = vsel %vm8660_vm8, %v4070_v25, -1e+09  ;;  %v9973_v24 = vpack.c.b16 %v4461_v29, %v4461_v29 }
0x122b   : > { %v4199_v58 = vsel %vm11189_vm14, %v9932_v27, -inf  ;;  %v9977_v25 = vpack.c.b16 %v4437_v62, %v4437_v62  ;;  %vm11195_vm14 = vmmov %vm11192_vm0 }
0x122c   : > { %4200 = vmax.xlane.f32.xlu2 %v4199_v58  ;;  %v4486_v58 = vpack.c.b16 %v4485_v34, %v4485_v34 }
0x1230   : > { %7530 = vmatmul.msk.bf16.vlgmr.msra.gmra.mxu3 %vm484_vm1, %v9936_v50 }
0x1231   : > { %v4072_v61 = vpop.f32.mrf.mxu3 }
0x1255   : > { %v4416_v22 = vpop.permute.xlu2 %4415  ;;  %v4344_v43 = vpop.permute.xlu1 %4343 }
0x1256   : > { %v4421_v42 = vsel %vm1151_vm13, %v4416_v22, 0  ;;  %v4349_v41 = vsel %vm1151_vm13, %v4344_v43, 0 }
0x1257   : > { %4358 = vmatpush.bf16.msrb.mxu3 %v4349_v41  ;;  %4430 = vmatpush.bf16.msrb.mxu2 %v4421_v42 }
0x1264   : > { %v4089_v60 = vpop.f32.mrf.mxu0 }
0x1265   : > { %v9944_v9 = vsel %vm8690_vm2, %v4089_v60, -1e+09  ;;  %v4365_v60 = vunpack.c.l.b16 %v9880_v37 }
0x1266   : > { %v4202_v21 = vsel %vm11190_vm5, %v9944_v9, -inf  ;;  %vm11196_vm5 = vmmov %vm11192_vm0 }
0x1267   : > { %4203 = vmax.xlane.f32.xlu0 %v4202_v21 }
0x126c   : > { %v4091_v7 = vpop.f32.mrf.mxu0 }
0x126d   : > { %v9997_v7 = vpack.c.b16 %v4365_v60, %v4365_v60 }
0x1272   : > { %v4108_v4 = vpop.f32.mrf.mxu2 }
0x1273   : > { %v9950_v13 = vsel %vm8712_vm10, %v4108_v4, -1e+09 }
0x1274   : > { %v4205_v45 = vsel %vm11191_vm6, %v9950_v13, -inf  ;;  %vm11197_vm6 = vmmov %vm11192_vm0 }
0x1275   : > { %4206 = vmax.xlane.f32.xlu1 %v4205_v45 }
0x127a   : > { %v4110_v35 = vpop.f32.mrf.mxu2  ;;  %v4127_v40 = vpop.f32.mrf.mxu3 }
0x127b   : > { %v9956_v14 = vsel %vm8676_vm11, %v4127_v40, -1e+09 }
0x127c   : > { %v4208_v2 = vsel %vm11192_vm0, %v9956_v14, -inf  ;;  %v4146_v31 = vpop.f32.mrf.mxu0 }
0x127d   : > { %v9962_v48 = vsel %vm8703_vm7, %v4146_v31, -1e+09  ;;  %4209 = vmax.xlane.f32.xlu0 %v4208_v2 }
0x127e   : > { %v4211_v12 = vsel %vm11193_vm4, %v9962_v48, -inf  ;;  %vm11198_vm4 = vmmov %vm11192_vm0 }
0x127f   : > { %4212 = vmax.xlane.f32.xlu2 %v4211_v12 }
0x1282   : > { %v4129_v5 = vpop.f32.mrf.mxu3 }
0x1284   : > { %v4148_v3 = vpop.f32.mrf.mxu0 }
0x128e   : > { %4515 = vrot.lane.b32.xlu1 %v9861_v49, %s8300_s28 }
0x1291   : > { %4391 = vrot.lane.b32.xlu0 %v9969_v26, %s8298_s22 }
0x1296   : > { %4463 = vrot.lane.b32.xlu1 %v9973_v24, %s8298_s22  ;;  %v4198_v43 = vpop.xlane.xlu1 %4197 }
0x1297   : > { %v4220_v41 = vsub.f32 %v9918_v20, %v4198_v43 }
0x1299   : > { %4439 = vrot.lane.b32.xlu0 %v9977_v25, %s8298_s22  ;;  %v4228_v21 = vmul.f32 1.442695, %v4220_v41 }
0x129b   : > { %8109 = vpow2.f32 %v4228_v21 }
0x129e   : > { %4487 = vrot.lane.b32.xlu1 %v4486_v58, %s8300_s28 }
0x129f   : > { %v4201_v45 = vpop.xlane.xlu2 %4200 }
0x12a0   : > { %v4221_v20 = vsub.f32 %v9932_v27, %v4201_v45 }
0x12a1   : > { %4513 = vrot.lane.b32.xlu0 %v4512_v39, %s8300_s28  ;;  %v10008_v40 = vpop.eup %8109 }
0x12a2   : > { %v4230_v37 = vmul.f32 1.442695, %v4221_v20  ;;  %v4244_v2 = vsel %vm11196_vm5, %v10008_v40, 0.0  ;;  %vm11201_vm5 = vmmov %vm11192_vm0 }
0x12a4   : > { %8111 = vpow2.f32 %v4230_v37 }
0x12a9   : > { %4489 = vrot.lane.b32.xlu0 %v9840_v18, %s8300_s28 }
0x12aa   : > { %v10012_v31 = vpop.eup %8111 }
0x12ab   : > { %v4165_v52 = vpop.f32.mrf.mxu2  ;;  %v4247_v5 = vsel %vm11197_vm6, %v10012_v31, 0.0  ;;  %vm11202_vm6 = vmmov %vm11192_vm0 }
0x12ac   : > { %v9989_v61 = vsel %vm8726_vm9, %v4165_v52, -1e+09  ;;  %v4537_v52 = vunpack.c.l.b16 %v9878_v30 }
0x12ad   : > { %v4214_v63 = vsel %vm11194_vm15, %v9989_v61, -inf  ;;  %vm11199_vm15 = vmmov %vm11192_vm0 }
0x12ae   : > { %4215 = vmax.xlane.f32.xlu2 %v4214_v63  ;;  %v4538_v63 = vpack.c.b16 %v4537_v52, %v4537_v52 }
0x12b1   : > { %4541 = vrot.lane.b32.xlu0 %v9873_v55, %s8300_s28 }
0x12b3   : > { %v4167_v11 = vpop.f32.mrf.mxu2  ;;  %v4184_v22 = vpop.f32.mrf.mxu3 }
0x12b4   : > { %v10001_v4 = vsel %vm8732_vm12, %v4184_v22, -1e+09 }
0x12b5   : > { %v4217_v35 = vsel %vm11195_vm14, %v10001_v4, -inf  ;;  %vm11200_vm14 = vmmov %vm11192_vm0 }
0x12bb   : > { %v4186_v42 = vpop.f32.mrf.mxu3 }
0x12c6   : > { %4367 = vrot.lane.b32.xlu2 %v9997_v7, %s8298_s22 }
0x12c8   : > { %4218 = vmax.xlane.f32.xlu1 %v4217_v35 }
0x12d0   : > { %4245 = vadd.xlane.f32.xlu1 %v4244_v2 }
0x12da   : > { %v4204_v12 = vpop.xlane.xlu0 %4203 }
0x12db   : > { %v4222_v3 = vsub.f32 %v9944_v9, %v4204_v12  ;;  %4248 = vadd.xlane.f32.xlu0 %v4247_v5 }
0x12dd   : > { %v4232_v17 = vmul.f32 1.442695, %v4222_v3 }
0x12df   : > { %8113 = vpow2.f32 %v4232_v17 }
0x12e5   : > { %v10017_v27 = vpop.eup %8113 }
0x12e6   : > { %v4250_v29 = vsel %vm11192_vm0, %v10017_v27, 0.0 }
0x12e7   : > { %4251 = vadd.xlane.f32.xlu0 %v4250_v29 }
0x12e8   : > { %v4207_v60 = vpop.xlane.xlu1 %4206 }
0x12e9   : > { %v4223_v21 = vsub.f32 %v9950_v13, %v4207_v60 }
0x12eb   : > { %v4234_v35 = vmul.f32 1.442695, %v4223_v21 }
0x12f0   : > { %v4210_v62 = vpop.xlane.xlu0 %4209 }
0x12f1   : > { %v4224_v34 = vsub.f32 %v9956_v14, %v4210_v62 }
0x12f2   : > { %v4213_v59 = vpop.xlane.xlu2 %4212 }
0x12f3   : > { %v4236_v58 = vmul.f32 1.442695, %v4224_v34  ;;  %v4225_v39 = vsub.f32 %v9962_v48, %v4213_v59 }
0x12f5   : > { %8115 = vpow2.f32 %v4236_v58  ;;  %v4238_v9 = vmul.f32 1.442695, %v4225_v39 }
0x12f7   : > { %8117 = vpow2.f32 %v4238_v9 }
0x12f8   : > { %8119 = vpow2.f32 %v4234_v35  ;;  %v4563_v35 = vunpack.c.l.b16 %v9888_v6 }
0x12fb   : > { %v10024_v11 = vpop.eup %8115  ;;  %4539 = vrot.lane.b32.xlu0 %v4538_v63, %s8300_s28 }
0x12fc   : > { %v4256_v22 = vsel %vm11198_vm4, %v10024_v11, 0.0  ;;  %vm11203_vm4 = vmmov %vm11192_vm0 }
0x12fd   : > { %v10029_v43 = vpop.eup %8117  ;;  %4257 = vadd.xlane.f32.xlu2 %v4256_v22 }
0x12fe   : > { %v4259_v14 = vsel %vm11199_vm15, %v10029_v43, 0.0  ;;  %v10041_v12 = vpop.eup %8119  ;;  %vm11204_vm15 = vmmov %vm11192_vm0 }
0x12ff   : > { %4260 = vadd.xlane.f32.xlu1 %v4259_v14  ;;  %v4253_v3 = vsel %vm11200_vm14, %v10041_v12, 0.0  ;;  %vm11205_vm14 = vmmov %vm11192_vm0 }
0x1300   : > { %v4516_v2 = vpop.permute.xlu1 %4515 }
0x1303   : > { %v4392_v48 = vpop.permute.xlu0 %4391 }
0x1304   : > { %v4397_v30 = vsel %vm1151_vm13, %v4392_v48, 0 }
0x1305   : > { %4406 = vmatpush.bf16.msra.mxu1 %v4397_v30 }
0x1308   : > { %v4464_v13 = vpop.permute.xlu1 %4463 }
0x1309   : > { %v4469_v60 = vsel %vm1151_vm13, %v4464_v13, 0  ;;  %v4589_v13 = vunpack.c.l.b16 %v9898_v53 }
0x130b   : > { %v4440_v42 = vpop.permute.xlu0 %4439 }
0x130c   : > { %v4445_v41 = vsel %vm1151_vm13, %v4440_v42, 0 }
0x130d   : > { %4454 = vmatpush.bf16.msra.mxu3 %v4445_v41 }
0x1310   : > { %v10047_v34 = vpop.permute.xlu1 %4487 }
0x1313   : > { %v10036_v45 = vpop.permute.xlu0 %4513 }
0x1318   : > { %4567 = vrot.lane.b32.xlu1 %v9997_v7, %s8300_s28 }
0x131b   : > { %v4490_v20 = vpop.permute.xlu0 %4489 }
0x131c   : > { %v4495_v37 = vsel %vm484_vm1, %v4490_v20, 0 }
0x131d   : > { %4504 = vmatpush.bf16.xpose.msrb.mxu1 %v4495_v37 }
0x1321   : > { %v4216_v5 = vpop.xlane.xlu2 %4215 }
0x1322   : > { %v4226_v62 = vsub.f32 %v9989_v61, %v4216_v5  ;;  %v4564_v5 = vpack.c.b16 %v4563_v35, %v4563_v35 }
0x1323   : > { %v4542_v14 = vpop.permute.xlu0 %4541 }
0x1324   : > { %v4240_v59 = vmul.f32 1.442695, %v4226_v62 }
0x1325   : > { %4254 = vadd.xlane.f32.xlu0 %v4253_v3  ;;  %v4521_v3 = vsel %vm484_vm1, %v4516_v2, 0  ;;  %v4641_v2 = vunpack.c.l.b16 %v9924_v46 }
0x1326   : > { %8121 = vpow2.f32 %v4240_v59  ;;  %v4547_v59 = vsel %vm484_vm1, %v4542_v14, 0 }
0x1327   : > { %v4642_v53 = vpack.c.b16 %v4641_v2, %v4641_v2 }
0x1329   : > { %v4368_v17 = vpop.permute.xlu2 %4367 }
0x132a   : > { %v4373_v29 = vsel %vm1151_vm13, %v4368_v17, 0 }
0x132b   : > { %4382 = vmatpush.bf16.msrb.mxu0 %v4373_v29 }
0x132c   : > { %v10052_v52 = vpop.eup %8121 }
0x132d   : > { %v4262_v61 = vsel %vm11201_vm5, %v10052_v52, 0.0  ;;  %vm11206_vm5 = vmmov %vm11192_vm0 }
0x1339   : > { %4619 = vrot.lane.b32.xlu0 %v9904_v47, %s8300_s28 }
0x133b   : > { %v4219_v58 = vpop.xlane.xlu1 %4218 }
0x133c   : > { %v4227_v39 = vsub.f32 %v10001_v4, %v4219_v58  ;;  %v4667_v58 = vunpack.c.l.b16 %v9936_v50 }
0x133e   : > { %v4242_v9 = vmul.f32 1.442695, %v4227_v39 }
0x1340   : > { %8123 = vpow2.f32 %v4242_v9 }
0x1341   : > { %4593 = vrot.lane.b32.xlu0 %v9969_v26, %s8300_s28 }
0x1342   : > { %4263 = vadd.xlane.f32.xlu1 %v4262_v61 }
0x1343   : > { %v4246_v63 = vpop.xlane.xlu1 %4245 }
0x1344   : > { %8125 = vrcp.f32 %v4246_v63 }
0x1346   : > { %v10058_v22 = vpop.eup %8123 }
0x1347   : > { %v4265_v48 = vsel %vm11202_vm6, %v10058_v22, 0.0  ;;  %vm11207_vm6 = vmmov %vm11192_vm0 }
0x1348   : > { %4266 = vadd.xlane.f32.xlu2 %v4265_v48 }
0x1349   : > { %4645 = vrot.lane.b32.xlu0 %v9977_v25, %s8300_s28 }
0x134a   : > { %v8126_v4 = vpop.eup %8125 }
0x134b   : > { %v4276_v30 = vmul.f32 %v8126_v4, %v10008_v40  ;;  %v4615_v40 = vunpack.c.l.b16 %v9908_v51 }
0x134d   : > { %v4284_v42 = vpack.c.bf16 %v4276_v30, %v4276_v30  ;;  %v4616_v29 = vpack.c.b16 %v4615_v40, %v4615_v40 }
0x134e   : > { %v4249_v41 = vpop.xlane.xlu0 %4248 }
0x134f   : > { %8127 = vrcp.f32 %v4249_v41  ;;  %7531 = vmatmul.msk.bf16.vlgmr.msra.gmra.mxu0 %vm11192_vm0, %v4284_v42 }
0x1350   : > { %4478 = vmatpush.bf16.msra.mxu0 %v4469_v60 }
0x1351   : > { %4671 = vrot.lane.b32.xlu0 %v9973_v24, %s8300_s28 }
0x1355   : > { %v8128_v21 = vpop.eup %8127 }
0x1356   : > { %v4277_v20 = vmul.f32 %v8128_v21, %v10012_v31  ;;  %v4590_v31 = vpack.c.b16 %v4589_v13, %v4589_v13 }
0x1358   : > { %v4285_v37 = vpack.c.bf16 %v4277_v20, %v4277_v20 }
0x135a   : > { %v4252_v17 = vpop.xlane.xlu0 %4251  ;;  %7532 = vmatmul.msk.bf16.vlgmr.msra.gmra.mxu2 %vm11203_vm4, %v4285_v37  ;;  %vm11208_vm4 = vmmov %vm11192_vm0 }
0x135b   : > { %8129 = vrcp.f32 %v4252_v17  ;;  %4530 = vmatpush.bf16.xpose.msra.mxu2 %v4521_v3  ;;  %4565 = vrot.lane.b32.xlu1 %v4564_v5, %s8300_s28 }
0x1360   : > { %4617 = vrot.lane.b32.xlu2 %v4616_v29, %s8300_s28 }
0x1361   : > { %v8130_v6 = vpop.eup %8129 }
0x1362   : > { %v4278_v62 = vmul.f32 %v8130_v6, %v10017_v27  ;;  %v4668_v27 = vpack.c.b16 %v4667_v58, %v4667_v58 }
0x1363   : > { %4591 = vrot.lane.b32.xlu1 %v4590_v31, %s8300_s28 }
0x1364   : > { %v4286_v51 = vpack.c.bf16 %v4278_v62, %v4278_v62 }
0x1366   : > { %7533 = vmatmul.msk.bf16.vlgmr.msrb.gmra.mxu3 %vm11204_vm15, %v4286_v51  ;;  %vm11209_vm15 = vmmov %vm11192_vm0 }
0x1367   : > { %4556 = vmatpush.bf16.xpose.msrb.mxu3 %v4547_v59 }
0x1368   : > { %4817 = vrot.lane.b32.xlu2 %v9861_v49, %s8301_s29 }
0x136b   : > { %4643 = vrot.lane.b32.xlu1 %v4642_v53, %s8300_s28 }
0x136d   : > { %v4540_v50 = vpop.permute.xlu0 %4539 }
0x1370   : > { %v4258_v39 = vpop.xlane.xlu2 %4257 }
0x1371   : > { %8131 = vrcp.f32 %v4258_v39 }
0x1372   : > { %v4261_v9 = vpop.xlane.xlu1 %4260 }
0x1373   : > { %8133 = vrcp.f32 %v4261_v9  ;;  %4669 = vrot.lane.b32.xlu1 %v4668_v27, %s8300_s28 }
0x1377   : > { %v8132_v46 = vpop.eup %8131 }
0x1378   : > { %v4280_v61 = vmul.f32 %v8132_v46, %v10024_v11 }
0x1379   : > { %v8134_v63 = vpop.eup %8133 }
0x137a   : > { %v4288_v14 = vpack.c.bf16 %v4280_v61, %v4280_v61  ;;  %v4281_v48 = vmul.f32 %v8134_v63, %v10029_v43 }
0x137c   : > { %v4289_v49 = vpack.c.bf16 %v4281_v48, %v4281_v48  ;;  %7535 = vmatmul.msk.bf16.vlgmr.msra.gmra.mxu1 %vm11205_vm14, %v4288_v14  ;;  %vm11210_vm14 = vmmov %vm11192_vm0 }
0x137e   : > { %7536 = vmatmul.msk.bf16.vlgmr.msrb.gmra.mxu2 %vm11206_vm5, %v4289_v49  ;;  %vm11213_vm5 = vmmov %vm11192_vm0 }
0x138a   : > { %v4568_v42 = vpop.permute.xlu1 %4567 }
0x138b   : > { %v4573_v43 = vsel %vm484_vm1, %v4568_v42, 0 }
0x138c   : > { %7539 = vmatmul.msk.bf16.vlgmr.msrb.gmra.mxu1 %vm484_vm1, %v10047_v34 }
0x138e   : > { %7540 = vmatmul.msk.bf16.vlgmr.msra.gmra.mxu2 %vm484_vm1, %v10036_v45 }
0x1398   : > { %v4255_v4 = vpop.xlane.xlu0 %4254 }
0x1399   : > { %8135 = vrcp.f32 %v4255_v4 }
0x139f   : > { %v8136_v30 = vpop.eup %8135 }
0x13a0   : > { %v4279_v11 = vmul.f32 %v8136_v30, %v10041_v12 }
0x13a2   : > { %v4287_v41 = vpack.c.bf16 %v4279_v11, %v4279_v11 }
0x13a4   : > { %7534 = vmatmul.msk.bf16.vlgmr.msrb.gmra.mxu0 %vm11207_vm6, %v4287_v41  ;;  %vm11220_vm6 = vmmov %vm11192_vm0 }
0x13a5   : > { %4582 = vmatpush.bf16.xpose.msrb.mxu0 %v4573_v43 }
0x13ab   : > { %v4620_v60 = vpop.permute.xlu0 %4619 }
0x13ac   : > { %v4625_v21 = vsel %vm484_vm1, %v4620_v60, 0 }
0x13ad   : > { %4634 = vmatpush.bf16.xpose.msrb.mxu2 %v4625_v21 }
0x13b3   : > { %v4594_v34 = vpop.permute.xlu0 %4593 }
0x13b4   : > { %v4599_v45 = vsel %vm484_vm1, %v4594_v34, 0 }
0x13b5   : > { %v4264_v35 = vpop.xlane.xlu1 %4263  ;;  %4608 = vmatpush.bf16.xpose.msra.mxu1 %v4599_v45 }
0x13b6   : > { %8137 = vrcp.f32 %v4264_v35 }
0x13bb   : > { %v4646_v20 = vpop.permute.xlu0 %4645  ;;  %v4267_v37 = vpop.xlane.xlu2 %4266 }
0x13bc   : > { %v8138_v12 = vpop.eup %8137  ;;  %8139 = vrcp.f32 %v4267_v37  ;;  %v4651_v3 = vsel %vm484_vm1, %v4646_v20, 0 }
0x13bd   : > { %v4282_v5 = vmul.f32 %v8138_v12, %v10052_v52 }
0x13bf   : > { %v4290_v40 = vpack.c.bf16 %v4282_v5, %v4282_v5 }
0x13c1   : > { %7537 = vmatmul.msk.bf16.vlgmr.msra.gmra.mxu3 %vm11192_vm0, %v4290_v40 }
0x13c2   : > { %v8140_v17 = vpop.eup %8139  ;;  %4660 = vmatpush.bf16.xpose.msra.mxu3 %v4651_v3 }
0x13c3   : > { %v4283_v13 = vmul.f32 %v8140_v17, %v10058_v22  ;;  %v4618_v29 = vpop.permute.xlu2 %4617  ;;  %v4672_v6 = vpop.permute.xlu0 %4671 }
0x13c4   : > { %7544 = vmatmul.msk.bf16.vlgmr.msrb.gmra.mxu2 %vm484_vm1, %v4618_v29  ;;  %v4677_v62 = vsel %vm484_vm1, %v4672_v6, 0 }
0x13c5   : > { %v4291_v31 = vpack.c.bf16 %v4283_v13, %v4283_v13 }
0x13c7   : > { %7538 = vmatmul.msk.bf16.vlgmr.msra.gmra.mxu0 %vm11208_vm4, %v4291_v31  ;;  %vm11221_vm4 = vmmov %vm11192_vm0 }
0x13c8   : > { %4686 = vmatpush.bf16.xpose.msra.mxu0 %v4677_v62 }
0x13cb   : > { %v4818_v52 = vpop.permute.xlu2 %4817 }
0x13cc   : > { %v4823_v51 = vsel %vm1151_vm13, %v4818_v52, 0  ;;  %v10108_v2 = vpop.f32.mrf.mxu0 }
0x13cd   : > { %v4566_v59 = vpop.permute.xlu1 %4565  ;;  %4832 = vmatpush.bf16.msra.mxu2 %v4823_v51 }
0x13d1   : > { %7541 = vmatmul.msk.bf16.vlgmr.msrb.gmra.mxu3 %vm484_vm1, %v4540_v50 }
0x13d4   : > { %v4314_v22 = vpop.f32.mrf.mxu0 }
0x13d5   : > { %v4592_v53 = vpop.permute.xlu1 %4591 }
0x13d6   : > { %7543 = vmatmul.msk.bf16.vlgmr.msra.gmra.mxu1 %vm484_vm1, %v4592_v53 }
0x13d7   : > { %7542 = vmatmul.msk.bf16.vlgmr.msrb.gmra.mxu0 %vm484_vm1, %v4566_v59 }
0x13dd   : > { %v4644_v58 = vpop.permute.xlu1 %4643  ;;  %v10113_v39 = vpop.f32.mrf.mxu2 }
0x13e1   : > { %7545 = vmatmul.msk.bf16.vlgmr.msra.gmra.mxu3 %vm484_vm1, %v4644_v58 }
0x13e5   : > { %v4670_v27 = vpop.permute.xlu1 %4669  ;;  %v4338_v9 = vpop.f32.mrf.mxu2 }
0x13e7   : > { %7546 = vmatmul.msk.bf16.vlgmr.msra.gmra.mxu0 %vm484_vm1, %v4670_v27 }
0x13e9   : > { %v10117_v46 = vpop.f32.mrf.mxu3 }
0x13f1   : > { %v4362_v61 = vpop.f32.mrf.mxu3 }
0x13f9   : > { %v10119_v63 = vpop.f32.mrf.mxu1 }
0x1401   : > { %v4410_v14 = vpop.f32.mrf.mxu1  ;;  %v10121_v48 = vpop.f32.mrf.mxu2 }
0x1409   : > { %v4434_v49 = vpop.f32.mrf.mxu2  ;;  %v4506_v50 = vpop.f32.mrf.mxu1 }
0x140a   : > { %v4692_v4 = vsel %vm8643_vm3, %v4506_v50, -1e+09  ;;  %vm11211_vm3 = vmmov %vm11192_vm0 }
0x140b   : > { %v4700_v30 = vsel %vm11209_vm15, %v4692_v4, -inf  ;;  %vm11222_vm15 = vmmov %vm11192_vm0 }
0x140c   : > { %4701 = vmax.xlane.f32.xlu0 %v4700_v30 }
0x1411   : > { %v4508_v11 = vpop.f32.mrf.mxu1  ;;  %v4532_v42 = vpop.f32.mrf.mxu2 }
0x1412   : > { %v4693_v41 = vsel %vm8660_vm8, %v4532_v42, -1e+09  ;;  %vm11212_vm8 = vmmov %vm11192_vm0 }
0x1413   : > { %v4703_v43 = vsel %vm11210_vm14, %v4693_v41, -inf  ;;  %vm11223_vm14 = vmmov %vm11192_vm0 }
0x1414   : > { %4704 = vmax.xlane.f32.xlu2 %v4703_v43 }
0x1419   : > { %v4534_v60 = vpop.f32.mrf.mxu2 }
0x1421   : > { %v10129_v21 = vpop.f32.mrf.mxu0 }
0x1429   : > { %v4386_v34 = vpop.f32.mrf.mxu0 }
0x1444   : > { %v10131_v45 = vpop.f32.mrf.mxu3  ;;  %v10133_v35 = vpop.f32.mrf.mxu0 }
0x1447   : > { %v4636_v57 = vpop.f32.mrf.mxu2 }
0x1448   : > { %v4697_v20 = vsel %vm8703_vm7, %v4636_v57, -1e+09  ;;  %vm11214_vm7 = vmmov %vm11192_vm0 }
0x1449   : > { %v4715_v37 = vsel %vm11211_vm3, %v4697_v20, -inf  ;;  %vm11224_vm3 = vmmov %vm11192_vm0 }
0x144a   : > { %4716 = vmax.xlane.f32.xlu0 %v4715_v37 }
0x144c   : > { %v4458_v8 = vpop.f32.mrf.mxu3  ;;  %v4482_v12 = vpop.f32.mrf.mxu0 }
0x144f   : > { %v4638_v5 = vpop.f32.mrf.mxu2 }
0x1453   : > { %v4610_v40 = vpop.f32.mrf.mxu1 }
0x1454   : > { %v4696_v3 = vsel %vm8676_vm11, %v4610_v40, -1e+09  ;;  %v4558_v17 = vpop.f32.mrf.mxu3  ;;  %v4584_v13 = vpop.f32.mrf.mxu0  ;;  %vm11215_vm11 = vmmov %vm11192_vm0 }
0x1455   : > { %v4712_v29 = vsel %vm11212_vm8, %v4696_v3, -inf  ;;  %v4695_v6 = vsel %vm8712_vm10, %v4584_v13, -1e+09  ;;  %v4694_v31 = vsel %vm8690_vm2, %v4558_v17, -1e+09  ;;  %vm11216_vm2 = vmmov %vm11192_vm0 }
0x1456   : > { %v4709_v33 = vsel %vm11213_vm5, %v4695_v6, -inf  ;;  %4713 = vmax.xlane.f32.xlu1 %v4712_v29  ;;  %v4706_v28 = vsel %vm11214_vm7, %v4694_v31, -inf  ;;  %vm11217_vm10 = vmmov %vm11192_vm0 }
0x1457   : > { %4710 = vmax.xlane.f32.xlu2 %v4709_v33  ;;  %vm11225_vm8 = vmmov %vm11192_vm0 }
0x1458   : > { %vm11226_vm5 = vmmov %vm11192_vm0 }
0x1459   : > { %vm11227_vm7 = vmmov %vm11192_vm0 }
0x145b   : > { %v4612_v62 = vpop.f32.mrf.mxu1 }
0x145c   : > { %v4560_v52 = vpop.f32.mrf.mxu3  ;;  %v4586_v51 = vpop.f32.mrf.mxu0 }
0x145e   : > { %4707 = vmax.xlane.f32.xlu1 %v4706_v28 }
0x1464   : > { %v4662_v59 = vpop.f32.mrf.mxu3  ;;  %v4688_v22 = vpop.f32.mrf.mxu0 }
0x1465   : > { %v10149_v53 = vsel %vm8726_vm9, %v4662_v59, -1e+09  ;;  %v4699_v38 = vsel %vm8732_vm12, %v4688_v22, -1e+09  ;;  %vm11218_vm9 = vmmov %vm11192_vm0 }
0x1466   : > { %v4718_v1 = vsel %vm11215_vm11, %v10149_v53, -inf  ;;  %v4721_v9 = vsel %vm11216_vm2, %v4699_v38, -inf  ;;  %vm11219_vm12 = vmmov %vm11192_vm0 }
0x1467   : > { %4719 = vmax.xlane.f32.xlu0 %v4718_v1  ;;  %vm11228_vm11 = vmmov %vm11192_vm0 }
0x1468   : > { %vm11229_vm2 = vmmov %vm11192_vm0 }
0x146c   : > { %v4664_v58 = vpop.f32.mrf.mxu3  ;;  %v4690_v27 = vpop.f32.mrf.mxu0 }
0x146f   : > { %4722 = vmax.xlane.f32.xlu0 %v4721_v9 }
0x147f   : > { %v4702_v61 = vpop.xlane.xlu0 %4701 }
0x1480   : > { %v4724_v14 = vsub.f32 %v4692_v4, %v4702_v61 }
0x1482   : > { %v4732_v49 = vmul.f32 1.442695, %v4724_v14 }
0x1483   : > { %4859 = vrot.lane.b32.xlu0 %v9997_v7, %s8301_s29 }
0x1484   : > { %8141 = vpow2.f32 %v4732_v49 }
0x1487   : > { %v4705_v32 = vpop.xlane.xlu2 %4704 }
0x1488   : > { %v4725_v50 = vsub.f32 %v4693_v41, %v4705_v32 }
0x148a   : > { %v10158_v30 = vpop.eup %8141  ;;  %v4734_v11 = vmul.f32 1.442695, %v4725_v50 }
0x148b   : > { %4901 = vrot.lane.b32.xlu0 %v9904_v47, %s8301_s29  ;;  %v4748_v36 = vsel %vm11217_vm10, %v10158_v30, 0.0  ;;  %vm11230_vm10 = vmmov %vm11192_vm0 }
0x148c   : > { %8143 = vpow2.f32 %v4734_v11  ;;  %4749 = vadd.xlane.f32.xlu1 %v4748_v36 }
0x1492   : > { %v8144_v42 = vpop.eup %8143 }
0x1493   : > { %v4751_v4 = vsel %vm11218_vm9, %v8144_v42, 0.0  ;;  %vm11231_vm9 = vmmov %vm11192_vm0 }
0x1494   : > { %4752 = vadd.xlane.f32.xlu2 %v4751_v4 }
0x14a5   : > { %4796 = vrot.lane.b32.xlu1 %v9840_v18, %s8301_s29 }
0x14ac   : > { %4838 = vrot.lane.b32.xlu2 %v9873_v55, %s8301_s29 }
0x14bd   : > { %v4717_v7 = vpop.xlane.xlu0 %4716 }
0x14be   : > { %v4729_v41 = vsub.f32 %v4697_v20, %v4717_v7 }
0x14c0   : > { %v4742_v43 = vmul.f32 1.442695, %v4729_v41 }
0x14c2   : > { %8145 = vpow2.f32 %v4742_v43 }
0x14c8   : > { %v10169_v34 = vpop.eup %8145 }
0x14c9   : > { %v4714_v47 = vpop.xlane.xlu1 %4713  ;;  %v4763_v37 = vsel %vm11219_vm12, %v10169_v34, 0.0  ;;  %vm11232_vm12 = vcmask 523264  }
0x14ca   : > { %v4728_v60 = vsub.f32 %v4696_v3, %v4714_v47  ;;  %v4711_v8 = vpop.xlane.xlu2 %4710 }
0x14cb   : > { %v4727_v55 = vsub.f32 %v4695_v6, %v4711_v8 }
0x14cc   : > { %v4740_v57 = vmul.f32 1.442695, %v4728_v60 }
0x14cd   : > { %v4738_v3 = vmul.f32 1.442695, %v4727_v55 }
0x14ce   : > { %8147 = vpow2.f32 %v4740_v57 }
0x14cf   : > { %4764 = vadd.xlane.f32.xlu1 %v4763_v37 }
0x14d1   : > { %v4708_v12 = vpop.xlane.xlu1 %4707 }
0x14d2   : > { %v4726_v18 = vsub.f32 %v4694_v31, %v4708_v12 }
0x14d4   : > { %v10173_v5 = vpop.eup %8147  ;;  %v4736_v40 = vmul.f32 1.442695, %v4726_v18 }
0x14d5   : > { %v4760_v20 = vsel %vm11220_vm6, %v10173_v5, 0.0  ;;  %vm11233_vm6 = vmmov %vm11232_vm12 }
0x14d6   : > { %8149 = vpow2.f32 %v4736_v40  ;;  %4761 = vadd.xlane.f32.xlu2 %v4760_v20 }
0x14d7   : > { %8151 = vpow2.f32 %v4738_v3 }
0x14da   : > { %v4720_v17 = vpop.xlane.xlu0 %4719 }
0x14dc   : > { %v8150_v13 = vpop.eup %8149 }
0x14dd   : > { %v4754_v29 = vsel %vm11192_vm0, %v8150_v13, 0.0  ;;  %v8152_v33 = vpop.eup %8151  ;;  %vm11234_vm0 = vmmov %vm11233_vm6 }
0x14de   : > { %4755 = vadd.xlane.f32.xlu0 %v4754_v29  ;;  %v4757_v51 = vsel %vm11221_vm4, %v8152_v33, 0.0  ;;  %vm11235_vm4 = vmmov %vm11234_vm0 }
0x14e2   : > { %v4723_v62 = vpop.xlane.xlu0 %4722 }
0x14e3   : > { %v4731_v52 = vsub.f32 %v4699_v38, %v4723_v62 }
0x14e5   : > { %v4746_v31 = vmul.f32 1.442695, %v4731_v52 }
0x14e6   : > { %4758 = vadd.xlane.f32.xlu0 %v4757_v51 }
0x14e7   : > { %8153 = vpow2.f32 %v4746_v31 }
0x14ed   : > { %v10179_v6 = vpop.eup %8153 }
0x14ee   : > { %4922 = vrot.lane.b32.xlu2 %v9977_v25, %s8301_s29  ;;  %v4769_v28 = vsel %vm11222_vm15, %v10179_v6, 0.0 }
0x14ef   : > { %4770 = vadd.xlane.f32.xlu1 %v4769_v28 }
0x14f5   : > { %v4860_v59 = vpop.permute.xlu0 %4859 }
0x14f6   : > { %v4865_v22 = vsel %vm1151_vm13, %v4860_v59, 0 }
0x14f7   : > { %4874 = vmatpush.bf16.msrb.mxu0 %v4865_v22 }
0x14fa   : > { %4880 = vrot.lane.b32.xlu0 %v9969_v26, %s8301_s29  ;;  %v4730_v26 = vsub.f32 %v10149_v53, %v4720_v17 }
0x14fc   : > { %v4744_v50 = vmul.f32 1.442695, %v4730_v26  ;;  %v7772_v26 = vld [vmem:[%s11116_s6 + $0x88] sm:$0xff] }
0x14fd   : > { %v4902_v1 = vpop.permute.xlu0 %4901 }
0x14fe   : > { %v4907_v38 = vsel %vm1151_vm13, %v4902_v1, 0 }
0x14ff   : > { %4916 = vmatpush.bf16.msrb.mxu2 %v4907_v38  ;;  %v4750_v25 = vpop.xlane.xlu1 %4749 }
0x1507   : > { %v4753_v58 = vpop.xlane.xlu2 %4752 }
0x1508   : > { %8155 = vrcp.f32 %v4753_v58  ;;  %4943 = vrot.lane.b32.xlu1 %v9973_v24, %s8301_s29 }
0x1509   : > { %8157 = vrcp.f32 %v4750_v25 }
0x150a   : > { %8159 = vpow2.f32 %v4744_v50 }
0x150e   : > { %v8156_v27 = vpop.eup %8155 }
0x150f   : > { %v4781_v9 = vmul.f32 %v8156_v27, %v8144_v42  ;;  %v4839_v61 = vpop.permute.xlu2 %4838  ;;  %v8158_v32 = vpop.eup %8157 }
0x1510   : > { %v4844_v14 = vsel %vm1151_vm13, %v4839_v61, 0  ;;  %v4780_v11 = vmul.f32 %v8158_v32, %v10158_v30  ;;  %v8160_v42 = vpop.eup %8159  ;;  %v7771_v32 = vld [vmem:[%s11116_s6 + $0x80] sm:$0xff] }
0x1511   : > { %v4789_v49 = vpack.c.bf16 %v4781_v9, %v4781_v9  ;;  %4853 = vmatpush.bf16.msrb.mxu3 %v4844_v14  ;;  %v4766_v7 = vsel %vm11225_vm8, %v8160_v42, 0.0  ;;  %v7773_v14 = vld [vmem:[%s11116_s6 + $0x90] sm:$0xff] }
0x1512   : > { %v4788_v4 = vpack.c.bf16 %v4780_v11, %v4780_v11 }
0x1513   : > { %7548 = vmatmul.msk.bf16.vlgmr.msra.gmra.mxu2 %vm11223_vm14, %v4789_v49 }
0x1517   : > { %v4797_v36 = vpop.permute.xlu1 %4796 }
0x1518   : > { %v4802_v24 = vsel %vm1151_vm13, %v4797_v36, 0 }
0x1519   : > { %4811 = vmatpush.bf16.msrb.mxu1 %v4802_v24 }
0x151c   : > { %7547 = vmatmul.msk.bf16.vlgmr.msrb.gmra.mxu1 %vm11224_vm3, %v4788_v4 }
0x1524   : > { %4767 = vadd.xlane.f32.xlu0 %v4766_v7 }
0x1542   : > { %v4765_v41 = vpop.xlane.xlu1 %4764 }
0x1543   : > { %8161 = vrcp.f32 %v4765_v41 }
0x1549   : > { %v8162_v53 = vpop.eup %8161  ;;  %v4762_v43 = vpop.xlane.xlu2 %4761 }
0x154a   : > { %v4785_v47 = vmul.f32 %v8162_v53, %v10169_v34 }
0x154c   : > { %v4793_v60 = vpack.c.bf16 %v4785_v47, %v4785_v47 }
0x154e   : > { %7552 = vmatmul.msk.bf16.vlgmr.msrb.gmra.mxu2 %vm11226_vm5, %v4793_v60 }
0x1551   : > { %v4923_v30 = vpop.permute.xlu2 %4922  ;;  %v4756_v57 = vpop.xlane.xlu0 %4755 }
0x1552   : > { %v4928_v37 = vsel %vm1151_vm13, %v4923_v30, 0  ;;  %8163 = vrcp.f32 %v4756_v57 }
0x1553   : > { %4937 = vmatpush.bf16.msra.mxu3 %v4928_v37 }
0x1558   : > { %v8164_v8 = vpop.eup %8163 }
0x1559   : > { %v4782_v12 = vmul.f32 %v8164_v8, %v8150_v13  ;;  %v4759_v18 = vpop.xlane.xlu0 %4758 }
0x155a   : > { %8165 = vrcp.f32 %v4759_v18 }
0x155b   : > { %v4790_v55 = vpack.c.bf16 %v4782_v12, %v4782_v12  ;;  %8167 = vrcp.f32 %v4762_v43 }
0x155d   : > { %7549 = vmatmul.msk.bf16.vlgmr.msrb.gmra.mxu3 %vm11227_vm7, %v4790_v55 }
0x1560   : > { %v8166_v40 = vpop.eup %8165 }
0x1561   : > { %v4783_v20 = vmul.f32 %v8166_v40, %v8152_v33  ;;  %v8168_v3 = vpop.eup %8167 }
0x1562   : > { %v4784_v17 = vmul.f32 %v8168_v3, %v10173_v5  ;;  %v4771_v62 = vpop.xlane.xlu1 %4770 }
0x1563   : > { %v4791_v34 = vpack.c.bf16 %v4783_v20, %v4783_v20  ;;  %8169 = vrcp.f32 %v4771_v62 }
0x1564   : > { %v4792_v13 = vpack.c.bf16 %v4784_v17, %v4784_v17 }
0x1565   : > { %7550 = vmatmul.msk.bf16.vlgmr.msrb.gmra.mxu0 %vm11228_vm11, %v4791_v34 }
0x1569   : > { %v8170_v31 = vpop.eup %8169 }
0x156a   : > { %v4787_v51 = vmul.f32 %v8170_v31, %v10179_v6  ;;  %v7774_v6 = vld [vmem:[%s11116_s6 + $0x98] sm:$0xff] }
0x156c   : > { %v4881_v29 = vpop.permute.xlu0 %4880  ;;  %v4795_v59 = vpack.c.bf16 %v4787_v51, %v4787_v51 }
0x156d   : > { %v4886_v52 = vsel %vm1151_vm13, %v4881_v29, 0 }
0x156e   : > { %4895 = vmatpush.bf16.msra.mxu1 %v4886_v52 }
0x1571   : > { %7551 = vmatmul.msk.bf16.vlgmr.msra.gmra.mxu1 %vm11229_vm2, %v4792_v13 }
0x1572   : > { %5067 = vmatpush.bf16.msrb.mxu1 %v7774_v6 }
0x1576   : > { %5068 = vmatpush.bf16.msrb.mxu1 %v7773_v14 }
0x157a   : > { %v4944_v33 = vpop.permute.xlu1 %4943  ;;  %5069 = vmatpush.bf16.msrb.mxu1 %v7772_v26 }
0x157b   : > { %v4949_v28 = vsel %vm1151_vm13, %v4944_v33, 0 }
0x157c   : > { %4958 = vmatpush.bf16.msra.mxu0 %v4949_v28 }
0x157e   : > { %5070 = vmatpush.bf16.msrb.mxu1 %v7771_v32 }
0x157f   : > { %7554 = vmatmul.msk.bf16.vlgmr.msra.gmra.mxu0 %vm11230_vm10, %v4795_v59 }
0x1596   : > { %v4834_v5 = vpop.f32.mrf.mxu2 }
0x1597   : > { %v4768_v22 = vpop.xlane.xlu0 %4767 }
0x1598   : > { %8171 = vrcp.f32 %v4768_v22 }
0x1599   : > { %v4813_v1 = vpop.f32.mrf.mxu1 }
0x159a   : > { %v7844_v38 = vpack.i.bf16 %v4834_v5, %v4813_v1 }
0x159c   : > { %7845 = vrot.lane.b32.xlu2 %v7844_v38, %s8301_s29 }
0x159e   : > { %v8172_v58 = vpop.eup %8171  ;;  %v4836_v25 = vpop.f32.mrf.mxu2 }
0x159f   : > { %v4786_v27 = vmul.f32 %v8172_v58, %v8160_v42 }
0x15a1   : > { %v4794_v9 = vpack.c.bf16 %v4786_v27, %v4786_v27  ;;  %v4815_v61 = vpop.f32.mrf.mxu1 }
0x15a3   : > { %7553 = vmatmul.msk.bf16.vlgmr.msra.gmra.mxu3 %vm11231_vm9, %v4794_v9 }
0x15d1   : > { %v4918_v49 = vpop.f32.mrf.mxu2 }
0x15d9   : > { %v4920_v50 = vpop.f32.mrf.mxu2 }
0x15e0   : > { %v4855_v11 = vpop.f32.mrf.mxu3 }
0x15e2   : > { %v4876_v36 = vpop.f32.mrf.mxu0 }
0x15e3   : > { %v7849_v24 = vpack.i.bf16 %v4876_v36, %v4855_v11 }
0x15e5   : > { %7850 = vrot.lane.b32.xlu2 %v7849_v24, %s8301_s29 }
0x15e8   : > { %v4857_v4 = vpop.f32.mrf.mxu3 }
0x15ea   : > { %v4878_v42 = vpop.f32.mrf.mxu0 }
0x15ee   : > { %v4897_v7 = vpop.f32.mrf.mxu1 }
0x15ef   : > { %v7854_v41 = vpack.i.bf16 %v4918_v49, %v4897_v7 }
0x15f1   : > { %7855 = vrot.lane.b32.xlu1 %v7854_v41, %s8301_s29 }
0x15f6   : > { %v4899_v53 = vpop.f32.mrf.mxu1  ;;  %v7846_v43 = vpop.permute.xlu2 %7845 }
0x15f7   : > { %v7848_v47 = vunpack.i.h.bf16 %v7846_v43  ;;  %v7847_v60 = vunpack.i.l.bf16 %v7846_v43 }
0x15f9   : > { %v4997_v30 = vsel %vm484_vm1, %v10113_v39, %v7848_v47  ;;  %v4996_v57 = vsel %vm484_vm1, %v10108_v2, %v7847_v60 }
0x15fa   : > { %v5023_v37 = vpack.c.bf16 %v4997_v30, %v4996_v57 }
0x15fc   : > { %v4960_v8 = vpop.f32.mrf.mxu0  ;;  %7579 = vmatmul.msk.bf16.vlgmr.msrb.gmra.mxu1 %vm11232_vm12, %v5023_v37 }
0x1604   : > { %v4962_v12 = vpop.f32.mrf.mxu0 }
0x1626   : > { %v4939_v18 = vpop.f32.mrf.mxu3 }
0x1627   : > { %v7859_v55 = vpack.i.bf16 %v4960_v8, %v4939_v18 }
0x1629   : > { %7860 = vrot.lane.b32.xlu0 %v7859_v55, %s8301_s29 }
0x162e   : > { %v4941_v40 = vpop.f32.mrf.mxu3 }
0x163f   : > { %v7851_v20 = vpop.permute.xlu2 %7850 }
0x1640   : > { %v7853_v34 = vunpack.i.h.bf16 %v7851_v20  ;;  %v7852_v3 = vunpack.i.l.bf16 %v7851_v20 }
0x1642   : > { %v4999_v17 = vsel %vm484_vm1, %v10129_v21, %v7853_v34  ;;  %v4998_v39 = vsel %vm484_vm1, %v10117_v46, %v7852_v3  ;;  %v7903_v21 = vld [vmem:[%s11117_s7 + $0x1b] ss:$0 sm:$0xff] }
0x1643   : > { %v5024_v2 = vpack.c.bf16 %v4999_v17, %v4998_v39  ;;  %v5006_v46 = vadd.f32 %v7903_v21, %v9781_v19  ;;  %v5007_v5 = vadd.f32 %v7903_v21, %v9784_v16  ;;  %v5008_v9 = vadd.f32 %v7903_v21, %v9799_v0 }
0x1644   : > { %v5009_v14 = vadd.f32 %v7903_v21, %v9802_v15  ;;  %v5011_v0 = vadd.f32 %v7903_v21, %v9816_v54  ;;  %v5012_v30 = vadd.f32 %v7903_v21, %v9847_v56  ;;  %v5013_v12 = vadd.f32 %v7903_v21, %v9850_v10 }
0x1645   : > { %7580 = vmatmul.msk.bf16.gmra.mxu1 %vm11233_vm6, %v5024_v2 }
0x1663   : > { %v7856_v29 = vpop.permute.xlu1 %7855 }
0x1664   : > { %v7858_v62 = vunpack.i.h.bf16 %v7856_v29  ;;  %v7857_v52 = vunpack.i.l.bf16 %v7856_v29 }
0x1666   : > { %v5001_v13 = vsel %vm484_vm1, %v10121_v48, %v7858_v62  ;;  %v5000_v31 = vsel %vm484_vm1, %v10119_v63, %v7857_v52 }
0x1667   : > { %v5025_v51 = vpack.c.bf16 %v5001_v13, %v5000_v31 }
0x1669   : > { %7581 = vmatmul.msk.bf16.gmra.mxu1 %vm11234_vm0, %v5025_v51 }
0x1679   : > { %v5072_v33 = vpop.f32.mrf.mxu1 }
0x167a   : > { %v5092_v28 = vadd.f32 %v5072_v33, %v5006_v46 }
0x167c   : > { %v5100_v59 = vsel %vm484_vm1, %v5092_v28, 0.0 }
0x167d   : > { %5101 = vadd.xlane.f32.xlu2 %v5100_v59  ;;  %v7777_v59 = vld [vmem:[%s11115_s5 + $0x40] sm:$0xff] }
0x1681   : > { %v5074_v48 = vpop.f32.mrf.mxu1 }
0x1682   : > { %v5093_v22 = vadd.f32 %v5074_v48, %v5007_v5 }
0x1684   : > { %v5103_v63 = vsel %vm484_vm1, %v5093_v22, 0.0 }
0x1685   : > { %5104 = vadd.xlane.f32.xlu1 %v5103_v63 }
0x169b   : > { %v7861_v1 = vpop.permute.xlu0 %7860 }
0x169c   : > { %v7863_v38 = vunpack.i.h.bf16 %v7861_v1  ;;  %v7862_v58 = vunpack.i.l.bf16 %v7861_v1  ;;  %v8285_v1 = vld [vmem:[%s9068_s25] sm:$0xff] }
0x169e   : > { %v5003_v25 = vsel %vm484_vm1, %v10133_v35, %v7863_v38  ;;  %v5002_v19 = vsel %vm484_vm1, %v10131_v45, %v7862_v58  ;;  %v5010_v35 = vadd.f32 %v7903_v21, %v9813_v23  ;;  %v7778_v21 = vld [vmem:[%s11115_s5 + $0x48] sm:$0xff] }
0x169f   : > { %v5026_v27 = vpack.c.bf16 %v5003_v25, %v5002_v19  ;;  %5385 = vmatpush.bf16.msrb.mxu3 %v7778_v21  ;;  %v7775_v19 = vld [vmem:[%s11114_s4 + $0x40] sm:$0xff] }
0x16a1   : > { %7582 = vmatmul.msk.bf16.gmra.mxu1 %vm11235_vm4, %v5026_v27 }
0x16a3   : > { %5386 = vmatpush.bf16.msrb.mxu3 %v7777_v59 }
0x16a6   : > { %7611 = vmatmul.msk.bf16.vlgmr.msrb.gmra.mxu3 %vm484_vm1, %v8285_v1 }
0x16c2   : > { %v5077_v16 = vpop.f32.mrf.mxu1 }
0x16c3   : > { %v5094_v61 = vadd.f32 %v5077_v16, %v5008_v9 }
0x16c5   : > { %v5106_v6 = vsel %vm484_vm1, %v5094_v61, 0.0 }
0x16c6   : > { %5107 = vadd.xlane.f32.xlu0 %v5106_v6 }
0x16ca   : > { %v5079_v49 = vpop.f32.mrf.mxu1 }
0x16cb   : > { %v5095_v26 = vadd.f32 %v5079_v49, %v5009_v14 }
0x16cd   : > { %v5109_v32 = vsel %vm484_vm1, %v5095_v26, 0.0 }
0x16ce   : > { %5110 = vadd.xlane.f32.xlu2 %v5109_v32 }
0x16e6   : > { %v5082_v45 = vpop.f32.mrf.mxu1 }
0x16e7   : > { %v5096_v50 = vadd.f32 %v5082_v45, %v5010_v35 }
0x16e9   : > { %v5112_v11 = vsel %vm484_vm1, %v5096_v50, 0.0 }
0x16ea   : > { %5113 = vadd.xlane.f32.xlu1 %v5112_v11 }
0x16ee   : > { %v5084_v36 = vpop.f32.mrf.mxu1 }
0x16ef   : > { %v5097_v24 = vadd.f32 %v5084_v36, %v5011_v0 }
0x16f0   : > { %v5102_v4 = vpop.xlane.xlu2 %5101 }
0x16f1   : > { %v5124_v42 = vmul.f32 %v5102_v4, %v8395_v44  ;;  %v5115_v15 = vsel %vm484_vm1, %v5097_v24, 0.0  ;;  %v10328_v4 = vld [vmem:[%s11117_s7 + $0x1c] ss:$0 sm:$0xff] }
0x16f2   : > { %5116 = vadd.xlane.f32.xlu2 %v5115_v15 }
0x16f3   : > { %v10262_v7 = vsub.f32 %v5092_v28, %v5124_v42 }
0x16f5   : > { %v5140_v23 = vmul.f32 %v10262_v7, %v10262_v7 }
0x16f7   : > { %v5148_v41 = vsel %vm484_vm1, %v5140_v23, 0.0 }
0x16f8   : > { %v5105_v53 = vpop.xlane.xlu1 %5104  ;;  %5149 = vadd.xlane.f32.xlu1 %v5148_v41  ;;  %v10334_v41 = vld [vmem:[%s11117_s7 + $0x1d] ss:$0 sm:$0xff] }
0x16f9   : > { %v5125_v43 = vmul.f32 %v5105_v53, %v8395_v44 }
0x16fb   : > { %v10268_v54 = vsub.f32 %v5093_v22, %v5125_v43  ;;  %v7776_v22 = vld [vmem:[%s11114_s4 + $0x48] sm:$0xff] }
0x16fc   : > { %5337 = vmatpush.bf16.msra.mxu2 %v7776_v22 }
0x16fd   : > { %v5141_v47 = vmul.f32 %v10268_v54, %v10268_v54 }
0x16ff   : > { %v5151_v60 = vsel %vm484_vm1, %v5141_v47, 0.0  ;;  %v8287_v47 = vld [vmem:[%s9068_s25 + $0x10] sm:$0xff] }
0x1700   : > { %5152 = vadd.xlane.f32.xlu0 %v5151_v60  ;;  %5338 = vmatpush.bf16.msra.mxu2 %v7775_v19 }
0x171e   : > { %v5087_v57 = vpop.f32.mrf.mxu1 }
0x171f   : > { %v10274_v37 = vadd.f32 %v5087_v57, %v5012_v30 }
0x1721   : > { %v5118_v8 = vsel %vm484_vm1, %v10274_v37, 0.0 }
0x1722   : > { %5119 = vadd.xlane.f32.xlu2 %v5118_v8 }
0x1726   : > { %v5089_v18 = vpop.f32.mrf.mxu1 }
0x1727   : > { %v10279_v55 = vadd.f32 %v5089_v18, %v5013_v12 }
0x1729   : > { %v5121_v40 = vsel %vm484_vm1, %v10279_v55, 0.0 }
0x172a   : > { %5122 = vadd.xlane.f32.xlu1 %v5121_v40  ;;  %v8288_v40 = vld [vmem:[%s9068_s25 + $0x18] sm:$0xff] }
0x1739   : > { %v5108_v20 = vpop.xlane.xlu0 %5107 }
0x173a   : > { %v5126_v34 = vmul.f32 %v5108_v20, %v8395_v44 }
0x173c   : > { %v10284_v56 = vsub.f32 %v5094_v61, %v5126_v34 }
0x173e   : > { %v5142_v3 = vmul.f32 %v10284_v56, %v10284_v56 }
0x1740   : > { %v5154_v17 = vsel %vm484_vm1, %v5142_v3, 0.0 }
0x1741   : > { %v5111_v39 = vpop.xlane.xlu2 %5110  ;;  %5155 = vadd.xlane.f32.xlu0 %v5154_v17 }
0x1742   : > { %v5127_v10 = vmul.f32 %v5111_v39, %v8395_v44 }
0x1744   : > { %v10290_v2 = vsub.f32 %v5095_v26, %v5127_v10  ;;  %v8286_v26 = vld [vmem:[%s9068_s25 + $0x8] sm:$0xff]  ;;  %s7211_s25 = sshll.u32 %s11290_s9, 3 }
0x1745   : > { %7612 = vmatmul.msk.bf16.gmra.mxu3 %vm484_vm1, %v8286_v26  ;;  %s11087_s15 = scalar_lea.vmem %s11118_s8, %s7211_s25 }
0x1746   : > { %v5143_v29 = vmul.f32 %v10290_v2, %v10290_v2 }
0x1748   : > { %v5157_v62 = vsel %vm484_vm1, %v5143_v29, 0.0 }
0x1749   : > { %5158 = vadd.xlane.f32.xlu2 %v5157_v62 }
0x1755   : > { %7613 = vmatmul.msk.bf16.gmra.mxu3 %vm484_vm1, %v8287_v47  ;;  %v5388_v47 = vpop.f32.mrf.mxu3 }
0x175d   : > { %v5114_v52 = vpop.xlane.xlu1 %5113 }
0x175e   : > { %v5128_v13 = vmul.f32 %v5114_v52, %v8395_v44 }
0x1760   : > { %v10296_v31 = vsub.f32 %v5096_v50, %v5128_v13 }
0x1762   : > { %v5144_v51 = vmul.f32 %v10296_v31, %v10296_v31 }
0x1764   : > { %v5160_v46 = vsel %vm484_vm1, %v5144_v51, 0.0 }
0x1765   : > { %v5117_v33 = vpop.xlane.xlu2 %5116  ;;  %5161 = vadd.xlane.f32.xlu1 %v5160_v46  ;;  %7614 = vmatmul.msk.bf16.gmra.mxu3 %vm484_vm1, %v8288_v40 }
0x1766   : > { %v5129_v28 = vmul.f32 %v5117_v33, %v8395_v44 }
0x1768   : > { %v10308_v5 = vsub.f32 %v5097_v24, %v5129_v28 }
0x176a   : > { %v5145_v48 = vmul.f32 %v10308_v5, %v10308_v5 }
0x176b   : > { %v5150_v63 = vpop.xlane.xlu1 %5149 }
0x176c   : > { %v5172_v38 = vmul.f32 %v5150_v63, %v8395_v44  ;;  %v5163_v58 = vsel %vm484_vm1, %v5145_v48, 0.0 }
0x176d   : > { %5164 = vadd.xlane.f32.xlu0 %v5163_v58 }
0x176e   : > { %v5180_v25 = vadd.f32 1e-06, %v5172_v38 }
0x1770   : > { %8173 = vrsqrt.f32 %v5180_v25  ;;  %vm5194_vm14 = vweird.f32 %v5180_v25 }
0x1773   : > { %v5153_v27 = vpop.xlane.xlu0 %5152 }
0x1774   : > { %v5173_v9 = vmul.f32 %v5153_v27, %v8395_v44 }
0x1776   : > { %v8174_v16 = vpop.eup %8173  ;;  %v5181_v61 = vadd.f32 1e-06, %v5173_v9 }
0x1777   : > { %v5189_v6 = vmul.f32 %v8174_v16, %v5180_v25  ;;  %vm5195_vm15 = vweird.f32 %v8174_v16 }
0x1778   : > { %8175 = vrsqrt.f32 %v5181_v61  ;;  %vm5196_vm3 = vmor %vm5194_vm14, %vm5195_vm15  ;;  %vm5204_vm5 = vweird.f32 %v5181_v61 }
0x1779   : > { %v5190_v14 = vmul.f32 %v8174_v16, %v5189_v6 }
0x177b   : > { %v5191_v49 = vmul.f32 0.5, %v5190_v14 }
0x177d   : > { %v5192_v32 = vsub.f32 1.5, %v5191_v49 }
0x177e   : > { %v8176_v35 = vpop.eup %8175 }
0x177f   : > { %v5193_v45 = vmul.f32 %v8174_v16, %v5192_v32  ;;  %v5199_v50 = vmul.f32 %v8176_v35, %v5181_v61  ;;  %vm5205_vm8 = vweird.f32 %v8176_v35 }
0x1780   : > { %vm5206_vm7 = vmor %vm5204_vm5, %vm5205_vm8 }
0x1781   : > { %v5200_v11 = vmul.f32 %v8176_v35, %v5199_v50  ;;  %v5197_v0 = vsel %vm5196_vm3, %v8174_v16, %v5193_v45 }
0x1782   : > { %v5268_v42 = vmul.f32 %v5197_v0, %v10262_v7 }
0x1783   : > { %v5201_v36 = vmul.f32 0.5, %v5200_v11 }
0x1784   : > { %v5278_v53 = vmul.f32 %v10328_v4, %v5268_v42 }
0x1785   : > { %v5202_v24 = vsub.f32 1.5, %v5201_v36 }
0x1786   : > { %v10342_v7 = vadd.f32 %v10334_v41, %v5278_v53 }
0x1787   : > { %v5203_v15 = vmul.f32 %v8176_v35, %v5202_v24 }
0x1789   : > { %v5207_v23 = vsel %vm5206_vm7, %v8176_v35, %v5203_v15  ;;  %v10386_v15 = vld [vmem:[%s11117_s7 + $0x1f] ss:$0 sm:$0xff] }
0x178a   : > { %v5269_v43 = vmul.f32 %v5207_v23, %v10268_v54 }
0x178c   : > { %v5279_v60 = vmul.f32 %v10328_v4, %v5269_v43 }
0x178e   : > { %v10345_v30 = vadd.f32 %v10334_v41, %v5279_v60  ;;  %v5389_v60 = vadd.f32 %v10386_v15, %v5388_v47 }
0x1790   : > { %v5301_v57 = vpack.c.bf16 %v10345_v30, %v10342_v7 }
0x1792   : > { %7595 = vmatmul.msk.bf16.vlgmr.msra.gmra.mxu2 %vm484_vm1, %v5301_v57 }
0x1795   : > { %v5120_v8 = vpop.xlane.xlu2 %5119 }
0x1796   : > { %v5130_v12 = vmul.f32 %v5120_v8, %v8395_v44 }
0x1798   : > { %v10352_v54 = vsub.f32 %v10274_v37, %v5130_v12  ;;  %v5416_v12 = vpack.c.bf16 %v5389_v60, %v5389_v60 }
0x179a   : > { %v5146_v18 = vmul.f32 %v10352_v54, %v10352_v54 }
0x179c   : > { %v5166_v20 = vsel %vm484_vm1, %v5146_v18, 0.0 }
0x179d   : > { %5167 = vadd.xlane.f32.xlu2 %v5166_v20  ;;  %v5123_v34 = vpop.xlane.xlu1 %5122  ;;  %v5428_v20 = vsel %vm484_vm1, %v5416_v12, 0 }
0x179e   : > { %v5131_v3 = vmul.f32 %v5123_v34, %v8395_v44  ;;  %v5673_v34 = vunpack.c.l.b16 %v5416_v12  ;;  %5437 = vmatpush.bf16.xpose.msrb.mxu0 %v5428_v20 }
0x17a0   : > { %v10361_v17 = vsub.f32 %v10279_v55, %v5131_v3 }
0x17a2   : > { %v5147_v39 = vmul.f32 %v10361_v17, %v10361_v17 }
0x17a4   : > { %v5169_v37 = vsel %vm484_vm1, %v5147_v39, 0.0  ;;  %v10391_v39 = vpack.c.b16 %v5673_v34, %v5673_v34 }
0x17a5   : > { %5170 = vadd.xlane.f32.xlu1 %v5169_v37 }
0x17b4   : > { %v5156_v10 = vpop.xlane.xlu0 %5155 }
0x17b5   : > { %v5174_v29 = vmul.f32 %v5156_v10, %v8395_v44 }
0x17b7   : > { %v5182_v62 = vadd.f32 1e-06, %v5174_v29 }
0x17b9   : > { %8177 = vrsqrt.f32 %v5182_v62  ;;  %vm5214_vm2 = vweird.f32 %v5182_v62 }
0x17bc   : > { %v5159_v52 = vpop.xlane.xlu2 %5158 }
0x17bd   : > { %v5175_v13 = vmul.f32 %v5159_v52, %v8395_v44 }
0x17be   : > { %5675 = vrot.lane.b32.xlu1 %v10391_v39, %s8298_s22 }
0x17bf   : > { %v8178_v51 = vpop.eup %8177  ;;  %v5183_v21 = vadd.f32 1e-06, %v5175_v13 }
0x17c0   : > { %v5209_v46 = vmul.f32 %v8178_v51, %v5182_v62  ;;  %vm5215_vm11 = vweird.f32 %v8178_v51 }
0x17c1   : > { %8179 = vrsqrt.f32 %v5183_v21  ;;  %vm5216_vm10 = vmor %vm5214_vm2, %vm5215_vm11  ;;  %vm5224_vm12 = vweird.f32 %v5183_v21 }
0x17c2   : > { %v5210_v55 = vmul.f32 %v8178_v51, %v5209_v46 }
0x17c4   : > { %v5211_v33 = vmul.f32 0.5, %v5210_v55 }
0x17c6   : > { %v5212_v28 = vsub.f32 1.5, %v5211_v33 }
0x17c7   : > { %v8180_v59 = vpop.eup %8179 }
0x17c8   : > { %v5213_v48 = vmul.f32 %v8178_v51, %v5212_v28  ;;  %v5219_v22 = vmul.f32 %v8180_v59, %v5183_v21  ;;  %vm5225_vm9 = vweird.f32 %v8180_v59 }
0x17c9   : > { %vm5226_vm6 = vmor %vm5224_vm12, %vm5225_vm9  ;;  %vm11236_vm12 = vcmask 64512  }
0x17ca   : > { %v5220_v63 = vmul.f32 %v8180_v59, %v5219_v22  ;;  %v5217_v1 = vsel %vm5216_vm10, %v8178_v51, %v5213_v48  ;;  %v5390_v51 = vpop.f32.mrf.mxu3  ;;  %v10415_v48 = vld [vmem:[%s11117_s7 + $0x1e] ss:$0 sm:$0xff] }
0x17cb   : > { %v5270_v25 = vmul.f32 %v5217_v1, %v10284_v56 }
0x17cc   : > { %v5221_v38 = vmul.f32 0.5, %v5220_v63 }
0x17cd   : > { %v5280_v16 = vmul.f32 %v10328_v4, %v5270_v25 }
0x17ce   : > { %v5222_v58 = vsub.f32 1.5, %v5221_v38 }
0x17cf   : > { %v10373_v6 = vadd.f32 %v10334_v41, %v5280_v16 }
0x17d0   : > { %v5223_v19 = vmul.f32 %v8180_v59, %v5222_v58 }
0x17d2   : > { %v5227_v27 = vsel %vm5226_vm6, %v8180_v59, %v5223_v19  ;;  %v5393_v38 = vpop.f32.mrf.mxu3  ;;  %vm11237_vm6 = vmmov %vm11236_vm12 }
0x17d3   : > { %v5271_v9 = vmul.f32 %v5227_v27, %v10290_v2  ;;  %v5394_v19 = vadd.f32 %v10386_v15, %v5393_v38 }
0x17d5   : > { %v5281_v61 = vmul.f32 %v10328_v4, %v5271_v9  ;;  %v5418_v9 = vpack.c.bf16 %v5394_v19, %v5394_v19 }
0x17d7   : > { %v10376_v14 = vadd.f32 %v10334_v41, %v5281_v61 }
0x17d8   : > { %v5162_v49 = vpop.xlane.xlu1 %5161 }
0x17d9   : > { %v5176_v26 = vmul.f32 %v5162_v49, %v8395_v44  ;;  %v5302_v56 = vpack.c.bf16 %v10376_v14, %v10373_v6 }
0x17db   : > { %v5184_v32 = vadd.f32 1e-06, %v5176_v26  ;;  %7596 = vmatmul.msk.bf16.gmra.mxu2 %vm484_vm1, %v5302_v56  ;;  %v5466_v26 = vsel %vm484_vm1, %v5418_v9, 0  ;;  %v5721_v56 = vunpack.c.l.b16 %v5418_v9 }
0x17dd   : > { %8181 = vrsqrt.f32 %v5184_v32  ;;  %vm5234_vm4 = vweird.f32 %v5184_v32 }
0x17e0   : > { %v5165_v2 = vpop.xlane.xlu0 %5164 }
0x17e1   : > { %v5177_v35 = vmul.f32 %v5165_v2, %v8395_v44  ;;  %v10427_v2 = vpack.c.b16 %v5721_v56, %v5721_v56 }
0x17e3   : > { %v8182_v45 = vpop.eup %8181  ;;  %v5185_v50 = vadd.f32 1e-06, %v5177_v35  ;;  %5723 = vrot.lane.b32.xlu2 %v10427_v2, %s8298_s22 }
0x17e4   : > { %v5229_v11 = vmul.f32 %v8182_v45, %v5184_v32  ;;  %vm5235_vm0 = vweird.f32 %v8182_v45 }
0x17e5   : > { %8183 = vrsqrt.f32 %v5185_v50  ;;  %vm5236_vm15 = vmor %vm5234_vm4, %vm5235_vm0  ;;  %vm5244_vm3 = vweird.f32 %v5185_v50 }
0x17e6   : > { %v5230_v0 = vmul.f32 %v8182_v45, %v5229_v11  ;;  %vm11238_vm0 = vmmov %vm11237_vm6 }
0x17e7   : > { %vm11239_vm4 = vmmov %vm11238_vm0 }
0x17e8   : > { %v5231_v36 = vmul.f32 0.5, %v5230_v0 }
0x17ea   : > { %v5232_v24 = vsub.f32 1.5, %v5231_v36 }
0x17eb   : > { %v8184_v42 = vpop.eup %8183 }
0x17ec   : > { %v5233_v23 = vmul.f32 %v8182_v45, %v5232_v24  ;;  %v5239_v53 = vmul.f32 %v8184_v42, %v5185_v50  ;;  %vm5245_vm14 = vweird.f32 %v8184_v42 }
0x17ed   : > { %vm5246_vm8 = vmor %vm5244_vm3, %vm5245_vm14 }
0x17ee   : > { %v5240_v43 = vmul.f32 %v8184_v42, %v5239_v53  ;;  %v5237_v57 = vsel %vm5236_vm15, %v8182_v45, %v5233_v23  ;;  %vm11240_vm15 = vmmov %vm11238_vm0 }
0x17ef   : > { %v5272_v40 = vmul.f32 %v5237_v57, %v10296_v31  ;;  %vm11241_vm14 = vmmov %vm11238_vm0 }
0x17f0   : > { %v5241_v8 = vmul.f32 0.5, %v5240_v43  ;;  %vm11242_vm3 = vmmov %vm11238_vm0 }
0x17f1   : > { %v5282_v29 = vmul.f32 %v10328_v4, %v5272_v40 }
0x17f2   : > { %v5242_v18 = vsub.f32 1.5, %v5241_v8 }
0x17f3   : > { %v10399_v31 = vadd.f32 %v10334_v41, %v5282_v29 }
0x17f4   : > { %v5243_v3 = vmul.f32 %v8184_v42, %v5242_v18 }
0x17f6   : > { %v5247_v37 = vsel %vm5246_vm8, %v8184_v42, %v5243_v3  ;;  %vm11243_vm8 = vmmov %vm11238_vm0 }
0x17f7   : > { %v5273_v10 = vmul.f32 %v5247_v37, %v10308_v5  ;;  %v5391_v5 = vadd.f32 %v10386_v15, %v5390_v51 }
0x17f9   : > { %v5283_v62 = vmul.f32 %v10328_v4, %v5273_v10  ;;  %v5417_v21 = vpack.c.bf16 %v5391_v5, %v5391_v5 }
0x17fb   : > { %v10402_v52 = vadd.f32 %v10334_v41, %v5283_v62  ;;  %v5447_v46 = vsel %vm484_vm1, %v5417_v21, 0  ;;  %v5697_v55 = vunpack.c.l.b16 %v5417_v21 }
0x17fc   : > { %5456 = vmatpush.bf16.xpose.msra.mxu0 %v5447_v46 }
0x17fd   : > { %v5303_v13 = vpack.c.bf16 %v10402_v52, %v10399_v31  ;;  %v10410_v59 = vpack.c.b16 %v5697_v55, %v5697_v55 }
0x17ff   : > { %7597 = vmatmul.msk.bf16.gmra.mxu2 %vm484_vm1, %v5303_v13  ;;  %5699 = vrot.lane.b32.xlu0 %v10410_v59, %s8298_s22 }
0x1810   : > { %v5168_v33 = vpop.xlane.xlu2 %5167 }
0x1811   : > { %v5178_v28 = vmul.f32 %v5168_v33, %v8395_v44 }
0x1813   : > { %v5186_v22 = vadd.f32 1e-06, %v5178_v28 }
0x1815   : > { %8185 = vrsqrt.f32 %v5186_v22  ;;  %v5340_v63 = vpop.f32.mrf.mxu2  ;;  %vm5254_vm7 = vweird.f32 %v5186_v22 }
0x1816   : > { %v5341_v1 = vadd.f32 %v10415_v48, %v5340_v63 }
0x1818   : > { %v10420_v58 = vpack.c.bf16 %v5341_v1, %v5341_v1  ;;  %v5171_v25 = vpop.xlane.xlu1 %5170 }
0x1819   : > { %v5179_v27 = vmul.f32 %v5171_v25, %v8395_v44 }
0x181a   : > { %7615 = vmatmul.msk.bf16.vlgmr.msrb.gmra.mxu0 %vm484_vm1, %v10420_v58 }
0x181b   : > { %v8186_v16 = vpop.eup %8185  ;;  %v5187_v61 = vadd.f32 1e-06, %v5179_v27  ;;  %5475 = vmatpush.bf16.xpose.msrb.mxu0 %v5466_v26 }
0x181c   : > { %v5249_v49 = vmul.f32 %v8186_v16, %v5186_v22  ;;  %vm5255_vm5 = vweird.f32 %v8186_v16 }
0x181d   : > { %8187 = vrsqrt.f32 %v5187_v61  ;;  %v5342_v45 = vpop.f32.mrf.mxu2  ;;  %vm5256_vm11 = vmor %vm5254_vm7, %vm5255_vm5  ;;  %vm5264_vm10 = vweird.f32 %v5187_v61 }
0x181e   : > { %v5250_v32 = vmul.f32 %v8186_v16, %v5249_v49  ;;  %v5343_v24 = vadd.f32 %v10415_v48, %v5342_v45  ;;  %vm11244_vm5 = vmmov %vm11238_vm0 }
0x181f   : > { %vm11245_vm7 = vmmov %vm11238_vm0 }
0x1820   : > { %v5251_v35 = vmul.f32 0.5, %v5250_v32  ;;  %v10432_v43 = vpack.c.bf16 %v5343_v24, %v5343_v24 }
0x1822   : > { %v5252_v50 = vsub.f32 1.5, %v5251_v35 }
0x1823   : > { %v8188_v11 = vpop.eup %8187 }
0x1824   : > { %v5253_v0 = vmul.f32 %v8186_v16, %v5252_v50  ;;  %v5259_v36 = vmul.f32 %v8188_v11, %v5187_v61  ;;  %vm5265_vm2 = vweird.f32 %v8188_v11 }
0x1825   : > { %vm5266_vm9 = vmor %vm5264_vm10, %vm5265_vm2 }
0x1826   : > { %v5260_v42 = vmul.f32 %v8188_v11, %v5259_v36  ;;  %v5257_v23 = vsel %vm5256_vm11, %v8186_v16, %v5253_v0  ;;  %vm11246_vm11 = vmmov %vm11238_vm0 }
0x1827   : > { %v5274_v60 = vmul.f32 %v5257_v23, %v10352_v54  ;;  %v5395_v54 = vpop.f32.mrf.mxu3  ;;  %vm11247_vm2 = vmmov %vm11238_vm0 }
0x1828   : > { %v5261_v53 = vmul.f32 0.5, %v5260_v42  ;;  %v5396_v37 = vadd.f32 %v10386_v15, %v5395_v54  ;;  %vm11248_vm10 = vmmov %vm11238_vm0 }
0x1829   : > { %v5284_v18 = vmul.f32 %v10328_v4, %v5274_v60 }
0x182a   : > { %v5262_v47 = vsub.f32 1.5, %v5261_v53  ;;  %7616 = vmatmul.msk.bf16.vlgmr.msra.gmra.mxu0 %vm484_vm1, %v10432_v43  ;;  %v10450_v10 = vpack.c.bf16 %v5396_v37, %v5396_v37 }
0x182b   : > { %v10441_v20 = vadd.f32 %v10334_v41, %v5284_v18 }
0x182c   : > { %v5263_v57 = vmul.f32 %v8188_v11, %v5262_v47 }
0x182e   : > { %v5267_v8 = vsel %vm5266_vm9, %v8188_v11, %v5263_v57  ;;  %vm11249_vm9 = vmmov %vm11238_vm0 }
0x182f   : > { %v5275_v12 = vmul.f32 %v5267_v8, %v10361_v17  ;;  %v5485_v17 = vsel %vm484_vm1, %v10450_v10, 0 }
0x1830   : > { %5494 = vmatpush.bf16.xpose.msra.mxu0 %v5485_v17  ;;  %v5676_v45 = vpop.permute.xlu1 %5675 }
0x1831   : > { %v5285_v40 = vmul.f32 %v10328_v4, %v5275_v12  ;;  %v5398_v4 = vpop.f32.mrf.mxu3  ;;  %v5681_v0 = vsel %vm1151_vm13, %v5676_v45, 0 }
0x1832   : > { %v5399_v29 = vadd.f32 %v10386_v15, %v5398_v4 }
0x1833   : > { %v10444_v34 = vadd.f32 %v10334_v41, %v5285_v40 }
0x1834   : > { %v10455_v62 = vpack.c.bf16 %v5399_v29, %v5399_v29 }
0x1835   : > { %v5304_v3 = vpack.c.bf16 %v10444_v34, %v10441_v20 }
0x1836   : > { %v5504_v41 = vsel %vm484_vm1, %v10455_v62, 0 }
0x1837   : > { %7598 = vmatmul.msk.bf16.gmra.mxu2 %vm484_vm1, %v5304_v3  ;;  %5513 = vmatpush.bf16.xpose.msra.mxu1 %v5504_v41 }
0x1839   : > { %v5400_v13 = vpop.f32.mrf.mxu3 }
0x183a   : > { %v5401_v51 = vadd.f32 %v10386_v15, %v5400_v13 }
0x183c   : > { %v5421_v5 = vpack.c.bf16 %v5401_v51, %v5401_v51 }
0x183d   : > { %v5724_v60 = vpop.permute.xlu2 %5723 }
0x183e   : > { %v5793_v21 = vunpack.c.l.b16 %v5421_v5  ;;  %v5523_v46 = vsel %vm484_vm1, %v5421_v5, 0  ;;  %v5729_v57 = vsel %vm1151_vm13, %v5724_v60, 0 }
0x183f   : > { %5532 = vmatpush.bf16.xpose.msrb.mxu2 %v5523_v46  ;;  %5690 = vmatpush.bf16.msrb.mxu1 %v5681_v0 }
0x1840   : > { %v10461_v55 = vpack.c.b16 %v5793_v21, %v5793_v21 }
0x1841   : > { %v5403_v49 = vpop.f32.mrf.mxu3 }
0x1842   : > { %5795 = vrot.lane.b32.xlu0 %v10461_v55, %s8298_s22  ;;  %v5404_v26 = vadd.f32 %v10386_v15, %v5403_v49 }
0x1844   : > { %v10486_v56 = vpack.c.bf16 %v5404_v26, %v5404_v26 }
0x1846   : > { %v5542_v32 = vsel %vm484_vm1, %v10486_v56, 0 }
0x1847   : > { %5551 = vmatpush.bf16.xpose.msra.mxu3 %v5542_v32 }
0x1849   : > { %v5405_v24 = vpop.f32.mrf.mxu3 }
0x184a   : > { %v5406_v42 = vadd.f32 %v10386_v15, %v5405_v24  ;;  %v5745_v15 = vunpack.c.l.b16 %v10450_v10 }
0x184c   : > { %v10497_v23 = vpack.c.bf16 %v5406_v42, %v5406_v42  ;;  %v10506_v3 = vpack.c.b16 %v5745_v15, %v5745_v15 }
0x184e   : > { %v5561_v47 = vsel %vm484_vm1, %v10497_v23, 0 }
0x184f   : > { %5738 = vmatpush.bf16.msrb.mxu3 %v5729_v57 }
0x185e   : > { %v5345_v33 = vpop.f32.mrf.mxu2 }
0x185f   : > { %v5346_v28 = vadd.f32 %v10415_v48, %v5345_v33 }
0x1861   : > { %v10466_v22 = vpack.c.bf16 %v5346_v28, %v5346_v28 }
0x1863   : > { %7617 = vmatmul.msk.bf16.vlgmr.msrb.gmra.mxu0 %vm484_vm1, %v10466_v22 }
0x1864   : > { %5570 = vmatpush.bf16.xpose.msrb.mxu0 %v5561_v47 }
0x1866   : > { %v5347_v63 = vpop.f32.mrf.mxu2 }
0x1867   : > { %v5348_v1 = vadd.f32 %v10415_v48, %v5347_v63 }
0x1869   : > { %v10471_v38 = vpack.c.bf16 %v5348_v1, %v5348_v1 }
0x1871   : > { %v5700_v35 = vpop.permute.xlu0 %5699 }
0x1872   : > { %v5705_v11 = vsel %vm1151_vm13, %v5700_v35, 0 }
0x1873   : > { %7618 = vmatmul.msk.bf16.vlgmr.msra.gmra.mxu0 %vm484_vm1, %v10471_v38  ;;  %5714 = vmatpush.bf16.msra.mxu2 %v5705_v11 }
0x1882   : > { %v5350_v25 = vpop.f32.mrf.mxu2 }
0x1883   : > { %v5351_v19 = vadd.f32 %v10415_v48, %v5350_v25 }
0x1885   : > { %v10476_v27 = vpack.c.bf16 %v5351_v19, %v5351_v19 }
0x1887   : > { %7619 = vmatmul.msk.bf16.vlgmr.msra.gmra.mxu1 %vm484_vm1, %v10476_v27 }
0x188a   : > { %v5352_v9 = vpop.f32.mrf.mxu2 }
0x188b   : > { %v5353_v16 = vadd.f32 %v10415_v48, %v5352_v9 }
0x188d   : > { %v10481_v61 = vpack.c.bf16 %v5353_v16, %v5353_v16 }
0x188f   : > { %7620 = vmatmul.msk.bf16.vlgmr.msrb.gmra.mxu2 %vm484_vm1, %v10481_v61 }
0x1897   : > { %v10490_v50 = vpop.f32.mrf.mxu0 }
0x1898   : > { %v5576_v36 = vsel %vm11236_vm12, %v10490_v50, -inf  ;;  %vm11250_vm12 = vmmov %vm11238_vm0 }
0x1899   : > { %5577 = vmax.xlane.f32.xlu2 %v5576_v36 }
0x189f   : > { %v5441_v53 = vpop.f32.mrf.mxu0 }
0x18a7   : > { %v5458_v8 = vpop.f32.mrf.mxu0 }
0x18a8   : > { %v5579_v12 = vsel %vm11237_vm6, %v5458_v8, -inf  ;;  %vm11251_vm6 = vmmov %vm11238_vm0 }
0x18a9   : > { %5580 = vmax.xlane.f32.xlu0 %v5579_v12 }
0x18af   : > { %v5460_v18 = vpop.f32.mrf.mxu0 }
0x18b1   : > { %5895 = vrot.lane.b32.xlu2 %v10410_v59, %s8300_s28 }
0x18b4   : > { %v5796_v10 = vpop.permute.xlu0 %5795 }
0x18b5   : > { %v5801_v41 = vsel %vm1151_vm13, %v5796_v10, 0 }
0x18b6   : > { %5810 = vmatpush.bf16.msrb.mxu2 %v5801_v41 }
0x18ba   : > { %v5355_v40 = vpop.f32.mrf.mxu2 }
0x18bb   : > { %v5356_v54 = vadd.f32 %v10415_v48, %v5355_v40 }
0x18bd   : > { %v10509_v37 = vpack.c.bf16 %v5356_v54, %v5356_v54  ;;  %5747 = vrot.lane.b32.xlu0 %v10506_v3, %s8298_s22 }
0x18bf   : > { %7621 = vmatmul.msk.bf16.vlgmr.msra.gmra.mxu3 %vm484_vm1, %v10509_v37 }
0x18c2   : > { %v5357_v17 = vpop.f32.mrf.mxu2 }
0x18c3   : > { %v5358_v4 = vadd.f32 %v10415_v48, %v5357_v17  ;;  %v5769_v48 = vunpack.c.l.b16 %v10455_v62 }
0x18c5   : > { %v10516_v29 = vpack.c.bf16 %v5358_v4, %v5358_v4  ;;  %v10524_v28 = vpack.c.b16 %v5769_v48, %v5769_v48 }
0x18c7   : > { %7622 = vmatmul.msk.bf16.vlgmr.msrb.gmra.mxu0 %vm484_vm1, %v10516_v29 }
0x18e0   : > { %v5477_v13 = vpop.f32.mrf.mxu0 }
0x18e1   : > { %v5582_v51 = vsel %vm11238_vm0, %v5477_v13, -inf }
0x18e2   : > { %5583 = vmax.xlane.f32.xlu1 %v5582_v51 }
0x18e8   : > { %v5479_v5 = vpop.f32.mrf.mxu0 }
0x18f0   : > { %v5496_v21 = vpop.f32.mrf.mxu0 }
0x18f1   : > { %v5585_v46 = vsel %vm11239_vm4, %v5496_v21, -inf  ;;  %vm11252_vm4 = vmmov %vm11238_vm0 }
0x18f2   : > { %5586 = vmax.xlane.f32.xlu2 %v5585_v46 }
0x18f8   : > { %v5498_v33 = vpop.f32.mrf.mxu0 }
0x18f9   : > { %v5817_v33 = vunpack.c.l.b16 %v10486_v56 }
0x18fb   : > { %5771 = vrot.lane.b32.xlu1 %v10524_v28, %s8298_s22 }
0x1904   : > { %v10528_v63 = vpop.f32.mrf.mxu1 }
0x1905   : > { %v5588_v62 = vsel %vm11241_vm14, %v10528_v63, -inf  ;;  %vm11254_vm14 = vmmov %vm11238_vm0 }
0x190c   : > { %v5517_v1 = vpop.f32.mrf.mxu1  ;;  %v5578_v0 = vpop.xlane.xlu2 %5577 }
0x190d   : > { %v5600_v36 = vsub.f32 %v10490_v50, %v5578_v0  ;;  %v10555_v1 = vpack.c.b16 %v5817_v33, %v5817_v33 }
0x190f   : > { %v5608_v24 = vmul.f32 1.442695, %v5600_v36 }
0x1912   : > { %v5534_v25 = vpop.f32.mrf.mxu2 }
0x1913   : > { %v5591_v19 = vsel %vm11240_vm15, %v5534_v25, -inf  ;;  %vm11253_vm15 = vmmov %vm11238_vm0 }
0x1914   : > { %5592 = vmax.xlane.f32.xlu0 %v5591_v19  ;;  %v5896_v54 = vpop.permute.xlu2 %5895 }
0x191a   : > { %v5536_v9 = vpop.f32.mrf.mxu2 }
0x191c   : > { %v5581_v16 = vpop.xlane.xlu0 %5580 }
0x191d   : > { %v5601_v49 = vsub.f32 %v5458_v8, %v5581_v16 }
0x191f   : > { %v5610_v26 = vmul.f32 1.442695, %v5601_v49 }
0x1921   : > { %8189 = vpow2.f32 %v5610_v26 }
0x1922   : > { %8191 = vpow2.f32 %v5608_v24  ;;  %v5901_v24 = vsel %vm484_vm1, %v5896_v54, 0 }
0x1925   : > { %5589 = vmax.xlane.f32.xlu1 %v5588_v62 }
0x1927   : > { %v8190_v32 = vpop.eup %8189 }
0x1928   : > { %v5627_v35 = vsel %vm11242_vm3, %v8190_v32, 0.0  ;;  %v10541_v57 = vpop.eup %8191  ;;  %vm11255_vm3 = vmmov %vm11238_vm0 }
0x1929   : > { %v5624_v18 = vsel %vm11245_vm7, %v10541_v57, 0.0  ;;  %vm11258_vm7 = vmmov %vm11238_vm0 }
0x192d   : > { %5628 = vadd.xlane.f32.xlu1 %v5627_v35 }
0x192f   : > { %v5748_v45 = vpop.permute.xlu0 %5747 }
0x1930   : > { %v5753_v11 = vsel %vm1151_vm13, %v5748_v45, 0 }
0x1931   : > { %5762 = vmatpush.bf16.msra.mxu0 %v5753_v11 }
0x1942   : > { %v10536_v42 = vpop.f32.mrf.mxu3 }
0x1943   : > { %v5594_v53 = vsel %vm11243_vm8, %v10536_v42, -inf  ;;  %vm11256_vm8 = vmmov %vm11238_vm0 }
0x1944   : > { %5595 = vmax.xlane.f32.xlu0 %v5594_v53  ;;  %v5572_v47 = vpop.f32.mrf.mxu0  ;;  %v5891_v53 = vunpack.c.l.b16 %v10432_v43 }
0x1945   : > { %v5597_v60 = vsel %vm11244_vm5, %v5572_v47, -inf  ;;  %vm11257_vm5 = vmmov %vm11238_vm0 }
0x1946   : > { %5598 = vmax.xlane.f32.xlu2 %v5597_v60 }
0x194a   : > { %v5555_v8 = vpop.f32.mrf.mxu3 }
0x194c   : > { %v5574_v12 = vpop.f32.mrf.mxu0 }
0x194e   : > { %5625 = vadd.xlane.f32.xlu2 %v5624_v18 }
0x1955   : > { %v5584_v50 = vpop.xlane.xlu1 %5583 }
0x1956   : > { %v5602_v15 = vsub.f32 %v5477_v13, %v5584_v50  ;;  %v5841_v50 = vunpack.c.l.b16 %v10497_v23 }
0x1958   : > { %v5612_v40 = vmul.f32 1.442695, %v5602_v15  ;;  %v10581_v54 = vpack.c.b16 %v5841_v50, %v5841_v50 }
0x195a   : > { %8193 = vpow2.f32 %v5612_v40 }
0x1960   : > { %v10545_v17 = vpop.eup %8193 }
0x1961   : > { %v5630_v4 = vsel %vm11246_vm11, %v10545_v17, 0.0  ;;  %vm11259_vm11 = vmmov %vm11238_vm0 }
0x1962   : > { %5631 = vadd.xlane.f32.xlu1 %v5630_v4 }
0x1965   : > { %v5587_v10 = vpop.xlane.xlu2 %5586 }
0x1966   : > { %v5603_v41 = vsub.f32 %v5496_v21, %v5587_v10 }
0x1968   : > { %v5614_v51 = vmul.f32 1.442695, %v5603_v41 }
0x196a   : > { %8195 = vpow2.f32 %v5614_v51 }
0x196d   : > { %v5772_v5 = vpop.permute.xlu1 %5771 }
0x196e   : > { %v5777_v46 = vsel %vm1151_vm13, %v5772_v5, 0 }
0x196f   : > { %5786 = vmatpush.bf16.msra.mxu1 %v5777_v46 }
0x1970   : > { %v10550_v48 = vpop.eup %8195 }
0x1971   : > { %v5633_v13 = vsel %vm11247_vm2, %v10550_v48, 0.0  ;;  %vm11260_vm2 = vmmov %vm11238_vm0 }
0x1972   : > { %5634 = vadd.xlane.f32.xlu0 %v5633_v13  ;;  %v5943_v13 = vunpack.c.l.b16 %v10471_v38  ;;  %v6021_v38 = vunpack.c.l.b16 %v10509_v37  ;;  %v5995_v37 = vunpack.c.l.b16 %v10481_v61 }
0x1986   : > { %5819 = vrot.lane.b32.xlu0 %v10555_v1, %s8298_s22 }
0x1987   : > { %v5593_v21 = vpop.xlane.xlu0 %5592 }
0x1988   : > { %v5605_v19 = vsub.f32 %v5534_v25, %v5593_v21 }
0x198a   : > { %v5618_v9 = vmul.f32 1.442695, %v5605_v19 }
0x198c   : > { %8197 = vpow2.f32 %v5618_v9 }
0x1992   : > { %v10559_v16 = vpop.eup %8197 }
0x1993   : > { %v5639_v49 = vsel %vm11248_vm10, %v10559_v16, 0.0  ;;  %vm11261_vm10 = vmmov %vm11238_vm0 }
0x1994   : > { %5640 = vadd.xlane.f32.xlu2 %v5639_v49 }
0x1998   : > { %v5590_v26 = vpop.xlane.xlu1 %5589 }
0x1999   : > { %v5604_v62 = vsub.f32 %v10528_v63, %v5590_v26  ;;  %v5917_v63 = vunpack.c.l.b16 %v10466_v22 }
0x199b   : > { %v5616_v35 = vmul.f32 1.442695, %v5604_v62  ;;  %v5918_v8 = vpack.c.b16 %v5917_v63, %v5917_v63 }
0x199d   : > { %8199 = vpow2.f32 %v5616_v35  ;;  %v6047_v35 = vunpack.c.l.b16 %v10516_v29 }
0x19a0   : > { %v5629_v56 = vpop.xlane.xlu1 %5628 }
0x19a1   : > { %8201 = vrcp.f32 %v5629_v56  ;;  %v6048_v56 = vpack.c.b16 %v6047_v35, %v6047_v35 }
0x19a3   : > { %v10564_v45 = vpop.eup %8199 }
0x19a4   : > { %v5636_v25 = vsel %vm11249_vm9, %v10564_v45, 0.0  ;;  %vm11262_vm9 = vmmov %vm11238_vm0 }
0x19a5   : > { %5637 = vadd.xlane.f32.xlu1 %v5636_v25 }
0x19a7   : > { %v8202_v11 = vpop.eup %8201 }
0x19a8   : > { %v5657_v0 = vmul.f32 %v8202_v11, %v8190_v32  ;;  %v5892_v32 = vpack.c.b16 %v5891_v53, %v5891_v53 }
0x19aa   : > { %v5665_v36 = vpack.c.bf16 %v5657_v0, %v5657_v0  ;;  %v5969_v0 = vunpack.c.l.b16 %v10476_v27 }
0x19ac   : > { %7624 = vmatmul.msk.bf16.vlgmr.msra.gmra.mxu2 %vm11250_vm12, %v5665_v36  ;;  %5869 = vrot.lane.b32.xlu2 %v10391_v39, %s8300_s28  ;;  %v5970_v36 = vpack.c.b16 %v5969_v0, %v5969_v0  ;;  %vm11263_vm12 = vmmov %vm11238_vm0 }
0x19ad   : > { %5910 = vmatpush.bf16.xpose.msra.mxu2 %v5901_v24 }
0x19b4   : > { %5921 = vrot.lane.b32.xlu2 %v10427_v2, %s8300_s28 }
0x19b7   : > { %v5596_v41 = vpop.xlane.xlu0 %5595 }
0x19b8   : > { %v5606_v51 = vsub.f32 %v10536_v42, %v5596_v41 }
0x19b9   : > { %v5599_v60 = vpop.xlane.xlu2 %5598 }
0x19ba   : > { %v5607_v12 = vsub.f32 %v5572_v47, %v5599_v60  ;;  %v5865_v47 = vunpack.c.l.b16 %v10420_v58  ;;  %v5620_v46 = vmul.f32 1.442695, %v5606_v51 }
0x19bc   : > { %v5622_v18 = vmul.f32 1.442695, %v5607_v12  ;;  %5919 = vrot.lane.b32.xlu2 %v5918_v8, %s8300_s28  ;;  %v5866_v23 = vpack.c.b16 %v5865_v47, %v5865_v47 }
0x19be   : > { %8203 = vpow2.f32 %v5622_v18  ;;  %5893 = vrot.lane.b32.xlu1 %v5892_v32, %s8300_s28 }
0x19c1   : > { %v5626_v15 = vpop.xlane.xlu2 %5625 }
0x19c2   : > { %8205 = vrcp.f32 %v5626_v15 }
0x19c4   : > { %v10579_v40 = vpop.eup %8203 }
0x19c5   : > { %v5645_v43 = vsel %vm11251_vm6, %v10579_v40, 0.0  ;;  %vm11264_vm6 = vmmov %vm11238_vm0 }
0x19c6   : > { %5843 = vrot.lane.b32.xlu1 %v10581_v54, %s8298_s22  ;;  %5646 = vadd.xlane.f32.xlu0 %v5645_v43 }
0x19c8   : > { %v8206_v22 = vpop.eup %8205 }
0x19c9   : > { %v5656_v4 = vmul.f32 %v8206_v22, %v10541_v57  ;;  %v5944_v57 = vpack.c.b16 %v5943_v13, %v5943_v13 }
0x19cb   : > { %v5664_v10 = vpack.c.bf16 %v5656_v4, %v5656_v4 }
0x19cd   : > { %7623 = vmatmul.msk.bf16.vlgmr.msrb.gmra.mxu1 %vm11238_vm0, %v5664_v10 }
0x19ce   : > { %5867 = vrot.lane.b32.xlu1 %v5866_v23, %s8300_s28 }
0x19d5   : > { %v5632_v5 = vpop.xlane.xlu1 %5631 }
0x19d6   : > { %8207 = vrcp.f32 %v5632_v5  ;;  %5947 = vrot.lane.b32.xlu1 %v10506_v3, %s8300_s28 }
0x19d7   : > { %8209 = vpow2.f32 %v5620_v46 }
0x19da   : > { %5973 = vrot.lane.b32.xlu0 %v10524_v28, %s8300_s28 }
0x19dc   : > { %v8208_v58 = vpop.eup %8207 }
0x19dd   : > { %v5658_v33 = vmul.f32 %v8208_v58, %v10545_v17  ;;  %v10599_v42 = vpop.eup %8209  ;;  %v6022_v17 = vpack.c.b16 %v6021_v38, %v6021_v38 }
0x19de   : > { %5945 = vrot.lane.b32.xlu1 %v5944_v57, %s8300_s28  ;;  %v5642_v19 = vsel %vm11253_vm15, %v10599_v42, 0.0  ;;  %vm11266_vm15 = vmmov %vm11238_vm0 }
0x19df   : > { %v5666_v21 = vpack.c.bf16 %v5658_v33, %v5658_v33 }
0x19e1   : > { %7625 = vmatmul.msk.bf16.vlgmr.msrb.gmra.mxu3 %vm11252_vm4, %v5666_v21  ;;  %vm11265_vm4 = vmmov %vm11238_vm0 }
0x19e5   : > { %v5635_v9 = vpop.xlane.xlu0 %5634  ;;  %5643 = vadd.xlane.f32.xlu2 %v5642_v19 }
0x19e6   : > { %8211 = vrcp.f32 %v5635_v9  ;;  %6025 = vrot.lane.b32.xlu1 %v10555_v1, %s8300_s28 }
0x19ec   : > { %v8212_v49 = vpop.eup %8211 }
0x19ed   : > { %v5659_v26 = vmul.f32 %v8212_v49, %v10550_v48  ;;  %v5996_v48 = vpack.c.b16 %v5995_v37, %v5995_v37 }
0x19ee   : > { %6023 = vrot.lane.b32.xlu1 %v6022_v17, %s8300_s28 }
0x19ef   : > { %v5667_v62 = vpack.c.bf16 %v5659_v26, %v5659_v26 }
0x19f1   : > { %7626 = vmatmul.msk.bf16.vlgmr.msra.gmra.mxu0 %vm11254_vm14, %v5667_v62  ;;  %vm11267_vm14 = vmmov %vm11238_vm0 }
0x19f6   : > { %6049 = vrot.lane.b32.xlu1 %v6048_v56, %s8300_s28 }
0x19f8   : > { %v5820_v25 = vpop.permute.xlu0 %5819 }
0x19f9   : > { %v5825_v11 = vsel %vm1151_vm13, %v5820_v25, 0 }
0x19fa   : > { %5834 = vmatpush.bf16.msra.mxu3 %v5825_v11 }
0x19fd   : > { %5999 = vrot.lane.b32.xlu2 %v10461_v55, %s8300_s28 }
0x1a05   : > { %5997 = vrot.lane.b32.xlu2 %v5996_v48, %s8300_s28 }
0x1a07   : > { %v5641_v29 = vpop.xlane.xlu2 %5640 }
0x1a08   : > { %8213 = vrcp.f32 %v5641_v29 }
0x1a0d   : > { %5971 = vrot.lane.b32.xlu2 %v5970_v36, %s8300_s28 }
0x1a0e   : > { %v8214_v24 = vpop.eup %8213 }
0x1a0f   : > { %v5661_v63 = vmul.f32 %v8214_v24, %v10559_v16  ;;  %v5870_v53 = vpop.permute.xlu2 %5869 }
0x1a10   : > { %v5875_v60 = vsel %vm484_vm1, %v5870_v53, 0 }
0x1a11   : > { %v5669_v8 = vpack.c.bf16 %v5661_v63, %v5661_v63  ;;  %5884 = vmatpush.bf16.xpose.msrb.mxu1 %v5875_v60 }
0x1a13   : > { %7628 = vmatmul.msk.bf16.vlgmr.msrb.gmra.mxu2 %vm11255_vm3, %v5669_v8  ;;  %vm11268_vm3 = vmmov %vm11238_vm0 }
0x1a15   : > { %6051 = vrot.lane.b32.xlu2 %v10581_v54, %s8300_s28  ;;  %s11036_s28 = scalar_lea.vmem %s11112_s2, %s7211_s25 }
0x1a17   : > { %v5922_v61 = vpop.permute.xlu2 %5921 }
0x1a18   : > { %v5927_v27 = vsel %vm484_vm1, %v5922_v61, 0  ;;  %v5638_v12 = vpop.xlane.xlu1 %5637 }
0x1a19   : > { %8215 = vrcp.f32 %v5638_v12  ;;  %5936 = vmatpush.bf16.xpose.msrb.mxu3 %v5927_v27 }
0x1a1d   : > { %6189 = vrot.lane.b32.xlu2 %v10410_v59, %s8301_s29 }
0x1a1f   : > { %v8216_v16 = vpop.eup %8215  ;;  %v5920_v58 = vpop.permute.xlu2 %5919 }
0x1a20   : > { %v5660_v32 = vmul.f32 %v8216_v16, %v10564_v45 }
0x1a22   : > { %v5668_v18 = vpack.c.bf16 %v5660_v32, %v5660_v32 }
0x1a24   : > { %7627 = vmatmul.msk.bf16.vlgmr.msra.gmra.mxu1 %vm11256_vm8, %v5668_v18  ;;  %vm11269_vm8 = vmmov %vm11238_vm0 }
0x1a2f   : > { %v10629_v50 = vpop.f32.mrf.mxu2 }
0x1a30   : > { %v5894_v15 = vpop.permute.xlu1 %5893 }
0x1a31   : > { %7632 = vmatmul.msk.bf16.vlgmr.msra.gmra.mxu2 %vm484_vm1, %v5894_v15 }
0x1a37   : > { %v5718_v43 = vpop.f32.mrf.mxu2 }
0x1a38   : > { %v5844_v22 = vpop.permute.xlu1 %5843 }
0x1a39   : > { %v5849_v47 = vsel %vm1151_vm13, %v5844_v22, 0  ;;  %v5647_v4 = vpop.xlane.xlu0 %5646 }
0x1a3a   : > { %8217 = vrcp.f32 %v5647_v4  ;;  %5858 = vmatpush.bf16.msrb.mxu0 %v5849_v47 }
0x1a40   : > { %v8218_v10 = vpop.eup %8217  ;;  %v5868_v59 = vpop.permute.xlu1 %5867 }
0x1a41   : > { %v5663_v23 = vmul.f32 %v8218_v10, %v10579_v40  ;;  %7631 = vmatmul.msk.bf16.vlgmr.msrb.gmra.mxu1 %vm484_vm1, %v5868_v59 }
0x1a43   : > { %v5671_v45 = vpack.c.bf16 %v5663_v23, %v5663_v23 }
0x1a45   : > { %7630 = vmatmul.msk.bf16.vlgmr.msrb.gmra.mxu0 %vm11257_vm5, %v5671_v45  ;;  %vm11270_vm5 = vmmov %vm11238_vm0 }
0x1a48   : > { %v5948_v41 = vpop.permute.xlu1 %5947 }
0x1a49   : > { %v5953_v51 = vsel %vm484_vm1, %v5948_v41, 0 }
0x1a4a   : > { %v10637_v5 = vpop.f32.mrf.mxu1  ;;  %5962 = vmatpush.bf16.xpose.msra.mxu0 %v5953_v51 }
0x1a4c   : > { %v5974_v46 = vpop.permute.xlu0 %5973 }
0x1a4d   : > { %v5979_v13 = vsel %vm484_vm1, %v5974_v46, 0 }
0x1a4e   : > { %5988 = vmatpush.bf16.xpose.msra.mxu1 %v5979_v13 }
0x1a50   : > { %v5946_v33 = vpop.permute.xlu1 %5945 }
0x1a52   : > { %v5694_v57 = vpop.f32.mrf.mxu1 }
0x1a55   : > { %7634 = vmatmul.msk.bf16.vlgmr.msra.gmra.mxu0 %vm484_vm1, %v5946_v33 }
0x1a58   : > { %v5644_v40 = vpop.xlane.xlu2 %5643  ;;  %v6026_v38 = vpop.permute.xlu1 %6025 }
0x1a59   : > { %8219 = vrcp.f32 %v5644_v40  ;;  %v6031_v26 = vsel %vm484_vm1, %v6026_v38, 0 }
0x1a5f   : > { %v8220_v21 = vpop.eup %8219 }
0x1a60   : > { %v5662_v19 = vmul.f32 %v8220_v21, %v10599_v42  ;;  %v6000_v9 = vpop.permute.xlu2 %5999  ;;  %v6024_v11 = vpop.permute.xlu1 %6023 }
0x1a61   : > { %v6005_v49 = vsel %vm484_vm1, %v6000_v9, 0 }
0x1a62   : > { %v5670_v17 = vpack.c.bf16 %v5662_v19, %v5662_v19  ;;  %6014 = vmatpush.bf16.xpose.msrb.mxu2 %v6005_v49 }
0x1a64   : > { %v10644_v62 = vpop.f32.mrf.mxu3  ;;  %7629 = vmatmul.msk.bf16.vlgmr.msra.gmra.mxu3 %vm11258_vm7, %v5670_v17  ;;  %vm11271_vm7 = vmmov %vm11238_vm0 }
0x1a65   : > { %6040 = vmatpush.bf16.xpose.msra.mxu3 %v6031_v26 }
0x1a68   : > { %v5998_v35 = vpop.permute.xlu2 %5997  ;;  %v6050_v29 = vpop.permute.xlu1 %6049 }
0x1a69   : > { %7636 = vmatmul.msk.bf16.vlgmr.msrb.gmra.mxu2 %vm484_vm1, %v5998_v35 }
0x1a6c   : > { %v5742_v56 = vpop.f32.mrf.mxu3 }
0x1a6e   : > { %v10648_v25 = vpop.f32.mrf.mxu0 }
0x1a70   : > { %v5972_v42 = vpop.permute.xlu2 %5971 }
0x1a71   : > { %7635 = vmatmul.msk.bf16.vlgmr.msra.gmra.mxu1 %vm484_vm1, %v5972_v42 }
0x1a74   : > { %7633 = vmatmul.msk.bf16.vlgmr.msrb.gmra.mxu3 %vm484_vm1, %v5920_v58 }
0x1a76   : > { %v5766_v37 = vpop.f32.mrf.mxu0 }
0x1a78   : > { %v6052_v48 = vpop.permute.xlu2 %6051 }
0x1a79   : > { %v6057_v0 = vsel %vm484_vm1, %v6052_v48, 0 }
0x1a7a   : > { %6066 = vmatpush.bf16.xpose.msrb.mxu0 %v6057_v0 }
0x1a80   : > { %v6190_v36 = vpop.permute.xlu2 %6189 }
0x1a81   : > { %v6195_v24 = vsel %vm1151_vm13, %v6190_v36, 0  ;;  %7638 = vmatmul.msk.bf16.vlgmr.msrb.gmra.mxu0 %vm484_vm1, %v6050_v29 }
0x1a82   : > { %6204 = vmatpush.bf16.msra.mxu2 %v6195_v24 }
0x1a84   : > { %7637 = vmatmul.msk.bf16.vlgmr.msra.gmra.mxu3 %vm484_vm1, %v6024_v11 }
0x1a96   : > { %v10656_v63 = vpop.f32.mrf.mxu2 }
0x1a9e   : > { %v5814_v53 = vpop.f32.mrf.mxu2 }
0x1aa1   : > { %v10658_v60 = vpop.f32.mrf.mxu1 }
0x1aa9   : > { %v5790_v8 = vpop.f32.mrf.mxu1 }
0x1ab4   : > { %v5912_v61 = vpop.f32.mrf.mxu2 }
0x1ab5   : > { %v6075_v27 = vsel %vm11259_vm11, %v5912_v61, -inf  ;;  %vm11272_vm11 = vmmov %vm11238_vm0 }
0x1ab6   : > { %6076 = vmax.xlane.f32.xlu0 %v6075_v27 }
0x1abc   : > { %v5914_v12 = vpop.f32.mrf.mxu2 }
0x1abe   : > { %v5886_v16 = vpop.f32.mrf.mxu1 }
0x1abf   : > { %v6072_v32 = vsel %vm11260_vm2, %v5886_v16, -inf  ;;  %vm11273_vm2 = vmmov %vm11238_vm0 }
0x1ac0   : > { %6073 = vmax.xlane.f32.xlu2 %v6072_v32 }
0x1ac2   : > { %v10662_v18 = vpop.f32.mrf.mxu0 }
0x1ac6   : > { %v5888_v15 = vpop.f32.mrf.mxu1 }
0x1aca   : > { %v5862_v43 = vpop.f32.mrf.mxu0 }
0x1ad2   : > { %v10664_v22 = vpop.f32.mrf.mxu0 }
0x1ad3   : > { %v6081_v47 = vsel %vm11261_vm10, %v10664_v22, -inf  ;;  %vm11274_vm10 = vmmov %vm11238_vm0 }
0x1ad4   : > { %6082 = vmax.xlane.f32.xlu0 %v6081_v47 }
0x1ada   : > { %v5966_v4 = vpop.f32.mrf.mxu0 }
0x1ae7   : > { %v10668_v10 = vpop.f32.mrf.mxu3 }
0x1aec   : > { %v6016_v59 = vpop.f32.mrf.mxu2 }
0x1aed   : > { %v6087_v23 = vsel %vm11262_vm9, %v6016_v59, -inf  ;;  %vm11275_vm9 = vmmov %vm11238_vm0 }
0x1aee   : > { %6088 = vmax.xlane.f32.xlu2 %v6087_v23  ;;  %v5990_v45 = vpop.f32.mrf.mxu1 }
0x1aef   : > { %v5838_v41 = vpop.f32.mrf.mxu3  ;;  %v6084_v51 = vsel %vm11263_vm12, %v5990_v45, -inf  ;;  %vm11276_vm12 = vmmov %vm11238_vm0 }
0x1af0   : > { %6085 = vmax.xlane.f32.xlu1 %v6084_v51 }
0x1af4   : > { %v6018_v46 = vpop.f32.mrf.mxu2 }
0x1af6   : > { %v5992_v13 = vpop.f32.mrf.mxu1 }
0x1af7   : > { %v5938_v58 = vpop.f32.mrf.mxu3 }
0x1af8   : > { %v6078_v57 = vsel %vm11264_vm6, %v5938_v58, -inf  ;;  %vm11277_vm6 = vmmov %vm11238_vm0 }
0x1af9   : > { %6079 = vmax.xlane.f32.xlu1 %v6078_v57 }
0x1afe   : > { %v6068_v33 = vpop.f32.mrf.mxu0 }
0x1aff   : > { %v5940_v40 = vpop.f32.mrf.mxu3  ;;  %v6093_v21 = vsel %vm11238_vm0, %v6068_v33, -inf }
0x1b01   : > { %6094 = vmax.xlane.f32.xlu1 %v6093_v21 }
0x1b06   : > { %v6070_v19 = vpop.f32.mrf.mxu0 }
0x1b07   : > { %v10674_v9 = vpop.f32.mrf.mxu3 }
0x1b08   : > { %v6090_v38 = vsel %vm11265_vm4, %v10674_v9, -inf  ;;  %vm11278_vm4 = vmmov %vm11238_vm0 }
0x1b09   : > { %6091 = vmax.xlane.f32.xlu0 %v6090_v38 }
0x1b0f   : > { %v6044_v49 = vpop.f32.mrf.mxu3 }
0x1b1a   : > { %6168 = vrot.lane.b32.xlu1 %v10391_v39, %s8301_s29 }
0x1b1d   : > { %6210 = vrot.lane.b32.xlu0 %v10427_v2, %s8301_s29 }
0x1b29   : > { %v6077_v17 = vpop.xlane.xlu0 %6076 }
0x1b2a   : > { %v6097_v26 = vsub.f32 %v5912_v61, %v6077_v17 }
0x1b2c   : > { %v6106_v35 = vmul.f32 1.442695, %v6097_v26 }
0x1b2e   : > { %8221 = vpow2.f32 %v6106_v35 }
0x1b33   : > { %v6074_v56 = vpop.xlane.xlu2 %6073 }
0x1b34   : > { %v8222_v42 = vpop.eup %8221  ;;  %v6096_v11 = vsub.f32 %v5886_v16, %v6074_v56 }
0x1b35   : > { %v6123_v37 = vsel %vm11266_vm15, %v8222_v42, 0.0  ;;  %vm11279_vm15 = vmmov %vm11238_vm0 }
0x1b36   : > { %6124 = vadd.xlane.f32.xlu2 %v6123_v37  ;;  %v6104_v48 = vmul.f32 1.442695, %v6096_v11 }
0x1b38   : > { %8223 = vpow2.f32 %v6104_v48 }
0x1b3e   : > { %v10683_v0 = vpop.eup %8223 }
0x1b3f   : > { %v6120_v39 = vsel %vm11267_vm14, %v10683_v0, 0.0  ;;  %vm11281_vm14 = vcmask 523264  }
0x1b47   : > { %6121 = vadd.xlane.f32.xlu0 %v6120_v39  ;;  %v6083_v4 = vpop.xlane.xlu0 %6082 }
0x1b4e   : > { %6231 = vrot.lane.b32.xlu2 %v10506_v3, %s8301_s29 }
0x1b5b   : > { %6273 = vrot.lane.b32.xlu0 %v10461_v55, %s8301_s29 }
0x1b61   : > { %v6089_v2 = vpop.xlane.xlu2 %6088 }
0x1b62   : > { %v6101_v29 = vsub.f32 %v6016_v59, %v6089_v2  ;;  %v6099_v59 = vsub.f32 %v10664_v22, %v6083_v4 }
0x1b63   : > { %v6086_v36 = vpop.xlane.xlu1 %6085 }
0x1b64   : > { %v6114_v24 = vmul.f32 1.442695, %v6101_v29  ;;  %v6100_v53 = vsub.f32 %v5990_v45, %v6086_v36  ;;  %v6110_v45 = vmul.f32 1.442695, %v6099_v59 }
0x1b66   : > { %8225 = vpow2.f32 %v6114_v24  ;;  %v6112_v8 = vmul.f32 1.442695, %v6100_v53 }
0x1b68   : > { %8227 = vpow2.f32 %v6112_v8 }
0x1b6c   : > { %v10691_v61 = vpop.eup %8225  ;;  %v6080_v27 = vpop.xlane.xlu1 %6079 }
0x1b6d   : > { %v6135_v12 = vsel %vm11268_vm3, %v10691_v61, 0.0  ;;  %v6098_v3 = vsub.f32 %v5938_v58, %v6080_v27  ;;  %vm11282_vm3 = vmmov %vm11281_vm14 }
0x1b6e   : > { %6136 = vadd.xlane.f32.xlu1 %v6135_v12  ;;  %v10695_v16 = vpop.eup %8227 }
0x1b6f   : > { %v6132_v15 = vsel %vm11269_vm8, %v10695_v16, 0.0  ;;  %v6108_v43 = vmul.f32 1.442695, %v6098_v3  ;;  %vm11283_vm8 = vmmov %vm11282_vm3 }
0x1b74   : > { %v6095_v32 = vpop.xlane.xlu1 %6094 }
0x1b75   : > { %v6103_v55 = vsub.f32 %v6068_v33, %v6095_v32 }
0x1b77   : > { %v6118_v47 = vmul.f32 1.442695, %v6103_v55  ;;  %6133 = vadd.xlane.f32.xlu2 %v6132_v15 }
0x1b79   : > { %8229 = vpow2.f32 %v6118_v47 }
0x1b7a   : > { %8231 = vpow2.f32 %v6108_v43 }
0x1b7b   : > { %8233 = vpow2.f32 %v6110_v45 }
0x1b7c   : > { %v6092_v13 = vpop.xlane.xlu0 %6091 }
0x1b7f   : > { %v10700_v23 = vpop.eup %8229 }
0x1b80   : > { %v6141_v41 = vsel %vm11270_vm5, %v10700_v23, 0.0  ;;  %v8232_v51 = vpop.eup %8231  ;;  %vm11284_vm5 = vmmov %vm11282_vm3 }
0x1b81   : > { %6142 = vadd.xlane.f32.xlu1 %v6141_v41  ;;  %v6126_v46 = vsel %vm11271_vm7, %v8232_v51, 0.0  ;;  %v8234_v58 = vpop.eup %8233 }
0x1b82   : > { %v6129_v33 = vsel %vm11272_vm11, %v8234_v58, 0.0 }
0x1b85   : > { %6127 = vadd.xlane.f32.xlu0 %v6126_v46 }
0x1b8c   : > { %v6169_v57 = vpop.permute.xlu1 %6168 }
0x1b8d   : > { %v6174_v22 = vsel %vm1151_vm13, %v6169_v57, 0  ;;  %6130 = vadd.xlane.f32.xlu0 %v6129_v33 }
0x1b8e   : > { %6183 = vmatpush.bf16.msrb.mxu1 %v6174_v22 }
0x1b8f   : > { %6294 = vrot.lane.b32.xlu2 %v10555_v1, %s8301_s29  ;;  %v6211_v40 = vpop.permute.xlu0 %6210  ;;  %v6102_v1 = vsub.f32 %v10674_v9, %v6092_v13 }
0x1b90   : > { %v6216_v21 = vsel %vm1151_vm13, %v6211_v40, 0 }
0x1b91   : > { %6225 = vmatpush.bf16.msrb.mxu3 %v6216_v21  ;;  %v6116_v11 = vmul.f32 1.442695, %v6102_v1 }
0x1b9a   : > { %6315 = vrot.lane.b32.xlu1 %v10581_v54, %s8301_s29 }
0x1ba1   : > { %6252 = vrot.lane.b32.xlu0 %v10524_v28, %s8301_s29 }
0x1ba9   : > { %v6125_v19 = vpop.xlane.xlu2 %6124 }
0x1baa   : > { %8235 = vrcp.f32 %v6125_v19 }
0x1bb0   : > { %v8236_v38 = vpop.eup %8235 }
0x1bb1   : > { %v6153_v49 = vmul.f32 %v8236_v38, %v8222_v42  ;;  %v6232_v17 = vpop.permute.xlu2 %6231 }
0x1bb2   : > { %v6237_v26 = vsel %vm1151_vm13, %v6232_v17, 0 }
0x1bb3   : > { %v6161_v35 = vpack.c.bf16 %v6153_v49, %v6153_v49  ;;  %6246 = vmatpush.bf16.msra.mxu0 %v6237_v26 }
0x1bb5   : > { %7640 = vmatmul.msk.bf16.vlgmr.msra.gmra.mxu2 %vm11273_vm2, %v6161_v35  ;;  %v7782_v35 = vld [vmem:[%s11116_s6 + $0xb8] sm:$0xff] }
0x1bba   : > { %v6122_v56 = vpop.xlane.xlu0 %6121 }
0x1bbb   : > { %8237 = vrcp.f32 %v6122_v56  ;;  %v7781_v56 = vld [vmem:[%s11116_s6 + $0xb0] sm:$0xff] }
0x1bbc   : > { %8239 = vpow2.f32 %v6116_v11  ;;  %v7780_v11 = vld [vmem:[%s11116_s6 + $0xa8] sm:$0xff] }
0x1bc1   : > { %v8238_v54 = vpop.eup %8237 }
0x1bc2   : > { %v6152_v28 = vmul.f32 %v8238_v54, %v10683_v0  ;;  %v8240_v42 = vpop.eup %8239  ;;  %v7779_v54 = vld [vmem:[%s11116_s6 + $0xa0] sm:$0xff] }
0x1bc3   : > { %v6138_v48 = vsel %vm11275_vm9, %v8240_v42, 0.0 }
0x1bc4   : > { %v6160_v37 = vpack.c.bf16 %v6152_v28, %v6152_v28 }
0x1bc6   : > { %7639 = vmatmul.msk.bf16.vlgmr.msrb.gmra.mxu1 %vm11274_vm10, %v6160_v37 }
0x1bcb   : > { %6139 = vadd.xlane.f32.xlu0 %v6138_v48 }
0x1bcd   : > { %v6274_v39 = vpop.permute.xlu0 %6273 }
0x1bce   : > { %v6279_v2 = vsel %vm1151_vm13, %v6274_v39, 0 }
0x1bcf   : > { %6288 = vmatpush.bf16.msrb.mxu2 %v6279_v2 }
0x1be1   : > { %v6137_v29 = vpop.xlane.xlu1 %6136 }
0x1be2   : > { %8241 = vrcp.f32 %v6137_v29 }
0x1be8   : > { %v8242_v9 = vpop.eup %8241 }
0x1be9   : > { %v6157_v36 = vmul.f32 %v8242_v9, %v10691_v61 }
0x1bea   : > { %v6134_v24 = vpop.xlane.xlu2 %6133 }
0x1beb   : > { %v6165_v53 = vpack.c.bf16 %v6157_v36, %v6157_v36 }
0x1bed   : > { %7644 = vmatmul.msk.bf16.vlgmr.msrb.gmra.mxu2 %vm11276_vm12, %v6165_v53 }
0x1bf2   : > { %v6295_v0 = vpop.permute.xlu2 %6294 }
0x1bf3   : > { %v6300_v8 = vsel %vm1151_vm13, %v6295_v0, 0 }
0x1bf4   : > { %6309 = vmatpush.bf16.msra.mxu3 %v6300_v8  ;;  %v6143_v15 = vpop.xlane.xlu1 %6142 }
0x1bf8   : > { %v6128_v27 = vpop.xlane.xlu0 %6127 }
0x1bf9   : > { %8243 = vrcp.f32 %v6128_v27 }
0x1bff   : > { %v8244_v12 = vpop.eup %8243 }
0x1c00   : > { %v6154_v3 = vmul.f32 %v8244_v12, %v8232_v51  ;;  %v6131_v32 = vpop.xlane.xlu0 %6130 }
0x1c01   : > { %8245 = vrcp.f32 %v6131_v32 }
0x1c02   : > { %v6162_v55 = vpack.c.bf16 %v6154_v3, %v6154_v3  ;;  %8247 = vrcp.f32 %v6134_v24 }
0x1c03   : > { %8249 = vrcp.f32 %v6143_v15 }
0x1c04   : > { %7641 = vmatmul.msk.bf16.vlgmr.msrb.gmra.mxu3 %vm11277_vm6, %v6162_v55 }
0x1c07   : > { %v8246_v43 = vpop.eup %8245 }
0x1c08   : > { %v6155_v61 = vmul.f32 %v8246_v43, %v8234_v58  ;;  %v8248_v45 = vpop.eup %8247 }
0x1c09   : > { %v6156_v41 = vmul.f32 %v8248_v45, %v10695_v16  ;;  %v8250_v51 = vpop.eup %8249 }
0x1c0a   : > { %v6163_v47 = vpack.c.bf16 %v6155_v61, %v6155_v61  ;;  %v6159_v58 = vmul.f32 %v8250_v51, %v10700_v23 }
0x1c0b   : > { %v6164_v57 = vpack.c.bf16 %v6156_v41, %v6156_v41 }
0x1c0c   : > { %7642 = vmatmul.msk.bf16.vlgmr.msra.gmra.mxu0 %vm11238_vm0, %v6163_v47  ;;  %v6316_v4 = vpop.permute.xlu1 %6315  ;;  %v6167_v33 = vpack.c.bf16 %v6159_v58, %v6159_v58 }
0x1c0d   : > { %v6321_v59 = vsel %vm1151_vm13, %v6316_v4, 0 }
0x1c0e   : > { %6330 = vmatpush.bf16.msrb.mxu0 %v6321_v59 }
0x1c13   : > { %v6253_v46 = vpop.permute.xlu0 %6252 }
0x1c14   : > { %v6258_v13 = vsel %vm1151_vm13, %v6253_v46, 0  ;;  %vm11280_vm13 = vmmov %vm11238_vm0 }
0x1c15   : > { %6267 = vmatpush.bf16.msra.mxu1 %v6258_v13 }
0x1c18   : > { %7643 = vmatmul.msk.bf16.vlgmr.msra.gmra.mxu1 %vm11278_vm4, %v6164_v57 }
0x1c19   : > { %6439 = vmatpush.bf16.msrb.mxu1 %v7782_v35 }
0x1c1c   : > { %7646 = vmatmul.msk.bf16.vlgmr.msrb.gmra.mxu0 %vm11279_vm15, %v6167_v33 }
0x1c1d   : > { %6440 = vmatpush.bf16.msrb.mxu1 %v7781_v56 }
0x1c21   : > { %6441 = vmatpush.bf16.msrb.mxu1 %v7780_v11 }
0x1c25   : > { %6442 = vmatpush.bf16.msrb.mxu1 %v7779_v54 }
0x1c38   : > { %v6206_v22 = vpop.f32.mrf.mxu2 }
0x1c3e   : > { %v6140_v40 = vpop.xlane.xlu0 %6139 }
0x1c3f   : > { %8251 = vrcp.f32 %v6140_v40 }
0x1c40   : > { %v6208_v21 = vpop.f32.mrf.mxu2 }
0x1c43   : > { %v6185_v19 = vpop.f32.mrf.mxu1 }
0x1c44   : > { %v7864_v38 = vpack.i.bf16 %v6206_v22, %v6185_v19 }
0x1c45   : > { %v8252_v16 = vpop.eup %8251 }
0x1c46   : > { %v6158_v49 = vmul.f32 %v8252_v16, %v8240_v42  ;;  %7865 = vrot.lane.b32.xlu2 %v7864_v38, %s8301_s29 }
0x1c48   : > { %v6166_v17 = vpack.c.bf16 %v6158_v49, %v6158_v49 }
0x1c4a   : > { %7645 = vmatmul.msk.bf16.vlgmr.msra.gmra.mxu3 %vm11280_vm13, %v6166_v17 }
0x1c4b   : > { %v6187_v26 = vpop.f32.mrf.mxu1 }
0x1c70   : > { %v6290_v23 = vpop.f32.mrf.mxu2 }
0x1c78   : > { %v6292_v1 = vpop.f32.mrf.mxu2 }
0x1c87   : > { %v6227_v28 = vpop.f32.mrf.mxu3 }
0x1c89   : > { %v6248_v37 = vpop.f32.mrf.mxu0 }
0x1c8a   : > { %v7869_v42 = vpack.i.bf16 %v6248_v37, %v6227_v28 }
0x1c8c   : > { %7870 = vrot.lane.b32.xlu0 %v7869_v42, %s8301_s29 }
0x1c8f   : > { %v6229_v48 = vpop.f32.mrf.mxu3 }
0x1c91   : > { %v6250_v39 = vpop.f32.mrf.mxu0 }
0x1c95   : > { %v6269_v2 = vpop.f32.mrf.mxu1 }
0x1c96   : > { %v7874_v29 = vpack.i.bf16 %v6290_v23, %v6269_v2 }
0x1c98   : > { %7875 = vrot.lane.b32.xlu2 %v7874_v29, %s8301_s29 }
0x1c99   : > { %v6332_v9 = vpop.f32.mrf.mxu0 }
0x1c9d   : > { %v6271_v36 = vpop.f32.mrf.mxu1 }
0x1ca0   : > { %v7866_v24 = vpop.permute.xlu2 %7865 }
0x1ca1   : > { %v7868_v53 = vunpack.i.h.bf16 %v7866_v24  ;;  %v7867_v0 = vunpack.i.l.bf16 %v7866_v24  ;;  %v6334_v8 = vpop.f32.mrf.mxu0 }
0x1ca3   : > { %v6369_v27 = vsel %vm484_vm1, %v10629_v50, %v7868_v53  ;;  %v6368_v12 = vsel %vm484_vm1, %v10637_v5, %v7867_v0 }
0x1ca4   : > { %v6395_v3 = vpack.c.bf16 %v6369_v27, %v6368_v12 }
0x1ca6   : > { %7671 = vmatmul.msk.bf16.vlgmr.msrb.gmra.mxu1 %vm11281_vm14, %v6395_v3 }
0x1ccd   : > { %v6311_v32 = vpop.f32.mrf.mxu3 }
0x1cce   : > { %v7879_v55 = vpack.i.bf16 %v6332_v9, %v6311_v32 }
0x1cd0   : > { %7880 = vrot.lane.b32.xlu1 %v7879_v55, %s8301_s29 }
0x1cd5   : > { %v6313_v15 = vpop.f32.mrf.mxu3 }
0x1cf2   : > { %v7876_v5 = vpop.permute.xlu2 %7875 }
0x1cf3   : > { %v7878_v45 = vunpack.i.h.bf16 %v7876_v5  ;;  %v7877_v41 = vunpack.i.l.bf16 %v7876_v5 }
0x1cf5   : > { %v6373_v51 = vsel %vm484_vm1, %v10656_v63, %v7878_v45  ;;  %v6372_v46 = vsel %vm484_vm1, %v10658_v60, %v7877_v41 }
0x1cf6   : > { %v6397_v13 = vpack.c.bf16 %v6373_v51, %v6372_v46 }
0x1cfe   : > { %v7871_v43 = vpop.permute.xlu0 %7870 }
0x1cff   : > { %v7873_v61 = vunpack.i.h.bf16 %v7871_v43  ;;  %v7872_v47 = vunpack.i.l.bf16 %v7871_v43 }
0x1d01   : > { %v6371_v4 = vsel %vm484_vm1, %v10648_v25, %v7873_v61  ;;  %v6370_v50 = vsel %vm484_vm1, %v10644_v62, %v7872_v47  ;;  %v7908_v25 = vld [vmem:[%s11117_s7 + $0x20] ss:$0 sm:$0xff] }
0x1d02   : > { %v6396_v59 = vpack.c.bf16 %v6371_v4, %v6370_v50  ;;  %v6378_v62 = vadd.f32 %v7908_v25, %v10342_v7  ;;  %v6379_v22 = vadd.f32 %v7908_v25, %v10345_v30  ;;  %v6380_v17 = vadd.f32 %v7908_v25, %v10373_v6 }
0x1d03   : > { %v6381_v35 = vadd.f32 %v7908_v25, %v10376_v14  ;;  %v6383_v6 = vadd.f32 %v7908_v25, %v10402_v52  ;;  %v6384_v0 = vadd.f32 %v7908_v25, %v10441_v20  ;;  %v6385_v3 = vadd.f32 %v7908_v25, %v10444_v34 }
0x1d04   : > { %7672 = vmatmul.msk.bf16.gmra.mxu1 %vm11282_vm3, %v6396_v59 }
0x1d14   : > { %7673 = vmatmul.msk.bf16.gmra.mxu1 %vm11283_vm8, %v6397_v13 }
0x1d23   : > { %v6444_v57 = vpop.f32.mrf.mxu1 }
0x1d24   : > { %v6464_v58 = vadd.f32 %v6444_v57, %v6378_v62 }
0x1d26   : > { %v6472_v33 = vsel %vm484_vm1, %v6464_v58, 0.0 }
0x1d27   : > { %6473 = vadd.xlane.f32.xlu2 %v6472_v33  ;;  %v7784_v33 = vld [vmem:[%s11114_s4 + $0x58] sm:$0xff] }
0x1d28   : > { %6709 = vmatpush.bf16.msra.mxu2 %v7784_v33 }
0x1d2b   : > { %v6446_v63 = vpop.f32.mrf.mxu1 }
0x1d2c   : > { %v6465_v40 = vadd.f32 %v6446_v63, %v6379_v22 }
0x1d2e   : > { %v6475_v60 = vsel %vm484_vm1, %v6465_v40, 0.0 }
0x1d2f   : > { %6476 = vadd.xlane.f32.xlu1 %v6475_v60 }
0x1d42   : > { %v7881_v21 = vpop.permute.xlu1 %7880 }
0x1d43   : > { %v7883_v19 = vunpack.i.h.bf16 %v7881_v21  ;;  %v7882_v38 = vunpack.i.l.bf16 %v7881_v21 }
0x1d45   : > { %v6375_v16 = vsel %vm484_vm1, %v10662_v18, %v7883_v19  ;;  %v6374_v7 = vsel %vm484_vm1, %v10668_v10, %v7882_v38  ;;  %v6382_v18 = vadd.f32 %v7908_v25, %v10399_v31  ;;  %v7783_v19 = vld [vmem:[%s11114_s4 + $0x50] sm:$0xff] }
0x1d46   : > { %v6398_v49 = vpack.c.bf16 %v6375_v16, %v6374_v7  ;;  %6710 = vmatpush.bf16.msra.mxu2 %v7783_v19 }
0x1d48   : > { %7674 = vmatmul.msk.bf16.gmra.mxu1 %vm11284_vm5, %v6398_v49 }
0x1d81   : > { %v6449_v30 = vpop.f32.mrf.mxu1 }
0x1d82   : > { %v6466_v26 = vadd.f32 %v6449_v30, %v6380_v17 }
0x1d84   : > { %v6478_v23 = vsel %vm484_vm1, %v6466_v26, 0.0 }
0x1d85   : > { %6479 = vadd.xlane.f32.xlu0 %v6478_v23 }
0x1d89   : > { %v6451_v1 = vpop.f32.mrf.mxu1 }
0x1d8a   : > { %v6467_v56 = vadd.f32 %v6451_v1, %v6381_v35 }
0x1d8c   : > { %v6481_v11 = vsel %vm484_vm1, %v6467_v56, 0.0 }
0x1d8d   : > { %6482 = vadd.xlane.f32.xlu2 %v6481_v11 }
0x1d91   : > { %v6454_v10 = vpop.f32.mrf.mxu1 }
0x1d92   : > { %v6468_v54 = vadd.f32 %v6454_v10, %v6382_v18 }
0x1d94   : > { %v6484_v28 = vsel %vm484_vm1, %v6468_v54, 0.0 }
0x1d95   : > { %6485 = vadd.xlane.f32.xlu1 %v6484_v28  ;;  %v10841_v28 = vld [vmem:[%s11117_s7 + $0x21] ss:$0 sm:$0xff] }
0x1d99   : > { %v6456_v37 = vpop.f32.mrf.mxu1 }
0x1d9a   : > { %v6469_v42 = vadd.f32 %v6456_v37, %v6383_v6  ;;  %v6474_v48 = vpop.xlane.xlu2 %6473 }
0x1d9b   : > { %v6496_v39 = vmul.f32 %v6474_v48, %v8395_v44  ;;  %v10847_v48 = vld [vmem:[%s11117_s7 + $0x22] ss:$0 sm:$0xff] }
0x1d9c   : > { %v6487_v14 = vsel %vm484_vm1, %v6469_v42, 0.0 }
0x1d9d   : > { %v10785_v2 = vsub.f32 %v6464_v58, %v6496_v39  ;;  %6488 = vadd.xlane.f32.xlu2 %v6487_v14 }
0x1d9f   : > { %v6512_v31 = vmul.f32 %v10785_v2, %v10785_v2 }
0x1da1   : > { %v6520_v29 = vsel %vm484_vm1, %v6512_v31, 0.0 }
0x1da2   : > { %6521 = vadd.xlane.f32.xlu0 %v6520_v29  ;;  %v6477_v9 = vpop.xlane.xlu1 %6476 }
0x1da3   : > { %v6497_v36 = vmul.f32 %v6477_v9, %v8395_v44 }
0x1da5   : > { %v10791_v52 = vsub.f32 %v6465_v40, %v6497_v36 }
0x1da7   : > { %v6513_v24 = vmul.f32 %v10791_v52, %v10791_v52 }
0x1da9   : > { %v6523_v53 = vsel %vm484_vm1, %v6513_v24, 0.0 }
0x1daa   : > { %6524 = vadd.xlane.f32.xlu1 %v6523_v53 }
0x1dc5   : > { %v6459_v8 = vpop.f32.mrf.mxu1 }
0x1dc6   : > { %v10797_v27 = vadd.f32 %v6459_v8, %v6384_v0 }
0x1dc8   : > { %v6490_v12 = vsel %vm484_vm1, %v10797_v27, 0.0 }
0x1dc9   : > { %6491 = vadd.xlane.f32.xlu2 %v6490_v12 }
0x1dcd   : > { %v6461_v32 = vpop.f32.mrf.mxu1 }
0x1dce   : > { %v10802_v55 = vadd.f32 %v6461_v32, %v6385_v3 }
0x1dd0   : > { %v6493_v15 = vsel %vm484_vm1, %v10802_v55, 0.0 }
0x1dd1   : > { %6494 = vadd.xlane.f32.xlu0 %v6493_v15 }
0x1df8   : > { %v6480_v43 = vpop.xlane.xlu0 %6479 }
0x1df9   : > { %v6498_v61 = vmul.f32 %v6480_v43, %v8395_v44 }
0x1dfb   : > { %v10807_v20 = vsub.f32 %v6466_v26, %v6498_v61 }
0x1dfd   : > { %v6514_v47 = vmul.f32 %v10807_v20, %v10807_v20 }
0x1dff   : > { %v6526_v4 = vsel %vm484_vm1, %v6514_v47, 0.0 }
0x1e00   : > { %v6483_v50 = vpop.xlane.xlu2 %6482  ;;  %6527 = vadd.xlane.f32.xlu1 %v6526_v4 }
0x1e01   : > { %v6499_v34 = vmul.f32 %v6483_v50, %v8395_v44 }
0x1e03   : > { %v10813_v59 = vsub.f32 %v6467_v56, %v6499_v34 }
0x1e05   : > { %v6515_v5 = vmul.f32 %v10813_v59, %v10813_v59 }
0x1e07   : > { %v6529_v45 = vsel %vm484_vm1, %v6515_v5, 0.0 }
0x1e08   : > { %v6486_v41 = vpop.xlane.xlu1 %6485  ;;  %6530 = vadd.xlane.f32.xlu2 %v6529_v45 }
0x1e09   : > { %v6500_v51 = vmul.f32 %v6486_v41, %v8395_v44 }
0x1e0b   : > { %v10819_v46 = vsub.f32 %v6468_v54, %v6500_v51 }
0x1e0d   : > { %v6516_v13 = vmul.f32 %v10819_v46, %v10819_v46 }
0x1e0f   : > { %v6532_v25 = vsel %vm484_vm1, %v6516_v13, 0.0 }
0x1e10   : > { %v6489_v62 = vpop.xlane.xlu2 %6488  ;;  %6533 = vadd.xlane.f32.xlu0 %v6532_v25 }
0x1e11   : > { %v6501_v57 = vmul.f32 %v6489_v62, %v8395_v44 }
0x1e13   : > { %v10825_v58 = vsub.f32 %v6469_v42, %v6501_v57 }
0x1e15   : > { %v6522_v22 = vpop.xlane.xlu0 %6521  ;;  %v6517_v63 = vmul.f32 %v10825_v58, %v10825_v58 }
0x1e16   : > { %v6544_v40 = vmul.f32 %v6522_v22, %v8395_v44 }
0x1e17   : > { %v6535_v60 = vsel %vm484_vm1, %v6517_v63, 0.0 }
0x1e18   : > { %v6552_v21 = vadd.f32 1e-06, %v6544_v40  ;;  %6536 = vadd.xlane.f32.xlu1 %v6535_v60 }
0x1e1a   : > { %8253 = vrsqrt.f32 %v6552_v21  ;;  %vm6566_vm11 = vweird.f32 %v6552_v21 }
0x1e1d   : > { %v6525_v38 = vpop.xlane.xlu1 %6524 }
0x1e1e   : > { %v6545_v16 = vmul.f32 %v6525_v38, %v8395_v44 }
0x1e20   : > { %v8254_v7 = vpop.eup %8253  ;;  %v6553_v49 = vadd.f32 1e-06, %v6545_v16 }
0x1e21   : > { %v6561_v17 = vmul.f32 %v8254_v7, %v6552_v21  ;;  %vm6567_vm7 = vweird.f32 %v8254_v7 }
0x1e22   : > { %8255 = vrsqrt.f32 %v6553_v49  ;;  %vm6568_vm2 = vmor %vm6566_vm11, %vm6567_vm7  ;;  %vm6576_vm9 = vweird.f32 %v6553_v49 }
0x1e23   : > { %v6562_v30 = vmul.f32 %v8254_v7, %v6561_v17 }
0x1e25   : > { %v6563_v26 = vmul.f32 0.5, %v6562_v30 }
0x1e27   : > { %v6564_v23 = vsub.f32 1.5, %v6563_v26 }
0x1e28   : > { %v8256_v35 = vpop.eup %8255 }
0x1e29   : > { %v6565_v1 = vmul.f32 %v8254_v7, %v6564_v23  ;;  %v6571_v56 = vmul.f32 %v8256_v35, %v6553_v49  ;;  %vm6577_vm10 = vweird.f32 %v8256_v35 }
0x1e2a   : > { %vm6578_vm12 = vmor %vm6576_vm9, %vm6577_vm10 }
0x1e2b   : > { %v6572_v11 = vmul.f32 %v8256_v35, %v6571_v56  ;;  %v6569_v18 = vsel %vm6568_vm2, %v8254_v7, %v6565_v1 }
0x1e2c   : > { %v6640_v6 = vmul.f32 %v6569_v18, %v10785_v2 }
0x1e2d   : > { %v6573_v10 = vmul.f32 0.5, %v6572_v11 }
0x1e2e   : > { %v6650_v39 = vmul.f32 %v10841_v28, %v6640_v6 }
0x1e2f   : > { %v6574_v54 = vsub.f32 1.5, %v6573_v10 }
0x1e30   : > { %v10853_v29 = vadd.f32 %v10847_v48, %v6650_v39 }
0x1e31   : > { %v6575_v37 = vmul.f32 %v8256_v35, %v6574_v54 }
0x1e33   : > { %v6579_v42 = vsel %vm6578_vm12, %v8256_v35, %v6575_v37 }
0x1e34   : > { %v6641_v14 = vmul.f32 %v6579_v42, %v10791_v52 }
0x1e36   : > { %v6651_v31 = vmul.f32 %v10841_v28, %v6641_v14 }
0x1e38   : > { %v10856_v2 = vadd.f32 %v10847_v48, %v6651_v31 }
0x1e3a   : > { %v6673_v9 = vpack.c.bf16 %v10856_v2, %v10853_v29 }
0x1e3c   : > { %7687 = vmatmul.msk.bf16.vlgmr.msra.gmra.mxu2 %vm484_vm1, %v6673_v9  ;;  %v6492_v36 = vpop.xlane.xlu2 %6491  ;;  %v7788_v9 = vld [vmem:[%s11116_s6 + $0xd8] sm:$0xff] }
0x1e3d   : > { %v6502_v24 = vmul.f32 %v6492_v36, %v8395_v44  ;;  %6795 = vmatpush.bf16.msrb.mxu3 %v7788_v9 }
0x1e3f   : > { %v10863_v53 = vsub.f32 %v10797_v27, %v6502_v24 }
0x1e41   : > { %v6518_v52 = vmul.f32 %v10863_v53, %v10863_v53 }
0x1e43   : > { %v6538_v0 = vsel %vm484_vm1, %v6518_v52, 0.0 }
0x1e44   : > { %6539 = vadd.xlane.f32.xlu2 %v6538_v0  ;;  %v6495_v8 = vpop.xlane.xlu0 %6494 }
0x1e45   : > { %v6503_v12 = vmul.f32 %v6495_v8, %v8395_v44  ;;  %v7787_v8 = vld [vmem:[%s11116_s6 + $0xd0] sm:$0xff] }
0x1e46   : > { %6796 = vmatpush.bf16.msrb.mxu3 %v7787_v8 }
0x1e47   : > { %v10870_v3 = vsub.f32 %v10802_v55, %v6503_v12 }
0x1e49   : > { %v6519_v32 = vmul.f32 %v10870_v3, %v10870_v3 }
0x1e4b   : > { %v6541_v15 = vsel %vm484_vm1, %v6519_v32, 0.0 }
0x1e4c   : > { %6542 = vadd.xlane.f32.xlu0 %v6541_v15  ;;  %v7786_v15 = vld [vmem:[%s11116_s6 + $0xc8] sm:$0xff] }
0x1e4d   : > { %6797 = vmatpush.bf16.msrb.mxu3 %v7786_v15 }
0x1e73   : > { %v6528_v27 = vpop.xlane.xlu1 %6527 }
0x1e74   : > { %v6546_v43 = vmul.f32 %v6528_v27, %v8395_v44  ;;  %v7785_v27 = vld [vmem:[%s11116_s6 + $0xc0] sm:$0xff] }
0x1e75   : > { %6798 = vmatpush.bf16.msrb.mxu3 %v7785_v27 }
0x1e76   : > { %v6554_v61 = vadd.f32 1e-06, %v6546_v43 }
0x1e78   : > { %8257 = vrsqrt.f32 %v6554_v61  ;;  %vm6586_vm0 = vweird.f32 %v6554_v61 }
0x1e7b   : > { %v6531_v47 = vpop.xlane.xlu2 %6530 }
0x1e7c   : > { %v6547_v4 = vmul.f32 %v6531_v47, %v8395_v44 }
0x1e7e   : > { %v8258_v50 = vpop.eup %8257  ;;  %v6555_v34 = vadd.f32 1e-06, %v6547_v4 }
0x1e7f   : > { %v6581_v5 = vmul.f32 %v8258_v50, %v6554_v61  ;;  %vm6587_vm6 = vweird.f32 %v8258_v50 }
0x1e80   : > { %8259 = vrsqrt.f32 %v6555_v34  ;;  %vm6588_vm4 = vmor %vm6586_vm0, %vm6587_vm6  ;;  %vm6596_vm13 = vweird.f32 %v6555_v34  ;;  %vm11285_vm6 = vcmask 523264  }
0x1e81   : > { %v6582_v55 = vmul.f32 %v8258_v50, %v6581_v5 }
0x1e83   : > { %v6583_v45 = vmul.f32 0.5, %v6582_v55  ;;  %v6534_v41 = vpop.xlane.xlu0 %6533  ;;  %v10922_v55 = vld [vmem:[%s11117_s7 + $0x23] ss:$0 sm:$0xff] }
0x1e84   : > { %v6548_v51 = vmul.f32 %v6534_v41, %v8395_v44 }
0x1e85   : > { %v6584_v13 = vsub.f32 1.5, %v6583_v45 }
0x1e86   : > { %v8260_v25 = vpop.eup %8259  ;;  %v6556_v62 = vadd.f32 1e-06, %v6548_v51 }
0x1e87   : > { %v6585_v57 = vmul.f32 %v8258_v50, %v6584_v13  ;;  %v6591_v33 = vmul.f32 %v8260_v25, %v6555_v34  ;;  %vm6597_vm15 = vweird.f32 %v8260_v25 }
0x1e88   : > { %8261 = vrsqrt.f32 %v6556_v62  ;;  %vm6598_vm14 = vmor %vm6596_vm13, %vm6597_vm15  ;;  %vm6606_vm8 = vweird.f32 %v6556_v62 }
0x1e89   : > { %v6592_v22 = vmul.f32 %v8260_v25, %v6591_v33  ;;  %v6589_v63 = vsel %vm6588_vm4, %v8258_v50, %v6585_v57  ;;  %vm11286_vm13 = vmmov %vm11285_vm6 }
0x1e8a   : > { %v6642_v16 = vmul.f32 %v6589_v63, %v10807_v20 }
0x1e8b   : > { %v6593_v40 = vmul.f32 0.5, %v6592_v22  ;;  %v6537_v60 = vpop.xlane.xlu1 %6536 }
0x1e8c   : > { %v6549_v21 = vmul.f32 %v6537_v60, %v8395_v44  ;;  %v6652_v35 = vmul.f32 %v10841_v28, %v6642_v16 }
0x1e8d   : > { %v6594_v19 = vsub.f32 1.5, %v6593_v40 }
0x1e8e   : > { %v8262_v38 = vpop.eup %8261  ;;  %v6557_v7 = vadd.f32 1e-06, %v6549_v21  ;;  %v10884_v10 = vadd.f32 %v10847_v48, %v6652_v35 }
0x1e8f   : > { %v6595_v49 = vmul.f32 %v8260_v25, %v6594_v19  ;;  %v6601_v17 = vmul.f32 %v8262_v38, %v6556_v62  ;;  %vm6607_vm3 = vweird.f32 %v8262_v38 }
0x1e90   : > { %8263 = vrsqrt.f32 %v6557_v7  ;;  %vm6608_vm5 = vmor %vm6606_vm8, %vm6607_vm3  ;;  %vm6616_vm11 = vweird.f32 %v6557_v7 }
0x1e91   : > { %v6599_v30 = vsel %vm6598_vm14, %v8260_v25, %v6595_v49  ;;  %v6602_v26 = vmul.f32 %v8262_v38, %v6601_v17  ;;  %vm11287_vm14 = vmmov %vm11285_vm6 }
0x1e92   : > { %v6643_v23 = vmul.f32 %v6599_v30, %v10813_v59  ;;  %vm11288_vm3 = vmmov %vm11285_vm6 }
0x1e93   : > { %v6603_v1 = vmul.f32 0.5, %v6602_v26 }
0x1e94   : > { %v6653_v56 = vmul.f32 %v10841_v28, %v6643_v23 }
0x1e95   : > { %v6604_v11 = vsub.f32 1.5, %v6603_v1 }
0x1e96   : > { %v8264_v18 = vpop.eup %8263  ;;  %v10887_v20 = vadd.f32 %v10847_v48, %v6653_v56 }
0x1e97   : > { %v6605_v54 = vmul.f32 %v8262_v38, %v6604_v11  ;;  %v6611_v6 = vmul.f32 %v8264_v18, %v6557_v7  ;;  %vm6617_vm7 = vweird.f32 %v8264_v18 }
0x1e98   : > { %v6674_v37 = vpack.c.bf16 %v10887_v20, %v10884_v10  ;;  %vm6618_vm2 = vmor %vm6616_vm11, %vm6617_vm7 }
0x1e99   : > { %v6612_v59 = vmul.f32 %v8264_v18, %v6611_v6  ;;  %v6609_v42 = vsel %vm6608_vm5, %v8262_v38, %v6605_v54 }
0x1e9a   : > { %7688 = vmatmul.msk.bf16.gmra.mxu2 %vm484_vm1, %v6674_v37  ;;  %v6644_v31 = vmul.f32 %v6609_v42, %v10819_v46 }
0x1e9b   : > { %v6613_v39 = vmul.f32 0.5, %v6612_v59 }
0x1e9c   : > { %v6654_v0 = vmul.f32 %v10841_v28, %v6644_v31 }
0x1e9d   : > { %v6614_v14 = vsub.f32 1.5, %v6613_v39 }
0x1e9e   : > { %v10903_v46 = vadd.f32 %v10847_v48, %v6654_v0 }
0x1e9f   : > { %v6615_v36 = vmul.f32 %v8264_v18, %v6614_v14 }
0x1ea1   : > { %v6619_v24 = vsel %vm6618_vm2, %v8264_v18, %v6615_v36 }
0x1ea2   : > { %v6645_v52 = vmul.f32 %v6619_v24, %v10825_v58  ;;  %v7912_v24 = vld [vmem:[%s11117_s7 + $0x24] ss:$0 sm:$0xff] }
0x1ea4   : > { %v6655_v12 = vmul.f32 %v10841_v28, %v6645_v52 }
0x1ea6   : > { %v10906_v32 = vadd.f32 %v10847_v48, %v6655_v12 }
0x1ea8   : > { %v6675_v58 = vpack.c.bf16 %v10906_v32, %v10903_v46 }
0x1eaa   : > { %7689 = vmatmul.msk.bf16.gmra.mxu2 %vm484_vm1, %v6675_v58 }
0x1eb7   : > { %v6540_v43 = vpop.xlane.xlu2 %6539 }
0x1eb8   : > { %v6550_v61 = vmul.f32 %v6540_v43, %v8395_v44 }
0x1eba   : > { %v6558_v47 = vadd.f32 1e-06, %v6550_v61 }
0x1ebc   : > { %8265 = vrsqrt.f32 %v6558_v47  ;;  %vm6626_vm9 = vweird.f32 %v6558_v47 }
0x1ebf   : > { %v6712_v4 = vpop.f32.mrf.mxu2  ;;  %v6543_v50 = vpop.xlane.xlu0 %6542 }
0x1ec0   : > { %v6551_v34 = vmul.f32 %v6543_v50, %v8395_v44  ;;  %v6713_v13 = vadd.f32 %v10922_v55, %v6712_v4 }
0x1ec2   : > { %v8266_v5 = vpop.eup %8265  ;;  %v6559_v45 = vadd.f32 1e-06, %v6551_v34  ;;  %v6732_v63 = vmax.f32 %v6713_v13, 0.0 }
0x1ec3   : > { %v6621_v41 = vmul.f32 %v8266_v5, %v6558_v47  ;;  %vm6627_vm10 = vweird.f32 %v8266_v5 }
0x1ec4   : > { %8267 = vrsqrt.f32 %v6559_v45  ;;  %vm6628_vm12 = vmor %vm6626_vm9, %vm6627_vm10  ;;  %vm6636_vm4 = vweird.f32 %v6559_v45 }
0x1ec5   : > { %v6622_v51 = vmul.f32 %v8266_v5, %v6621_v41 }
0x1ec7   : > { %v6623_v25 = vmul.f32 0.5, %v6622_v51  ;;  %v6714_v62 = vpop.f32.mrf.mxu2 }
0x1ec8   : > { %v6715_v57 = vadd.f32 %v10922_v55, %v6714_v62 }
0x1ec9   : > { %v6624_v33 = vsub.f32 1.5, %v6623_v25 }
0x1eca   : > { %v8268_v22 = vpop.eup %8267  ;;  %v6733_v40 = vmax.f32 %v6715_v57, 0.0 }
0x1ecb   : > { %v6625_v60 = vmul.f32 %v8266_v5, %v6624_v33  ;;  %v6631_v21 = vmul.f32 %v8268_v22, %v6559_v45  ;;  %vm6637_vm0 = vweird.f32 %v8268_v22 }
0x1ecc   : > { %v6749_v19 = vpack.c.bf16 %v6733_v40, %v6732_v63  ;;  %vm6638_vm15 = vmor %vm6636_vm4, %vm6637_vm0 }
0x1ecd   : > { %v6632_v38 = vmul.f32 %v8268_v22, %v6631_v21  ;;  %v6629_v16 = vsel %vm6628_vm12, %v8266_v5, %v6625_v60 }
0x1ece   : > { %7715 = vmatmul.msk.bf16.vlgmr.msrb.gmra.mxu3 %vm11285_vm6, %v6749_v19  ;;  %v6646_v17 = vmul.f32 %v6629_v16, %v10863_v53 }
0x1ecf   : > { %v6633_v7 = vmul.f32 0.5, %v6632_v38 }
0x1ed0   : > { %v6656_v35 = vmul.f32 %v10841_v28, %v6646_v17 }
0x1ed1   : > { %v6634_v49 = vsub.f32 1.5, %v6633_v7 }
0x1ed2   : > { %v10932_v56 = vadd.f32 %v10847_v48, %v6656_v35 }
0x1ed3   : > { %v6635_v30 = vmul.f32 %v8268_v22, %v6634_v49 }
0x1ed5   : > { %v6639_v26 = vsel %vm6638_vm15, %v8268_v22, %v6635_v30 }
0x1ed6   : > { %v6647_v23 = vmul.f32 %v6639_v26, %v10870_v3 }
0x1ed8   : > { %v6657_v1 = vmul.f32 %v10841_v28, %v6647_v23 }
0x1eda   : > { %v10935_v11 = vadd.f32 %v10847_v48, %v6657_v1 }
0x1edc   : > { %v6676_v18 = vpack.c.bf16 %v10935_v11, %v10932_v56 }
0x1ede   : > { %7690 = vmatmul.msk.bf16.gmra.mxu2 %vm484_vm1, %v6676_v18 }
0x1f1d   : > { %v6717_v53 = vpop.f32.mrf.mxu2 }
0x1f1e   : > { %v6718_v54 = vadd.f32 %v10922_v55, %v6717_v53 }
0x1f20   : > { %v6734_v37 = vmax.f32 %v6718_v54, 0.0 }
0x1f25   : > { %v6719_v6 = vpop.f32.mrf.mxu2 }
0x1f26   : > { %v6720_v3 = vadd.f32 %v10922_v55, %v6719_v6 }
0x1f28   : > { %v6735_v59 = vmax.f32 %v6720_v3, 0.0 }
0x1f2a   : > { %v6750_v28 = vpack.c.bf16 %v6735_v59, %v6734_v37 }
0x1f2c   : > { %7716 = vmatmul.msk.bf16.gmra.mxu3 %vm11286_vm13, %v6750_v28 }
0x1f2d   : > { %v6722_v42 = vpop.f32.mrf.mxu2 }
0x1f2e   : > { %v6723_v48 = vadd.f32 %v10922_v55, %v6722_v42 }
0x1f30   : > { %v6736_v31 = vmax.f32 %v6723_v48, 0.0 }
0x1f35   : > { %v6724_v39 = vpop.f32.mrf.mxu2 }
0x1f36   : > { %v6725_v14 = vadd.f32 %v10922_v55, %v6724_v39 }
0x1f38   : > { %v6737_v9 = vmax.f32 %v6725_v14, 0.0 }
0x1f3a   : > { %v6751_v36 = vpack.c.bf16 %v6737_v9, %v6736_v31 }
0x1f3c   : > { %7717 = vmatmul.msk.bf16.gmra.mxu3 %vm11287_vm14, %v6751_v36 }
0x1f51   : > { %v6800_v52 = vpop.f32.mrf.mxu3 }
0x1f52   : > { %v6801_v0 = vadd.f32 %v7912_v24, %v6800_v52 }
0x1f54   : > { %v6820_v8 = vadd.f32 %v6801_v0, %v10853_v29 }
0x1f56   : > { %v6828_v12 = vsel %vm484_vm1, %v6820_v8, 0.0 }
0x1f57   : > { %6829 = vadd.xlane.f32.xlu1 %v6828_v12 }
0x1f59   : > { %v6802_v15 = vpop.f32.mrf.mxu3 }
0x1f5a   : > { %v6803_v58 = vadd.f32 %v7912_v24, %v6802_v15 }
0x1f5c   : > { %v6821_v27 = vadd.f32 %v6803_v58, %v10856_v2 }
0x1f5e   : > { %v6831_v43 = vsel %vm484_vm1, %v6821_v27, 0.0 }
0x1f5f   : > { %6832 = vadd.xlane.f32.xlu2 %v6831_v43  ;;  %v7790_v43 = vld [vmem:[%s11115_s5 + $0x8] sm:$0xff] }
0x1f60   : > { %7078 = vmatpush.bf16.msra.mxu0 %v7790_v43 }
0x1f61   : > { %v6727_v61 = vpop.f32.mrf.mxu2 }
0x1f62   : > { %v6728_v47 = vadd.f32 %v10922_v55, %v6727_v61 }
0x1f64   : > { %v6738_v34 = vmax.f32 %v6728_v47, 0.0 }
0x1f69   : > { %v6729_v4 = vpop.f32.mrf.mxu2 }
0x1f6a   : > { %v6730_v50 = vadd.f32 %v10922_v55, %v6729_v4  ;;  %v7789_v4 = vld [vmem:[%s11115_s5] sm:$0xff] }
0x1f6b   : > { %7079 = vmatpush.bf16.msra.mxu0 %v7789_v4 }
0x1f6c   : > { %v6739_v5 = vmax.f32 %v6730_v50, 0.0 }
0x1f6e   : > { %v6752_v45 = vpack.c.bf16 %v6739_v5, %v6738_v34 }
0x1f70   : > { %7718 = vmatmul.msk.bf16.gmra.mxu3 %vm11288_vm3, %v6752_v45 }
0x1faf   : > { %v6805_v29 = vpop.f32.mrf.mxu3 }
0x1fb0   : > { %v6806_v41 = vadd.f32 %v7912_v24, %v6805_v29 }
0x1fb2   : > { %v6822_v51 = vadd.f32 %v6806_v41, %v10884_v10 }
0x1fb4   : > { %v6834_v2 = vsel %vm484_vm1, %v6822_v51, 0.0 }
0x1fb5   : > { %6835 = vadd.xlane.f32.xlu0 %v6834_v2 }
0x1fb7   : > { %v6807_v13 = vpop.f32.mrf.mxu3 }
0x1fb8   : > { %v6808_v25 = vadd.f32 %v7912_v24, %v6807_v13 }
0x1fba   : > { %v6823_v62 = vadd.f32 %v6808_v25, %v10887_v20 }
0x1fbc   : > { %v6837_v57 = vsel %vm484_vm1, %v6823_v62, 0.0 }
0x1fbd   : > { %6838 = vadd.xlane.f32.xlu1 %v6837_v57 }
0x1fbf   : > { %v6810_v55 = vpop.f32.mrf.mxu3 }
0x1fc0   : > { %v6811_v33 = vadd.f32 %v7912_v24, %v6810_v55 }
0x1fc2   : > { %v6824_v22 = vadd.f32 %v6811_v33, %v10903_v46 }
0x1fc4   : > { %v6840_v63 = vsel %vm484_vm1, %v6824_v22, 0.0 }
0x1fc5   : > { %6841 = vadd.xlane.f32.xlu2 %v6840_v63 }
0x1fc7   : > { %v6812_v40 = vpop.f32.mrf.mxu3 }
0x1fc8   : > { %v6813_v60 = vadd.f32 %v7912_v24, %v6812_v40 }
0x1fca   : > { %v6825_v10 = vadd.f32 %v6813_v60, %v10906_v32  ;;  %v6830_v21 = vpop.xlane.xlu1 %6829 }
0x1fcb   : > { %v6852_v19 = vmul.f32 %v6830_v21, %v8395_v44 }
0x1fcc   : > { %v6843_v38 = vsel %vm484_vm1, %v6825_v10, 0.0 }
0x1fcd   : > { %v10965_v20 = vsub.f32 %v6820_v8, %v6852_v19  ;;  %6844 = vadd.xlane.f32.xlu0 %v6843_v38 }
0x1fcf   : > { %v6868_v16 = vmul.f32 %v10965_v20, %v10965_v20 }
0x1fd1   : > { %v6876_v46 = vsel %vm484_vm1, %v6868_v16, 0.0 }
0x1fd2   : > { %6877 = vadd.xlane.f32.xlu1 %v6876_v46  ;;  %v6833_v7 = vpop.xlane.xlu2 %6832  ;;  %v7024_v46 = vld [vmem:[%s11036_s28] sm:$0xff] }
0x1fd3   : > { %v6853_v49 = vmul.f32 %v6833_v7, %v8395_v44  ;;  %v7025_v7 = vld [vmem:[%s11036_s28 + $0x8] sm:$0xff] }
0x1fd5   : > { %v10971_v17 = vsub.f32 %v6821_v27, %v6853_v49 }
0x1fd7   : > { %v6869_v32 = vmul.f32 %v10971_v17, %v10971_v17 }
0x1fd9   : > { %v6879_v30 = vsel %vm484_vm1, %v6869_v32, 0.0 }
0x1fda   : > { %6880 = vadd.xlane.f32.xlu2 %v6879_v30 }
0x1ff3   : > { %v6815_v26 = vpop.f32.mrf.mxu3 }
0x1ff4   : > { %v6816_v23 = vadd.f32 %v7912_v24, %v6815_v26 }
0x1ff6   : > { %v10977_v35 = vadd.f32 %v6816_v23, %v10932_v56 }
0x1ff8   : > { %v6846_v1 = vsel %vm484_vm1, %v10977_v35, 0.0 }
0x1ff9   : > { %6847 = vadd.xlane.f32.xlu0 %v6846_v1 }
0x1ffb   : > { %v6817_v18 = vpop.f32.mrf.mxu3 }
0x1ffc   : > { %v6818_v53 = vadd.f32 %v7912_v24, %v6817_v18 }
0x1ffe   : > { %v10982_v54 = vadd.f32 %v6818_v53, %v10935_v11 }
0x2000   : > { %v6849_v6 = vsel %vm484_vm1, %v10982_v54, 0.0 }
0x2001   : > { %6850 = vadd.xlane.f32.xlu1 %v6849_v6 }
0x2028   : > { %v6836_v3 = vpop.xlane.xlu0 %6835 }
0x2029   : > { %v6854_v37 = vmul.f32 %v6836_v3, %v8395_v44 }
0x202b   : > { %v10987_v59 = vsub.f32 %v6822_v51, %v6854_v37 }
0x202d   : > { %v6870_v56 = vmul.f32 %v10987_v59, %v10987_v59 }
0x202f   : > { %v6882_v28 = vsel %vm484_vm1, %v6870_v56, 0.0 }
0x2030   : > { %v6839_v42 = vpop.xlane.xlu1 %6838  ;;  %6883 = vadd.xlane.f32.xlu2 %v6882_v28 }
0x2031   : > { %v6855_v48 = vmul.f32 %v6839_v42, %v8395_v44 }
0x2033   : > { %v10993_v11 = vsub.f32 %v6823_v62, %v6855_v48 }
0x2035   : > { %v6871_v39 = vmul.f32 %v10993_v11, %v10993_v11 }
0x2037   : > { %v6885_v14 = vsel %vm484_vm1, %v6871_v39, 0.0 }
0x2038   : > { %v6842_v31 = vpop.xlane.xlu2 %6841  ;;  %6886 = vadd.xlane.f32.xlu0 %v6885_v14 }
0x2039   : > { %v6856_v9 = vmul.f32 %v6842_v31, %v8395_v44 }
0x203b   : > { %v10999_v36 = vsub.f32 %v6824_v22, %v6856_v9  ;;  %v11021_v22 = vld [vmem:[%s11117_s7 + $0x25] ss:$0 sm:$0xff] }
0x203d   : > { %v6872_v24 = vmul.f32 %v10999_v36, %v10999_v36 }
0x203f   : > { %v6888_v52 = vsel %vm484_vm1, %v6872_v24, 0.0 }
0x2040   : > { %6889 = vadd.xlane.f32.xlu1 %v6888_v52  ;;  %v6845_v0 = vpop.xlane.xlu0 %6844 }
0x2041   : > { %v6857_v8 = vmul.f32 %v6845_v0, %v8395_v44 }
0x2043   : > { %v11005_v12 = vsub.f32 %v6825_v10, %v6857_v8  ;;  %v11028_v10 = vld [vmem:[%s11117_s7 + $0x26] ss:$0 sm:$0xff] }
0x2045   : > { %v6878_v15 = vpop.xlane.xlu1 %6877  ;;  %v6873_v58 = vmul.f32 %v11005_v12, %v11005_v12 }
0x2046   : > { %v6900_v27 = vmul.f32 %v6878_v15, %v8395_v44 }
0x2047   : > { %v6891_v61 = vsel %vm484_vm1, %v6873_v58, 0.0 }
0x2048   : > { %v6908_v47 = vadd.f32 1e-06, %v6900_v27  ;;  %6892 = vadd.xlane.f32.xlu2 %v6891_v61 }
0x204a   : > { %8269 = vrsqrt.f32 %v6908_v47  ;;  %vm6922_vm5 = vweird.f32 %v6908_v47 }
0x204d   : > { %v6881_v50 = vpop.xlane.xlu2 %6880 }
0x204e   : > { %v6901_v34 = vmul.f32 %v6881_v50, %v8395_v44 }
0x2050   : > { %v8270_v5 = vpop.eup %8269  ;;  %v6909_v45 = vadd.f32 1e-06, %v6901_v34 }
0x2051   : > { %v6917_v29 = vmul.f32 %v8270_v5, %v6908_v47  ;;  %vm6923_vm8 = vweird.f32 %v8270_v5 }
0x2052   : > { %8271 = vrsqrt.f32 %v6909_v45  ;;  %vm6924_vm7 = vmor %vm6922_vm5, %vm6923_vm8  ;;  %vm6932_vm2 = vweird.f32 %v6909_v45 }
0x2053   : > { %v6918_v41 = vmul.f32 %v8270_v5, %v6917_v29 }
0x2055   : > { %v6919_v51 = vmul.f32 0.5, %v6918_v41 }
0x2057   : > { %v6920_v2 = vsub.f32 1.5, %v6919_v51 }
0x2058   : > { %v8272_v13 = vpop.eup %8271 }
0x2059   : > { %v6921_v25 = vmul.f32 %v8270_v5, %v6920_v2  ;;  %v6927_v62 = vmul.f32 %v8272_v13, %v6909_v45  ;;  %vm6933_vm11 = vweird.f32 %v8272_v13 }
0x205a   : > { %vm6934_vm10 = vmor %vm6932_vm2, %vm6933_vm11 }
0x205b   : > { %v6925_v57 = vsel %vm6924_vm7, %v8270_v5, %v6921_v25  ;;  %v6928_v55 = vmul.f32 %v8272_v13, %v6927_v62 }
0x205c   : > { %v6996_v63 = vmul.f32 %v6925_v57, %v10965_v20 }
0x205d   : > { %v6929_v33 = vmul.f32 0.5, %v6928_v55 }
0x205e   : > { %v7006_v21 = vmul.f32 %v11021_v22, %v6996_v63 }
0x205f   : > { %v6930_v40 = vsub.f32 1.5, %v6929_v33 }
0x2060   : > { %v7016_v20 = vadd.f32 %v11028_v10, %v7006_v21  ;;  %v7027_v21 = vld [vmem:[%s11036_s28 + $0x18] sm:$0xff] }
0x2061   : > { %v6931_v60 = vmul.f32 %v8272_v13, %v6930_v40 }
0x2062   : > { %v7032_v32 = vadd.f32 %v7024_v46, %v7016_v20 }
0x2063   : > { %v6935_v19 = vsel %vm6934_vm10, %v8272_v13, %v6931_v60  ;;  %v7026_v60 = vld [vmem:[%s11036_s28 + $0x10] sm:$0xff] }
0x2064   : > { %v6997_v38 = vmul.f32 %v6935_v19, %v10971_v17 }
0x2066   : > { %v7007_v16 = vmul.f32 %v11021_v22, %v6997_v38 }
0x2068   : > { %v7017_v49 = vadd.f32 %v11028_v10, %v7007_v16 }
0x206a   : > { %v7033_v30 = vadd.f32 %v7025_v7, %v7017_v49 }
0x206c   : > { %v6848_v26 = vpop.xlane.xlu0 %6847  ;;  %v7044_v23 = vpack.c.bf16 %v7033_v30, %v7032_v32 }
0x206d   : > { %v6858_v1 = vmul.f32 %v6848_v26, %v8395_v44 }
0x206e   : > { %7727 = vmatmul.msk.bf16.vlgmr.msra.gmra.mxu0 %vm484_vm1, %v7044_v23 }
0x206f   : > { %v11047_v18 = vsub.f32 %v10977_v35, %v6858_v1 }
0x2071   : > { %v6874_v17 = vmul.f32 %v11047_v18, %v11047_v18 }
0x2073   : > { %v6894_v53 = vsel %vm484_vm1, %v6874_v17, 0.0 }
0x2074   : > { %v6851_v6 = vpop.xlane.xlu1 %6850  ;;  %6895 = vadd.xlane.f32.xlu0 %v6894_v53 }
0x2075   : > { %v6859_v3 = vmul.f32 %v6851_v6, %v8395_v44 }
0x2077   : > { %v11054_v37 = vsub.f32 %v10982_v54, %v6859_v3 }
0x2079   : > { %v6875_v56 = vmul.f32 %v11054_v37, %v11054_v37 }
0x207b   : > { %v6897_v28 = vsel %vm484_vm1, %v6875_v56, 0.0 }
0x207c   : > { %6898 = vadd.xlane.f32.xlu1 %v6897_v28  ;;  %v7028_v28 = vld [vmem:[%s11036_s28 + $0x20] sm:$0xff] }
0x20a3   : > { %v6884_v35 = vpop.xlane.xlu2 %6883 }
0x20a4   : > { %v6902_v42 = vmul.f32 %v6884_v35, %v8395_v44  ;;  %v7029_v35 = vld [vmem:[%s11036_s28 + $0x28] sm:$0xff] }
0x20a6   : > { %v6910_v48 = vadd.f32 1e-06, %v6902_v42 }
0x20a8   : > { %8273 = vrsqrt.f32 %v6910_v48  ;;  %vm6942_vm12 = vweird.f32 %v6910_v48 }
0x20ab   : > { %v6887_v39 = vpop.xlane.xlu0 %6886 }
0x20ac   : > { %v6903_v14 = vmul.f32 %v6887_v39, %v8395_v44 }
0x20ae   : > { %v8274_v31 = vpop.eup %8273  ;;  %v6911_v9 = vadd.f32 1e-06, %v6903_v14 }
0x20af   : > { %v6937_v24 = vmul.f32 %v8274_v31, %v6910_v48  ;;  %vm6943_vm9 = vweird.f32 %v8274_v31 }
0x20b0   : > { %8275 = vrsqrt.f32 %v6911_v9  ;;  %vm6944_vm6 = vmor %vm6942_vm12, %vm6943_vm9  ;;  %vm6952_vm4 = vweird.f32 %v6911_v9 }
0x20b1   : > { %v6938_v54 = vmul.f32 %v8274_v31, %v6937_v24 }
0x20b3   : > { %v6939_v52 = vmul.f32 0.5, %v6938_v54  ;;  %v6890_v0 = vpop.xlane.xlu1 %6889 }
0x20b4   : > { %v6904_v8 = vmul.f32 %v6890_v0, %v8395_v44 }
0x20b5   : > { %v6940_v15 = vsub.f32 1.5, %v6939_v52 }
0x20b6   : > { %v8276_v58 = vpop.eup %8275  ;;  %v6912_v27 = vadd.f32 1e-06, %v6904_v8 }
0x20b7   : > { %v6941_v43 = vmul.f32 %v8274_v31, %v6940_v15  ;;  %v6947_v61 = vmul.f32 %v8276_v58, %v6911_v9  ;;  %vm6953_vm0 = vweird.f32 %v8276_v58 }
0x20b8   : > { %8277 = vrsqrt.f32 %v6912_v27  ;;  %vm6954_vm15 = vmor %vm6952_vm4, %vm6953_vm0  ;;  %vm6962_vm14 = vweird.f32 %v6912_v27 }
0x20b9   : > { %v6945_v47 = vsel %vm6944_vm6, %v8274_v31, %v6941_v43  ;;  %v6948_v4 = vmul.f32 %v8276_v58, %v6947_v61 }
0x20ba   : > { %v6998_v5 = vmul.f32 %v6945_v47, %v10987_v59 }
0x20bb   : > { %v6949_v50 = vmul.f32 0.5, %v6948_v4  ;;  %v6893_v34 = vpop.xlane.xlu2 %6892 }
0x20bc   : > { %v6905_v45 = vmul.f32 %v6893_v34, %v8395_v44  ;;  %v7008_v25 = vmul.f32 %v11021_v22, %v6998_v5 }
0x20bd   : > { %v6950_v29 = vsub.f32 1.5, %v6949_v50 }
0x20be   : > { %v8278_v41 = vpop.eup %8277  ;;  %v6913_v51 = vadd.f32 1e-06, %v6905_v45  ;;  %v7018_v63 = vadd.f32 %v11028_v10, %v7008_v25 }
0x20bf   : > { %v6951_v2 = vmul.f32 %v8276_v58, %v6950_v29  ;;  %v6957_v13 = vmul.f32 %v8278_v41, %v6912_v27  ;;  %vm6963_vm13 = vweird.f32 %v8278_v41 }
0x20c0   : > { %8279 = vrsqrt.f32 %v6913_v51  ;;  %vm6964_vm3 = vmor %vm6962_vm14, %vm6963_vm13  ;;  %v7034_v46 = vadd.f32 %v7026_v60, %v7018_v63  ;;  %vm6972_vm5 = vweird.f32 %v6913_v51 }
0x20c1   : > { %v6955_v62 = vsel %vm6954_vm15, %v8276_v58, %v6951_v2  ;;  %v6958_v57 = vmul.f32 %v8278_v41, %v6957_v13 }
0x20c2   : > { %v6999_v55 = vmul.f32 %v6955_v62, %v10993_v11  ;;  %v7030_v62 = vld [vmem:[%s11036_s28 + $0x30] sm:$0xff] }
0x20c3   : > { %v6959_v59 = vmul.f32 0.5, %v6958_v57 }
0x20c4   : > { %v7009_v33 = vmul.f32 %v11021_v22, %v6999_v55 }
0x20c5   : > { %v6960_v40 = vsub.f32 1.5, %v6959_v59 }
0x20c6   : > { %v8280_v19 = vpop.eup %8279  ;;  %v7019_v38 = vadd.f32 %v11028_v10, %v7009_v33 }
0x20c7   : > { %v6961_v20 = vmul.f32 %v8278_v41, %v6960_v40  ;;  %v6967_v16 = vmul.f32 %v8280_v19, %v6913_v51  ;;  %vm6973_vm8 = vweird.f32 %v8280_v19 }
0x20c8   : > { %v7035_v7 = vadd.f32 %v7027_v21, %v7019_v38  ;;  %vm6974_vm7 = vmor %vm6972_vm5, %vm6973_vm8 }
0x20c9   : > { %v6965_v49 = vsel %vm6964_vm3, %v8278_v41, %v6961_v20  ;;  %v6968_v11 = vmul.f32 %v8280_v19, %v6967_v16 }
0x20ca   : > { %v7045_v32 = vpack.c.bf16 %v7035_v7, %v7034_v46  ;;  %v7000_v26 = vmul.f32 %v6965_v49, %v10999_v36 }
0x20cb   : > { %v6969_v30 = vmul.f32 0.5, %v6968_v11 }
0x20cc   : > { %7728 = vmatmul.msk.bf16.gmra.mxu0 %vm484_vm1, %v7045_v32  ;;  %v7010_v17 = vmul.f32 %v11021_v22, %v7000_v26 }
0x20cd   : > { %v6970_v23 = vsub.f32 1.5, %v6969_v30 }
0x20ce   : > { %v7020_v56 = vadd.f32 %v11028_v10, %v7010_v17 }
0x20cf   : > { %v6971_v1 = vmul.f32 %v8280_v19, %v6970_v23 }
0x20d0   : > { %v7036_v42 = vadd.f32 %v7028_v28, %v7020_v56 }
0x20d1   : > { %v6975_v53 = vsel %vm6974_vm7, %v8280_v19, %v6971_v1 }
0x20d2   : > { %v7001_v6 = vmul.f32 %v6975_v53, %v11005_v12 }
0x20d4   : > { %v7011_v3 = vmul.f32 %v11021_v22, %v7001_v6 }
0x20d6   : > { %v7021_v36 = vadd.f32 %v11028_v10, %v7011_v3 }
0x20d8   : > { %v7037_v48 = vadd.f32 %v7029_v35, %v7021_v36 }
0x20da   : > { %v7046_v39 = vpack.c.bf16 %v7037_v48, %v7036_v42 }
0x20dc   : > { %7729 = vmatmul.msk.bf16.gmra.mxu0 %vm484_vm1, %v7046_v39 }
0x20e7   : > { %v6896_v14 = vpop.xlane.xlu0 %6895 }
0x20e8   : > { %v6906_v31 = vmul.f32 %v6896_v14, %v8395_v44 }
0x20ea   : > { %v6914_v12 = vadd.f32 1e-06, %v6906_v31 }
0x20eb   : > { %v7081_v9 = vpop.f32.mrf.mxu0 }
0x20ec   : > { %8281 = vrsqrt.f32 %v6914_v12  ;;  %7101 = vst [vmem:[%s11087_s15] sm:$0xff] %v7081_v9  ;;  %vm6982_vm2 = vweird.f32 %v6914_v12 }
0x20ef   : > { %v6899_v24 = vpop.xlane.xlu1 %6898 }
0x20f0   : > { %v6907_v54 = vmul.f32 %v6899_v24, %v8395_v44 }
0x20f2   : > { %v8282_v52 = vpop.eup %8281  ;;  %v6915_v0 = vadd.f32 1e-06, %v6907_v54 }
0x20f3   : > { %v6977_v8 = vmul.f32 %v8282_v52, %v6914_v12  ;;  %v7083_v15 = vpop.f32.mrf.mxu0  ;;  %vm6983_vm11 = vweird.f32 %v8282_v52 }
0x20f4   : > { %8283 = vrsqrt.f32 %v6915_v0  ;;  %7102 = vst [vmem:[%s11087_s15 + $0x8] sm:$0xff] %v7083_v15  ;;  %vm6984_vm10 = vmor %vm6982_vm2, %vm6983_vm11  ;;  %vm6992_vm12 = vweird.f32 %v6915_v0 }
0x20f5   : > { %v6978_v58 = vmul.f32 %v8282_v52, %v6977_v8 }
0x20f7   : > { %v6979_v27 = vmul.f32 0.5, %v6978_v58 }
0x20f9   : > { %v6980_v43 = vsub.f32 1.5, %v6979_v27 }
0x20fa   : > { %v8284_v61 = vpop.eup %8283 }
0x20fb   : > { %v6981_v47 = vmul.f32 %v8282_v52, %v6980_v43  ;;  %v6987_v4 = vmul.f32 %v8284_v61, %v6915_v0  ;;  %vm6993_vm9 = vweird.f32 %v8284_v61 }
0x20fc   : > { %vm6994_vm6 = vmor %vm6992_vm12, %vm6993_vm9 }
0x20fd   : > { %v6985_v50 = vsel %vm6984_vm10, %v8282_v52, %v6981_v47  ;;  %v6988_v34 = vmul.f32 %v8284_v61, %v6987_v4 }
0x20fe   : > { %v7002_v5 = vmul.f32 %v6985_v50, %v11047_v18  ;;  %v7031_v18 = vld [vmem:[%s11036_s28 + $0x38] sm:$0xff] }
0x20ff   : > { %v6989_v44 = vmul.f32 0.5, %v6988_v34 }
0x2100   : > { %v7012_v41 = vmul.f32 %v11021_v22, %v7002_v5 }
0x2101   : > { %v6990_v45 = vsub.f32 1.5, %v6989_v44 }
0x2102   : > { %v7022_v25 = vadd.f32 %v11028_v10, %v7012_v41 }
0x2103   : > { %v6991_v29 = vmul.f32 %v8284_v61, %v6990_v45 }
0x2104   : > { %v7038_v55 = vadd.f32 %v7030_v62, %v7022_v25 }
0x2105   : > { %v6995_v51 = vsel %vm6994_vm6, %v8284_v61, %v6991_v29 }
0x2106   : > { %v7003_v2 = vmul.f32 %v6995_v51, %v11054_v37 }
0x2108   : > { %v7013_v13 = vmul.f32 %v11021_v22, %v7003_v2 }
0x210a   : > { %v7023_v57 = vadd.f32 %v11028_v10, %v7013_v13 }
0x210c   : > { %v7039_v59 = vadd.f32 %v7031_v18, %v7023_v57 }
0x210e   : > { %v7047_v33 = vpack.c.bf16 %v7039_v59, %v7038_v55 }
0x2110   : > { %7730 = vmatmul.msk.bf16.gmra.mxu0 %vm484_vm1, %v7047_v33 }
0x2149   : > { %v7086_v63 = vpop.f32.mrf.mxu0 }
0x214a   : > { %7103 = vst [vmem:[%s11087_s15 + $0x10] sm:$0xff] %v7086_v63 }
0x2151   : > { %v7088_v40 = vpop.f32.mrf.mxu0 }
0x2152   : > { %7104 = vst [vmem:[%s11087_s15 + $0x18] sm:$0xff] %v7088_v40 }
0x2159   : > { %v7091_v37 = vpop.f32.mrf.mxu0 }
0x215a   : > { %7105 = vst [vmem:[%s11087_s15 + $0x20] sm:$0xff] %v7091_v37 }
0x2161   : > { %v7093_v22 = vpop.f32.mrf.mxu0 }
0x2162   : > { %7106 = vst [vmem:[%s11087_s15 + $0x28] sm:$0xff] %v7093_v22 }
0x218d   : > { %v7096_v60 = vpop.f32.mrf.mxu0 }
0x218e   : > { %7107 = vst [vmem:[%s11087_s15 + $0x30] sm:$0xff] %v7096_v60 }
0x2195   : > { %v7098_v21 = vpop.f32.mrf.mxu0 }
0x2196   : > { %7108 = vst [vmem:[%s11087_s15 + $0x38] sm:$0xff] %v7098_v21 }
0x2197 PF: > { %s18_s27 = sadd.s32 1, %s8295_s27  }
0x2198   : > { %p15_p5 = scmp.ge.s32.totalorder %s18_s27, 4  }
0x219a   :  { %17 = sbr.rel (!%p15_p5) target bundleno = 1 (0x1), region = 106 }

</bundles_post_ra>
